<compile_context>
chip_gen: v6e
topology: v6e:2x2x1
jax: 0.10.0
libtpu: 0.0.40
codegen_flags: <defaults>
</compile_context>

<pallas_src>
import functools

import numpy as np
import jax
import jax.numpy as jnp
from jax import lax
from jax.experimental import pallas as pl
from jax.experimental.pallas import tpu as pltpu

_EPS = 1e-5


# ------------------------------- Pallas kernel ------------------------------

def _upproject_kernel(x_ref, w1_ref, t1_ref, w2_ref, t2_ref, o_ref, a_ref,
                      *, H, W, Cin, Cout, G):
    """Fully fused UpProject forward for one batch element.

    x_ref  : (1, (H+3)*(W+2), Cin) f32   zero-padded input, rows flattened
    w1_ref : (9, Cin, 8*Cout)      bf16  8 convs packed along N, BN1 scales folded
    t1_ref : (1, 8*Cout)           f32   folded conv bias + BN1 shift (packed)
    w2_ref : (9, 4*Cout, 4*Cout)   bf16  conv3 in sub-pixel form, bn2 scale folded
    t2_ref : (1, 4*Cout)           f32   folded conv3 bias + bn2 shift (tiled x4)
    o_ref  : (1, H*(W+2), 4*Cout)  f32   4 output sub-grids channel-packed; the
                                         2 pad columns per row are garbage rows
                                         the wrapper strips
    a_ref  : VMEM (rows, 4*Cout)   f32   branch-1 activation slab with zero ring
    """
    Wp = W + 2
    M = H * Wp
    C4 = 4 * Cout
    f32 = jnp.float32

    # Zero only the slab rows conv3's padding reads but the interior store
    # below never writes (top ring + bottom ring + tail).  Re-done every grid
    # step -> correct under any grid order / core sharding; costs a handful of
    # tiny rows instead of full-scratch memsets.
    head = G + Wp + 1                      # sublane-aligned by construction of G
    a_ref[pl.ds(0, head), :] = jnp.zeros((head, C4), f32)
    tail = a_ref.shape[0] - (head + M)
    a_ref[pl.ds(head + M, tail), :] = jnp.zeros((tail, C4), f32)

    # ---- stage 1: the eight up-projection convs -----------------------------
    # 9 taps, each a (H*Wp, Cin) @ (Cin, 8*Cout) matmul with bf16 operands and
    # f32 accumulation, value-accumulated (one store at the end, no ref RMW).
    acc1 = None
    for di in range(3):
        for dj in range(3):
            patch = x_ref[0, pl.ds(di * Wp + dj, M), :].astype(jnp.bfloat16)
            part = jnp.dot(patch, w1_ref[di * 3 + dj],
                           preferred_element_type=f32)
            acc1 = part if acc1 is None else acc1 + part
    vals = acc1 + t1_ref[...]              # (M, 8*Cout): bias + BN shift, all 8 parts

    # Branch 1: relu(bn1_1(.)) with the pad-column garbage rows masked to zero
    # (they land in the slab's ring, i.e. conv3's zero padding), then ONE
    # aligned contiguous store into the slab interior.
    col = lax.broadcasted_iota(jnp.int32, (M, 1), 0) % Wp
    b1 = jnp.where(col < W, jnp.maximum(vals[:, :C4], 0.0), 0.0)
    a_ref[pl.ds(head, M), :] = b1

    # ---- stage 2: conv3 + bn2 (sub-pixel form) + branch-2 residual + ReLU ----
    # Seed with the branch-2 residual (bn1_2 parts) and the folded conv3 bias /
    # bn2 shift; 9 tap matmuls on the channel-packed parts; single final store.
    acc2 = vals[:, C4:] + t2_ref[...]
    for di in range(3):
        for dj in range(3):
            patch = a_ref[pl.ds(G + di * Wp + dj, M), :].astype(jnp.bfloat16)
            acc2 = acc2 + jnp.dot(patch, w2_ref[di * 3 + dj],
                                  preferred_element_type=f32)
    o_ref[0] = jnp.maximum(acc2, 0.0)


# ------------------------------ glue helpers --------------------------------

def _fold_bn(gamma, beta, mean, var):
    s = gamma / jnp.sqrt(var + _EPS)
    return s, beta - mean * s


def _embed_3x3(w):
    # (kh, kw, Cin, Cout) -> (3, 3, Cin, Cout), anchored top-left.
    kh, kw = w.shape[0], w.shape[1]
    return jnp.pad(w, ((0, 3 - kh), (0, 3 - kw), (0, 0), (0, 0)))


def _subpixel_tap(out_par, part_par, delta):
    """3x3-tap index (0..2) feeding output parity `out_par` from the part with
    parity `part_par` at part-grid offset `delta` (-1/0/+1); None if unused."""
    for d in (-1, 0, 1):
        if (out_par + d) % 2 == part_par and (out_par + d - part_par) // 2 == delta:
            return d + 1
    return None


def _interleave_2x(tl, tr, bl, br):
    # (reference only) Matches PyTorch stack/permute/view:
    # out[2i,2j]=tl, [2i,2j+1]=tr, [2i+1,2j]=bl, [2i+1,2j+1]=br.
    B, H, W, C = tl.shape
    top = jnp.stack([tl, tr], axis=3).reshape(B, H, 2 * W, C)
    bot = jnp.stack([bl, br], axis=3).reshape(B, H, 2 * W, C)
    return jnp.stack([top, bot], axis=2).reshape(B, 2 * H, 2 * W, C)


# ------------------------------ forward pass --------------------------------

def upproject_forward(x_nchw, p):
    B, Cin, H, W = x_nchw.shape
    Cout = p["b1_1"].shape[0]
    C4, C8 = 4 * Cout, 8 * Cout
    Wp = W + 2
    M = H * Wp
    G = (-(Wp + 1)) % 8                       # aligns the branch-1 interior store
    A_ROWS = -(-(G + 2 * Wp + 2 + M) // 8) * 8   # covers every tap window read

    # NCHW -> NHWC, pad the conv halo once (top 1 / bottom 2 / left 1 / right 1;
    # the extra bottom row keeps every tap window inside the slab), flatten the
    # spatial dims so each tap is a contiguous 1-D window.
    # TODO(synk): at production sizes move this pad into the kernel (DMA into a
    # zero-ringed VMEM slab) to avoid the extra HBM copy of the activation.
    x = jnp.transpose(x_nchw, (0, 2, 3, 1)).astype(jnp.float32)
    xflat = jnp.pad(x, ((0, 0), (1, 2), (1, 1), (0, 0))).reshape(
        B, (H + 3) * Wp, Cin)

    s11, t11 = _fold_bn(p["bn1_1_gamma"], p["bn1_1_beta"], p["bn1_1_mean"], p["bn1_1_var"])
    s12, t12 = _fold_bn(p["bn1_2_gamma"], p["bn1_2_beta"], p["bn1_2_mean"], p["bn1_2_var"])
    s2, t2 = _fold_bn(p["bn2_gamma"], p["bn2_beta"], p["bn2_mean"], p["bn2_var"])

    # --- stage-1 weights: 8 convs embedded into 3x3 taps, BN folded, packed
    #     along the output-channel (lane) dimension -> (9, Cin, 8*Cout), bf16.
    names = ["1_1", "1_2", "1_3", "1_4", "2_1", "2_2", "2_3", "2_4"]
    w_parts, t_parts = [], []
    for idx, nm in enumerate(names):
        s, t = (s11, t11) if idx < 4 else (s12, t12)
        w_parts.append(_embed_3x3(p["w" + nm]) * s)                   # (3,3,Cin,Cout)
        t_parts.append(p["b" + nm] * s + t)
    w1 = jnp.stack(w_parts, axis=3).reshape(9, Cin, C8).astype(jnp.bfloat16)
    t1 = jnp.stack(t_parts, axis=0).reshape(1, C8)

    # --- stage-2 weights: conv3 (pad 1) on the 2x-interleaved branch-1 image,
    #     re-expressed in sub-pixel form: per 3x3 tap a (4*Cout, 4*Cout) block
    #     matrix maps the 4 channel-packed parts (r,s) to the 4 channel-packed
    #     output sub-grids (p,q).  bn2 scale folded in.  bf16.
    w3f = p["w3"] * s2                                                # (3,3,Cout,Cout)
    zero_blk = jnp.zeros((Cout, Cout), jnp.float32)
    taps = []
    for ti in range(3):
        for tj in range(3):
            rows = []
            for r in range(2):              # part parity along H
                for sc in range(2):         # part parity along W
                    cols = []
                    for pp in range(2):     # output parity along H
                        for qq in range(2): # output parity along W
                            ku = _subpixel_tap(pp, r, ti - 1)
                            kv = _subpixel_tap(qq, sc, tj - 1)
                            cols.append(zero_blk if ku is None or kv is None
                                        else w3f[ku, kv])
                    rows.append(jnp.concatenate(cols, axis=1))
            taps.append(jnp.concatenate(rows, axis=0))
    w2 = jnp.stack(taps, axis=0).astype(jnp.bfloat16)                 # (9, 4C, 4C)
    t2p = jnp.tile(p["b3"] * s2 + t2, 4).reshape(1, C4)

    kernel = functools.partial(_upproject_kernel, H=H, W=W, Cin=Cin, Cout=Cout, G=G)
    out = pl.pallas_call(
        kernel,
        out_shape=jax.ShapeDtypeStruct((B, M, C4), jnp.float32),
        grid_spec=pltpu.PrefetchScalarGridSpec(
            num_scalar_prefetch=0,
            grid=(B,),
            in_specs=[
                pl.BlockSpec((1, (H + 3) * Wp, Cin), lambda b: (b, 0, 0)),
                # Grid-invariant operands (constant index maps).  At production
                # weight sizes, mark them pipeline_mode=pl.Buffered(1) to drop
                # the double buffer; negligible here.
                pl.BlockSpec((9, Cin, C8), lambda b: (0, 0, 0)),
                pl.BlockSpec((1, C8), lambda b: (0, 0)),
                pl.BlockSpec((9, C4, C4), lambda b: (0, 0, 0)),
                pl.BlockSpec((1, C4), lambda b: (0, 0)),
            ],
            out_specs=pl.BlockSpec((1, M, C4), lambda b: (b, 0, 0)),
            scratch_shapes=[pltpu.VMEM((A_ROWS, C4), jnp.float32)],   # branch-1 slab
        ),
        compiler_params=pltpu.CompilerParams(
            dimension_semantics=("parallel",),
            vmem_limit_bytes=32 * 1024 * 1024),
    )(xflat, w1, t1, w2, t2p)

    # out[b, i*Wp + j, (p*2+q)*Cout + c] -> NCHW[b, c, 2i+p, 2j+q]; the 2 pad
    # (garbage) columns per row are stripped while de-interleaving.
    out = out.reshape(B, H, Wp, 2, 2, Cout)[:, :, :W]
    out = jnp.transpose(out, (0, 5, 1, 3, 2, 4)).reshape(B, Cout, 2 * H, 2 * W)
    return out


# --------------------------- parameters & reference -------------------------

def init_params(key, cin, cout):
    keys = jax.random.split(key, 32)
    ki = iter(keys)

    def conv_w(kh, kw, ci, co):
        bound = 1.0 / np.sqrt(ci * kh * kw)
        return jax.random.uniform(next(ki), (kh, kw, ci, co), jnp.float32, -bound, bound)

    def conv_b(kh, kw, ci, co):
        bound = 1.0 / np.sqrt(ci * kh * kw)
        return jax.random.uniform(next(ki), (co,), jnp.float32, -bound, bound)

    p = {}
    shapes = {"1_1": (3, 3), "1_2": (2, 3), "1_3": (3, 2), "1_4": (2, 2),
              "2_1": (3, 3), "2_2": (2, 3), "2_3": (3, 2), "2_4": (2, 2)}
    for nm, (kh, kw) in shapes.items():
        p["w" + nm] = conv_w(kh, kw, cin, cout)
        p["b" + nm] = conv_b(kh, kw, cin, cout)
    p["w3"] = conv_w(3, 3, cout, cout)
    p["b3"] = conv_b(3, 3, cout, cout)
    for bn in ("bn1_1", "bn1_2", "bn2"):
        p[bn + "_gamma"] = jax.random.uniform(next(ki), (cout,), jnp.float32, 0.5, 1.5)
        p[bn + "_beta"] = 0.1 * jax.random.normal(next(ki), (cout,), jnp.float32)
        p[bn + "_mean"] = 0.1 * jax.random.normal(next(ki), (cout,), jnp.float32)
        p[bn + "_var"] = jax.random.uniform(next(ki), (cout,), jnp.float32, 0.5, 1.5)
    return p


def reference_forward(x_nchw, p):
    x = jnp.transpose(x_nchw, (0, 2, 3, 1)).astype(jnp.float32)

    def conv(inp, w, b, pad_hw):
        return lax.conv_general_dilated(
            inp, w, (1, 1), pad_hw,
            dimension_numbers=("NHWC", "HWIO", "NHWC"),
            precision=lax.Precision.HIGHEST) + b

    def bn(v, nm):
        return ((v - p[nm + "_mean"]) / jnp.sqrt(p[nm + "_var"] + _EPS)
                * p[nm + "_gamma"] + p[nm + "_beta"])

    # F.pad(x,(l,r,t,b)) -> spatial padding ((t,b),(l,r)) in (H,W) order
    o11 = conv(x, p["w1_1"], p["b1_1"], ((1, 1), (1, 1)))
    o12 = conv(x, p["w1_2"], p["b1_2"], ((1, 0), (1, 1)))
    o13 = conv(x, p["w1_3"], p["b1_3"], ((1, 1), (1, 0)))
    o14 = conv(x, p["w1_4"], p["b1_4"], ((1, 0), (1, 0)))
    o21 = conv(x, p["w2_1"], p["b2_1"], ((1, 1), (1, 1)))
    o22 = conv(x, p["w2_2"], p["b2_2"], ((1, 0), (1, 1)))
    o23 = conv(x, p["w2_3"], p["b2_3"], ((1, 1), (1, 0)))
    o24 = conv(x, p["w2_4"], p["b2_4"], ((1, 0), (1, 0)))

    A1 = _interleave_2x(o11, o12, o13, o14)
    A2 = _interleave_2x(o21, o22, o23, o24)

    out1 = jnp.maximum(bn(A1, "bn1_1"), 0.0)
    out1 = conv(out1, p["w3"], p["b3"], ((1, 1), (1, 1)))
    out1 = bn(out1, "bn2")
    out2 = bn(A2, "bn1_2")
    out = jnp.maximum(out1 + out2, 0.0)
    return jnp.transpose(out, (0, 3, 1, 2))


# ----------------------------------- main ------------------------------------

if __name__ == "__main__":
    B, Cin, Cout, H, W = 2, 4, 8, 16, 16
    key = jax.random.PRNGKey(0)
    kx, kp = jax.random.split(key)
    params = init_params(kp, Cin, Cout)
    x = jax.random.normal(kx, (B, Cin, H, W), jnp.float32)   # NCHW, like PyTorch

    out = jax.jit(upproject_forward)(x, params)
    out = jax.block_until_ready(out)

    assert out.shape == (B, Cout, 2 * H, 2 * W), out.shape
    ref = reference_forward(x, params)
    # Tolerance accounts for bf16 MXU operands (f32 accumulation) vs. the f32
    # HIGHEST-precision reference convolutions.  A wrong tap / sub-pixel
    # mapping would produce O(1) errors, far above this, so structural bugs
    # are still caught.
    np.testing.assert_allclose(np.asarray(out), np.asarray(ref), rtol=5e-2, atol=5e-2)
    print("KERNEL_OK")
</pallas_src>

<mosaic_0001>
module attributes {stable_mosaic.version = 11 : i64} {
  func.func @_upproject_kernel(%arg0: i32, %arg1: memref<1x342x4xf32, #tpu.memory_space<vmem>>, %arg2: memref<9x4x64xbf16, #tpu.memory_space<vmem>>, %arg3: memref<1x64xf32, #tpu.memory_space<vmem>>, %arg4: memref<9x32x32xbf16, #tpu.memory_space<vmem>>, %arg5: memref<1x32xf32, #tpu.memory_space<vmem>>, %arg6: memref<1x288x32xf32, #tpu.memory_space<vmem>>, %arg7: memref<336x32xf32, #tpu.memory_space<vmem>>) attributes {dimension_semantics = [#tpu.dimension_semantics<parallel>], iteration_bounds = array<i64: 2>, scalar_prefetch = 0 : i64, scratch_operands = 1 : i64, tpu.core_type = #tpu.core_type<tc>, window_params = [{transform_indices = @transform_0, window_bounds = array<i64: 1, 342, 4>}, {pipeline_mode = #tpu.pipeline_mode<synchronous>, transform_indices = @transform_1, window_bounds = array<i64: 9, 4, 64>}, {pipeline_mode = #tpu.pipeline_mode<synchronous>, transform_indices = @transform_2, window_bounds = array<i64: 1, 64>}, {pipeline_mode = #tpu.pipeline_mode<synchronous>, transform_indices = @transform_3, window_bounds = array<i64: 9, 32, 32>}, {pipeline_mode = #tpu.pipeline_mode<synchronous>, transform_indices = @transform_4, window_bounds = array<i64: 1, 32>}, {transform_indices = @transform_5, window_bounds = array<i64: 1, 288, 32>}]} {
    %cst = arith.constant 0.000000e+00 : f32
    %0 = vector.broadcast %cst : f32 to vector<24x32xf32>
    %c0 = arith.constant 0 : index
    %c0_0 = arith.constant 0 : index
    %1 = vector.load %arg7[%c0, %c0_0] : memref<336x32xf32, #tpu.memory_space<vmem>>, vector<24x32xf32>
    tpu.vector_store %arg7[%c0, %c0_0], %0 {strides = array<i32>} : memref<336x32xf32, #tpu.memory_space<vmem>>, vector<24x32xf32>,
    %cst_1 = arith.constant 0.000000e+00 : f32
    %2 = vector.broadcast %cst_1 : f32 to vector<24x32xf32>
    %c312 = arith.constant 312 : index
    %c0_2 = arith.constant 0 : index
    %3 = vector.load %arg7[%c312, %c0_2] : memref<336x32xf32, #tpu.memory_space<vmem>>, vector<24x32xf32>
    tpu.vector_store %arg7[%c312, %c0_2], %2 {strides = array<i32>} : memref<336x32xf32, #tpu.memory_space<vmem>>, vector<24x32xf32>,
    %c0_3 = arith.constant 0 : index
    %c0_4 = arith.constant 0 : index
    %c0_5 = arith.constant 0 : index
    %4 = vector.load %arg1[%c0_3, %c0_4, %c0_5] : memref<1x342x4xf32, #tpu.memory_space<vmem>>, vector<1x288x4xf32>
    %5 = vector.shape_cast %4 : vector<1x288x4xf32> to vector<288x4xf32>
    %6 = arith.truncf %5 : vector<288x4xf32> to vector<288x4xbf16>
    %c0_6 = arith.constant 0 : index
    %c0_7 = arith.constant 0 : index
    %c0_8 = arith.constant 0 : index
    %7 = vector.load %arg2[%c0_6, %c0_7, %c0_8] : memref<9x4x64xbf16, #tpu.memory_space<vmem>>, vector<1x4x64xbf16>
    %8 = vector.shape_cast %7 : vector<1x4x64xbf16> to vector<4x64xbf16>
    %cst_9 = arith.constant dense<0.000000e+00> : vector<288x64xf32>
    %9 = tpu.matmul %6, %8, %cst_9 {dimension_numbers = #tpu.dot_dimension_numbers<[1], [0], [0], [1], [0, 0, 1, 1], [], []>} : vector<288x4xbf16>, vector<4x64xbf16>, vector<288x64xf32> -> vector<288x64xf32>
    %c0_10 = arith.constant 0 : index
    %c1 = arith.constant 1 : index
    %c0_11 = arith.constant 0 : index
    %10 = vector.load %arg1[%c0_10, %c1, %c0_11] : memref<1x342x4xf32, #tpu.memory_space<vmem>>, vector<1x288x4xf32>
    %11 = vector.shape_cast %10 : vector<1x288x4xf32> to vector<288x4xf32>
    %12 = arith.truncf %11 : vector<288x4xf32> to vector<288x4xbf16>
    %c1_12 = arith.constant 1 : index
    %c0_13 = arith.constant 0 : index
    %c0_14 = arith.constant 0 : index
    %13 = vector.load %arg2[%c1_12, %c0_13, %c0_14] : memref<9x4x64xbf16, #tpu.memory_space<vmem>>, vector<1x4x64xbf16>
    %14 = vector.shape_cast %13 : vector<1x4x64xbf16> to vector<4x64xbf16>
    %cst_15 = arith.constant dense<0.000000e+00> : vector<288x64xf32>
    %15 = tpu.matmul %12, %14, %cst_15 {dimension_numbers = #tpu.dot_dimension_numbers<[1], [0], [0], [1], [0, 0, 1, 1], [], []>} : vector<288x4xbf16>, vector<4x64xbf16>, vector<288x64xf32> -> vector<288x64xf32>
    %16 = arith.addf %9, %15 : vector<288x64xf32>
    %c0_16 = arith.constant 0 : index
    %c2 = arith.constant 2 : index
    %c0_17 = arith.constant 0 : index
    %17 = vector.load %arg1[%c0_16, %c2, %c0_17] : memref<1x342x4xf32, #tpu.memory_space<vmem>>, vector<1x288x4xf32>
    %18 = vector.shape_cast %17 : vector<1x288x4xf32> to vector<288x4xf32>
    %19 = arith.truncf %18 : vector<288x4xf32> to vector<288x4xbf16>
    %c2_18 = arith.constant 2 : index
    %c0_19 = arith.constant 0 : index
    %c0_20 = arith.constant 0 : index
    %20 = vector.load %arg2[%c2_18, %c0_19, %c0_20] : memref<9x4x64xbf16, #tpu.memory_space<vmem>>, vector<1x4x64xbf16>
    %21 = vector.shape_cast %20 : vector<1x4x64xbf16> to vector<4x64xbf16>
    %cst_21 = arith.constant dense<0.000000e+00> : vector<288x64xf32>
    %22 = tpu.matmul %19, %21, %cst_21 {dimension_numbers = #tpu.dot_dimension_numbers<[1], [0], [0], [1], [0, 0, 1, 1], [], []>} : vector<288x4xbf16>, vector<4x64xbf16>, vector<288x64xf32> -> vector<288x64xf32>
    %23 = arith.addf %16, %22 : vector<288x64xf32>
    %c0_22 = arith.constant 0 : index
    %c18 = arith.constant 18 : index
    %c0_23 = arith.constant 0 : index
    %24 = vector.load %arg1[%c0_22, %c18, %c0_23] : memref<1x342x4xf32, #tpu.memory_space<vmem>>, vector<1x288x4xf32>
    %25 = vector.shape_cast %24 : vector<1x288x4xf32> to vector<288x4xf32>
    %26 = arith.truncf %25 : vector<288x4xf32> to vector<288x4xbf16>
    %c3 = arith.constant 3 : index
    %c0_24 = arith.constant 0 : index
    %c0_25 = arith.constant 0 : index
    %27 = vector.load %arg2[%c3, %c0_24, %c0_25] : memref<9x4x64xbf16, #tpu.memory_space<vmem>>, vector<1x4x64xbf16>
    %28 = vector.shape_cast %27 : vector<1x4x64xbf16> to vector<4x64xbf16>
    %cst_26 = arith.constant dense<0.000000e+00> : vector<288x64xf32>
    %29 = tpu.matmul %26, %28, %cst_26 {dimension_numbers = #tpu.dot_dimension_numbers<[1], [0], [0], [1], [0, 0, 1, 1], [], []>} : vector<288x4xbf16>, vector<4x64xbf16>, vector<288x64xf32> -> vector<288x64xf32>
    %30 = arith.addf %23, %29 : vector<288x64xf32>
    %c0_27 = arith.constant 0 : index
    %c19 = arith.constant 19 : index
    %c0_28 = arith.constant 0 : index
    %31 = vector.load %arg1[%c0_27, %c19, %c0_28] : memref<1x342x4xf32, #tpu.memory_space<vmem>>, vector<1x288x4xf32>
    %32 = vector.shape_cast %31 : vector<1x288x4xf32> to vector<288x4xf32>
    %33 = arith.truncf %32 : vector<288x4xf32> to vector<288x4xbf16>
    %c4 = arith.constant 4 : index
    %c0_29 = arith.constant 0 : index
    %c0_30 = arith.constant 0 : index
    %34 = vector.load %arg2[%c4, %c0_29, %c0_30] : memref<9x4x64xbf16, #tpu.memory_space<vmem>>, vector<1x4x64xbf16>
    %35 = vector.shape_cast %34 : vector<1x4x64xbf16> to vector<4x64xbf16>
    %cst_31 = arith.constant dense<0.000000e+00> : vector<288x64xf32>
    %36 = tpu.matmul %33, %35, %cst_31 {dimension_numbers = #tpu.dot_dimension_numbers<[1], [0], [0], [1], [0, 0, 1, 1], [], []>} : vector<288x4xbf16>, vector<4x64xbf16>, vector<288x64xf32> -> vector<288x64xf32>
    %37 = arith.addf %30, %36 : vector<288x64xf32>
    %c0_32 = arith.constant 0 : index
    %c20 = arith.constant 20 : index
    %c0_33 = arith.constant 0 : index
    %38 = vector.load %arg1[%c0_32, %c20, %c0_33] : memref<1x342x4xf32, #tpu.memory_space<vmem>>, vector<1x288x4xf32>
    %39 = vector.shape_cast %38 : vector<1x288x4xf32> to vector<288x4xf32>
    %40 = arith.truncf %39 : vector<288x4xf32> to vector<288x4xbf16>
    %c5 = arith.constant 5 : index
    %c0_34 = arith.constant 0 : index
    %c0_35 = arith.constant 0 : index
    %41 = vector.load %arg2[%c5, %c0_34, %c0_35] : memref<9x4x64xbf16, #tpu.memory_space<vmem>>, vector<1x4x64xbf16>
    %42 = vector.shape_cast %41 : vector<1x4x64xbf16> to vector<4x64xbf16>
    %cst_36 = arith.constant dense<0.000000e+00> : vector<288x64xf32>
    %43 = tpu.matmul %40, %42, %cst_36 {dimension_numbers = #tpu.dot_dimension_numbers<[1], [0], [0], [1], [0, 0, 1, 1], [], []>} : vector<288x4xbf16>, vector<4x64xbf16>, vector<288x64xf32> -> vector<288x64xf32>
    %44 = arith.addf %37, %43 : vector<288x64xf32>
    %c0_37 = arith.constant 0 : index
    %c36 = arith.constant 36 : index
    %c0_38 = arith.constant 0 : index
    %45 = vector.load %arg1[%c0_37, %c36, %c0_38] : memref<1x342x4xf32, #tpu.memory_space<vmem>>, vector<1x288x4xf32>
    %46 = vector.shape_cast %45 : vector<1x288x4xf32> to vector<288x4xf32>
    %47 = arith.truncf %46 : vector<288x4xf32> to vector<288x4xbf16>
    %c6 = arith.constant 6 : index
    %c0_39 = arith.constant 0 : index
    %c0_40 = arith.constant 0 : index
    %48 = vector.load %arg2[%c6, %c0_39, %c0_40] : memref<9x4x64xbf16, #tpu.memory_space<vmem>>, vector<1x4x64xbf16>
    %49 = vector.shape_cast %48 : vector<1x4x64xbf16> to vector<4x64xbf16>
    %cst_41 = arith.constant dense<0.000000e+00> : vector<288x64xf32>
    %50 = tpu.matmul %47, %49, %cst_41 {dimension_numbers = #tpu.dot_dimension_numbers<[1], [0], [0], [1], [0, 0, 1, 1], [], []>} : vector<288x4xbf16>, vector<4x64xbf16>, vector<288x64xf32> -> vector<288x64xf32>
    %51 = arith.addf %44, %50 : vector<288x64xf32>
    %c0_42 = arith.constant 0 : index
    %c37 = arith.constant 37 : index
    %c0_43 = arith.constant 0 : index
    %52 = vector.load %arg1[%c0_42, %c37, %c0_43] : memref<1x342x4xf32, #tpu.memory_space<vmem>>, vector<1x288x4xf32>
    %53 = vector.shape_cast %52 : vector<1x288x4xf32> to vector<288x4xf32>
    %54 = arith.truncf %53 : vector<288x4xf32> to vector<288x4xbf16>
    %c7 = arith.constant 7 : index
    %c0_44 = arith.constant 0 : index
    %c0_45 = arith.constant 0 : index
    %55 = vector.load %arg2[%c7, %c0_44, %c0_45] : memref<9x4x64xbf16, #tpu.memory_space<vmem>>, vector<1x4x64xbf16>
    %56 = vector.shape_cast %55 : vector<1x4x64xbf16> to vector<4x64xbf16>
    %cst_46 = arith.constant dense<0.000000e+00> : vector<288x64xf32>
    %57 = tpu.matmul %54, %56, %cst_46 {dimension_numbers = #tpu.dot_dimension_numbers<[1], [0], [0], [1], [0, 0, 1, 1], [], []>} : vector<288x4xbf16>, vector<4x64xbf16>, vector<288x64xf32> -> vector<288x64xf32>
    %58 = arith.addf %51, %57 : vector<288x64xf32>
    %c0_47 = arith.constant 0 : index
    %c38 = arith.constant 38 : index
    %c0_48 = arith.constant 0 : index
    %59 = vector.load %arg1[%c0_47, %c38, %c0_48] : memref<1x342x4xf32, #tpu.memory_space<vmem>>, vector<1x288x4xf32>
    %60 = vector.shape_cast %59 : vector<1x288x4xf32> to vector<288x4xf32>
    %61 = arith.truncf %60 : vector<288x4xf32> to vector<288x4xbf16>
    %c8 = arith.constant 8 : index
    %c0_49 = arith.constant 0 : index
    %c0_50 = arith.constant 0 : index
    %62 = vector.load %arg2[%c8, %c0_49, %c0_50] : memref<9x4x64xbf16, #tpu.memory_space<vmem>>, vector<1x4x64xbf16>
    %63 = vector.shape_cast %62 : vector<1x4x64xbf16> to vector<4x64xbf16>
    %cst_51 = arith.constant dense<0.000000e+00> : vector<288x64xf32>
    %64 = tpu.matmul %61, %63, %cst_51 {dimension_numbers = #tpu.dot_dimension_numbers<[1], [0], [0], [1], [0, 0, 1, 1], [], []>} : vector<288x4xbf16>, vector<4x64xbf16>, vector<288x64xf32> -> vector<288x64xf32>
    %65 = arith.addf %58, %64 : vector<288x64xf32>
    %c0_52 = arith.constant 0 : index
    %c0_53 = arith.constant 0 : index
    %66 = vector.load %arg3[%c0_52, %c0_53] : memref<1x64xf32, #tpu.memory_space<vmem>>, vector<1x64xf32>
    %67 = vector.broadcast %66 : vector<1x64xf32> to vector<288x64xf32>
    %68 = arith.addf %65, %67 : vector<288x64xf32>
    %69 = tpu.iota {dimensions = array<i32: 0>} : vector<288x1xi32>
    %c18_i32 = arith.constant 18 : i32
    %c0_i32 = arith.constant 0 : i32
    %70 = arith.cmpi eq, %c18_i32, %c0_i32 : i32
    %c1_i32 = arith.constant 1 : i32
    %71 = arith.select %70, %c1_i32, %c18_i32 : i32
    %72 = vector.broadcast %71 : i32 to vector<288x1xi32>
    %73 = arith.remsi %69, %72 : vector<288x1xi32>
    %c0_i32_54 = arith.constant 0 : i32
    %74 = vector.broadcast %c0_i32_54 : i32 to vector<288x1xi32>
    %75 = arith.cmpi ne, %73, %74 : vector<288x1xi32>
    %c0_i32_55 = arith.constant 0 : i32
    %76 = vector.broadcast %c0_i32_55 : i32 to vector<288x1xi32>
    %77 = arith.cmpi slt, %73, %76 : vector<288x1xi32>
    %c0_i32_56 = arith.constant 0 : i32
    %78 = arith.cmpi slt, %71, %c0_i32_56 : i32
    %79 = vector.broadcast %78 : i1 to vector<288x1xi1>
    %80 = vector.broadcast %79 : vector<288x1xi1> to vector<288x1xi1>
    %81 = arith.xori %77, %80 : vector<288x1xi1>
    %82 = arith.andi %81, %75 : vector<288x1xi1>
    %83 = vector.broadcast %71 : i32 to vector<288x1xi32>
    %84 = arith.addi %73, %83 : vector<288x1xi32>
    %85 = arith.select %82, %84, %73 : vector<288x1xi1>, vector<288x1xi32>
    %c16_i32 = arith.constant 16 : i32
    %86 = vector.broadcast %c16_i32 : i32 to vector<288x1xi32>
    %87 = arith.cmpi slt, %85, %86 : vector<288x1xi32>
    %88 = vector.extract_strided_slice %68 {offsets = [0, 0], sizes = [288, 32], strides = [1, 1]} : vector<288x64xf32> to vector<288x32xf32>
    %cst_57 = arith.constant 0.000000e+00 : f32
    %89 = vector.broadcast %cst_57 : f32 to vector<288x32xf32>
    %90 = arith.maximumf %88, %89 : vector<288x32xf32>
    %cst_58 = arith.constant 0.000000e+00 : f32
    %91 = vector.shape_cast %87 : vector<288x1xi1> to vector<288x1xi1>
    %92 = vector.broadcast %91 : vector<288x1xi1> to vector<288x32xi1>
    %93 = vector.broadcast %cst_58 : f32 to vector<288x32xf32>
    %94 = arith.select %92, %90, %93 : vector<288x32xi1>, vector<288x32xf32>
    %c24 = arith.constant 24 : index
    %c0_59 = arith.constant 0 : index
    %95 = vector.load %arg7[%c24, %c0_59] : memref<336x32xf32, #tpu.memory_space<vmem>>, vector<288x32xf32>
    tpu.vector_store %arg7[%c24, %c0_59], %94 {strides = array<i32>} : memref<336x32xf32, #tpu.memory_space<vmem>>, vector<288x32xf32>,
    %96 = vector.extract_strided_slice %68 {offsets = [0, 32], sizes = [288, 32], strides = [1, 1]} : vector<288x64xf32> to vector<288x32xf32>
    %c0_60 = arith.constant 0 : index
    %c0_61 = arith.constant 0 : index
    %97 = vector.load %arg5[%c0_60, %c0_61] : memref<1x32xf32, #tpu.memory_space<vmem>>, vector<1x32xf32>
    %98 = vector.broadcast %97 : vector<1x32xf32> to vector<288x32xf32>
    %99 = arith.addf %96, %98 : vector<288x32xf32>
    %c5_62 = arith.constant 5 : index
    %c0_63 = arith.constant 0 : index
    %100 = vector.load %arg7[%c5_62, %c0_63] : memref<336x32xf32, #tpu.memory_space<vmem>>, vector<288x32xf32>
    %101 = arith.truncf %100 : vector<288x32xf32> to vector<288x32xbf16>
    %c0_64 = arith.constant 0 : index
    %c0_65 = arith.constant 0 : index
    %c0_66 = arith.constant 0 : index
    %102 = vector.load %arg4[%c0_64, %c0_65, %c0_66] : memref<9x32x32xbf16, #tpu.memory_space<vmem>>, vector<1x32x32xbf16>
    %103 = vector.shape_cast %102 : vector<1x32x32xbf16> to vector<32x32xbf16>
    %cst_67 = arith.constant dense<0.000000e+00> : vector<288x32xf32>
    %104 = tpu.matmul %101, %103, %cst_67 {dimension_numbers = #tpu.dot_dimension_numbers<[1], [0], [0], [1], [0, 0, 1, 1], [], []>} : vector<288x32xbf16>, vector<32x32xbf16>, vector<288x32xf32> -> vector<288x32xf32>
    %105 = arith.addf %99, %104 : vector<288x32xf32>
    %c6_68 = arith.constant 6 : index
    %c0_69 = arith.constant 0 : index
    %106 = vector.load %arg7[%c6_68, %c0_69] : memref<336x32xf32, #tpu.memory_space<vmem>>, vector<288x32xf32>
    %107 = arith.truncf %106 : vector<288x32xf32> to vector<288x32xbf16>
    %c1_70 = arith.constant 1 : index
    %c0_71 = arith.constant 0 : index
    %c0_72 = arith.constant 0 : index
    %108 = vector.load %arg4[%c1_70, %c0_71, %c0_72] : memref<9x32x32xbf16, #tpu.memory_space<vmem>>, vector<1x32x32xbf16>
    %109 = vector.shape_cast %108 : vector<1x32x32xbf16> to vector<32x32xbf16>
    %cst_73 = arith.constant dense<0.000000e+00> : vector<288x32xf32>
    %110 = tpu.matmul %107, %109, %cst_73 {dimension_numbers = #tpu.dot_dimension_numbers<[1], [0], [0], [1], [0, 0, 1, 1], [], []>} : vector<288x32xbf16>, vector<32x32xbf16>, vector<288x32xf32> -> vector<288x32xf32>
    %111 = arith.addf %105, %110 : vector<288x32xf32>
    %c7_74 = arith.constant 7 : index
    %c0_75 = arith.constant 0 : index
    %112 = vector.load %arg7[%c7_74, %c0_75] : memref<336x32xf32, #tpu.memory_space<vmem>>, vector<288x32xf32>
    %113 = arith.truncf %112 : vector<288x32xf32> to vector<288x32xbf16>
    %c2_76 = arith.constant 2 : index
    %c0_77 = arith.constant 0 : index
    %c0_78 = arith.constant 0 : index
    %114 = vector.load %arg4[%c2_76, %c0_77, %c0_78] : memref<9x32x32xbf16, #tpu.memory_space<vmem>>, vector<1x32x32xbf16>
    %115 = vector.shape_cast %114 : vector<1x32x32xbf16> to vector<32x32xbf16>
    %cst_79 = arith.constant dense<0.000000e+00> : vector<288x32xf32>
    %116 = tpu.matmul %113, %115, %cst_79 {dimension_numbers = #tpu.dot_dimension_numbers<[1], [0], [0], [1], [0, 0, 1, 1], [], []>} : vector<288x32xbf16>, vector<32x32xbf16>, vector<288x32xf32> -> vector<288x32xf32>
    %117 = arith.addf %111, %116 : vector<288x32xf32>
    %c23 = arith.constant 23 : index
    %c0_80 = arith.constant 0 : index
    %118 = vector.load %arg7[%c23, %c0_80] : memref<336x32xf32, #tpu.memory_space<vmem>>, vector<288x32xf32>
    %119 = arith.truncf %118 : vector<288x32xf32> to vector<288x32xbf16>
    %c3_81 = arith.constant 3 : index
    %c0_82 = arith.constant 0 : index
    %c0_83 = arith.constant 0 : index
    %120 = vector.load %arg4[%c3_81, %c0_82, %c0_83] : memref<9x32x32xbf16, #tpu.memory_space<vmem>>, vector<1x32x32xbf16>
    %121 = vector.shape_cast %120 : vector<1x32x32xbf16> to vector<32x32xbf16>
    %cst_84 = arith.constant dense<0.000000e+00> : vector<288x32xf32>
    %122 = tpu.matmul %119, %121, %cst_84 {dimension_numbers = #tpu.dot_dimension_numbers<[1], [0], [0], [1], [0, 0, 1, 1], [], []>} : vector<288x32xbf16>, vector<32x32xbf16>, vector<288x32xf32> -> vector<288x32xf32>
    %123 = arith.addf %117, %122 : vector<288x32xf32>
    %c24_85 = arith.constant 24 : index
    %c0_86 = arith.constant 0 : index
    %124 = vector.load %arg7[%c24_85, %c0_86] : memref<336x32xf32, #tpu.memory_space<vmem>>, vector<288x32xf32>
    %125 = arith.truncf %124 : vector<288x32xf32> to vector<288x32xbf16>
    %c4_87 = arith.constant 4 : index
    %c0_88 = arith.constant 0 : index
    %c0_89 = arith.constant 0 : index
    %126 = vector.load %arg4[%c4_87, %c0_88, %c0_89] : memref<9x32x32xbf16, #tpu.memory_space<vmem>>, vector<1x32x32xbf16>
    %127 = vector.shape_cast %126 : vector<1x32x32xbf16> to vector<32x32xbf16>
    %cst_90 = arith.constant dense<0.000000e+00> : vector<288x32xf32>
    %128 = tpu.matmul %125, %127, %cst_90 {dimension_numbers = #tpu.dot_dimension_numbers<[1], [0], [0], [1], [0, 0, 1, 1], [], []>} : vector<288x32xbf16>, vector<32x32xbf16>, vector<288x32xf32> -> vector<288x32xf32>
    %129 = arith.addf %123, %128 : vector<288x32xf32>
    %c25 = arith.constant 25 : index
    %c0_91 = arith.constant 0 : index
    %130 = vector.load %arg7[%c25, %c0_91] : memref<336x32xf32, #tpu.memory_space<vmem>>, vector<288x32xf32>
    %131 = arith.truncf %130 : vector<288x32xf32> to vector<288x32xbf16>
    %c5_92 = arith.constant 5 : index
    %c0_93 = arith.constant 0 : index
    %c0_94 = arith.constant 0 : index
    %132 = vector.load %arg4[%c5_92, %c0_93, %c0_94] : memref<9x32x32xbf16, #tpu.memory_space<vmem>>, vector<1x32x32xbf16>
    %133 = vector.shape_cast %132 : vector<1x32x32xbf16> to vector<32x32xbf16>
    %cst_95 = arith.constant dense<0.000000e+00> : vector<288x32xf32>
    %134 = tpu.matmul %131, %133, %cst_95 {dimension_numbers = #tpu.dot_dimension_numbers<[1], [0], [0], [1], [0, 0, 1, 1], [], []>} : vector<288x32xbf16>, vector<32x32xbf16>, vector<288x32xf32> -> vector<288x32xf32>
    %135 = arith.addf %129, %134 : vector<288x32xf32>
    %c41 = arith.constant 41 : index
    %c0_96 = arith.constant 0 : index
    %136 = vector.load %arg7[%c41, %c0_96] : memref<336x32xf32, #tpu.memory_space<vmem>>, vector<288x32xf32>
    %137 = arith.truncf %136 : vector<288x32xf32> to vector<288x32xbf16>
    %c6_97 = arith.constant 6 : index
    %c0_98 = arith.constant 0 : index
    %c0_99 = arith.constant 0 : index
    %138 = vector.load %arg4[%c6_97, %c0_98, %c0_99] : memref<9x32x32xbf16, #tpu.memory_space<vmem>>, vector<1x32x32xbf16>
    %139 = vector.shape_cast %138 : vector<1x32x32xbf16> to vector<32x32xbf16>
    %cst_100 = arith.constant dense<0.000000e+00> : vector<288x32xf32>
    %140 = tpu.matmul %137, %139, %cst_100 {dimension_numbers = #tpu.dot_dimension_numbers<[1], [0], [0], [1], [0, 0, 1, 1], [], []>} : vector<288x32xbf16>, vector<32x32xbf16>, vector<288x32xf32> -> vector<288x32xf32>
    %141 = arith.addf %135, %140 : vector<288x32xf32>
    %c42 = arith.constant 42 : index
    %c0_101 = arith.constant 0 : index
    %142 = vector.load %arg7[%c42, %c0_101] : memref<336x32xf32, #tpu.memory_space<vmem>>, vector<288x32xf32>
    %143 = arith.truncf %142 : vector<288x32xf32> to vector<288x32xbf16>
    %c7_102 = arith.constant 7 : index
    %c0_103 = arith.constant 0 : index
    %c0_104 = arith.constant 0 : index
    %144 = vector.load %arg4[%c7_102, %c0_103, %c0_104] : memref<9x32x32xbf16, #tpu.memory_space<vmem>>, vector<1x32x32xbf16>
    %145 = vector.shape_cast %144 : vector<1x32x32xbf16> to vector<32x32xbf16>
    %cst_105 = arith.constant dense<0.000000e+00> : vector<288x32xf32>
    %146 = tpu.matmul %143, %145, %cst_105 {dimension_numbers = #tpu.dot_dimension_numbers<[1], [0], [0], [1], [0, 0, 1, 1], [], []>} : vector<288x32xbf16>, vector<32x32xbf16>, vector<288x32xf32> -> vector<288x32xf32>
    %147 = arith.addf %141, %146 : vector<288x32xf32>
    %c43 = arith.constant 43 : index
    %c0_106 = arith.constant 0 : index
    %148 = vector.load %arg7[%c43, %c0_106] : memref<336x32xf32, #tpu.memory_space<vmem>>, vector<288x32xf32>
    %149 = arith.truncf %148 : vector<288x32xf32> to vector<288x32xbf16>
    %c8_107 = arith.constant 8 : index
    %c0_108 = arith.constant 0 : index
    %c0_109 = arith.constant 0 : index
    %150 = vector.load %arg4[%c8_107, %c0_108, %c0_109] : memref<9x32x32xbf16, #tpu.memory_space<vmem>>, vector<1x32x32xbf16>
    %151 = vector.shape_cast %150 : vector<1x32x32xbf16> to vector<32x32xbf16>
    %cst_110 = arith.constant dense<0.000000e+00> : vector<288x32xf32>
    %152 = tpu.matmul %149, %151, %cst_110 {dimension_numbers = #tpu.dot_dimension_numbers<[1], [0], [0], [1], [0, 0, 1, 1], [], []>} : vector<288x32xbf16>, vector<32x32xbf16>, vector<288x32xf32> -> vector<288x32xf32>
    %153 = arith.addf %147, %152 : vector<288x32xf32>
    %cst_111 = arith.constant 0.000000e+00 : f32
    %154 = vector.broadcast %cst_111 : f32 to vector<288x32xf32>
    %155 = arith.maximumf %153, %154 : vector<288x32xf32>
    %c0_112 = arith.constant 0 : index
    %c0_113 = arith.constant 0 : index
    %c0_114 = arith.constant 0 : index
    %156 = vector.load %arg6[%c0_112, %c0_113, %c0_114] : memref<1x288x32xf32, #tpu.memory_space<vmem>>, vector<1x288x32xf32>
    %157 = vector.shape_cast %156 : vector<1x288x32xf32> to vector<288x32xf32>
    %158 = vector.shape_cast %155 : vector<288x32xf32> to vector<1x288x32xf32>
    tpu.vector_store %arg6[%c0_112, %c0_113, %c0_114], %158 {strides = array<i32>} : memref<1x288x32xf32, #tpu.memory_space<vmem>>, vector<1x288x32xf32>,
    return
  }
  func.func @transform_0(%arg0: i32) -> (i32, i32, i32) {
    %c0_i32 = arith.constant 0 : i32
    %c0_i32_0 = arith.constant 0 : i32
    %c0_i32_1 = arith.constant 0 : i32
    return %arg0, %c0_i32, %c0_i32_0 : i32, i32, i32
  }
  func.func @transform_1(%arg0: i32) -> (i32, i32, i32) {
    %c0_i32 = arith.constant 0 : i32
    %c0_i32_0 = arith.constant 0 : i32
    %c0_i32_1 = arith.constant 0 : i32
    %c0_i32_2 = arith.constant 0 : i32
    return %c0_i32, %c0_i32_0, %c0_i32_1 : i32, i32, i32
  }
  func.func @transform_2(%arg0: i32) -> (i32, i32) {
    %c0_i32 = arith.constant 0 : i32
    %c0_i32_0 = arith.constant 0 : i32
    %c0_i32_1 = arith.constant 0 : i32
    return %c0_i32, %c0_i32_0 : i32, i32
  }
  func.func @transform_3(%arg0: i32) -> (i32, i32, i32) {
    %c0_i32 = arith.constant 0 : i32
    %c0_i32_0 = arith.constant 0 : i32
    %c0_i32_1 = arith.constant 0 : i32
    %c0_i32_2 = arith.constant 0 : i32
    return %c0_i32, %c0_i32_0, %c0_i32_1 : i32, i32, i32
  }
  func.func @transform_4(%arg0: i32) -> (i32, i32) {
    %c0_i32 = arith.constant 0 : i32
    %c0_i32_0 = arith.constant 0 : i32
    %c0_i32_1 = arith.constant 0 : i32
    return %c0_i32, %c0_i32_0 : i32, i32
  }
  func.func @transform_5(%arg0: i32) -> (i32, i32, i32) {
    %c0_i32 = arith.constant 0 : i32
    %c0_i32_0 = arith.constant 0 : i32
    %c0_i32_1 = arith.constant 0 : i32
    return %arg0, %c0_i32, %c0_i32_0 : i32, i32, i32
  }
}

</mosaic_0001>

<bundles_post_ra>
// kernel: tile.8
= control target key start
LH: loop header
LB: loop body
LE: loop exit
PB: predicated region body
PF: predicated region fallthrough
CT: control target
= control target key end

     0   :  { %s22_s0 = inlined_call_operand.vmem [shape: f32[8], index: 0, kind: input, shape index: {}]   ;;  %s23_s1 = inlined_call_operand.vmem [shape: f32[4,8], index: 1, kind: output, shape index: {}]  }
   0x1   :  { %v4_v0 = vld [vmem:[%s22_s0] ss:$0 sm:$0xff] }
   0x2   :  { %5 = vst [vmem:[%s23_s1] sm:$0xf] %v4_v0 }

// kernel: tile.9
= control target key start
LH: loop header
LB: loop body
LE: loop exit
PB: predicated region body
PF: predicated region fallthrough
CT: control target
= control target key end

     0   :  { %vm8_vm0 = vcmask 64512   ;;  %s40_s8 = smov 8   ;;  %s41_s9 = smov 16   ;;  %vm14_vm1 = vcmask 261312   ;;  %vm20_vm2 = vcmask 195712   ;;  %vm26_vm3 = vcmask 130112   ;;  %s58_s0 = inlined_call_operand.vmem [shape: f32[4,8], index: 0, kind: input, shape index: {}]   ;;  %s59_s1 = inlined_call_operand.vmem [shape: f32[1,32], index: 1, kind: output, shape index: {}]  }
   0x1   :  { %v5_v0 = vld [vmem:[%s58_s0] sm:$0xf]  ;;  %s39_s0 = smov 24  }
   0x2   :  { %6 = vst [vmem:[#allocation1] sm:$0xf] %v5_v0 }
   0x9   :  { %v11_v1 = vld [vmem:[#allocation1 + $0x3] sm:$0x1]   ;;  %v23_v2 = vld [vmem:[#allocation1 + $0x1] sm:$0x1]   ;;  %v7_v3 = vld [vmem:[#allocation1] sm:$0x1]  }
   0xa   :  { %12 = vrot.lane.b32.xlu0 %v11_v1, %s39_s0  ;;  %24 = vrot.lane.b32.xlu1 %v23_v2, %s40_s8  ;;  %v17_v4 = vld [vmem:[#allocation1 + $0x2] sm:$0x1]   ;;  %9 = vst.msk [vmem:[#allocation0] sm:$0x1] %vm8_vm0, %v7_v3  }
   0xe   :  { %18 = vrot.lane.b32.xlu0 %v17_v4, %s41_s9 }
  0x7c   :  { %v13_v5 = vpop.permute.xlu0 %12   ;;  %v25_v6 = vpop.permute.xlu1 %24  }
  0x7d   :  { %15 = vst.msk [vmem:[#allocation0] sm:$0x1] %vm14_vm1, %v13_v5  }
  0x80   :  { %v19_v7 = vpop.permute.xlu0 %18  }
  0x81   :  { %21 = vst.msk [vmem:[#allocation0] sm:$0x1] %vm20_vm2, %v19_v7  }
  0x82   :  { %27 = vst.msk [vmem:[#allocation0] sm:$0x1] %vm26_vm3, %v25_v6  }
  0x89   :  { %v32_v8 = vld [vmem:[#allocation0] sm:$0x1] }
  0x8a   :  { %35 = vst [vmem:[%s59_s1] sm:$0x1] %v32_v8 }

// kernel: upproject_forward.1
= control target key start
LH: loop header
LB: loop body
LE: loop exit
PB: predicated region body
PF: predicated region fallthrough
CT: control target
= control target key end

     0   :  { %s10220_s18 = smov 0   ;;  %s15294_s0 = inlined_call_operand.vmem [shape: f32[2,342,4], index: 0, kind: input, shape index: {}]   ;;  %s15295_s1 = inlined_call_operand.vmem [shape: bf16[9,4,64], index: 1, kind: input, shape index: {}]   ;;  %s15296_s2 = inlined_call_operand.vmem [shape: f32[1,64], index: 2, kind: input, shape index: {}]   ;;  %s15297_s3 = inlined_call_operand.vmem [shape: bf16[9,32,32], index: 3, kind: input, shape index: {}]   ;;  %s15298_s4 = inlined_call_operand.vmem [shape: f32[1,32], index: 4, kind: input, shape index: {}]   ;;  %s15299_s5 = inlined_call_operand.vmem [shape: f32[2,288,32], index: 5, kind: output, shape index: {}]  }
   0x1 LB: > { %s8621_s19 = sadd.s32 4294967295, %s10185_s18   ;;  %p8625_p0 = scmp.ge.s32.totalorder %s10185_s18, 1  ;;  %s10185_s18 = sphi %s10220_s18, %s15_s18  }
   0x2   : > { %p187_p1 = scmp.lt.s32.totalorder %s10185_s18, 3 }
   0x4   : > { %p188_p2 = pnand %p8625_p0, %p187_p1 }
   0x6   : > { %191 = sbr.rel (%p188_p2) target bundleno = 1623 (0x657), region = 40 }
   0xb   : > { %v8628_v0 = vld [vmem:[%s15295_s1 + $0x2] sm:$0x3]  ;;  %vm399_vm0 = vcmask 1041408   ;;  %v287_v1 = vld [vmem:[%s15295_s1] sm:$0x3]  ;;  %p215_p3 = scmp.lt.s32.totalorder %s8621_s19, 1 }
   0xc   : > { %10067 = vmatprep.subr.msk.bf16.mxu0 %vm399_vm0, %v8628_v0  ;;  %v401_v2 = vsel %vm399_vm0, %v8628_v0, 0  ;;  %10068 = vmatprep.subr.msk.bf16.mxu1 %vm399_vm0, %v287_v1  ;;  %v635_v3 = vsel %vm399_vm0, %v287_v1, 0  ;;  %v8665_v4 = vld [vmem:[%s15295_s1 + $0x4] sm:$0x3]  ;;  %v8684_v5 = vld [vmem:[%s15295_s1 + $0x6] sm:$0x3] }
   0xd   : > { %9366 = vmatpush3.bf16.msra.mxu0 %v401_v2  ;;  %9404 = vmatpush3.bf16.msra.mxu1 %v635_v3  ;;  %s16626_s19 = smov (!%p215_p3, %s8621_s19), 1  ;;  %vm344_vm1 = vcmask 31744   ;;  %v925_v17 = vsel %vm399_vm0, %v8665_v4, 0  ;;  %v1251_v25 = vsel %vm399_vm0, %v8684_v5, 0  ;;  %v10274_v26 = vld [vmem:[%s15295_s1 + $0x8] sm:$0x3] }
   0xe   : > { %10069 = vmatprep.subr.msk.bf16.mxu0 %vm399_vm0, %v8665_v4  ;;  %10070 = vmatprep.subr.msk.bf16.mxu1 %vm399_vm0, %v8684_v5  ;;  %s10076_s28 = smul.u32 344, %s16626_s19  ;;  %s10187_s21 = smov 32   ;;  %vm15321_vm2 = vcmask 261120  }
   0xf   : > { %s10077_s13 = smul.u32 288, %s16626_s19 }
  0x10   : > { %s10252_s6 = scalar_lea.vmem %s15294_s0, %s10076_s28 }
  0x11   : > { %v288_v6 = vld [vmem:[%s10252_s6 + $0x1] sm:$0xff]  ;;  %v289_v7 = vld [vmem:[%s10252_s6 + $0x9] sm:$0xff]  ;;  %v290_v11 = vld [vmem:[%s10252_s6 + $0x11] sm:$0xff]  ;;  %s15217_s16 = scalar_lea.vmem %s15299_s5, %s10077_s13 }
  0x12   : > { %v233_v8 = vld [vmem:[%s10252_s6] sm:$0xff]  ;;  %v324_v9 = vpack.c.bf16 %v289_v7, %v288_v6  ;;  %v234_v10 = vld [vmem:[%s10252_s6 + $0x8] sm:$0xff]  ;;  %v235_v15 = vld [vmem:[%s10252_s6 + $0x10] sm:$0xff] }
  0x13   : > { %v291_v12 = vld [vmem:[%s10252_s6 + $0x19] sm:$0xff]  ;;  %v269_v13 = vpack.c.bf16 %v234_v10, %v233_v8  ;;  %v292_v18 = vld [vmem:[%s10252_s6 + $0x21] sm:$0xff]  ;;  %v293_v20 = vld [vmem:[%s10252_s6 + $0x29] sm:$0xff] }
  0x14   : > { %v325_v14 = vpack.c.bf16 %v291_v12, %v290_v11  ;;  %v236_v16 = vld [vmem:[%s10252_s6 + $0x18] sm:$0xff]  ;;  %9367 = vmatprep.mubr.msk.bf16.mxu0 %vm344_vm1, %v324_v9  ;;  %v237_v21 = vld [vmem:[%s10252_s6 + $0x20] sm:$0xff]  ;;  %v238_v22 = vld [vmem:[%s10252_s6 + $0x28] sm:$0xff]  ;;  %v326_v23 = vpack.c.bf16 %v293_v20, %v292_v18 }
  0x15   : > { %v270_v19 = vpack.c.bf16 %v236_v16, %v235_v15  ;;  %9405 = vmatprep.mubr.msk.bf16.mxu1 %vm344_vm1, %v269_v13  ;;  %v271_v24 = vpack.c.bf16 %v238_v22, %v237_v21  ;;  %v294_v27 = vld [vmem:[%s10252_s6 + $0x31] sm:$0xff]  ;;  %v295_v28 = vld [vmem:[%s10252_s6 + $0x39] sm:$0xff]  ;;  %v296_v31 = vld [vmem:[%s10252_s6 + $0x41] sm:$0xff] }
  0x16   : > { %9368 = vmatmul.mubr.msk.bf16.vlgmr.msra.gmra.mxu0 %vm344_vm1, %v325_v14  ;;  %v239_v29 = vld [vmem:[%s10252_s6 + $0x30] sm:$0xff]  ;;  %v240_v30 = vld [vmem:[%s10252_s6 + $0x38] sm:$0xff]  ;;  %v241_v33 = vld [vmem:[%s10252_s6 + $0x40] sm:$0xff]  ;;  %v327_v35 = vpack.c.bf16 %v295_v28, %v294_v27 }
  0x17   : > { %9406 = vmatmul.mubr.msk.bf16.vlgmr.msra.gmra.mxu1 %vm344_vm1, %v270_v19  ;;  %9442 = vmatpush3.bf16.msra.mxu0 %v925_v17  ;;  %v297_v32 = vld [vmem:[%s10252_s6 + $0x49] sm:$0xff]  ;;  %v272_v36 = vpack.c.bf16 %v240_v30, %v239_v29  ;;  %v298_v39 = vld [vmem:[%s10252_s6 + $0x51] sm:$0xff]  ;;  %v299_v40 = vld [vmem:[%s10252_s6 + $0x59] sm:$0xff] }
  0x18   : > { %9371 = vmatprep.mubr.msk.bf16.mxu0 %vm344_vm1, %v326_v23  ;;  %9409 = vmatprep.mubr.msk.bf16.mxu1 %vm344_vm1, %v271_v24  ;;  %v242_v34 = vld [vmem:[%s10252_s6 + $0x48] sm:$0xff]  ;;  %v328_v37 = vpack.c.bf16 %v297_v32, %v296_v31  ;;  %v243_v41 = vld [vmem:[%s10252_s6 + $0x50] sm:$0xff]  ;;  %v244_v42 = vld [vmem:[%s10252_s6 + $0x58] sm:$0xff]  ;;  %v329_v47 = vpack.c.bf16 %v299_v40, %v298_v39 }
  0x19   : > { %9480 = vmatpush3.bf16.msra.mxu1 %v1251_v25  ;;  %10071 = vmatprep.subr.msk.bf16.mxu0 %vm399_vm0, %v10274_v26  ;;  %v273_v38 = vpack.c.bf16 %v242_v34, %v241_v33  ;;  %v300_v43 = vld [vmem:[%s10252_s6 + $0x61] sm:$0xff]  ;;  %v301_v44 = vld [vmem:[%s10252_s6 + $0x69] sm:$0xff]  ;;  %v274_v48 = vpack.c.bf16 %v244_v42, %v243_v41  ;;  %v302_v51 = vld [vmem:[%s10252_s6 + $0x71] sm:$0xff] }
  0x1a   : > { %v245_v45 = vld [vmem:[%s10252_s6 + $0x60] sm:$0xff]  ;;  %v246_v46 = vld [vmem:[%s10252_s6 + $0x68] sm:$0xff]  ;;  %v330_v49 = vpack.c.bf16 %v301_v44, %v300_v43  ;;  %v247_v53 = vld [vmem:[%s10252_s6 + $0x70] sm:$0xff] }
  0x1b   : > { %v275_v50 = vpack.c.bf16 %v246_v46, %v245_v45  ;;  %v303_v52 = vld [vmem:[%s10252_s6 + $0x79] sm:$0xff]  ;;  %v304_v55 = vld [vmem:[%s10252_s6 + $0x81] sm:$0xff]  ;;  %v305_v56 = vld [vmem:[%s10252_s6 + $0x89] sm:$0xff] }
  0x1c   : > { %v248_v54 = vld [vmem:[%s10252_s6 + $0x78] sm:$0xff]  ;;  %v249_v57 = vld [vmem:[%s10252_s6 + $0x80] sm:$0xff]  ;;  %v250_v58 = vld [vmem:[%s10252_s6 + $0x88] sm:$0xff]  ;;  %v331_v59 = vpack.c.bf16 %v303_v52, %v302_v51  ;;  %v332_v61 = vpack.c.bf16 %v305_v56, %v304_v55 }
  0x1d   : > { %v276_v60 = vpack.c.bf16 %v248_v54, %v247_v53  ;;  %v277_v62 = vpack.c.bf16 %v250_v58, %v249_v57  ;;  %v306_v63 = vld [vmem:[%s10252_s6 + $0x91] sm:$0xff]  ;;  %v307_v0 = vld [vmem:[%s10252_s6 + $0x99] sm:$0xff]  ;;  %v308_v3 = vld [vmem:[%s10252_s6 + $0xa1] sm:$0xff] }
  0x1e   : > { %9372 = vmatmul.mubr.msk.bf16.gmra.mxu0 %vm344_vm1, %v327_v35  ;;  %v251_v1 = vld [vmem:[%s10252_s6 + $0x90] sm:$0xff]  ;;  %v252_v2 = vld [vmem:[%s10252_s6 + $0x98] sm:$0xff]  ;;  %v253_v5 = vld [vmem:[%s10252_s6 + $0xa0] sm:$0xff]  ;;  %v333_v7 = vpack.c.bf16 %v307_v0, %v306_v63 }
  0x1f   : > { %9410 = vmatmul.mubr.msk.bf16.gmra.mxu1 %vm344_vm1, %v272_v36  ;;  %9375 = vmatprep.mubr.msk.bf16.mxu0 %vm344_vm1, %v328_v37  ;;  %v309_v4 = vld [vmem:[%s10252_s6 + $0xa9] sm:$0xff]  ;;  %v278_v8 = vpack.c.bf16 %v252_v2, %v251_v1  ;;  %v310_v12 = vld [vmem:[%s10252_s6 + $0xb1] sm:$0xff]  ;;  %v311_v13 = vld [vmem:[%s10252_s6 + $0xb9] sm:$0xff]  ;;  %v1577_v2 = vsel %vm399_vm0, %v10274_v26, 0 }
  0x20   : > { %9413 = vmatprep.mubr.msk.bf16.mxu1 %vm344_vm1, %v273_v38  ;;  %v254_v6 = vld [vmem:[%s10252_s6 + $0xa8] sm:$0xff]  ;;  %v334_v9 = vpack.c.bf16 %v309_v4, %v308_v3  ;;  %v255_v14 = vld [vmem:[%s10252_s6 + $0xb0] sm:$0xff]  ;;  %v256_v15 = vld [vmem:[%s10252_s6 + $0xb8] sm:$0xff]  ;;  %v335_v20 = vpack.c.bf16 %v311_v13, %v310_v12 }
  0x21   : > { %v279_v10 = vpack.c.bf16 %v254_v6, %v253_v5  ;;  %v10329_v11 = vld [vmem:[%s15295_s1 + $0xa] sm:$0x3]  ;;  %v312_v16 = vld [vmem:[%s10252_s6 + $0xc1] sm:$0xff]  ;;  %v280_v21 = vpack.c.bf16 %v256_v15, %v255_v14  ;;  %v314_v24 = vld [vmem:[%s10252_s6 + $0xd1] sm:$0xff] }
  0x22   : > { %v313_v17 = vld [vmem:[%s10252_s6 + $0xc9] sm:$0xff]  ;;  %10072 = vmatprep.subr.msk.bf16.mxu1 %vm399_vm0, %v10329_v11  ;;  %v257_v18 = vld [vmem:[%s10252_s6 + $0xc0] sm:$0xff]  ;;  %v260_v28 = vld [vmem:[%s10252_s6 + $0xd8] sm:$0xff]  ;;  %v1903_v4 = vsel %vm399_vm0, %v10329_v11, 0 }
  0x23   : > { %v258_v19 = vld [vmem:[%s10252_s6 + $0xc8] sm:$0xff]  ;;  %v336_v22 = vpack.c.bf16 %v313_v17, %v312_v16  ;;  %v315_v25 = vld [vmem:[%s10252_s6 + $0xd9] sm:$0xff]  ;;  %v259_v27 = vld [vmem:[%s10252_s6 + $0xd0] sm:$0xff] }
  0x24   : > { %v281_v23 = vpack.c.bf16 %v258_v19, %v257_v18  ;;  %v316_v29 = vld [vmem:[%s10252_s6 + $0xe1] sm:$0xff]  ;;  %v317_v30 = vld [vmem:[%s10252_s6 + $0xe9] sm:$0xff]  ;;  %v337_v33 = vpack.c.bf16 %v315_v25, %v314_v24  ;;  %v282_v34 = vpack.c.bf16 %v260_v28, %v259_v27  ;;  %v318_v37 = vld [vmem:[%s10252_s6 + $0xf1] sm:$0xff] }
  0x25   : > { %v261_v31 = vld [vmem:[%s10252_s6 + $0xe0] sm:$0xff]  ;;  %v262_v32 = vld [vmem:[%s10252_s6 + $0xe8] sm:$0xff]  ;;  %v338_v35 = vpack.c.bf16 %v317_v30, %v316_v29  ;;  %v263_v39 = vld [vmem:[%s10252_s6 + $0xf0] sm:$0xff] }
  0x26   : > { %9376 = vmatmul.mubr.msk.bf16.gmra.mxu0 %vm344_vm1, %v329_v47  ;;  %v283_v36 = vpack.c.bf16 %v262_v32, %v261_v31  ;;  %v319_v38 = vld [vmem:[%s10252_s6 + $0xf9] sm:$0xff]  ;;  %v320_v41 = vld [vmem:[%s10252_s6 + $0x101] sm:$0xff]  ;;  %v321_v42 = vld [vmem:[%s10252_s6 + $0x109] sm:$0xff] }
  0x27   : > { %9414 = vmatmul.mubr.msk.bf16.gmra.mxu1 %vm344_vm1, %v274_v48  ;;  %9379 = vmatprep.mubr.msk.bf16.mxu0 %vm344_vm1, %v330_v49  ;;  %v264_v40 = vld [vmem:[%s10252_s6 + $0xf8] sm:$0xff]  ;;  %v265_v43 = vld [vmem:[%s10252_s6 + $0x100] sm:$0xff]  ;;  %v266_v44 = vld [vmem:[%s10252_s6 + $0x108] sm:$0xff]  ;;  %v339_v45 = vpack.c.bf16 %v319_v38, %v318_v37  ;;  %v340_v47 = vpack.c.bf16 %v321_v42, %v320_v41 }
  0x28   : > { %9417 = vmatprep.mubr.msk.bf16.mxu1 %vm344_vm1, %v275_v50  ;;  %v284_v46 = vpack.c.bf16 %v264_v40, %v263_v39  ;;  %v285_v48 = vpack.c.bf16 %v266_v44, %v265_v43  ;;  %v322_v49 = vld [vmem:[%s10252_s6 + $0x111] sm:$0xff]  ;;  %v323_v50 = vld [vmem:[%s10252_s6 + $0x119] sm:$0xff]  ;;  %v814_v53 = vld [vmem:[%s10252_s6 + $0x2] sm:$0xff] }
  0x29   : > { %v267_v51 = vld [vmem:[%s10252_s6 + $0x110] sm:$0xff]  ;;  %v268_v52 = vld [vmem:[%s10252_s6 + $0x118] sm:$0xff]  ;;  %v341_v57 = vpack.c.bf16 %v323_v50, %v322_v49  ;;  %v10396_v5 = vld [vmem:[%s15295_s1 + $0xc] sm:$0x3] }
  0x2a   : > { %v815_v54 = vld [vmem:[%s10252_s6 + $0xa] sm:$0xff]  ;;  %v816_v55 = vld [vmem:[%s10252_s6 + $0x12] sm:$0xff]  ;;  %v817_v56 = vld [vmem:[%s10252_s6 + $0x1a] sm:$0xff]  ;;  %v286_v58 = vpack.c.bf16 %v268_v52, %v267_v51 }
  0x2b   : > { %v820_v63 = vld [vmem:[%s10252_s6 + $0x32] sm:$0xff]  ;;  %v821_v0 = vld [vmem:[%s10252_s6 + $0x3a] sm:$0xff]  ;;  %v1146_v26 = vld [vmem:[%s10252_s6 + $0x42] sm:$0xff] }
  0x2c   : > { %v853_v3 = vpack.c.bf16 %v821_v0, %v820_v63  ;;  %v1147_v6 = vld [vmem:[%s10252_s6 + $0x4a] sm:$0xff]  ;;  %v1150_v11 = vld [vmem:[%s10252_s6 + $0x62] sm:$0xff]  ;;  %v828_v13 = vld [vmem:[%s10252_s6 + $0x72] sm:$0xff] }
  0x2d   : > { %v1151_v12 = vld [vmem:[%s10252_s6 + $0x6a] sm:$0xff]  ;;  %v829_v14 = vld [vmem:[%s10252_s6 + $0x7a] sm:$0xff]  ;;  %v1154_v18 = vld [vmem:[%s10252_s6 + $0x82] sm:$0xff] }
  0x2e   : > { %9380 = vmatmul.mubr.msk.bf16.gmra.mxu0 %vm344_vm1, %v331_v59  ;;  %v850_v59 = vpack.c.bf16 %v815_v54, %v814_v53  ;;  %v1181_v15 = vpack.c.bf16 %v1151_v12, %v1150_v11  ;;  %v857_v16 = vpack.c.bf16 %v829_v14, %v828_v13  ;;  %v10418_v17 = vld [vmem:[%s15295_s1 + $0xe] sm:$0x3]  ;;  %v1158_v24 = vld [vmem:[%s10252_s6 + $0xa2] sm:$0xff]  ;;  %v836_v27 = vld [vmem:[%s10252_s6 + $0xb2] sm:$0xff] }
  0x2f   : > { %9418 = vmatmul.mubr.msk.bf16.gmra.mxu1 %vm344_vm1, %v276_v60  ;;  %9383 = vmatprep.mubr.msk.bf16.mxu0 %vm344_vm1, %v332_v61  ;;  %v851_v60 = vpack.c.bf16 %v817_v56, %v816_v55  ;;  %v1142_v61 = vld [vmem:[%s10252_s6 + $0x22] sm:$0xff]  ;;  %v1155_v19 = vld [vmem:[%s10252_s6 + $0x8a] sm:$0xff]  ;;  %v837_v28 = vld [vmem:[%s10252_s6 + $0xba] sm:$0xff] }
  0x30   : > { %9421 = vmatprep.mubr.msk.bf16.mxu1 %vm344_vm1, %v277_v62  ;;  %v1143_v62 = vld [vmem:[%s10252_s6 + $0x2a] sm:$0xff]  ;;  %v861_v30 = vpack.c.bf16 %v837_v28, %v836_v27  ;;  %v1162_v31 = vld [vmem:[%s10252_s6 + $0xc2] sm:$0xff]  ;;  %v844_v39 = vld [vmem:[%s10252_s6 + $0xf2] sm:$0xff] }
  0x31   : > { %v1177_v1 = vpack.c.bf16 %v1143_v62, %v1142_v61  ;;  %v1159_v25 = vld [vmem:[%s10252_s6 + $0xaa] sm:$0xff]  ;;  %v1166_v37 = vld [vmem:[%s10252_s6 + $0xe2] sm:$0xff]  ;;  %v845_v40 = vld [vmem:[%s10252_s6 + $0xfa] sm:$0xff] }
  0x32   : > { %v1185_v29 = vpack.c.bf16 %v1159_v25, %v1158_v24  ;;  %v1163_v32 = vld [vmem:[%s10252_s6 + $0xca] sm:$0xff]  ;;  %v865_v42 = vpack.c.bf16 %v845_v40, %v844_v39  ;;  %v1170_v43 = vld [vmem:[%s10252_s6 + $0x102] sm:$0xff]  ;;  %v1466_v51 = vld [vmem:[%s10252_s6 + $0x13] sm:$0xff] }
  0x33   : > { %v1167_v38 = vld [vmem:[%s10252_s6 + $0xea] sm:$0xff]  ;;  %v1174_v49 = vld [vmem:[%s10252_s6 + $0x122] sm:$0xff]  ;;  %v1792_v53 = vld [vmem:[%s10252_s6 + $0x14] sm:$0xff] }
  0x34   : > { %v1189_v41 = vpack.c.bf16 %v1167_v38, %v1166_v37  ;;  %v1171_v44 = vld [vmem:[%s10252_s6 + $0x10a] sm:$0xff]  ;;  %v1467_v52 = vld [vmem:[%s10252_s6 + $0x1b] sm:$0xff]  ;;  %v1470_v62 = vld [vmem:[%s10252_s6 + $0x33] sm:$0xff] }
  0x35   : > { %v1175_v50 = vld [vmem:[%s10252_s6 + $0x12a] sm:$0xff]  ;;  %v1793_v54 = vld [vmem:[%s10252_s6 + $0x1c] sm:$0xff]  ;;  %v1502_v56 = vpack.c.bf16 %v1467_v52, %v1466_v51  ;;  %v1796_v0 = vld [vmem:[%s10252_s6 + $0x34] sm:$0xff] }
  0x36   : > { %9384 = vmatmul.mubr.msk.bf16.gmra.mxu0 %vm344_vm1, %v333_v7  ;;  %v824_v7 = vld [vmem:[%s10252_s6 + $0x52] sm:$0xff]  ;;  %v1193_v55 = vpack.c.bf16 %v1175_v50, %v1174_v49  ;;  %v1471_v63 = vld [vmem:[%s10252_s6 + $0x3b] sm:$0xff] }
  0x37   : > { %9422 = vmatmul.mubr.msk.bf16.gmra.mxu1 %vm344_vm1, %v278_v8  ;;  %9387 = vmatprep.mubr.msk.bf16.mxu0 %vm344_vm1, %v334_v9  ;;  %v825_v8 = vld [vmem:[%s10252_s6 + $0x5a] sm:$0xff]  ;;  %v1179_v9 = vpack.c.bf16 %v1147_v6, %v1146_v26  ;;  %v1795_v61 = vld [vmem:[%s10252_s6 + $0x2c] sm:$0xff]  ;;  %v1504_v26 = vpack.c.bf16 %v1471_v63, %v1470_v62 }
  0x38   : > { %9425 = vmatprep.mubr.msk.bf16.mxu1 %vm344_vm1, %v279_v10  ;;  %v855_v10 = vpack.c.bf16 %v825_v8, %v824_v7  ;;  %v2555_v7 = vsel %vm399_vm0, %v10418_v17, 0  ;;  %v10496_v8 = vld [vmem:[%s15295_s1 + $0x10] sm:$0x3]  ;;  %v1474_v12 = vld [vmem:[%s10252_s6 + $0x53] sm:$0xff]  ;;  %v1475_v13 = vld [vmem:[%s10252_s6 + $0x5b] sm:$0xff] }
  0x39   : > { %v1799_v11 = vld [vmem:[%s10252_s6 + $0x4c] sm:$0xff]  ;;  %v1800_v14 = vld [vmem:[%s10252_s6 + $0x54] sm:$0xff]  ;;  %v1805_v28 = vld [vmem:[%s10252_s6 + $0x7c] sm:$0xff] }
  0x3a   : > { %v1478_v24 = vld [vmem:[%s10252_s6 + $0x73] sm:$0xff]  ;;  %v1479_v25 = vld [vmem:[%s10252_s6 + $0x7b] sm:$0xff] }
  0x3b   : > { %v1804_v27 = vld [vmem:[%s10252_s6 + $0x74] sm:$0xff]  ;;  %v1809_v40 = vld [vmem:[%s10252_s6 + $0x9c] sm:$0xff] }
  0x3c   : > { %v1482_v37 = vld [vmem:[%s10252_s6 + $0x93] sm:$0xff]  ;;  %v1483_v38 = vld [vmem:[%s10252_s6 + $0x9b] sm:$0xff] }
  0x3d   : > { %v1808_v39 = vld [vmem:[%s10252_s6 + $0x94] sm:$0xff]  ;;  %v1813_v52 = vld [vmem:[%s10252_s6 + $0xbc] sm:$0xff] }
  0x3e   : > { %9388 = vmatmul.mubr.msk.bf16.gmra.mxu0 %vm344_vm1, %v335_v20  ;;  %v832_v20 = vld [vmem:[%s10252_s6 + $0x92] sm:$0xff]  ;;  %v1487_v50 = vld [vmem:[%s10252_s6 + $0xbb] sm:$0xff] }
  0x3f   : > { %9426 = vmatmul.mubr.msk.bf16.gmra.mxu1 %vm344_vm1, %v280_v21  ;;  %9391 = vmatprep.mubr.msk.bf16.mxu0 %vm344_vm1, %v336_v22  ;;  %v833_v21 = vld [vmem:[%s10252_s6 + $0x9a] sm:$0xff]  ;;  %v1183_v22 = vpack.c.bf16 %v1155_v19, %v1154_v18  ;;  %v1506_v18 = vpack.c.bf16 %v1475_v13, %v1474_v12 }
  0x40   : > { %9429 = vmatprep.mubr.msk.bf16.mxu1 %vm344_vm1, %v281_v23  ;;  %v859_v23 = vpack.c.bf16 %v833_v21, %v832_v20  ;;  %v1476_v20 = vld [vmem:[%s10252_s6 + $0x63] sm:$0xff]  ;;  %v1477_v21 = vld [vmem:[%s10252_s6 + $0x6b] sm:$0xff]  ;;  %v1486_v49 = vld [vmem:[%s10252_s6 + $0xb3] sm:$0xff] }
  0x41   : > { %v1812_v51 = vld [vmem:[%s10252_s6 + $0xb4] sm:$0xff] }
  0x42   : > { %v1491_v62 = vld [vmem:[%s10252_s6 + $0xdb] sm:$0xff] }
  0x43   : > { %v1816_v63 = vld [vmem:[%s10252_s6 + $0xd4] sm:$0xff] }
  0x44   : > { %v1495_v12 = vld [vmem:[%s10252_s6 + $0xfb] sm:$0xff] }
  0x45   : > { %v1820_v13 = vld [vmem:[%s10252_s6 + $0xf4] sm:$0xff] }
  0x46   : > { %9392 = vmatmul.mubr.msk.bf16.gmra.mxu0 %vm344_vm1, %v337_v33  ;;  %v840_v33 = vld [vmem:[%s10252_s6 + $0xd2] sm:$0xff] }
  0x47   : > { %9430 = vmatmul.mubr.msk.bf16.gmra.mxu1 %vm344_vm1, %v282_v34  ;;  %9395 = vmatprep.mubr.msk.bf16.mxu0 %vm344_vm1, %v338_v35  ;;  %v841_v34 = vld [vmem:[%s10252_s6 + $0xda] sm:$0xff]  ;;  %v1187_v35 = vpack.c.bf16 %v1163_v32, %v1162_v31  ;;  %v1508_v31 = vpack.c.bf16 %v1479_v25, %v1478_v24  ;;  %v10533_v32 = vpack.c.bf16 %v1805_v28, %v1804_v27  ;;  %v1497_v24 = vld [vmem:[%s10252_s6 + $0x10b] sm:$0xff] }
  0x48   : > { %9433 = vmatprep.mubr.msk.bf16.mxu1 %vm344_vm1, %v283_v36  ;;  %v863_v36 = vpack.c.bf16 %v841_v34, %v840_v33  ;;  %v1480_v33 = vld [vmem:[%s10252_s6 + $0x83] sm:$0xff]  ;;  %v1481_v34 = vld [vmem:[%s10252_s6 + $0x8b] sm:$0xff] }
  0x49   : > { %v1822_v25 = vld [vmem:[%s10252_s6 + $0x104] sm:$0xff] }
  0x4e   : > { %9396 = vmatmul.mubr.msk.bf16.gmra.mxu0 %vm344_vm1, %v339_v45  ;;  %v848_v45 = vld [vmem:[%s10252_s6 + $0x112] sm:$0xff] }
  0x4f   : > { %9434 = vmatmul.mubr.msk.bf16.gmra.mxu1 %vm344_vm1, %v284_v46  ;;  %9399 = vmatprep.mubr.msk.bf16.mxu0 %vm344_vm1, %v340_v47  ;;  %v849_v46 = vld [vmem:[%s10252_s6 + $0x11a] sm:$0xff]  ;;  %v1191_v47 = vpack.c.bf16 %v1171_v44, %v1170_v43  ;;  %v1510_v43 = vpack.c.bf16 %v1483_v38, %v1482_v37  ;;  %v10551_v44 = vpack.c.bf16 %v1809_v40, %v1808_v39 }
  0x50   : > { %9437 = vmatprep.mubr.msk.bf16.mxu1 %vm344_vm1, %v285_v48  ;;  %v867_v48 = vpack.c.bf16 %v849_v46, %v848_v45  ;;  %v1484_v45 = vld [vmem:[%s10252_s6 + $0xa3] sm:$0xff]  ;;  %v1485_v46 = vld [vmem:[%s10252_s6 + $0xab] sm:$0xff] }
  0x56   : > { %9400 = vmatmul.mubr.msk.bf16.gmra.mxu0 %vm344_vm1, %v341_v57  ;;  %v1828_v57 = vpack.c.bf16 %v1793_v54, %v1792_v53  ;;  %v1511_v53 = vpack.c.bf16 %v1485_v46, %v1484_v45 }
  0x57   : > { %9438 = vmatmul.mubr.msk.bf16.gmra.mxu1 %vm344_vm1, %v286_v58  ;;  %9443 = vmatprep.mubr.msk.bf16.mxu0 %vm344_vm1, %v850_v59  ;;  %v1468_v58 = vld [vmem:[%s10252_s6 + $0x23] sm:$0xff]  ;;  %v1469_v59 = vld [vmem:[%s10252_s6 + $0x2b] sm:$0xff] }
  0x58   : > { %9481 = vmatprep.mubr.msk.bf16.mxu1 %vm344_vm1, %v851_v60 }
  0x5e   : > { %9444 = vmatmul.mubr.msk.bf16.vlgmr.msra.gmra.mxu0 %vm344_vm1, %v851_v60  ;;  %v1794_v60 = vld [vmem:[%s10252_s6 + $0x24] sm:$0xff] }
  0x5f   : > { %9518 = vmatpush3.bf16.msra.mxu0 %v1577_v2  ;;  %9482 = vmatmul.mubr.msk.bf16.vlgmr.msra.gmra.mxu1 %vm344_vm1, %v1177_v1  ;;  %v1503_v2 = vpack.c.bf16 %v1469_v59, %v1468_v58  ;;  %v1489_v58 = vld [vmem:[%s10252_s6 + $0xcb] sm:$0xff] }
  0x60   : > { %9447 = vmatprep.mubr.msk.bf16.mxu0 %vm344_vm1, %v1177_v1  ;;  %9485 = vmatprep.mubr.msk.bf16.mxu1 %vm344_vm1, %v853_v3  ;;  %v1797_v1 = vld [vmem:[%s10252_s6 + $0x3c] sm:$0xff]  ;;  %v1814_v59 = vld [vmem:[%s10252_s6 + $0xc4] sm:$0xff] }
  0x61   : > { %9556 = vmatpush3.bf16.msra.mxu1 %v1903_v4  ;;  %10073 = vmatprep.subr.msk.bf16.mxu0 %vm399_vm0, %v10396_v5  ;;  %v2229_v4 = vsel %vm399_vm0, %v10396_v5, 0  ;;  %v10488_v6 = vpack.c.bf16 %v1797_v1, %v1796_v0  ;;  %v1472_v5 = vld [vmem:[%s10252_s6 + $0x43] sm:$0xff] }
  0x62   : > { %10074 = vmatprep.subr.msk.bf16.mxu1 %vm399_vm0, %v10418_v17  ;;  %v1817_v0 = vld [vmem:[%s10252_s6 + $0xdc] sm:$0xff] }
  0x66   : > { %9448 = vmatmul.mubr.msk.bf16.gmra.mxu0 %vm344_vm1, %v853_v3  ;;  %v10484_v3 = vpack.c.bf16 %v1795_v61, %v1794_v60  ;;  %v1815_v60 = vld [vmem:[%s10252_s6 + $0xcc] sm:$0xff] }
  0x67   : > { %9486 = vmatmul.mubr.msk.bf16.gmra.mxu1 %vm344_vm1, %v1179_v9  ;;  %9451 = vmatprep.mubr.msk.bf16.mxu0 %vm344_vm1, %v1179_v9  ;;  %v1473_v9 = vld [vmem:[%s10252_s6 + $0x4b] sm:$0xff]  ;;  %v1490_v61 = vld [vmem:[%s10252_s6 + $0xd3] sm:$0xff] }
  0x68   : > { %9489 = vmatprep.mubr.msk.bf16.mxu1 %vm344_vm1, %v855_v10 }
  0x6e   : > { %9452 = vmatmul.mubr.msk.bf16.gmra.mxu0 %vm344_vm1, %v855_v10  ;;  %v1798_v10 = vld [vmem:[%s10252_s6 + $0x44] sm:$0xff] }
  0x6f   : > { %9490 = vmatmul.mubr.msk.bf16.gmra.mxu1 %vm344_vm1, %v1181_v15  ;;  %9455 = vmatprep.mubr.msk.bf16.mxu0 %vm344_vm1, %v1181_v15  ;;  %v1801_v15 = vld [vmem:[%s10252_s6 + $0x5c] sm:$0xff]  ;;  %v10513_v17 = vpack.c.bf16 %v1799_v11, %v1798_v10  ;;  %v1819_v10 = vld [vmem:[%s10252_s6 + $0xec] sm:$0xff] }
  0x70   : > { %9493 = vmatprep.mubr.msk.bf16.mxu1 %vm344_vm1, %v857_v16  ;;  %v10515_v19 = vpack.c.bf16 %v1801_v15, %v1800_v14  ;;  %v1494_v11 = vld [vmem:[%s10252_s6 + $0xf3] sm:$0xff]  ;;  %v1821_v14 = vld [vmem:[%s10252_s6 + $0xfc] sm:$0xff] }
  0x76   : > { %9456 = vmatmul.mubr.msk.bf16.gmra.mxu0 %vm344_vm1, %v857_v16  ;;  %v1505_v16 = vpack.c.bf16 %v1473_v9, %v1472_v5  ;;  %v1493_v5 = vld [vmem:[%s10252_s6 + $0xeb] sm:$0xff] }
  0x77   : > { %9494 = vmatmul.mubr.msk.bf16.gmra.mxu1 %vm344_vm1, %v1183_v22  ;;  %9459 = vmatprep.mubr.msk.bf16.mxu0 %vm344_vm1, %v1183_v22  ;;  %v1802_v22 = vld [vmem:[%s10252_s6 + $0x64] sm:$0xff] }
  0x78   : > { %9497 = vmatprep.mubr.msk.bf16.mxu1 %vm344_vm1, %v859_v23  ;;  %v1818_v9 = vld [vmem:[%s10252_s6 + $0xe4] sm:$0xff] }
  0x7e   : > { %9460 = vmatmul.mubr.msk.bf16.gmra.mxu0 %vm344_vm1, %v859_v23  ;;  %v1803_v23 = vld [vmem:[%s10252_s6 + $0x6c] sm:$0xff] }
  0x7f   : > { %9498 = vmatmul.mubr.msk.bf16.gmra.mxu1 %vm344_vm1, %v1185_v29  ;;  %9463 = vmatprep.mubr.msk.bf16.mxu0 %vm344_vm1, %v1185_v29  ;;  %v1507_v29 = vpack.c.bf16 %v1477_v21, %v1476_v20  ;;  %v10605_v20 = vpack.c.bf16 %v1821_v14, %v1820_v13 }
  0x80   : > { %9501 = vmatprep.mubr.msk.bf16.mxu1 %vm344_vm1, %v861_v30 }
  0x86   : > { %9464 = vmatmul.mubr.msk.bf16.gmra.mxu0 %vm344_vm1, %v861_v30  ;;  %v10531_v30 = vpack.c.bf16 %v1803_v23, %v1802_v22  ;;  %v1496_v23 = vld [vmem:[%s10252_s6 + $0x103] sm:$0xff] }
  0x87   : > { %9502 = vmatmul.mubr.msk.bf16.gmra.mxu1 %vm344_vm1, %v1187_v35  ;;  %9467 = vmatprep.mubr.msk.bf16.mxu0 %vm344_vm1, %v1187_v35  ;;  %v1806_v35 = vld [vmem:[%s10252_s6 + $0x84] sm:$0xff]  ;;  %v1517_v39 = vpack.c.bf16 %v1497_v24, %v1496_v23 }
  0x88   : > { %9505 = vmatprep.mubr.msk.bf16.mxu1 %vm344_vm1, %v863_v36  ;;  %v2448_v24 = vld [vmem:[%s10252_s6 + $0x45] sm:$0xff] }
  0x8e   : > { %9468 = vmatmul.mubr.msk.bf16.gmra.mxu0 %vm344_vm1, %v863_v36  ;;  %v1807_v36 = vld [vmem:[%s10252_s6 + $0x8c] sm:$0xff] }
  0x8f   : > { %9506 = vmatmul.mubr.msk.bf16.gmra.mxu1 %vm344_vm1, %v1189_v41  ;;  %9471 = vmatprep.mubr.msk.bf16.mxu0 %vm344_vm1, %v1189_v41  ;;  %v1509_v41 = vpack.c.bf16 %v1481_v34, %v1480_v33  ;;  %v1499_v33 = vld [vmem:[%s10252_s6 + $0x11b] sm:$0xff] }
  0x90   : > { %9509 = vmatprep.mubr.msk.bf16.mxu1 %vm344_vm1, %v865_v42 }
  0x96   : > { %9472 = vmatmul.mubr.msk.bf16.gmra.mxu0 %vm344_vm1, %v865_v42  ;;  %v10549_v42 = vpack.c.bf16 %v1807_v36, %v1806_v35  ;;  %v1824_v35 = vld [vmem:[%s10252_s6 + $0x114] sm:$0xff]  ;;  %v1825_v36 = vld [vmem:[%s10252_s6 + $0x11c] sm:$0xff] }
  0x97   : > { %9510 = vmatmul.mubr.msk.bf16.gmra.mxu1 %vm344_vm1, %v1191_v47  ;;  %9475 = vmatprep.mubr.msk.bf16.mxu0 %vm344_vm1, %v1191_v47  ;;  %v1810_v47 = vld [vmem:[%s10252_s6 + $0xa4] sm:$0xff] }
  0x98   : > { %9513 = vmatprep.mubr.msk.bf16.mxu1 %vm344_vm1, %v867_v48 }
  0x9e   : > { %9476 = vmatmul.mubr.msk.bf16.gmra.mxu0 %vm344_vm1, %v867_v48  ;;  %v1811_v48 = vld [vmem:[%s10252_s6 + $0xac] sm:$0xff] }
  0x9f   : > { %9514 = vmatmul.mubr.msk.bf16.gmra.mxu1 %vm344_vm1, %v1193_v55  ;;  %9519 = vmatprep.mubr.msk.bf16.mxu0 %vm344_vm1, %v1502_v56  ;;  %v10567_v54 = vpack.c.bf16 %v1811_v48, %v1810_v47  ;;  %v1512_v55 = vpack.c.bf16 %v1487_v50, %v1486_v49  ;;  %v10569_v56 = vpack.c.bf16 %v1813_v52, %v1812_v51  ;;  %v1500_v52 = vld [vmem:[%s10252_s6 + $0x123] sm:$0xff] }
  0xa0   : > { %9557 = vmatprep.mubr.msk.bf16.mxu1 %vm344_vm1, %v1828_v57  ;;  %v1488_v57 = vld [vmem:[%s10252_s6 + $0xc3] sm:$0xff]  ;;  %v10629_v47 = vpack.c.bf16 %v1825_v36, %v1824_v35  ;;  %v2881_v35 = vsel %vm399_vm0, %v10496_v8, 0 }
  0xa1   : > { %v1513_v1 = vpack.c.bf16 %v1489_v58, %v1488_v57  ;;  %v1826_v58 = vld [vmem:[%s10252_s6 + $0x124] sm:$0xff] }
  0xa6   : > { %9520 = vmatmul.mubr.msk.bf16.vlgmr.msra.gmra.mxu0 %vm344_vm1, %v1503_v2  ;;  %v10585_v2 = vpack.c.bf16 %v1815_v60, %v1814_v59  ;;  %v1827_v59 = vld [vmem:[%s10252_s6 + $0x12c] sm:$0xff] }
  0xa7   : > { %9594 = vmatpush3.bf16.msra.mxu0 %v2229_v4  ;;  %9558 = vmatmul.mubr.msk.bf16.vlgmr.msra.gmra.mxu1 %vm344_vm1, %v10484_v3  ;;  %v1514_v4 = vpack.c.bf16 %v1491_v62, %v1490_v61  ;;  %v2444_v61 = vld [vmem:[%s10252_s6 + $0x25] sm:$0xff]  ;;  %v2445_v62 = vld [vmem:[%s10252_s6 + $0x2d] sm:$0xff] }
  0xa8   : > { %9523 = vmatprep.mubr.msk.bf16.mxu0 %vm344_vm1, %v1504_v26  ;;  %9561 = vmatprep.mubr.msk.bf16.mxu1 %vm344_vm1, %v10488_v6  ;;  %v10587_v26 = vpack.c.bf16 %v1817_v0, %v1816_v63 }
  0xa9   : > { %9632 = vmatpush3.bf16.msra.mxu1 %v2555_v7  ;;  %10075 = vmatprep.subr.msk.bf16.mxu0 %vm399_vm0, %v10496_v8  ;;  %v1492_v7 = vld [vmem:[%s10252_s6 + $0xe3] sm:$0xff]  ;;  %v2450_v8 = vld [vmem:[%s10252_s6 + $0x55] sm:$0xff] }
  0xaa   : > { %v1515_v15 = vpack.c.bf16 %v1493_v5, %v1492_v7  ;;  %v10649_v7 = vpack.c.bf16 %v1827_v59, %v1826_v58 }
  0xae   : > { %9524 = vmatmul.mubr.msk.bf16.gmra.mxu0 %vm344_vm1, %v1505_v16  ;;  %v10603_v16 = vpack.c.bf16 %v1819_v10, %v1818_v9  ;;  %v2480_v10 = vpack.c.bf16 %v2445_v62, %v2444_v61 }
  0xaf   : > { %9562 = vmatmul.mubr.msk.bf16.gmra.mxu1 %vm344_vm1, %v10513_v17  ;;  %9527 = vmatprep.mubr.msk.bf16.mxu0 %vm344_vm1, %v1506_v18  ;;  %v1516_v18 = vpack.c.bf16 %v1495_v12, %v1494_v11 }
  0xb0   : > { %9565 = vmatprep.mubr.msk.bf16.mxu1 %vm344_vm1, %v10515_v19 }
  0xb6   : > { %9528 = vmatmul.mubr.msk.bf16.gmra.mxu0 %vm344_vm1, %v1507_v29  ;;  %v1823_v29 = vld [vmem:[%s10252_s6 + $0x10c] sm:$0xff] }
  0xb7   : > { %9566 = vmatmul.mubr.msk.bf16.gmra.mxu1 %vm344_vm1, %v10531_v30  ;;  %9531 = vmatprep.mubr.msk.bf16.mxu0 %vm344_vm1, %v1508_v31  ;;  %v1498_v31 = vld [vmem:[%s10252_s6 + $0x113] sm:$0xff] }
  0xb8   : > { %9569 = vmatprep.mubr.msk.bf16.mxu1 %vm344_vm1, %v10533_v32 }
  0xbe   : > { %9532 = vmatmul.mubr.msk.bf16.gmra.mxu0 %vm344_vm1, %v1509_v41  ;;  %v10625_v41 = vpack.c.bf16 %v1823_v29, %v1822_v25  ;;  %v2449_v25 = vld [vmem:[%s10252_s6 + $0x4d] sm:$0xff] }
  0xbf   : > { %9570 = vmatmul.mubr.msk.bf16.gmra.mxu1 %vm344_vm1, %v10549_v42  ;;  %9535 = vmatprep.mubr.msk.bf16.mxu0 %vm344_vm1, %v1510_v43  ;;  %v1518_v43 = vpack.c.bf16 %v1499_v33, %v1498_v31  ;;  %v2482_v36 = vpack.c.bf16 %v2449_v25, %v2448_v24 }
  0xc0   : > { %9573 = vmatprep.mubr.msk.bf16.mxu1 %vm344_vm1, %v10551_v44 }
  0xc6   : > { %9536 = vmatmul.mubr.msk.bf16.gmra.mxu0 %vm344_vm1, %v1511_v53  ;;  %v1501_v53 = vld [vmem:[%s10252_s6 + $0x12b] sm:$0xff] }
  0xc7   : > { %9574 = vmatmul.mubr.msk.bf16.gmra.mxu1 %vm344_vm1, %v10567_v54  ;;  %9539 = vmatprep.mubr.msk.bf16.mxu0 %vm344_vm1, %v1512_v55 }
  0xc8   : > { %9577 = vmatprep.mubr.msk.bf16.mxu1 %vm344_vm1, %v10569_v56 }
  0xce   : > { %9540 = vmatmul.mubr.msk.bf16.gmra.mxu0 %vm344_vm1, %v1513_v1  ;;  %v1519_v1 = vpack.c.bf16 %v1501_v53, %v1500_v52  ;;  %v2452_v52 = vld [vmem:[%s10252_s6 + $0x65] sm:$0xff]  ;;  %v2453_v53 = vld [vmem:[%s10252_s6 + $0x6d] sm:$0xff] }
  0xcf   : > { %9578 = vmatmul.mubr.msk.bf16.gmra.mxu1 %vm344_vm1, %v10585_v2  ;;  %9543 = vmatprep.mubr.msk.bf16.mxu0 %vm344_vm1, %v1514_v4 }
  0xd0   : > { %9581 = vmatprep.mubr.msk.bf16.mxu1 %vm344_vm1, %v10587_v26 }
  0xd6   : > { %v9369_v21 = vpop.f32.mrf.mxu0  ;;  %9544 = vmatmul.mubr.msk.bf16.gmra.mxu0 %vm344_vm1, %v1515_v15 }
  0xd7   : > { %v9407_v22 = vpop.f32.mrf.mxu1  ;;  %9582 = vmatmul.mubr.msk.bf16.gmra.mxu1 %vm344_vm1, %v10603_v16  ;;  %9547 = vmatprep.mubr.msk.bf16.mxu0 %vm344_vm1, %v1516_v18 }
  0xd8   : > { %v10614_v27 = vadd.f32 %v9407_v22, %v9369_v21  ;;  %v437_v28 = vpop.f32.mrf.mxu0  ;;  %9585 = vmatprep.mubr.msk.bf16.mxu1 %vm344_vm1, %v10605_v20  ;;  %v2446_v21 = vld [vmem:[%s10252_s6 + $0x35] sm:$0xff]  ;;  %v2447_v22 = vld [vmem:[%s10252_s6 + $0x3d] sm:$0xff] }
  0xd9   : > { %v671_v34 = vpop.f32.mrf.mxu1  ;;  %v2481_v33 = vpack.c.bf16 %v2447_v22, %v2446_v21  ;;  %v2457_v21 = vld [vmem:[%s10252_s6 + $0x8d] sm:$0xff] }
  0xda   : > { %v10623_v37 = vadd.f32 %v671_v34, %v437_v28  ;;  %v9370_v38 = vpop.f32.mrf.mxu0 }
  0xdb   : > { %v9408_v40 = vpop.f32.mrf.mxu1 }
  0xdc   : > { %v10627_v45 = vadd.f32 %v9408_v40, %v9370_v38  ;;  %v440_v46 = vpop.f32.mrf.mxu0 }
  0xdd   : > { %v674_v48 = vpop.f32.mrf.mxu1 }
  0xde   : > { %v10631_v49 = vadd.f32 %v674_v48, %v440_v46  ;;  %v9373_v50 = vpop.f32.mrf.mxu0  ;;  %9548 = vmatmul.mubr.msk.bf16.gmra.mxu0 %vm344_vm1, %v1517_v39 }
  0xdf   : > { %v9411_v51 = vpop.f32.mrf.mxu1  ;;  %9586 = vmatmul.mubr.msk.bf16.gmra.mxu1 %vm344_vm1, %v10625_v41  ;;  %9551 = vmatprep.mubr.msk.bf16.mxu0 %vm344_vm1, %v1518_v43 }
  0xe0   : > { %v10639_v55 = vadd.f32 %v9411_v51, %v9373_v50  ;;  %v453_v57 = vpop.f32.mrf.mxu0  ;;  %9589 = vmatprep.mubr.msk.bf16.mxu1 %vm344_vm1, %v10629_v47  ;;  %v2451_v50 = vld [vmem:[%s10252_s6 + $0x5d] sm:$0xff] }
  0xe1   : > { %v687_v60 = vpop.f32.mrf.mxu1  ;;  %v2483_v59 = vpack.c.bf16 %v2451_v50, %v2450_v8  ;;  %v2460_v8 = vld [vmem:[%s10252_s6 + $0xa5] sm:$0xff]  ;;  %v2461_v50 = vld [vmem:[%s10252_s6 + $0xad] sm:$0xff] }
  0xe2   : > { %v10647_v63 = vadd.f32 %v687_v60, %v453_v57  ;;  %v9374_v0 = vpop.f32.mrf.mxu0 }
  0xe3   : > { %v9412_v4 = vpop.f32.mrf.mxu1 }
  0xe4   : > { %v10651_v5 = vadd.f32 %v9412_v4, %v9374_v0  ;;  %v456_v9 = vpop.f32.mrf.mxu0 }
  0xe5   : > { %v690_v11 = vpop.f32.mrf.mxu1 }
  0xe6   : > { %v10653_v12 = vadd.f32 %v690_v11, %v456_v9  ;;  %v9377_v13 = vpop.f32.mrf.mxu0  ;;  %9552 = vmatmul.mubr.msk.bf16.gmra.mxu0 %vm344_vm1, %v1519_v1  ;;  %v2454_v11 = vld [vmem:[%s10252_s6 + $0x75] sm:$0xff] }
  0xe7   : > { %v9415_v14 = vpop.f32.mrf.mxu1  ;;  %9590 = vmatmul.mubr.msk.bf16.gmra.mxu1 %vm344_vm1, %v10649_v7  ;;  %9595 = vmatprep.mubr.msk.bf16.mxu0 %vm344_vm1, %v10484_v3 }
  0xe8   : > { %v10660_v15 = vadd.f32 %v9415_v14, %v9377_v13  ;;  %v469_v18 = vpop.f32.mrf.mxu0  ;;  %9633 = vmatprep.mubr.msk.bf16.mxu1 %vm344_vm1, %v2480_v10  ;;  %v2455_v13 = vld [vmem:[%s10252_s6 + $0x7d] sm:$0xff] }
  0xe9   : > { %v703_v23 = vpop.f32.mrf.mxu1  ;;  %v2485_v24 = vpack.c.bf16 %v2455_v13, %v2454_v11  ;;  %v2462_v11 = vld [vmem:[%s10252_s6 + $0xb5] sm:$0xff]  ;;  %v2463_v13 = vld [vmem:[%s10252_s6 + $0xbd] sm:$0xff] }
  0xea   : > { %v10667_v28 = vadd.f32 %v703_v23, %v469_v18  ;;  %v9378_v29 = vpop.f32.mrf.mxu0  ;;  %v2456_v18 = vld [vmem:[%s10252_s6 + $0x85] sm:$0xff] }
  0xeb   : > { %v9416_v31 = vpop.f32.mrf.mxu1 }
  0xec   : > { %v10669_v34 = vadd.f32 %v9416_v31, %v9378_v29  ;;  %v472_v3 = vpop.f32.mrf.mxu0  ;;  %v2486_v29 = vpack.c.bf16 %v2457_v21, %v2456_v18  ;;  %v2465_v18 = vld [vmem:[%s10252_s6 + $0xcd] sm:$0xff] }
  0xed   : > { %v706_v38 = vpop.f32.mrf.mxu1 }
  0xee   : > { %v10673_v39 = vadd.f32 %v706_v38, %v472_v3  ;;  %v9381_v40 = vpop.f32.mrf.mxu0  ;;  %9596 = vmatmul.mubr.msk.bf16.vlgmr.msra.gmra.mxu0 %vm344_vm1, %v10488_v6 }
  0xef   : > { %v9419_v43 = vpop.f32.mrf.mxu1  ;;  %9670 = vmatpush3.bf16.msra.mxu0 %v2881_v35  ;;  %9634 = vmatmul.mubr.msk.bf16.vlgmr.msra.gmra.mxu1 %vm344_vm1, %v2481_v33 }
  0xf0   : > { %v10678_v46 = vadd.f32 %v9419_v43, %v9381_v40  ;;  %v485_v48 = vpop.f32.mrf.mxu0  ;;  %9599 = vmatprep.mubr.msk.bf16.mxu0 %vm344_vm1, %v10513_v17  ;;  %9637 = vmatprep.mubr.msk.bf16.mxu1 %vm344_vm1, %v2482_v36  ;;  %v2484_v17 = vpack.c.bf16 %v2453_v53, %v2452_v52  ;;  %v2458_v40 = vld [vmem:[%s10252_s6 + $0x95] sm:$0xff]  ;;  %v2459_v43 = vld [vmem:[%s10252_s6 + $0x9d] sm:$0xff] }
  0xf1   : > { %v719_v51 = vpop.f32.mrf.mxu1  ;;  %v2487_v53 = vpack.c.bf16 %v2459_v43, %v2458_v40 }
  0xf2   : > { %v10687_v57 = vadd.f32 %v719_v51, %v485_v48  ;;  %v9382_v6 = vpop.f32.mrf.mxu0 }
  0xf3   : > { %v9420_v58 = vpop.f32.mrf.mxu1 }
  0xf4   : > { %v10689_v60 = vadd.f32 %v9420_v58, %v9382_v6  ;;  %v488_v61 = vpop.f32.mrf.mxu0  ;;  %v2488_v58 = vpack.c.bf16 %v2461_v50, %v2460_v8  ;;  %v2467_v8 = vld [vmem:[%s10252_s6 + $0xdd] sm:$0xff] }
  0xf5   : > { %v722_v62 = vpop.f32.mrf.mxu1 }
  0xf6   : > { %v10691_v0 = vadd.f32 %v722_v62, %v488_v61  ;;  %v9385_v1 = vpop.f32.mrf.mxu0  ;;  %9600 = vmatmul.mubr.msk.bf16.gmra.mxu0 %vm344_vm1, %v10515_v19 }
  0xf7   : > { %v9423_v4 = vpop.f32.mrf.mxu1  ;;  %9638 = vmatmul.mubr.msk.bf16.gmra.mxu1 %vm344_vm1, %v2483_v59  ;;  %9603 = vmatprep.mubr.msk.bf16.mxu0 %vm344_vm1, %v10531_v30 }
  0xf8   : > { %v10698_v9 = vadd.f32 %v9423_v4, %v9385_v1  ;;  %v501_v10 = vpop.f32.mrf.mxu0  ;;  %9641 = vmatprep.mubr.msk.bf16.mxu1 %vm344_vm1, %v2484_v17  ;;  %v8799_v1 = vld [vmem:[%s15298_s4] ss:$0 sm:$0xff] }
  0xf9   : > { %v735_v14 = vpop.f32.mrf.mxu1  ;;  %3974 = vrot.lane.b32.xlu0 %v8799_v1, %s10187_s21 }
  0xfa   : > { %v10705_v22 = vadd.f32 %v735_v14, %v501_v10  ;;  %v9386_v23 = vpop.f32.mrf.mxu0  ;;  %v2464_v14 = vld [vmem:[%s10252_s6 + $0xc5] sm:$0xff] }
  0xfb   : > { %v9424_v19 = vpop.f32.mrf.mxu1 }
  0xfc   : > { %v10707_v25 = vadd.f32 %v9424_v19, %v9386_v23  ;;  %v504_v30 = vpop.f32.mrf.mxu0  ;;  %v2489_v19 = vpack.c.bf16 %v2463_v13, %v2462_v11 }
  0xfd   : > { %v738_v31 = vpop.f32.mrf.mxu1 }
  0xfe   : > { %v10709_v33 = vadd.f32 %v738_v31, %v504_v30  ;;  %v9389_v3 = vpop.f32.mrf.mxu0  ;;  %9604 = vmatmul.mubr.msk.bf16.gmra.mxu0 %vm344_vm1, %v10533_v32 }
  0xff   : > { %v9427_v35 = vpop.f32.mrf.mxu1  ;;  %9642 = vmatmul.mubr.msk.bf16.gmra.mxu1 %vm344_vm1, %v2485_v24  ;;  %9607 = vmatprep.mubr.msk.bf16.mxu0 %vm344_vm1, %v10549_v42 }
 0x100   : > { %v10716_v36 = vadd.f32 %v9427_v35, %v9389_v3  ;;  %v517_v38 = vpop.f32.mrf.mxu0  ;;  %9645 = vmatprep.mubr.msk.bf16.mxu1 %vm344_vm1, %v2486_v29  ;;  %v2490_v29 = vpack.c.bf16 %v2465_v18, %v2464_v14  ;;  %v2470_v14 = vld [vmem:[%s10252_s6 + $0xf5] sm:$0xff]  ;;  %v2471_v18 = vld [vmem:[%s10252_s6 + $0xfd] sm:$0xff] }
 0x101   : > { %v751_v48 = vpop.f32.mrf.mxu1 }
 0x102   : > { %v10723_v51 = vadd.f32 %v751_v48, %v517_v38  ;;  %v9390_v52 = vpop.f32.mrf.mxu0  ;;  %v2466_v48 = vld [vmem:[%s10252_s6 + $0xd5] sm:$0xff] }
 0x103   : > { %v9428_v32 = vpop.f32.mrf.mxu1 }
 0x104   : > { %v10725_v6 = vadd.f32 %v9428_v32, %v9390_v52  ;;  %v520_v42 = vpop.f32.mrf.mxu0  ;;  %v2468_v52 = vld [vmem:[%s10252_s6 + $0xe5] sm:$0xff]  ;;  %v2469_v32 = vld [vmem:[%s10252_s6 + $0xed] sm:$0xff] }
 0x105   : > { %v754_v59 = vpop.f32.mrf.mxu1 }
 0x106   : > { %v10727_v61 = vadd.f32 %v754_v59, %v520_v42  ;;  %v9393_v17 = vpop.f32.mrf.mxu0  ;;  %9608 = vmatmul.mubr.msk.bf16.gmra.mxu0 %vm344_vm1, %v10551_v44 }
 0x107   : > { %v9431_v62 = vpop.f32.mrf.mxu1  ;;  %9646 = vmatmul.mubr.msk.bf16.gmra.mxu1 %vm344_vm1, %v2487_v53  ;;  %9611 = vmatprep.mubr.msk.bf16.mxu0 %vm344_vm1, %v10567_v54 }
 0x108   : > { %v10737_v4 = vadd.f32 %v9431_v62, %v9393_v17  ;;  %v533_v10 = vpop.f32.mrf.mxu0  ;;  %9649 = vmatprep.mubr.msk.bf16.mxu1 %vm344_vm1, %v2488_v58  ;;  %v2491_v58 = vpack.c.bf16 %v2467_v8, %v2466_v48  ;;  %v2492_v17 = vpack.c.bf16 %v2469_v32, %v2468_v52  ;;  %v2474_v32 = vld [vmem:[%s10252_s6 + $0x115] sm:$0xff] }
 0x109   : > { %v767_v44 = vpop.f32.mrf.mxu1 }
 0x10a   : > { %v10745_v21 = vadd.f32 %v767_v44, %v533_v10  ;;  %v9394_v54 = vpop.f32.mrf.mxu0 }
 0x10b   : > { %v9432_v23 = vpop.f32.mrf.mxu1 }
 0x10c   : > { %v10747_v24 = vadd.f32 %v9432_v23, %v9394_v54  ;;  %v536_v30 = vpop.f32.mrf.mxu0  ;;  %v2472_v23 = vld [vmem:[%s10252_s6 + $0x105] sm:$0xff] }
 0x10d   : > { %v770_v31 = vpop.f32.mrf.mxu1 }
 0x10e   : > { %v10749_v3 = vadd.f32 %v770_v31, %v536_v30  ;;  %v9397_v35 = vpop.f32.mrf.mxu0  ;;  %9612 = vmatmul.mubr.msk.bf16.gmra.mxu0 %vm344_vm1, %v10569_v56  ;;  %v2493_v31 = vpack.c.bf16 %v2471_v18, %v2470_v14 }
 0x10f   : > { %v9435_v38 = vpop.f32.mrf.mxu1  ;;  %9650 = vmatmul.mubr.msk.bf16.gmra.mxu1 %vm344_vm1, %v2489_v19  ;;  %9615 = vmatprep.mubr.msk.bf16.mxu0 %vm344_vm1, %v10585_v2  ;;  %v2473_v19 = vld [vmem:[%s10252_s6 + $0x10d] sm:$0xff] }
 0x110   : > { %v10756_v40 = vadd.f32 %v9435_v38, %v9397_v35  ;;  %v549_v43 = vpop.f32.mrf.mxu0  ;;  %9653 = vmatprep.mubr.msk.bf16.mxu1 %vm344_vm1, %v2490_v29  ;;  %v2494_v38 = vpack.c.bf16 %v2473_v19, %v2472_v23 }
 0x111   : > { %v783_v50 = vpop.f32.mrf.mxu1 }
 0x112   : > { %v10763_v53 = vadd.f32 %v783_v50, %v549_v43  ;;  %v9398_v42 = vpop.f32.mrf.mxu0 }
 0x113   : > { %v9436_v56 = vpop.f32.mrf.mxu1 }
 0x114   : > { %v10765_v59 = vadd.f32 %v9436_v56, %v9398_v42  ;;  %v552_v2 = vpop.f32.mrf.mxu0  ;;  %v2475_v42 = vld [vmem:[%s10252_s6 + $0x11d] sm:$0xff] }
 0x115   : > { %v786_v62 = vpop.f32.mrf.mxu1 }
 0x116   : > { %v10767_v1 = vadd.f32 %v786_v62, %v552_v2  ;;  %v9401_v10 = vpop.f32.mrf.mxu0  ;;  %9616 = vmatmul.mubr.msk.bf16.gmra.mxu0 %vm344_vm1, %v10587_v26 }
 0x117   : > { %v9439_v11 = vpop.f32.mrf.mxu1  ;;  %9654 = vmatmul.mubr.msk.bf16.gmra.mxu1 %vm344_vm1, %v2491_v58  ;;  %9619 = vmatprep.mubr.msk.bf16.mxu0 %vm344_vm1, %v10603_v16 }
 0x118   : > { %v10774_v13 = vadd.f32 %v9439_v11, %v9401_v10  ;;  %v565_v44 = vpop.f32.mrf.mxu0  ;;  %9657 = vmatprep.mubr.msk.bf16.mxu1 %vm344_vm1, %v2492_v17  ;;  %v2476_v17 = vld [vmem:[%s10252_s6 + $0x125] sm:$0xff]  ;;  %v2495_v11 = vpack.c.bf16 %v2475_v42, %v2474_v32 }
 0x119   : > { %v799_v54 = vpop.f32.mrf.mxu1 }
 0x11a   : > { %v10781_v30 = vadd.f32 %v799_v54, %v565_v44  ;;  %v9402_v26 = vpop.f32.mrf.mxu0 }
 0x11b   : > { %v9440_v29 = vpop.f32.mrf.mxu1 }
 0x11c   : > { %v10783_v35 = vadd.f32 %v9440_v29, %v9402_v26  ;;  %v10785_v16 = vpop.f32.mrf.mxu0  ;;  %v2152_v26 = vld [vmem:[%s10252_s6 + $0x134] sm:$0xff] }
 0x11d   : > { %v10787_v43 = vpop.f32.mrf.mxu1  ;;  %v2478_v29 = vld [vmem:[%s10252_s6 + $0x135] sm:$0xff] }
 0x11e   : > { %v9445_v48 = vpop.f32.mrf.mxu0  ;;  %9620 = vmatmul.mubr.msk.bf16.gmra.mxu0 %vm344_vm1, %v10605_v20  ;;  %v2477_v20 = vld [vmem:[%s10252_s6 + $0x12d] sm:$0xff] }
 0x11f   : > { %v1106_v8 = vadd.f32 %v9445_v48, %v10614_v27  ;;  %v9483_v50 = vpop.f32.mrf.mxu1  ;;  %9658 = vmatmul.mubr.msk.bf16.gmra.mxu1 %vm344_vm1, %v2493_v31  ;;  %9623 = vmatprep.mubr.msk.bf16.mxu0 %vm344_vm1, %v10625_v41  ;;  %v2496_v14 = vpack.c.bf16 %v2477_v20, %v2476_v17  ;;  %v2770_v48 = vld [vmem:[%s10252_s6 + $0x26] sm:$0xff] }
 0x120   : > { %v961_v52 = vpop.f32.mrf.mxu0  ;;  %9661 = vmatprep.mubr.msk.bf16.mxu1 %vm344_vm1, %v2494_v38  ;;  %v2479_v38 = vld [vmem:[%s10252_s6 + $0x13d] sm:$0xff] }
 0x121   : > { %v1104_v56 = vadd.f32 %v961_v52, %v10623_v37  ;;  %v10799_v58 = vadd.f32 %v9483_v50, %v1106_v8  ;;  %v1287_v2 = vpop.f32.mrf.mxu1  ;;  %v2771_v8 = vld [vmem:[%s10252_s6 + $0x2e] sm:$0xff] }
 0x122   : > { %v9446_v62 = vpop.f32.mrf.mxu0  ;;  %v2806_v17 = vpack.c.bf16 %v2771_v8, %v2770_v48 }
 0x123   : > { %v1107_v27 = vadd.f32 %v9446_v62, %v10627_v45  ;;  %v10804_v10 = vadd.f32 %v1287_v2, %v1104_v56  ;;  %v9484_v41 = vpop.f32.mrf.mxu1  ;;  %v2497_v2 = vpack.c.bf16 %v2479_v38, %v2478_v29 }
 0x124   : > { %v964_v44 = vpop.f32.mrf.mxu0 }
 0x125   : > { %v10807_v37 = vadd.f32 %v964_v44, %v10631_v49  ;;  %v10809_v18 = vadd.f32 %v9484_v41, %v1107_v27  ;;  %v10811_v54 = vpop.f32.mrf.mxu1  ;;  %v2153_v49 = vld [vmem:[%s10252_s6 + $0x13c] sm:$0xff] }
 0x126   : > { %v9449_v23 = vpop.f32.mrf.mxu0  ;;  %9624 = vmatmul.mubr.msk.bf16.gmra.mxu0 %vm344_vm1, %v10629_v47  ;;  %v2171_v32 = vpack.c.bf16 %v2153_v49, %v2152_v26  ;;  %v2772_v44 = vld [vmem:[%s10252_s6 + $0x36] sm:$0xff] }
 0x127   : > { %v1110_v45 = vadd.f32 %v9449_v23, %v10639_v55  ;;  %v9487_v19 = vpop.f32.mrf.mxu1  ;;  %9662 = vmatmul.mubr.msk.bf16.gmra.mxu1 %vm344_vm1, %v2495_v11  ;;  %9627 = vmatprep.mubr.msk.bf16.mxu0 %vm344_vm1, %v10649_v7 }
 0x128   : > { %v977_v31 = vpop.f32.mrf.mxu0  ;;  %9665 = vmatprep.mubr.msk.bf16.mxu1 %vm344_vm1, %v2496_v14  ;;  %v2773_v14 = vld [vmem:[%s10252_s6 + $0x3e] sm:$0xff] }
 0x129   : > { %v1108_v50 = vadd.f32 %v977_v31, %v10647_v63  ;;  %v10827_v47 = vadd.f32 %v9487_v19, %v1110_v45  ;;  %v1303_v55 = vpop.f32.mrf.mxu1  ;;  %v2774_v45 = vld [vmem:[%s10252_s6 + $0x46] sm:$0xff]  ;;  %v2807_v31 = vpack.c.bf16 %v2773_v14, %v2772_v44 }
 0x12a   : > { %v9450_v52 = vpop.f32.mrf.mxu0 }
 0x12b   : > { %v1111_v42 = vadd.f32 %v9450_v52, %v10651_v5  ;;  %v10830_v7 = vadd.f32 %v1303_v55, %v1108_v50  ;;  %v9488_v56 = vpop.f32.mrf.mxu1 }
 0x12c   : > { %v980_v20 = vpop.f32.mrf.mxu0 }
 0x12d   : > { %v10833_v62 = vadd.f32 %v980_v20, %v10653_v12  ;;  %v10835_v63 = vadd.f32 %v9488_v56, %v1111_v42  ;;  %v10837_v27 = vpop.f32.mrf.mxu1  ;;  %v2775_v12 = vld [vmem:[%s10252_s6 + $0x4e] sm:$0xff]  ;;  %v2776_v56 = vld [vmem:[%s10252_s6 + $0x56] sm:$0xff]  ;;  %v2778_v20 = vld [vmem:[%s10252_s6 + $0x66] sm:$0xff] }
 0x12e   : > { %v9453_v41 = vpop.f32.mrf.mxu0  ;;  %9628 = vmatmul.mubr.msk.bf16.gmra.mxu0 %vm344_vm1, %v2171_v32  ;;  %v2808_v8 = vpack.c.bf16 %v2775_v12, %v2774_v45 }
 0x12f   : > { %v1114_v5 = vadd.f32 %v9453_v41, %v10660_v15  ;;  %v9491_v11 = vpop.f32.mrf.mxu1  ;;  %9666 = vmatmul.mubr.msk.bf16.gmra.mxu1 %vm344_vm1, %v2497_v2  ;;  %9671 = vmatprep.mubr.msk.bf16.mxu0 %vm344_vm1, %v2806_v17  ;;  %v2777_v2 = vld [vmem:[%s10252_s6 + $0x5e] sm:$0xff]  ;;  %v2779_v41 = vld [vmem:[%s10252_s6 + $0x6e] sm:$0xff] }
 0x130   : > { %v993_v23 = vpop.f32.mrf.mxu0  ;;  %v2809_v14 = vpack.c.bf16 %v2777_v2, %v2776_v56  ;;  %v2810_v12 = vpack.c.bf16 %v2779_v41, %v2778_v20 }
 0x131   : > { %v1112_v19 = vadd.f32 %v993_v23, %v10667_v28  ;;  %v10848_v26 = vadd.f32 %v9491_v11, %v1114_v5  ;;  %v1319_v49 = vpop.f32.mrf.mxu1 }
 0x132   : > { %v9454_v29 = vpop.f32.mrf.mxu0 }
 0x133   : > { %v1115_v15 = vadd.f32 %v9454_v29, %v10669_v34  ;;  %v10851_v38 = vadd.f32 %v1319_v49, %v1112_v19  ;;  %v9492_v48 = vpop.f32.mrf.mxu1 }
 0x134   : > { %v996_v50 = vpop.f32.mrf.mxu0 }
 0x135   : > { %v10854_v55 = vadd.f32 %v996_v50, %v10673_v39  ;;  %v10856_v28 = vadd.f32 %v9492_v48, %v1115_v15  ;;  %v10858_v52 = vpop.f32.mrf.mxu1  ;;  %v2780_v48 = vld [vmem:[%s10252_s6 + $0x76] sm:$0xff] }
 0x136   : > { %v9457_v32 = vpop.f32.mrf.mxu0  ;;  %9672 = vmatmul.mubr.msk.bf16.vlgmr.msra.gmra.mxu0 %vm344_vm1, %v2807_v31 }
 0x137   : > { %v1118_v42 = vadd.f32 %v9457_v32, %v10678_v46  ;;  %v9495_v34 = vpop.f32.mrf.mxu1  ;;  %9675 = vmatprep.mubr.msk.bf16.mxu0 %vm344_vm1, %v2808_v8  ;;  %v2781_v8 = vld [vmem:[%s10252_s6 + $0x7e] sm:$0xff]  ;;  %v2782_v32 = vld [vmem:[%s10252_s6 + $0x86] sm:$0xff] }
 0x138   : > { %v1009_v17 = vpop.f32.mrf.mxu0 }
 0x139   : > { %v1116_v39 = vadd.f32 %v1009_v17, %v10687_v57  ;;  %v10868_v5 = vadd.f32 %v9495_v34, %v1118_v42  ;;  %v1335_v11 = vpop.f32.mrf.mxu1  ;;  %v2783_v42 = vld [vmem:[%s10252_s6 + $0x8e] sm:$0xff]  ;;  %v2811_v17 = vpack.c.bf16 %v2781_v8, %v2780_v48 }
 0x13a   : > { %v9458_v44 = vpop.f32.mrf.mxu0 }
 0x13b   : > { %v1119_v23 = vadd.f32 %v9458_v44, %v10689_v60  ;;  %v10871_v46 = vadd.f32 %v1335_v11, %v1116_v39  ;;  %v9496_v45 = vpop.f32.mrf.mxu1  ;;  %v2812_v39 = vpack.c.bf16 %v2783_v42, %v2782_v32 }
 0x13c   : > { %v1012_v19 = vpop.f32.mrf.mxu0 }
 0x13d   : > { %v10874_v49 = vadd.f32 %v1012_v19, %v10691_v0  ;;  %v10876_v57 = vadd.f32 %v9496_v45, %v1119_v23  ;;  %v10878_v29 = vpop.f32.mrf.mxu1  ;;  %v10161_v23 = vld [vmem:[%s15297_s3 + $0x8] sm:$0xff]   ;;  %v2784_v19 = vld [vmem:[%s10252_s6 + $0x96] sm:$0xff] }
 0x13e   : > { %v9461_v31 = vpop.f32.mrf.mxu0  ;;  %9676 = vmatmul.mubr.msk.bf16.gmra.mxu0 %vm344_vm1, %v2809_v14  ;;  %9707 = vmatprep.subr.bf16.mxu1 %v10161_v23 }
 0x13f   : > { %v1122_v15 = vadd.f32 %v9461_v31, %v10698_v9  ;;  %v9499_v60 = vpop.f32.mrf.mxu1  ;;  %9679 = vmatprep.mubr.msk.bf16.mxu0 %vm344_vm1, %v2810_v12  ;;  %v2785_v31 = vld [vmem:[%s10252_s6 + $0x9e] sm:$0xff]  ;;  %9708 = vmatpush3.bf16.msra.mxu1 %v10161_v23 }
 0x140   : > { %v1025_v50 = vpop.f32.mrf.mxu0  ;;  %v2813_v42 = vpack.c.bf16 %v2785_v31, %v2784_v19  ;;  %v2790_v19 = vld [vmem:[%s10252_s6 + $0xc6] sm:$0xff] }
 0x141   : > { %v1120_v0 = vadd.f32 %v1025_v50, %v10705_v22  ;;  %v10888_v34 = vadd.f32 %v9499_v60, %v1122_v15  ;;  %v1351_v56 = vpop.f32.mrf.mxu1  ;;  %v2786_v15 = vld [vmem:[%s10252_s6 + $0xa6] sm:$0xff]  ;;  %v2787_v60 = vld [vmem:[%s10252_s6 + $0xae] sm:$0xff] }
 0x142   : > { %v9462_v2 = vpop.f32.mrf.mxu0 }
 0x143   : > { %v1123_v20 = vadd.f32 %v9462_v2, %v10707_v25  ;;  %v10891_v9 = vadd.f32 %v1351_v56, %v1120_v0  ;;  %v9500_v41 = vpop.f32.mrf.mxu1  ;;  %v2814_v2 = vpack.c.bf16 %v2787_v60, %v2786_v15 }
 0x144   : > { %v1028_v11 = vpop.f32.mrf.mxu0 }
 0x145   : > { %v10894_v44 = vadd.f32 %v1028_v11, %v10709_v33  ;;  %v10896_v22 = vadd.f32 %v9500_v41, %v1123_v20  ;;  %v10898_v14 = vpop.f32.mrf.mxu1 }
 0x146   : > { %v9465_v45 = vpop.f32.mrf.mxu0  ;;  %9680 = vmatmul.mubr.msk.bf16.gmra.mxu0 %vm344_vm1, %v2811_v17  ;;  %v10162_v17 = vld [vmem:[%s15297_s3 + $0x18] sm:$0xff]  }
 0x147   : > { %v1126_v25 = vadd.f32 %v9465_v45, %v10716_v36  ;;  %v9503_v12 = vpop.f32.mrf.mxu1  ;;  %9683 = vmatprep.mubr.msk.bf16.mxu0 %vm344_vm1, %v2812_v39  ;;  %9747 = vmatprep.subr.bf16.mxu0 %v10162_v17  ;;  %v2788_v45 = vld [vmem:[%s10252_s6 + $0xb6] sm:$0xff] }
 0x148   : > { %v1041_v33 = vpop.f32.mrf.mxu0  ;;  %9748 = vmatpush3.bf16.msra.mxu0 %v10162_v17 }
 0x149   : > { %v1124_v48 = vadd.f32 %v1041_v33, %v10723_v51  ;;  %v10911_v8 = vadd.f32 %v9503_v12, %v1126_v25  ;;  %v1367_v50 = vpop.f32.mrf.mxu1  ;;  %v2789_v25 = vld [vmem:[%s10252_s6 + $0xbe] sm:$0xff] }
 0x14a   : > { %v9466_v32 = vpop.f32.mrf.mxu0 }
 0x14b   : > { %v1127_v36 = vadd.f32 %v9466_v32, %v10725_v6  ;;  %v10914_v0 = vadd.f32 %v1367_v50, %v1124_v48  ;;  %v9504_v56 = vpop.f32.mrf.mxu1  ;;  %v2815_v48 = vpack.c.bf16 %v2789_v25, %v2788_v45  ;;  %v2794_v45 = vld [vmem:[%s10252_s6 + $0xe6] sm:$0xff]  ;;  %v2795_v25 = vld [vmem:[%s10252_s6 + $0xee] sm:$0xff] }
 0x14c   : > { %v1044_v51 = vpop.f32.mrf.mxu0 }
 0x14d   : > { %v10920_v20 = vadd.f32 %v1044_v51, %v10727_v61  ;;  %v10922_v41 = vadd.f32 %v9504_v56, %v1127_v36  ;;  %v10924_v39 = vpop.f32.mrf.mxu1  ;;  %v2791_v61 = vld [vmem:[%s10252_s6 + $0xce] sm:$0xff] }
 0x14e   : > { %v9469_v6 = vpop.f32.mrf.mxu0  ;;  %9684 = vmatmul.mubr.msk.bf16.gmra.mxu0 %vm344_vm1, %v2813_v42  ;;  %v2816_v42 = vpack.c.bf16 %v2791_v61, %v2790_v19 }
 0x14f   : > { %v1130_v11 = vadd.f32 %v9469_v6, %v10737_v4  ;;  %v9507_v23 = vpop.f32.mrf.mxu1  ;;  %9687 = vmatprep.mubr.msk.bf16.mxu0 %vm344_vm1, %v2814_v2  ;;  %v2792_v6 = vld [vmem:[%s10252_s6 + $0xd6] sm:$0xff] }
 0x150   : > { %v1057_v12 = vpop.f32.mrf.mxu0 }
 0x151   : > { %v1128_v31 = vadd.f32 %v1057_v12, %v10745_v21  ;;  %v10934_v33 = vadd.f32 %v9507_v23, %v1130_v11  ;;  %v1383_v15 = vpop.f32.mrf.mxu1  ;;  %v2793_v11 = vld [vmem:[%s10252_s6 + $0xde] sm:$0xff] }
 0x152   : > { %v9470_v60 = vpop.f32.mrf.mxu0 }
 0x153   : > { %v1131_v4 = vadd.f32 %v9470_v60, %v10747_v24  ;;  %v10937_v50 = vadd.f32 %v1383_v15, %v1128_v31  ;;  %v9508_v32 = vpop.f32.mrf.mxu1  ;;  %v2817_v31 = vpack.c.bf16 %v2793_v11, %v2792_v6  ;;  %v2798_v11 = vld [vmem:[%s10252_s6 + $0x106] sm:$0xff] }
 0x154   : > { %v1060_v36 = vpop.f32.mrf.mxu0 }
 0x155   : > { %v10940_v56 = vadd.f32 %v1060_v36, %v10749_v3  ;;  %v10942_v21 = vadd.f32 %v9508_v32, %v1131_v4  ;;  %v10944_v2 = vpop.f32.mrf.mxu1 }
 0x156   : > { %v9473_v17 = vpop.f32.mrf.mxu0  ;;  %9688 = vmatmul.mubr.msk.bf16.gmra.mxu0 %vm344_vm1, %v2815_v48  ;;  %v2818_v48 = vpack.c.bf16 %v2795_v25, %v2794_v45 }
 0x157   : > { %v1134_v51 = vadd.f32 %v9473_v17, %v10756_v40  ;;  %v9511_v24 = vpop.f32.mrf.mxu1  ;;  %9691 = vmatprep.mubr.msk.bf16.mxu0 %vm344_vm1, %v2816_v42 }
 0x158   : > { %v1073_v23 = vpop.f32.mrf.mxu0 }
 0x159   : > { %v1132_v3 = vadd.f32 %v1073_v23, %v10763_v53  ;;  %v10954_v12 = vadd.f32 %v9511_v24, %v1134_v51  ;;  %v1399_v19 = vpop.f32.mrf.mxu1  ;;  %v2796_v51 = vld [vmem:[%s10252_s6 + $0xf6] sm:$0xff]  ;;  %v2797_v24 = vld [vmem:[%s10252_s6 + $0xfe] sm:$0xff]  ;;  %v2799_v23 = vld [vmem:[%s10252_s6 + $0x10e] sm:$0xff] }
 0x15a   : > { %v9474_v61 = vpop.f32.mrf.mxu0 }
 0x15b   : > { %v1135_v15 = vadd.f32 %v9474_v61, %v10765_v59  ;;  %v10957_v40 = vadd.f32 %v1399_v19, %v1132_v3  ;;  %v9512_v60 = vpop.f32.mrf.mxu1  ;;  %v2819_v19 = vpack.c.bf16 %v2797_v24, %v2796_v51  ;;  %v2802_v24 = vld [vmem:[%s10252_s6 + $0x126] sm:$0xff] }
 0x15c   : > { %v1076_v4 = vpop.f32.mrf.mxu0 }
 0x15d   : > { %v10960_v32 = vadd.f32 %v1076_v4, %v10767_v1  ;;  %v10962_v53 = vadd.f32 %v9512_v60, %v1135_v15  ;;  %v10964_v42 = vpop.f32.mrf.mxu1  ;;  %v2820_v15 = vpack.c.bf16 %v2799_v23, %v2798_v11 }
 0x15e   : > { %v9477_v36 = vpop.f32.mrf.mxu0  ;;  %9692 = vmatmul.mubr.msk.bf16.gmra.mxu0 %vm344_vm1, %v2817_v31 }
 0x15f   : > { %v1138_v17 = vadd.f32 %v9477_v36, %v10774_v13  ;;  %v9515_v59 = vpop.f32.mrf.mxu1  ;;  %9695 = vmatprep.mubr.msk.bf16.mxu0 %vm344_vm1, %v2818_v48 }
 0x160   : > { %v1089_v6 = vpop.f32.mrf.mxu0 }
 0x161   : > { %v1136_v1 = vadd.f32 %v1089_v6, %v10781_v30  ;;  %v10974_v45 = vadd.f32 %v9515_v59, %v1138_v17  ;;  %v1415_v25 = vpop.f32.mrf.mxu1  ;;  %v2801_v59 = vld [vmem:[%s10252_s6 + $0x11e] sm:$0xff]  ;;  %v2803_v6 = vld [vmem:[%s10252_s6 + $0x12e] sm:$0xff] }
 0x162   : > { %v9478_v3 = vpop.f32.mrf.mxu0 }
 0x163   : > { %v1139_v13 = vadd.f32 %v9478_v3, %v10783_v35  ;;  %v10977_v61 = vadd.f32 %v1415_v25, %v1136_v1  ;;  %v9516_v31 = vpop.f32.mrf.mxu1  ;;  %v2800_v35 = vld [vmem:[%s10252_s6 + $0x116] sm:$0xff]  ;;  %v10163_v25 = vld [vmem:[%s15297_s3] sm:$0xff]  }
 0x164   : > { %v10979_v60 = vpop.f32.mrf.mxu0  ;;  %9709 = vmatprep.subr.bf16.mxu1 %v10163_v25 }
 0x165   : > { %v10981_v48 = vadd.f32 %v9516_v31, %v1139_v13  ;;  %v10983_v30 = vpop.f32.mrf.mxu1  ;;  %9710 = vmatpush3.bf16.msra.mxu1 %v10163_v25 }
 0x166   : > { %v9521_v4 = vpop.f32.mrf.mxu0  ;;  %9696 = vmatmul.mubr.msk.bf16.gmra.mxu0 %vm344_vm1, %v2819_v19 }
 0x167   : > { %v1758_v36 = vadd.f32 %v9521_v4, %v10799_v58  ;;  %v9559_v17 = vpop.f32.mrf.mxu1  ;;  %9699 = vmatprep.mubr.msk.bf16.mxu0 %vm344_vm1, %v2820_v15  ;;  %v2821_v58 = vpack.c.bf16 %v2801_v59, %v2800_v35  ;;  %v2822_v15 = vpack.c.bf16 %v2803_v6, %v2802_v24  ;;  %v10164_v24 = vld [vmem:[%s15297_s3 + $0x10] sm:$0xff]  }
 0x168   : > { %v1613_v51 = vpop.f32.mrf.mxu0  ;;  %9749 = vmatprep.subr.bf16.mxu0 %v10164_v24 }
 0x169   : > { %v1756_v11 = vadd.f32 %v1613_v51, %v10804_v10  ;;  %v10993_v23 = vadd.f32 %v9559_v17, %v1758_v36  ;;  %v1939_v1 = vpop.f32.mrf.mxu1  ;;  %v2805_v51 = vld [vmem:[%s10252_s6 + $0x13e] sm:$0xff]  ;;  %9750 = vmatpush3.bf16.msra.mxu0 %v10164_v24 }
 0x16a   : > { %v9522_v3 = vpop.f32.mrf.mxu0 }
 0x16b   : > { %v1759_v19 = vadd.f32 %v9522_v3, %v10809_v18  ;;  %v10999_v13 = vadd.f32 %v1939_v1, %v1756_v11  ;;  %v9560_v31 = vpop.f32.mrf.mxu1  ;;  %v2804_v18 = vld [vmem:[%s10252_s6 + $0x136] sm:$0xff] }
 0x16c   : > { %v11001_v4 = vpop.f32.mrf.mxu0 }
 0x16d   : > { %15424 = vst [vmem:[#allocation3_spill] sm:$0xff] %v10999_v13  ;;  %v11003_v10 = vadd.f32 %v9560_v31, %v1759_v19  ;;  %v11005_v36 = vpop.f32.mrf.mxu1 }
 0x16e   : > { %v9525_v17 = vpop.f32.mrf.mxu0  ;;  %9700 = vmatmul.mubr.msk.bf16.gmra.mxu0 %vm344_vm1, %v2821_v58  ;;  %v2823_v58 = vpack.c.bf16 %v2805_v51, %v2804_v18 }
 0x16f   : > { %15425 = vst [vmem:[#allocation4_spill] sm:$0xff] %v11003_v10  ;;  %v1762_v35 = vadd.f32 %v9525_v17, %v10827_v47  ;;  %v9563_v59 = vpop.f32.mrf.mxu1  ;;  %9703 = vmatprep.mubr.msk.bf16.mxu0 %vm344_vm1, %v2822_v15 }
 0x170   : > { %v1629_v6 = vpop.f32.mrf.mxu0 }
 0x171   : > { %v1760_v11 = vadd.f32 %v1629_v6, %v10830_v7  ;;  %v11016_v1 = vadd.f32 %v9563_v59, %v1762_v35  ;;  %v1955_v25 = vpop.f32.mrf.mxu1 }
 0x172   : > { %v9526_v3 = vpop.f32.mrf.mxu0 }
 0x173   : > { %v1763_v47 = vadd.f32 %v9526_v3, %v10835_v63  ;;  %v11019_v19 = vadd.f32 %v1955_v25, %v1760_v11  ;;  %v9564_v31 = vpop.f32.mrf.mxu1 }
 0x174   : > { %v11021_v15 = vpop.f32.mrf.mxu0 }
 0x175   : > { %v11023_v17 = vadd.f32 %v9564_v31, %v1763_v47  ;;  %v11025_v10 = vpop.f32.mrf.mxu1 }
 0x176   : > { %v9529_v13 = vpop.f32.mrf.mxu0  ;;  %9704 = vmatmul.mubr.msk.bf16.gmra.mxu0 %vm344_vm1, %v2823_v58 }
 0x177   : > { %v1766_v7 = vadd.f32 %v9529_v13, %v10848_v26  ;;  %v9567_v35 = vpop.f32.mrf.mxu1 }
 0x178   : > { %v1645_v59 = vpop.f32.mrf.mxu0 }
 0x179   : > { %v1764_v18 = vadd.f32 %v1645_v59, %v10851_v38  ;;  %v11030_v51 = vadd.f32 %v9567_v35, %v1766_v7  ;;  %v1971_v63 = vpop.f32.mrf.mxu1 }
 0x17a   : > { %v9530_v24 = vpop.f32.mrf.mxu0 }
 0x17b   : > { %v1767_v6 = vadd.f32 %v9530_v24, %v10856_v28  ;;  %v11033_v11 = vadd.f32 %v1971_v63, %v1764_v18  ;;  %v9568_v25 = vpop.f32.mrf.mxu1 }
 0x17c   : > { %v11035_v3 = vpop.f32.mrf.mxu0 }
 0x17d   : > { %15426 = vst [vmem:[#allocation5_spill] sm:$0xff] %v11033_v11  ;;  %v11037_v47 = vadd.f32 %v9568_v25, %v1767_v6  ;;  %v11039_v58 = vpop.f32.mrf.mxu1 }
 0x17e   : > { %v9533_v26 = vpop.f32.mrf.mxu0 }
 0x17f   : > { %15427 = vst [vmem:[#allocation6_spill] sm:$0xff] %v11037_v47  ;;  %v1770_v13 = vadd.f32 %v9533_v26, %v10868_v5  ;;  %v9571_v31 = vpop.f32.mrf.mxu1 }
 0x180   : > { %v1661_v38 = vpop.f32.mrf.mxu0 }
 0x181   : > { %v1768_v7 = vadd.f32 %v1661_v38, %v10871_v46  ;;  %v11043_v35 = vadd.f32 %v9571_v31, %v1770_v13  ;;  %v1987_v59 = vpop.f32.mrf.mxu1  ;;  %v3139_v46 = vlaneseq }
 0x182   : > { %v9534_v28 = vpop.f32.mrf.mxu0 }
 0x183   : > { %15428 = vst [vmem:[#allocation7_spill] sm:$0xff] %v11043_v35  ;;  %v1771_v18 = vadd.f32 %v9534_v28, %v10876_v57  ;;  %v11046_v63 = vadd.f32 %v1987_v59, %v1768_v7  ;;  %v9572_v24 = vpop.f32.mrf.mxu1 }
 0x184   : > { %v11048_v6 = vpop.f32.mrf.mxu0 }
 0x185   : > { %15429 = vst [vmem:[#allocation8_spill] sm:$0xff] %v11046_v63  ;;  %v11050_v25 = vadd.f32 %v9572_v24, %v1771_v18  ;;  %v11052_v47 = vpop.f32.mrf.mxu1  ;;  %v11061_v24 = vshrl.u32 %v3139_v46, 7 }
 0x186   : > { %v9537_v5 = vpop.f32.mrf.mxu0 }
 0x187   : > { %15430 = vst [vmem:[#allocation9_spill] sm:$0xff] %v11050_v25  ;;  %v1774_v26 = vadd.f32 %v9537_v5, %v10888_v34  ;;  %v9575_v11 = vpop.f32.mrf.mxu1 }
 0x188   : > { %v1677_v13 = vpop.f32.mrf.mxu0 }
 0x189   : > { %v1772_v31 = vadd.f32 %v1677_v13, %v10891_v9  ;;  %v11056_v38 = vadd.f32 %v9575_v11, %v1774_v26  ;;  %v2003_v57 = vpop.f32.mrf.mxu1  ;;  %v10188_v9 = vmov 0.0   ;;  %v3142_v26 = vadd.s32 16, %v11061_v24 }
 0x18a   : > { %v9538_v7 = vpop.f32.mrf.mxu0  ;;  %227 = vst.msk [vmem:[#allocation2] sm:$0xff] %vm15321_vm2, %v10188_v9  ;;  %228 = vst.msk [vmem:[#allocation2 + $0x8] sm:$0xff] %vm15321_vm2, %v10188_v9 }
 0x18b   : > { %15431 = vst [vmem:[#allocation10_spill] sm:$0xff] %v11056_v38  ;;  %v1775_v59 = vadd.f32 %v9538_v7, %v10896_v22  ;;  %v11059_v28 = vadd.f32 %v2003_v57, %v1772_v31  ;;  %v9576_v18 = vpop.f32.mrf.mxu1  ;;  %229 = vst.msk [vmem:[#allocation2 + $0x10] sm:$0xff] %vm15321_vm2, %v10188_v9 }
 0x18c   : > { %v11063_v25 = vpop.f32.mrf.mxu0  ;;  %230 = vst.msk [vmem:[#allocation2 + $0x138] sm:$0xff] %vm15321_vm2, %v10188_v9  ;;  %231 = vst.msk [vmem:[#allocation2 + $0x140] sm:$0xff] %vm15321_vm2, %v10188_v9 }
 0x18d   : > { %15432 = vst [vmem:[#allocation11_spill] sm:$0xff] %v11059_v28  ;;  %v11065_v63 = vadd.f32 %v9576_v18, %v1775_v59  ;;  %v11067_v34 = vpop.f32.mrf.mxu1  ;;  %232 = vst.msk [vmem:[#allocation2 + $0x148] sm:$0xff] %vm15321_vm2, %v10188_v9  ;;  %v11083_v28 = vmul.u32.u64.low 3817748708, %v3142_v26  ;;  %v11084_v38 = vmul.u32.u64.high 3817748708, %v3142_v26, %v11083_v28 }
 0x18e   : > { %15434 = vst [vmem:[#allocation13_spill] sm:$0xff] %v11067_v34  ;;  %v9541_v5 = vpop.f32.mrf.mxu0 }
 0x18f   : > { %15433 = vst [vmem:[#allocation12_spill] sm:$0xff] %v11065_v63  ;;  %v1778_v22 = vadd.f32 %v9541_v5, %v10911_v8  ;;  %v9579_v11 = vpop.f32.mrf.mxu1  ;;  %v11089_v8 = vmul.u32.u64.low 3817748708, %v11061_v24  ;;  %v11090_v5 = vmul.u32.u64.high 3817748708, %v11061_v24, %v11089_v8 }
 0x190   : > { %v1693_v46 = vpop.f32.mrf.mxu0 }
 0x191   : > { %v1776_v13 = vadd.f32 %v1693_v46, %v10914_v0  ;;  %v11078_v31 = vadd.f32 %v9579_v11, %v1778_v22  ;;  %v2019_v57 = vpop.f32.mrf.mxu1  ;;  %v4013_v22 = vld [vmem:[#allocation2 + $0x5] sm:$0xff] }
 0x192   : > { %v9542_v7 = vpop.f32.mrf.mxu0  ;;  %v4014_v11 = vld [vmem:[#allocation2 + $0xd] sm:$0xff] }
 0x193   : > { %15435 = vst [vmem:[#allocation14_spill] sm:$0xff] %v11078_v31  ;;  %v1779_v59 = vadd.f32 %v9542_v7, %v10922_v41  ;;  %v11081_v18 = vadd.f32 %v2019_v57, %v1776_v13  ;;  %v9580_v63 = vpop.f32.mrf.mxu1  ;;  %v4049_v57 = vpack.c.bf16 %v4014_v11, %v4013_v22  ;;  %v4494_v7 = vld [vmem:[#allocation2 + $0x6] sm:$0xff]  ;;  %v11098_v31 = vadd.s32 24, %v11061_v24 }
 0x194   : > { %v11086_v9 = vpop.f32.mrf.mxu0 }
 0x195   : > { %15436 = vst [vmem:[#allocation15_spill] sm:$0xff] %v11081_v18  ;;  %15437 = vst [vmem:[#allocation16_spill] sm:$0xff] %v11086_v9  ;;  %v11092_v35 = vadd.f32 %v9580_v63, %v1779_v59  ;;  %v11094_v0 = vpop.f32.mrf.mxu1  ;;  %v4495_v18 = vld [vmem:[#allocation2 + $0xe] sm:$0xff]  ;;  %9711 = vmatprep.mubr.msk.bf16.mxu1 %vm15321_vm2, %v4049_v57 }
 0x196   : > { %15439 = vst [vmem:[#allocation18_spill] sm:$0xff] %v11094_v0  ;;  %v9545_v46 = vpop.f32.mrf.mxu0  ;;  %v3204_v0 = vshrl.u32 %v11084_v38, 4  ;;  %v11128_v38 = vadd.s32 48, %v11061_v24 }
 0x197   : > { %15438 = vst [vmem:[#allocation17_spill] sm:$0xff] %v11092_v35  ;;  %v1782_v41 = vadd.f32 %v9545_v46, %v10934_v33  ;;  %v9583_v13 = vpop.f32.mrf.mxu1  ;;  %v11105_v35 = vadd.s32 8, %v11061_v24  ;;  %v4530_v33 = vpack.c.bf16 %v4495_v18, %v4494_v7 }
 0x198   : > { %v1709_v28 = vpop.f32.mrf.mxu0 }
 0x199   : > { %v1780_v34 = vadd.f32 %v1709_v28, %v10937_v50  ;;  %v11101_v8 = vadd.f32 %v9583_v13, %v1782_v41  ;;  %v2035_v63 = vpop.f32.mrf.mxu1  ;;  %v3182_v50 = vshrl.u32 %v11090_v5, 4  ;;  %9751 = vmatprep.mubr.msk.bf16.mxu0 %vm15321_vm2, %v4530_v33 }
 0x19a   : > { %v9546_v59 = vpop.f32.mrf.mxu0  ;;  %v11115_v41 = vmul.u32.u64.low 3817748708, %v11098_v31  ;;  %v11116_v13 = vmul.u32.u64.high 3817748708, %v11098_v31, %v11115_v41 }
 0x19b   : > { %15440 = vst [vmem:[#allocation19_spill] sm:$0xff] %v11101_v8  ;;  %v1783_v22 = vadd.f32 %v9546_v59, %v10942_v21  ;;  %v11108_v11 = vadd.f32 %v2035_v63, %v1780_v34  ;;  %v9584_v46 = vpop.f32.mrf.mxu1  ;;  %v11124_v34 = vmul.u32.u64.low 3817748708, %v11105_v35  ;;  %v11125_v7 = vmul.u32.u64.high 3817748708, %v11105_v35, %v11124_v34 }
 0x19c   : > { %v11111_v9 = vpop.f32.mrf.mxu0  ;;  %v3205_v63 = vmul.u32 18, %v3204_v0  ;;  %v3183_v41 = vmul.u32 18, %v3182_v50  ;;  %v803_v0 = vadd.f32 %v10787_v43, %v10785_v16  ;;  %v11162_v16 = vadd.s32 32, %v11061_v24 }
 0x19d   : > { %15441 = vst [vmem:[#allocation20_spill] sm:$0xff] %v11108_v11  ;;  %15442 = vst [vmem:[#allocation21_spill] sm:$0xff] %v11111_v9  ;;  %v11119_v57 = vadd.f32 %v9584_v46, %v1783_v22  ;;  %v11121_v18 = vpop.f32.mrf.mxu1  ;;  %v11135_v11 = vmul.u32.u64.low 3817748708, %v11128_v38  ;;  %v11136_v8 = vmul.u32.u64.high 3817748708, %v11128_v38, %v11135_v11  ;;  %v11166_v43 = vadd.f32 %v10878_v29, %v10874_v49 }
 0x19e   : > { %15444 = vst [vmem:[#allocation23_spill] sm:$0xff] %v11121_v18  ;;  %v9549_v21 = vpop.f32.mrf.mxu0  ;;  %v3215_v11 = vshrl.u32 %v11116_v13, 4  ;;  %v11178_v13 = vadd.s32 56, %v11061_v24 }
 0x19f   : > { %15443 = vst [vmem:[#allocation22_spill] sm:$0xff] %v11119_v57  ;;  %v1786_v5 = vadd.f32 %v9549_v21, %v10954_v12  ;;  %v9587_v28 = vpop.f32.mrf.mxu1  ;;  %v11141_v12 = vsub.s32 %v3142_v26, %v3205_v63  ;;  %v11150_v21 = vsub.s32 %v11061_v24, %v3183_v41  ;;  %v1439_v26 = vadd.f32 %v10858_v52, %v10854_v55 }
 0x1a0   : > { %v1725_v59 = vpop.f32.mrf.mxu0  ;;  %v3216_v29 = vmul.u32 18, %v3215_v11  ;;  %v11195_v41 = vadd.s32 80, %v11061_v24 }
 0x1a1   : > { %v1784_v33 = vadd.f32 %v1725_v59, %v10957_v40  ;;  %v11132_v22 = vadd.f32 %v9587_v28, %v1786_v5  ;;  %v2051_v46 = vpop.f32.mrf.mxu1  ;;  %15445 = vst [vmem:[#allocation24_spill] sm:$0xff] %v11141_v12  ;;  %v1431_v40 = vadd.f32 %v10811_v54, %v10807_v37  ;;  %15446 = vst [vmem:[#allocation25_spill] sm:$0xff] %v11150_v21  ;;  %vm3574_vm3 = vcmp.ne.s32.totalorder %v11141_v12, 0 }
 0x1a2   : > { %v9550_v57 = vpop.f32.mrf.mxu0  ;;  %v11170_v37 = vadd.f32 %v10898_v14, %v10894_v44  ;;  %v1137_v54 = vadd.f32 %v10979_v60, %v803_v0  ;;  %vm3610_vm4 = vcmp.lt.s32.totalorder %v11141_v12, 0  ;;  %vm3572_vm5 = vcmp.ne.s32.totalorder %v11150_v21, 0 }
 0x1a3   : > { %v1787_v34 = vadd.f32 %v9550_v57, %v10962_v53  ;;  %v11139_v18 = vadd.f32 %v2051_v46, %v1784_v33  ;;  %v9588_v9 = vpop.f32.mrf.mxu1  ;;  %v1435_v53 = vadd.f32 %v10837_v27, %v10833_v62  ;;  %v3193_v27 = vshrl.u32 %v11125_v7, 4  ;;  %vm11230_vm7 = vmand %vm3610_vm4, %vm3574_vm3 }
 0x1a4   : > { %v11147_v50 = vpop.f32.mrf.mxu0  ;;  %v1757_v55 = vadd.f32 %v11001_v4, %v1431_v40  ;;  %v11183_v44 = vadd.s32 40, %v11061_v24  ;;  %v11189_v4 = vmul.u32.u64.low 3817748708, %v11162_v16  ;;  %v11190_v7 = vmul.u32.u64.high 3817748708, %v11162_v16, %v11189_v4 }
 0x1a5   : > { %v11157_v57 = vadd.f32 %v9588_v9, %v1787_v34  ;;  %v11159_v5 = vpop.f32.mrf.mxu1  ;;  %vm3608_vm6 = vcmp.lt.s32.totalorder %v11150_v21, 0  ;;  %v3194_v63 = vmul.u32 18, %v3193_v27  ;;  %v3248_v59 = vshrl.u32 %v11136_v8, 4 }
 0x1a6   : > { %v9553_v62 = vpop.f32.mrf.mxu0  ;;  %v11201_v34 = vmul.u32.u64.low 3817748708, %v11178_v13  ;;  %v11202_v0 = vmul.u32.u64.high 3817748708, %v11178_v13, %v11201_v34  ;;  %v1761_v40 = vadd.f32 %v11021_v15, %v1435_v53  ;;  %v15452_v53 = vmov 0  ;;  %vm11241_vm8 = vmand %vm3608_vm6, %vm3572_vm5 }
 0x1a7   : > { %15447 = vst [vmem:[#allocation26_spill] sm:$0xff] %v11157_v57  ;;  %v1790_v52 = vadd.f32 %v9553_v62, %v10974_v45  ;;  %v9591_v9 = vpop.f32.mrf.mxu1  ;;  %v11208_v62 = vadd.s32 18, %v11141_v12  ;;  %v11211_v8 = vmul.u32.u64.low 3817748708, %v11183_v44  ;;  %v11212_v27 = vmul.u32.u64.high 3817748708, %v11183_v44, %v11211_v8 }
 0x1a8   : > { %v1741_v49 = vpop.f32.mrf.mxu0  ;;  %v15453_v53 = vsel %vm11230_vm7, 4294967295, %v15452_v53  ;;  %v11254_v4 = vadd.f32 %v10964_v42, %v10960_v32  ;;  %v11278_v42 = vadd.s32 64, %v11061_v24  ;;  %v11364_v12 = vadd.s32 96, %v11061_v24 }
 0x1a9   : > { %v1788_v14 = vadd.f32 %v1741_v49, %v10977_v61  ;;  %v11186_v60 = vadd.f32 %v9591_v9, %v1790_v52  ;;  %v2067_v45 = vpop.f32.mrf.mxu1  ;;  %15450 = vst [vmem:[#allocation29_spill] sm:$0xff] %v11208_v62  ;;  %v11220_v52 = vadd.f32 %v10944_v2, %v10940_v56  ;;  %15454 = vst [vmem:[#allocation31_spill] sm:$0xff] %v15453_v53  ;;  %v11235_v49 = vadd.s32 18, %v11150_v21 }
 0x1aa   : > { %v9554_v28 = vpop.f32.mrf.mxu0  ;;  %v11246_v56 = vsub.s32 %v11098_v31, %v3216_v29  ;;  %v3249_v2 = vmul.u32 18, %v3248_v59  ;;  %v11265_v31 = vsub.s32 %v11105_v35, %v3194_v63  ;;  %v11268_v29 = vadd.f32 %v11005_v36, %v1757_v55 }
 0x1ab   : > { %15448 = vst [vmem:[#allocation27_spill] sm:$0xff] %v11186_v60  ;;  %v1791_v33 = vadd.f32 %v9554_v28, %v10981_v48  ;;  %v11198_v46 = vadd.f32 %v2067_v45, %v1788_v14  ;;  %v9592_v61 = vpop.f32.mrf.mxu1  ;;  %v11216_v48 = vadd.f32 %v10924_v39, %v10920_v20  ;;  %15455 = vst [vmem:[#allocation32_spill] sm:$0xff] %v11235_v49  ;;  %v15456_v39 = vmov 0 }
 0x1ac   : > { %v11205_v11 = vpop.f32.mrf.mxu0  ;;  %v15457_v39 = vsel %vm11241_vm8, 4294967295, %v15456_v39  ;;  %15459 = vst [vmem:[#allocation34_spill] sm:$0xff] %v11246_v56  ;;  %v11249_v14 = vmul.u32.u64.low 3817748708, %v11195_v41  ;;  %v11250_v45 = vmul.u32.u64.high 3817748708, %v11195_v41, %v11249_v14  ;;  %v11257_v28 = vadd.f32 %v10983_v30, %v1137_v54  ;;  %15460 = vst [vmem:[#allocation35_spill] sm:$0xff] %v11265_v31 }
 0x1ad   : > { %15449 = vst [vmem:[#allocation28_spill] sm:$0xff] %v11198_v46  ;;  %v11222_v9 = vadd.f32 %v9592_v61, %v1791_v33  ;;  %v11224_v15 = vpop.f32.mrf.mxu1  ;;  %15458 = vst [vmem:[#allocation33_spill] sm:$0xff] %v15457_v39  ;;  %v11271_v59 = vadd.f32 %v11025_v10, %v1761_v40  ;;  %v1765_v30 = vadd.f32 %v11035_v3, %v1439_v26  ;;  %v3226_v36 = vshrl.u32 %v11190_v7, 4  ;;  %v15463_v26 = vld [vmem:[#allocation4_spill] sm:$0xff] }
 0x1ae   : > { %v9597_v20 = vpop.f32.mrf.mxu0  ;;  %vm3575_vm9 = vcmp.ne.s32.totalorder %v11246_v56, 0  ;;  %vm3611_vm10 = vcmp.lt.s32.totalorder %v11246_v56, 0  ;;  %v11294_v63 = vsub.s32 %v11128_v38, %v3249_v2  ;;  %v11297_v3 = vadd.s32 88, %v11061_v24 }
 0x1af   : > { %15451 = vst [vmem:[#allocation30_spill] sm:$0xff] %v11222_v9  ;;  %v11260_v33 = vadd.f32 %v9597_v20, %v10993_v23  ;;  %v11262_v61 = vpop.f32.mrf.mxu1  ;;  %v15461_v23 = vld [vmem:[#allocation3_spill] sm:$0xff]  ;;  %vm3573_vm11 = vcmp.ne.s32.totalorder %v11265_v31, 0  ;;  %vm3609_vm12 = vcmp.lt.s32.totalorder %v11265_v31, 0  ;;  %v3259_v7 = vshrl.u32 %v11202_v0, 4  ;;  %vm11332_vm13 = vmand %vm3611_vm10, %vm3575_vm9 }
 0x1b0   : > { %v2265_v34 = vpop.f32.mrf.mxu0  ;;  %15462 = vst [vmem:[#allocation3_spill] sm:$0xff] %v11294_v63  ;;  %v3237_v14 = vshrl.u32 %v11212_v27, 4  ;;  %v11311_v38 = vmul.u32.u64.low 3817748708, %v11278_v42  ;;  %v11312_v2 = vmul.u32.u64.high 3817748708, %v11278_v42, %v11311_v38  ;;  %v11326_v0 = vadd.s32 18, %v11265_v31  ;;  %vm11351_vm15 = vmand %vm3609_vm12, %vm3573_vm11 }
 0x1b1   : > { %v11282_v35 = vadd.f32 %v2265_v34, %v15461_v23  ;;  %v11284_v54 = vpop.f32.mrf.mxu1  ;;  %v11315_v34 = vadd.s32 72, %v11061_v24  ;;  %v11318_v23 = vadd.f32 %v11039_v58, %v1765_v30  ;;  %v3227_v10 = vmul.u32 18, %v3226_v36 }
 0x1b2   : > { %v9598_v55 = vpop.f32.mrf.mxu0  ;;  %15466 = vst [vmem:[#allocation37_spill] sm:$0xff] %v11326_v0  ;;  %v15467_v38 = vmov 0  ;;  %vm3578_vm14 = vcmp.ne.s32.totalorder %v11294_v63, 0  ;;  %v3292_v58 = vshrl.u32 %v11250_v45, 4  ;;  %v15470_v49 = vmov 0 }
 0x1b3   : > { %v11300_v40 = vadd.f32 %v9598_v55, %v15463_v26  ;;  %v11302_v8 = vpop.f32.mrf.mxu1  ;;  %15464 = vst [vmem:[#allocation4_spill] sm:$0xff] %v11318_v23  ;;  %v11323_v26 = vadd.s32 18, %v11246_v56  ;;  %v15468_v38 = vsel %vm11332_vm13, 4294967295, %v15467_v38  ;;  %v15471_v49 = vsel %vm11351_vm15, 4294967295, %v15470_v49 }
 0x1b4   : > { %v11307_v20 = vpop.f32.mrf.mxu0  ;;  %15469 = vst [vmem:[#allocation38_spill] sm:$0xff] %v15468_v38  ;;  %v11339_v30 = vmul.u32.u64.low 3817748708, %v11297_v3  ;;  %v11340_v32 = vmul.u32.u64.high 3817748708, %v11297_v3, %v11339_v30  ;;  %15472 = vst [vmem:[#allocation39_spill] sm:$0xff] %v15471_v49  ;;  %vm3614_vm0 = vcmp.lt.s32.totalorder %v11294_v63, 0  ;;  %v3260_v45 = vmul.u32 18, %v3259_v7 }
 0x1b5   : > { %v11320_v55 = vpop.f32.mrf.mxu1  ;;  %15465 = vst [vmem:[#allocation36_spill] sm:$0xff] %v11323_v26  ;;  %v11357_v39 = vadd.s32 112, %v11061_v24  ;;  %v3238_v9 = vmul.u32 18, %v3237_v14  ;;  %v1769_v62 = vadd.f32 %v11048_v6, %v11166_v43  ;;  %v11374_v7 = vadd.s32 18, %v11294_v63  ;;  %vm11391_vm1 = vmand %vm3614_vm0, %vm3578_vm14 }
 0x1b6   : > { %v9601_v27 = vpop.f32.mrf.mxu0  ;;  %v11377_v14 = vsub.s32 %v11162_v16, %v3227_v10  ;;  %v15475_v6 = vmov 0  ;;  %v3293_v16 = vmul.u32 18, %v3292_v58  ;;  %v11396_v43 = vadd.s32 120, %v11061_v24 }
 0x1b7   : > { %v11343_v21 = vadd.f32 %v9601_v27, %v11016_v1  ;;  %v11345_v36 = vpop.f32.mrf.mxu1  ;;  %v11360_v1 = vmul.u32.u64.low 3817748708, %v11315_v34  ;;  %v11361_v27 = vmul.u32.u64.high 3817748708, %v11315_v34, %v11360_v1  ;;  %15473 = vst [vmem:[#allocation40_spill] sm:$0xff] %v11374_v7  ;;  %v15476_v6 = vsel %vm11391_vm1, 4294967295, %v15475_v6 }
 0x1b8   : > { %v2281_v30 = vpop.f32.mrf.mxu0  ;;  %15474 = vst [vmem:[#allocation41_spill] sm:$0xff] %v11377_v14  ;;  %15477 = vst [vmem:[#allocation42_spill] sm:$0xff] %v15476_v6  ;;  %v11404_v1 = vsub.s32 %v11178_v13, %v3260_v45  ;;  %v11413_v49 = vsub.s32 %v11183_v44, %v3238_v9  ;;  %v3270_v58 = vshrl.u32 %v11312_v2, 4  ;;  %vm3576_vm3 = vcmp.ne.s32.totalorder %v11377_v14, 0  ;;  %v15495_v6 = vld [vmem:[#allocation6_spill] sm:$0xff] }
 0x1b9   : > { %v11369_v53 = vadd.f32 %v2281_v30, %v11019_v19  ;;  %v11371_v46 = vpop.f32.mrf.mxu1  ;;  %v11407_v19 = vmul.u32.u64.low 3817748708, %v11357_v39  ;;  %v11408_v31 = vmul.u32.u64.high 3817748708, %v11357_v39, %v11407_v19  ;;  %vm3612_vm4 = vcmp.lt.s32.totalorder %v11377_v14, 0 }
 0x1ba   : > { %v9602_v60 = vpop.f32.mrf.mxu0  ;;  %15480 = vst [vmem:[#allocation45_spill] sm:$0xff] %v11404_v1  ;;  %15481 = vst [vmem:[#allocation46_spill] sm:$0xff] %v11413_v49  ;;  %v11432_v9 = vsub.s32 %v11195_v41, %v3293_v16  ;;  %v1773_v2 = vadd.f32 %v11063_v25, %v11170_v37  ;;  %v11447_v63 = vadd.s32 18, %v11377_v14  ;;  %vm3579_vm5 = vcmp.ne.s32.totalorder %v11404_v1, 0 }
 0x1bb   : > { %v11399_v10 = vadd.f32 %v9602_v60, %v11023_v17  ;;  %v11401_v30 = vpop.f32.mrf.mxu1  ;;  %v11417_v56 = vmul.u32.u64.low 3817748708, %v11364_v12  ;;  %v11418_v17 = vmul.u32.u64.high 3817748708, %v11364_v12, %v11417_v56  ;;  %v11421_v60 = vadd.f32 %v11052_v47, %v1769_v62  ;;  %vm11467_vm11 = vmand %vm3612_vm4, %vm3576_vm3 }
 0x1bc   : > { %15479 = vst [vmem:[#allocation44_spill] sm:$0xff] %v11401_v30  ;;  %v11410_v0 = vpop.f32.mrf.mxu0  ;;  %15484 = vst [vmem:[#allocation49_spill] sm:$0xff] %v11432_v9  ;;  %v3303_v56 = vshrl.u32 %v11340_v32, 4  ;;  %v11436_v47 = vmul.u32.u64.low 3817748708, %v11396_v43  ;;  %v11437_v62 = vmul.u32.u64.high 3817748708, %v11396_v43, %v11436_v47  ;;  %vm3615_vm6 = vcmp.lt.s32.totalorder %v11404_v1, 0 }
 0x1bd   : > { %15478 = vst [vmem:[#allocation43_spill] sm:$0xff] %v11399_v10  ;;  %15482 = vst [vmem:[#allocation47_spill] sm:$0xff] %v11421_v60  ;;  %v11423_v13 = vpop.f32.mrf.mxu1  ;;  %vm3577_vm9 = vcmp.ne.s32.totalorder %v11413_v49, 0  ;;  %v3271_v32 = vmul.u32 18, %v3270_v58  ;;  %v3281_v16 = vshrl.u32 %v11361_v27, 4  ;;  %v15488_v47 = vld [vmem:[#allocation5_spill] sm:$0xff] }
 0x1be   : > { %15483 = vst [vmem:[#allocation48_spill] sm:$0xff] %v11423_v13  ;;  %v9605_v44 = vpop.f32.mrf.mxu0  ;;  %15487 = vst [vmem:[#allocation52_spill] sm:$0xff] %v11447_v63  ;;  %vm3613_vm10 = vcmp.lt.s32.totalorder %v11413_v49, 0  ;;  %v11461_v37 = vadd.s32 144, %v11061_v24  ;;  %v15490_v58 = vmov 0  ;;  %v11472_v27 = vadd.s32 18, %v11404_v1 }
 0x1bf   : > { %v11442_v19 = vadd.f32 %v9605_v44, %v11030_v51  ;;  %v11444_v45 = vpop.f32.mrf.mxu1  ;;  %v11458_v51 = vadd.s32 104, %v11061_v24  ;;  %v15491_v58 = vsel %vm11467_vm11, 4294967295, %v15490_v58  ;;  %vm3582_vm12 = vcmp.ne.s32.totalorder %v11432_v9, 0  ;;  %vm11487_vm0 = vmand %vm3615_vm6, %vm3579_vm5 }
 0x1c0   : > { %15486 = vst [vmem:[#allocation51_spill] sm:$0xff] %v11444_v45  ;;  %v2297_v41 = vpop.f32.mrf.mxu0  ;;  %15492 = vst [vmem:[#allocation53_spill] sm:$0xff] %v15491_v58  ;;  %vm3618_vm14 = vcmp.lt.s32.totalorder %v11432_v9, 0  ;;  %v15498_v60 = vmov 0  ;;  %v11492_v23 = vadd.s32 18, %v11413_v49  ;;  %v3347_v13 = vshrl.u32 %v11437_v62, 4 }
 0x1c1   : > { %15485 = vst [vmem:[#allocation50_spill] sm:$0xff] %v11442_v19  ;;  %v11454_v25 = vadd.f32 %v2297_v41, %v15488_v47  ;;  %15493 = vst [vmem:[#allocation54_spill] sm:$0xff] %v11472_v27  ;;  %v3304_v41 = vmul.u32 18, %v3303_v56  ;;  %v15494_v47 = vld [vmem:[#allocation16_spill] sm:$0xff]  ;;  %v11481_v38 = vpop.f32.mrf.mxu1  ;;  %v15499_v60 = vsel %vm11487_vm0, 4294967295, %v15498_v60  ;;  %v3336_v56 = vshrl.u32 %v11408_v31, 4 }
 0x1c2   : > { %v9606_v44 = vpop.f32.mrf.mxu0  ;;  %v1777_v7 = vadd.f32 %v15494_v47, %v11216_v48  ;;  %15497 = vst [vmem:[#allocation6_spill] sm:$0xff] %v11481_v38  ;;  %15500 = vst [vmem:[#allocation55_spill] sm:$0xff] %v15499_v60  ;;  %v15503_v48 = vmov 0  ;;  %v3282_v47 = vmul.u32 18, %v3281_v16  ;;  %v15508_v31 = vmov 0  ;;  %v15538_v27 = vld [vmem:[#allocation11_spill] sm:$0xff] }
 0x1c3   : > { %15489 = vst [vmem:[#allocation5_spill] sm:$0xff] %v11454_v25  ;;  %v11479_v26 = vadd.f32 %v9606_v44, %v15495_v6  ;;  %15501 = vst [vmem:[#allocation56_spill] sm:$0xff] %v11492_v23  ;;  %v11506_v6 = vadd.s32 18, %v11432_v9  ;;  %v11509_v44 = vsub.s32 %v11278_v42, %v3271_v32  ;;  %v15511_v42 = vld [vmem:[#allocation13_spill] sm:$0xff]  ;;  %v11536_v57 = vsub.s32 %v11297_v3, %v3304_v41  ;;  %v11539_v30 = vpop.f32.mrf.mxu1  ;;  %v15514_v3 = vld [vmem:[#allocation18_spill] sm:$0xff] }
 0x1c4   : > { %v11495_v25 = vpop.f32.mrf.mxu0  ;;  %vm11501_vm3 = vmand %vm3613_vm10, %vm3577_vm9  ;;  %v11525_v45 = vmul.u32.u64.low 3817748708, %v11461_v37  ;;  %v11526_v19 = vmul.u32.u64.high 3817748708, %v11461_v37, %v11525_v45  ;;  %v11529_v32 = vadd.f32 %v15511_v42, %v1773_v2  ;;  %v3337_v42 = vmul.u32 18, %v3336_v56  ;;  %v15520_v56 = vld [vmem:[#allocation21_spill] sm:$0xff] }
 0x1c5   : > { %15496 = vst [vmem:[#allocation16_spill] sm:$0xff] %v11479_v26  ;;  %15502 = vst [vmem:[#allocation57_spill] sm:$0xff] %v11495_v25  ;;  %v15504_v48 = vsel %vm11501_vm3, 4294967295, %v15503_v48  ;;  %v3314_v26 = vshrl.u32 %v11418_v17, 4  ;;  %v11521_v25 = vmul.u32.u64.low 3817748708, %v11458_v51  ;;  %v11522_v38 = vmul.u32.u64.high 3817748708, %v11458_v51, %v11521_v25 }
 0x1c6   : > { %15505 = vst [vmem:[#allocation58_spill] sm:$0xff] %v15504_v48  ;;  %15506 = vst [vmem:[#allocation59_spill] sm:$0xff] %v11506_v6  ;;  %v9609_v17 = vpop.f32.mrf.mxu0  ;;  %v15513_v25 = vld [vmem:[#allocation7_spill] sm:$0xff]  ;;  %v11553_v41 = vadd.f32 %v15514_v3, %v1777_v7  ;;  %v15517_v45 = vld [vmem:[#allocation8_spill] sm:$0xff]  ;;  %vm3580_vm5 = vcmp.ne.s32.totalorder %v11509_v44, 0  ;;  %vm3616_vm6 = vcmp.lt.s32.totalorder %v11509_v44, 0  ;;  %v1781_v3 = vadd.f32 %v15520_v56, %v11220_v52 }
 0x1c7   : > { %15507 = vst [vmem:[#allocation60_spill] sm:$0xff] %v11509_v44  ;;  %vm11516_vm4 = vmand %vm3618_vm14, %vm3582_vm12  ;;  %v11542_v10 = vadd.f32 %v9609_v17, %v15513_v25  ;;  %v11560_v25 = vsub.s32 %v11315_v34, %v3282_v47  ;;  %v3315_v16 = vmul.u32 18, %v3314_v26  ;;  %v11568_v7 = vadd.s32 18, %v11509_v44  ;;  %v11576_v26 = vpop.f32.mrf.mxu1  ;;  %v15521_v47 = vld [vmem:[#allocation9_spill] sm:$0xff] }
 0x1c8   : > { %v15509_v31 = vsel %vm11516_vm4, 4294967295, %v15508_v31  ;;  %15512 = vst [vmem:[#allocation13_spill] sm:$0xff] %v11536_v57  ;;  %15515 = vst [vmem:[#allocation7_spill] sm:$0xff] %v11553_v41  ;;  %v2313_v62 = vpop.f32.mrf.mxu0  ;;  %vm3583_vm9 = vcmp.ne.s32.totalorder %v11536_v57, 0  ;;  %v3348_v17 = vmul.u32 18, %v3347_v13  ;;  %v11574_v34 = vadd.s32 128, %v11061_v24 }
 0x1c9   : > { %15510 = vst [vmem:[#allocation61_spill] sm:$0xff] %v15509_v31  ;;  %15516 = vst [vmem:[#allocation18_spill] sm:$0xff] %v11560_v25  ;;  %v11563_v1 = vadd.f32 %v2313_v62, %v15517_v45  ;;  %vm3619_vm10 = vcmp.lt.s32.totalorder %v11536_v57, 0  ;;  %v11583_v62 = vadd.s32 18, %v11536_v57  ;;  %v11586_v9 = vsub.s32 %v11357_v39, %v3337_v42  ;;  %v11625_v23 = vpop.f32.mrf.mxu1 }
 0x1ca   : > { %15519 = vst [vmem:[#allocation62_spill] sm:$0xff] %v11568_v7  ;;  %v9610_v2 = vpop.f32.mrf.mxu0  ;;  %v11593_v13 = vsub.s32 %v11364_v12, %v3315_v16  ;;  %v11599_v56 = vadd.s32 18, %v11560_v25  ;;  %v3380_v39 = vshrl.u32 %v11526_v19, 4  ;;  %v11604_v42 = vadd.s32 136, %v11061_v24  ;;  %v11623_v19 = vld [vmem:[%s15297_s3 + $0x38] sm:$0xff]   ;;  %vm11634_vm2 = vmand %vm3616_vm6, %vm3580_vm5 }
 0x1cb   : > { %15518 = vst [vmem:[#allocation8_spill] sm:$0xff] %v11563_v1  ;;  %v11579_v45 = vadd.f32 %v9610_v2, %v15521_v47  ;;  %15523 = vst [vmem:[#allocation9_spill] sm:$0xff] %v11583_v62  ;;  %v11596_v2 = vadd.s32 152, %v11061_v24  ;;  %v3325_v47 = vshrl.u32 %v11522_v38, 4  ;;  %v1785_v6 = vadd.f32 %v11147_v50, %v11254_v4  ;;  %v11618_v38 = vld [vmem:[%s15297_s3 + $0x28] sm:$0xff]   ;;  %9827 = vmatprep.subr.bf16.mxu0 %v11623_v19 }
 0x1cc   : > { %15524 = vst [vmem:[#allocation63_spill] sm:$0xff] %v11586_v9  ;;  %v11588_v52 = vpop.f32.mrf.mxu0  ;;  %15525 = vst [vmem:[#allocation64_spill] sm:$0xff] %v11593_v13  ;;  %v11609_v12 = vsub.s32 %v11396_v43, %v3348_v17  ;;  %v11612_v16 = vmul.u32.u64.low 3817748708, %v11574_v34  ;;  %v11613_v49 = vmul.u32.u64.high 3817748708, %v11574_v34, %v11612_v16  ;;  %v15530_v50 = vld [vmem:[#allocation10_spill] sm:$0xff]  ;;  %vm3586_vm14 = vcmp.ne.s32.totalorder %v11586_v9, 0  ;;  %9787 = vmatprep.subr.bf16.mxu1 %v11618_v38 }
 0x1cd   : > { %15522 = vst [vmem:[#allocation21_spill] sm:$0xff] %v11579_v45  ;;  %15526 = vst [vmem:[#allocation65_spill] sm:$0xff] %v11599_v56  ;;  %v11641_v17 = vadd.s32 18, %v11586_v9  ;;  %v15542_v14 = vmov 0  ;;  %v11671_v63 = vadd.s32 18, %v11593_v13  ;;  %v3326_v58 = vmul.u32 18, %v3325_v47 }
 0x1ce   : > { %v9613_v31 = vpop.f32.mrf.mxu0  ;;  %15527 = vst [vmem:[#allocation66_spill] sm:$0xff] %v11609_v12  ;;  %15528 = vst [vmem:[#allocation67_spill] sm:$0xff] %v11618_v38  ;;  %vm15546_vm6 = vcmp.lt.s32.totalorder %v11586_v9, 0  ;;  %vm3587_vm3 = vcmp.ne.s32.totalorder %v11609_v12, 0  ;;  %v15550_v38 = vld [vmem:[#allocation23_spill] sm:$0xff]  ;;  %v11769_v9 = vadd.s32 208, %v11061_v24 }
 0x1cf   : > { %15529 = vst [vmem:[#allocation68_spill] sm:$0xff] %v11623_v19  ;;  %v11628_v4 = vadd.f32 %v9613_v31, %v15530_v50  ;;  %15534 = vst [vmem:[#allocation69_spill] sm:$0xff] %v11641_v17  ;;  %v15535_v31 = vmov 0  ;;  %v11654_v50 = vmul.u32.u64.low 3817748708, %v11596_v2  ;;  %v11655_v48 = vmul.u32.u64.high 3817748708, %v11596_v2, %v11654_v50 }
 0x1d0   : > { %v2329_v16 = vpop.f32.mrf.mxu0  ;;  %vm11647_vm4 = vmand %vm3619_vm10, %vm3583_vm9  ;;  %vm15540_vm9 = vcmp.ne.s32.totalorder %v11560_v25, 0  ;;  %vm15541_vm10 = vcmp.lt.s32.totalorder %v11560_v25, 0  ;;  %15545 = vst [vmem:[#allocation72_spill] sm:$0xff] %v11671_v63  ;;  %v3381_v50 = vmul.u32 18, %v3380_v39  ;;  %v11688_v47 = vadd.f32 %v15550_v38, %v1781_v3 }
 0x1d1   : > { %15531 = vst [vmem:[#allocation10_spill] sm:$0xff] %v11628_v4  ;;  %v15536_v31 = vsel %vm11647_vm4, 4294967295, %v15535_v31  ;;  %v11660_v60 = vadd.f32 %v2329_v16, %v15538_v27  ;;  %vm11666_vm12 = vmand %vm15541_vm10, %vm15540_vm9  ;;  %v15547_v27 = vmov 0  ;;  %vm3623_vm9 = vcmp.lt.s32.totalorder %v11609_v12, 0  ;;  %v15552_v4 = vld [vmem:[#allocation12_spill] sm:$0xff] }
 0x1d2   : > { %15537 = vst [vmem:[#allocation70_spill] sm:$0xff] %v15536_v31  ;;  %v15543_v14 = vsel %vm11666_vm12, 4294967295, %v15542_v14  ;;  %v9614_v41 = vpop.f32.mrf.mxu0  ;;  %vm11677_vm5 = vmand %vm15546_vm6, %vm3586_vm14  ;;  %v11684_v16 = vmul.u32.u64.low 3817748708, %v11604_v42  ;;  %v11685_v19 = vmul.u32.u64.high 3817748708, %v11604_v42, %v11684_v16  ;;  %v1789_v39 = vadd.f32 %v11205_v11, %v11257_v28 }
 0x1d3   : > { %15539 = vst [vmem:[#allocation11_spill] sm:$0xff] %v11660_v60  ;;  %15544 = vst [vmem:[#allocation71_spill] sm:$0xff] %v15543_v14  ;;  %v15548_v27 = vsel %vm11677_vm5, 4294967295, %v15547_v27  ;;  %v11692_v60 = vpop.f32.mrf.mxu1  ;;  %v11695_v45 = vadd.f32 %v9614_v41, %v15552_v4  ;;  %vm15553_vm14 = vcmp.ne.s32.totalorder %v11593_v13, 0  ;;  %vm15554_vm6 = vcmp.lt.s32.totalorder %v11593_v13, 0 }
 0x1d4   : > { %15549 = vst [vmem:[#allocation73_spill] sm:$0xff] %v15548_v27  ;;  %15551 = vst [vmem:[#allocation23_spill] sm:$0xff] %v11688_v47  ;;  %v15555_v3 = vmov 0  ;;  %v11709_v38 = vpop.f32.mrf.mxu0  ;;  %v11720_v41 = vadd.s32 18, %v11609_v12  ;;  %v11723_v4 = vadd.s32 176, %v11061_v24  ;;  %v11726_v16 = vadd.f32 %v11159_v5, %v1785_v6 }
 0x1d5   : > { %vm11705_vm10 = vmand %vm15554_vm6, %vm15553_vm14  ;;  %v15560_v11 = vmov 0  ;;  %v11737_v1 = vsub.s32 %v11458_v51, %v3326_v58  ;;  %v11740_v28 = vsub.s32 %v11461_v37, %v3381_v50  ;;  %v11743_v47 = vadd.s32 160, %v11061_v24  ;;  %v11760_v50 = vpop.f32.mrf.mxu1 }
 0x1d6   : > { %v15556_v3 = vsel %vm11705_vm10, 4294967295, %v15555_v3  ;;  %15558 = vst [vmem:[#allocation74_spill] sm:$0xff] %v11720_v41  ;;  %15559 = vst [vmem:[#allocation75_spill] sm:$0xff] %v11726_v16  ;;  %v9617_v25 = vpop.f32.mrf.mxu0  ;;  %v3358_v51 = vshrl.u32 %v11613_v49, 4  ;;  %v11755_v58 = vadd.s32 184, %v11061_v24  ;;  %v11758_v37 = vadd.f32 %v11224_v15, %v1789_v39  ;;  %v15566_v16 = vld [vmem:[#allocation14_spill] sm:$0xff] }
 0x1d7   : > { %15557 = vst [vmem:[#allocation12_spill] sm:$0xff] %v15556_v3  ;;  %vm11732_vm14 = vmand %vm3623_vm9, %vm3587_vm3  ;;  %v11763_v56 = vadd.f32 %v9617_v25, %v15566_v16  ;;  %v11766_v5 = vadd.s32 168, %v11061_v24  ;;  %v11773_v49 = vadd.f32 %v11262_v61, %v11260_v33  ;;  %v3391_v39 = vshrl.u32 %v11655_v48, 4  ;;  %v15567_v16 = vld [vmem:[#allocation15_spill] sm:$0xff]  ;;  %v11794_v48 = vpop.f32.mrf.mxu1  ;;  %v15568_v41 = vld [vmem:[#allocation17_spill] sm:$0xff] }
 0x1d8   : > { %v15561_v11 = vsel %vm11732_vm14, 4294967295, %v15560_v11  ;;  %15563 = vst [vmem:[#allocation77_spill] sm:$0xff] %v11737_v1  ;;  %15564 = vst [vmem:[#allocation78_spill] sm:$0xff] %v11740_v28  ;;  %v2345_v6 = vpop.f32.mrf.mxu0  ;;  %v11781_v25 = vadd.s32 192, %v11061_v24  ;;  %vm3585_vm3 = vcmp.ne.s32.totalorder %v11737_v1, 0  ;;  %vm3621_vm9 = vcmp.lt.s32.totalorder %v11737_v1, 0 }
 0x1d9   : > { %15562 = vst [vmem:[#allocation76_spill] sm:$0xff] %v15561_v11  ;;  %15565 = vst [vmem:[#allocation79_spill] sm:$0xff] %v11758_v37  ;;  %v11784_v37 = vadd.f32 %v2345_v6, %v15567_v16  ;;  %v3359_v61 = vmul.u32 18, %v3358_v51  ;;  %v3369_v13 = vshrl.u32 %v11685_v19, 4  ;;  %vm3626_vm14 = vcmp.lt.s32.totalorder %v11740_v28, 0  ;;  %v11846_v62 = vpop.f32.mrf.mxu1 }
 0x1da   : > { %v9618_v33 = vpop.f32.mrf.mxu0  ;;  %v11791_v15 = vmul.u32.u64.low 3817748708, %v11723_v4  ;;  %v11792_v12 = vmul.u32.u64.high 3817748708, %v11723_v4, %v11791_v15  ;;  %v11801_v6 = vmul.u32.u64.low 3817748708, %v11743_v47  ;;  %v11802_v16 = vmul.u32.u64.high 3817748708, %v11743_v47, %v11801_v6  ;;  %vm11818_vm6 = vmand %vm3621_vm9, %vm3585_vm3 }
 0x1db   : > { %v11797_v11 = vadd.f32 %v9618_v33, %v15568_v41  ;;  %v2409_v51 = vadd.f32 %v11307_v20, %v11268_v29  ;;  %v11809_v19 = vadd.s32 18, %v11737_v1  ;;  %v11812_v15 = vadd.s32 18, %v11740_v28 }
 0x1dc   : > { %v11806_v63 = vpop.f32.mrf.mxu0  ;;  %v3392_v3 = vmul.u32 18, %v3391_v39  ;;  %v15571_v41 = vmov 0  ;;  %v11823_v33 = vmul.u32.u64.low 3817748708, %v11755_v58  ;;  %v11824_v29 = vmul.u32.u64.high 3817748708, %v11755_v58, %v11823_v33 }
 0x1dd   : > { %15569 = vst [vmem:[#allocation14_spill] sm:$0xff] %v11809_v19  ;;  %15570 = vst [vmem:[#allocation15_spill] sm:$0xff] %v11812_v15  ;;  %v15572_v41 = vsel %vm11818_vm6, 4294967295, %v15571_v41  ;;  %v11827_v20 = vmul.u32.u64.low 3817748708, %v11766_v5  ;;  %v11828_v6 = vmul.u32.u64.high 3817748708, %v11766_v5, %v11827_v20  ;;  %v11832_v17 = vadd.f32 %v11284_v54, %v11282_v35 }
 0x1de   : > { %15573 = vst [vmem:[#allocation17_spill] sm:$0xff] %v15572_v41  ;;  %v9621_v39 = vpop.f32.mrf.mxu0  ;;  %vm15574_vm10 = vcmp.ne.s32.totalorder %v11740_v28, 0  ;;  %v15575_v27 = vmov 0  ;;  %v11841_v14 = vsub.s32 %v11574_v34, %v3359_v61  ;;  %v3370_v57 = vmul.u32 18, %v3369_v13  ;;  %v15579_v20 = vld [vmem:[#allocation19_spill] sm:$0xff] }
 0x1df   : > { %vm11836_vm5 = vmand %vm3626_vm14, %vm15574_vm10  ;;  %v11844_v33 = vadd.s32 216, %v11061_v24  ;;  %v11849_v31 = vadd.f32 %v9621_v39, %v15579_v20  ;;  %v11852_v35 = vmul.u32.u64.low 3817748708, %v11769_v9  ;;  %v11853_v54 = vmul.u32.u64.high 3817748708, %v11769_v9, %v11852_v35 }
 0x1e0   : > { %v15576_v27 = vsel %vm11836_vm5, 4294967295, %v15575_v27  ;;  %15578 = vst [vmem:[#allocation81_spill] sm:$0xff] %v11841_v14  ;;  %v11856_v44 = vadd.s32 200, %v11061_v24  ;;  %v11860_v34 = vadd.f32 %v11302_v8, %v11300_v40  ;;  %v11863_v13 = vadd.f32 %v11320_v55, %v2409_v51  ;;  %v2361_v61 = vpop.f32.mrf.mxu0  ;;  %v15580_v35 = vld [vmem:[#allocation20_spill] sm:$0xff]  ;;  %v11895_v40 = vpop.f32.mrf.mxu1 }
 0x1e1   : > { %15577 = vst [vmem:[#allocation80_spill] sm:$0xff] %v15576_v27  ;;  %v11870_v20 = vadd.s32 240, %v11061_v24  ;;  %v11873_v7 = vadd.f32 %v2361_v61, %v15580_v35  ;;  %v11880_v8 = vsub.s32 %v11596_v2, %v3392_v3  ;;  %v11883_v55 = vadd.s32 224, %v11061_v24  ;;  %v15584_v2 = vld [vmem:[#allocation22_spill] sm:$0xff] }
 0x1e2   : > { %v9622_v51 = vpop.f32.mrf.mxu0  ;;  %vm3588_vm10 = vcmp.ne.s32.totalorder %v11841_v14, 0  ;;  %vm3624_vm14 = vcmp.lt.s32.totalorder %v11841_v14, 0  ;;  %v11888_v39 = vsub.s32 %v11604_v42, %v3370_v57  ;;  %v3424_v61 = vshrl.u32 %v11792_v12, 4  ;;  %v11933_v27 = vpop.f32.mrf.mxu1 }
 0x1e3   : > { %15581 = vst [vmem:[#allocation19_spill] sm:$0xff] %v11873_v7  ;;  %15582 = vst [vmem:[#allocation20_spill] sm:$0xff] %v11880_v8  ;;  %v11893_v35 = vadd.f32 %v11345_v36, %v11343_v21  ;;  %v11898_v3 = vadd.f32 %v9622_v51, %v15584_v2  ;;  %v3402_v28 = vshrl.u32 %v11802_v16, 4  ;;  %v11902_v15 = vadd.s32 248, %v11061_v24  ;;  %v15612_v7 = vld [vmem:[#allocation51_spill] sm:$0xff] }
 0x1e4   : > { %15583 = vst [vmem:[#allocation82_spill] sm:$0xff] %v11888_v39  ;;  %v11906_v57 = vadd.f32 %v11371_v46, %v11369_v53  ;;  %v2413_v42 = vadd.f32 %v11410_v0, %v11271_v59  ;;  %v11910_v12 = vpop.f32.mrf.mxu0  ;;  %v11913_v21 = vadd.s32 18, %v11841_v14  ;;  %v11916_v36 = vadd.s32 232, %v11061_v24  ;;  %vm11920_vm3 = vmand %vm3624_vm14, %vm3588_vm10  ;;  %v15599_v14 = vld [vmem:[#allocation43_spill] sm:$0xff] }
 0x1e5   : > { %15585 = vst [vmem:[#allocation22_spill] sm:$0xff] %v11898_v3  ;;  %15586 = vst [vmem:[#allocation83_spill] sm:$0xff] %v11902_v15  ;;  %v15590_v16 = vmov 0  ;;  %vm3591_vm9 = vcmp.ne.s32.totalorder %v11880_v8, 0  ;;  %vm3627_vm5 = vcmp.lt.s32.totalorder %v11880_v8, 0  ;;  %v3435_v46 = vshrl.u32 %v11824_v29, 4 }
 0x1e6   : > { %15587 = vst [vmem:[#allocation84_spill] sm:$0xff] %v11910_v12  ;;  %15588 = vst [vmem:[#allocation85_spill] sm:$0xff] %v11913_v21  ;;  %v15591_v16 = vsel %vm11920_vm3, 4294967295, %v15590_v16  ;;  %v3413_v53 = vshrl.u32 %v11828_v6, 4  ;;  %v9625_v59 = vpop.f32.mrf.mxu0  ;;  %vm3589_vm6 = vcmp.ne.s32.totalorder %v11888_v39, 0  ;;  %v3425_v0 = vmul.u32 18, %v3424_v61 }
 0x1e7   : > { %15589 = vst [vmem:[#allocation86_spill] sm:$0xff] %v11916_v36  ;;  %15592 = vst [vmem:[#allocation87_spill] sm:$0xff] %v15591_v16  ;;  %v11930_v51 = vmul.u32.u64.low 3817748708, %v11781_v25  ;;  %v11931_v2 = vmul.u32.u64.high 3817748708, %v11781_v25, %v11930_v51  ;;  %v11936_v1 = vadd.f32 %v9625_v59, %v11132_v22  ;;  %vm3625_vm10 = vcmp.lt.s32.totalorder %v11888_v39, 0  ;;  %v15600_v21 = vld [vmem:[#allocation44_spill] sm:$0xff] }
 0x1e8   : > { %v3403_v19 = vmul.u32 18, %v3402_v28  ;;  %v3468_v29 = vshrl.u32 %v11853_v54, 4  ;;  %v2377_v41 = vpop.f32.mrf.mxu0  ;;  %v11945_v61 = vadd.s32 18, %v11880_v8  ;;  %vm11958_vm14 = vmand %vm3627_vm5, %vm3591_vm9  ;;  %v15596_v28 = vmov 0  ;;  %v15611_v12 = vld [vmem:[#allocation50_spill] sm:$0xff] }
 0x1e9   : > { %15593 = vst [vmem:[#allocation88_spill] sm:$0xff] %v11936_v1  ;;  %v11948_v51 = vmul.u32.u64.low 3817748708, %v11844_v33  ;;  %v11949_v3 = vmul.u32.u64.high 3817748708, %v11844_v33, %v11948_v51  ;;  %v11952_v22 = vadd.f32 %v2377_v41, %v11139_v18  ;;  %v15597_v28 = vsel %vm11958_vm14, 4294967295, %v15596_v28  ;;  %vm11976_vm5 = vmand %vm3625_vm10, %vm3589_vm6 }
 0x1ea   : > { %15594 = vst [vmem:[#allocation89_spill] sm:$0xff] %v11945_v61  ;;  %v11963_v54 = vadd.s32 18, %v11888_v39  ;;  %v3436_v59 = vmul.u32 18, %v3435_v46  ;;  %v3414_v6 = vmul.u32 18, %v3413_v53  ;;  %v11967_v16 = vadd.f32 %v15600_v21, %v15599_v14  ;;  %v15601_v51 = vld [vmem:[#allocation48_spill] sm:$0xff]  ;;  %v9626_v41 = vpop.f32.mrf.mxu0  ;;  %v11986_v14 = vpop.f32.mrf.mxu1  ;;  %v15608_v21 = vld [vmem:[#allocation26_spill] sm:$0xff] }
 0x1eb   : > { %15595 = vst [vmem:[#allocation90_spill] sm:$0xff] %v11952_v22  ;;  %v11970_v18 = vadd.f32 %v15601_v51, %v2413_v42  ;;  %v15603_v22 = vmov 0  ;;  %v11981_v1 = vsub.s32 %v11723_v4, %v3425_v0  ;;  %v11984_v46 = vadd.s32 272, %v11061_v24  ;;  %v15613_v4 = vld [vmem:[#allocation5_spill] sm:$0xff]  ;;  %v15614_v0 = vld [vmem:[#allocation6_spill] sm:$0xff] }
 0x1ec   : > { %15598 = vst [vmem:[#allocation91_spill] sm:$0xff] %v11963_v54  ;;  %v15604_v22 = vsel %vm11976_vm5, 4294967295, %v15603_v22  ;;  %v11989_v42 = vadd.f32 %v9626_v41, %v15608_v21  ;;  %v11992_v53 = vsub.s32 %v11743_v47, %v3403_v19  ;;  %v3469_v51 = vmul.u32 18, %v3468_v29  ;;  %v15617_v29 = vld [vmem:[#allocation4_spill] sm:$0xff]  ;;  %v15618_v41 = vld [vmem:[#allocation57_spill] sm:$0xff] }
 0x1ed   : > { %15602 = vst [vmem:[#allocation43_spill] sm:$0xff] %v11970_v18  ;;  %15605 = vst [vmem:[#allocation44_spill] sm:$0xff] %v15604_v22  ;;  %v11995_v36 = vadd.s32 256, %v11061_v24  ;;  %v11999_v18 = vadd.f32 %v15612_v7, %v15611_v12  ;;  %v12003_v15 = vadd.f32 %v15614_v0, %v15613_v4  ;;  %v12012_v19 = vadd.s32 280, %v11061_v24  ;;  %v15621_v0 = vld [vmem:[#allocation16_spill] sm:$0xff]  ;;  %v15622_v7 = vld [vmem:[#allocation27_spill] sm:$0xff] }
 0x1ee   : > { %15606 = vst [vmem:[#allocation48_spill] sm:$0xff] %v11981_v1  ;;  %15607 = vst [vmem:[#allocation92_spill] sm:$0xff] %v11984_v46  ;;  %v12005_v46 = vpop.f32.mrf.mxu0  ;;  %v2417_v21 = vadd.f32 %v15618_v41, %v15617_v29  ;;  %v12021_v12 = vsub.s32 %v11755_v58, %v3436_v59  ;;  %v12024_v4 = vsub.s32 %v11766_v5, %v3414_v6  ;;  %v3446_v29 = vshrl.u32 %v11931_v2, 4  ;;  %v12033_v41 = vpop.f32.mrf.mxu1  ;;  %v15626_v5 = vld [vmem:[#allocation47_spill] sm:$0xff] }
 0x1ef   : > { %15609 = vst [vmem:[#allocation26_spill] sm:$0xff] %v11989_v42  ;;  %15610 = vst [vmem:[#allocation93_spill] sm:$0xff] %v11995_v36  ;;  %v12028_v47 = vadd.f32 %v11539_v30, %v15621_v0  ;;  %v12039_v58 = vadd.s32 18, %v11981_v1  ;;  %v12043_v30 = vsub.s32 %v11769_v9, %v3469_v51  ;;  %v2421_v6 = vadd.f32 %v11588_v52, %v15626_v5  ;;  %v15630_v52 = vld [vmem:[#allocation29_spill] sm:$0xff]  ;;  %v15631_v5 = vld [vmem:[#allocation24_spill] sm:$0xff] }
 0x1f0   : > { %15615 = vst [vmem:[#allocation50_spill] sm:$0xff] %v12005_v46  ;;  %15616 = vst [vmem:[#allocation51_spill] sm:$0xff] %v12012_v19  ;;  %v9629_v42 = vpop.f32.mrf.mxu0  ;;  %v12049_v2 = vadd.s32 18, %v11992_v53  ;;  %vm3595_vm6 = vcmp.ne.s32.totalorder %v12021_v12, 0  ;;  %vm15635_vm14 = vcmp.ne.s32.totalorder %v11981_v1, 0  ;;  %vm15636_vm3 = vcmp.lt.s32.totalorder %v11981_v1, 0 }
 0x1f1   : > { %15619 = vst [vmem:[#allocation5_spill] sm:$0xff] %v12021_v12  ;;  %15620 = vst [vmem:[#allocation6_spill] sm:$0xff] %v12024_v4  ;;  %v12036_v19 = vadd.f32 %v9629_v42, %v15622_v7  ;;  %v3479_v42 = vshrl.u32 %v11949_v3, 4  ;;  %v15627_v7 = vld [vmem:[#allocation28_spill] sm:$0xff]  ;;  %v15637_v3 = vmov 0  ;;  %vm15643_vm10 = vcmp.lt.s32.totalorder %v11992_v53, 0 }
 0x1f2   : > { %15624 = vst [vmem:[#allocation57_spill] sm:$0xff] %v12039_v58  ;;  %15625 = vst [vmem:[#allocation16_spill] sm:$0xff] %v12043_v30  ;;  %v2393_v59 = vpop.f32.mrf.mxu0  ;;  %v12094_v54 = vadd.s32 18, %v12021_v12  ;;  %v15655_v36 = vmov 0  ;;  %v15732_v1 = vld [vmem:[#allocation49_spill] sm:$0xff] }
 0x1f3   : > { %15623 = vst [vmem:[#allocation4_spill] sm:$0xff] %v12036_v19  ;;  %v12053_v0 = vadd.f32 %v2393_v59, %v15627_v7  ;;  %v15632_v19 = vsel %vm11230_vm7, %v15630_v52, %v15631_v5  ;;  %vm12071_vm12 = vmand %vm15636_vm3, %vm15635_vm14  ;;  %v3447_v59 = vmul.u32 18, %v3446_v29  ;;  %v12080_v52 = vpop.f32.mrf.mxu1  ;;  %vm15642_vm7 = vcmp.ne.s32.totalorder %v11992_v53, 0 }
 0x1f4   : > { %v9630_v9 = vpop.f32.mrf.mxu0  ;;  %vm12063_vm9 = vcmp.lt.s32.totalorder %v15632_v19, 16  ;;  %v15638_v3 = vsel %vm12071_vm12, 4294967295, %v15637_v3  ;;  %v12077_v7 = vmul.u32.u64.low 3817748708, %v11856_v44  ;;  %v12078_v51 = vmul.u32.u64.high 3817748708, %v11856_v44, %v12077_v7  ;;  %v15640_v19 = vld [vmem:[#allocation30_spill] sm:$0xff]  ;;  %vm12089_vm3 = vmand %vm15643_vm10, %vm15642_vm7  ;;  %15646 = vst [vmem:[#allocation31_spill] sm:$0xff] %v12094_v54 }
 0x1f5   : > { %15628 = vst [vmem:[#allocation27_spill] sm:$0xff] %v12053_v0  ;;  %15639 = vst [vmem:[#allocation47_spill] sm:$0xff] %v15638_v3  ;;  %v12083_v5 = vadd.f32 %v9630_v9, %v15640_v19  ;;  %v12097_v29 = vadd.s32 18, %v12024_v4  ;;  %v15649_v19 = vld [vmem:[#allocation32_spill] sm:$0xff]  ;;  %vm15654_vm10 = vcmp.lt.s32.totalorder %v12021_v12, 0  ;;  %v12171_v58 = vsub.s32 %v11781_v25, %v3447_v59  ;;  %v15670_v3 = vld [vmem:[#allocation21_spill] sm:$0xff] }
 0x1f6   : > { %v12100_v7 = vpop.f32.mrf.mxu0  ;;  %vm12115_vm7 = vmand %vm15654_vm10, %vm3595_vm6  ;;  %v12121_v9 = vmul.u32.u64.low 3817748708, %v11870_v20  ;;  %v12122_v8 = vmul.u32.u64.high 3817748708, %v11870_v20, %v12121_v9  ;;  %vm15658_vm6 = vcmp.lt.s32.totalorder %v12024_v4, 0  ;;  %v15673_v25 = vmov 0 }
 0x1f7   : > { %15641 = vst [vmem:[#allocation28_spill] sm:$0xff] %v12083_v5  ;;  %15647 = vst [vmem:[#allocation29_spill] sm:$0xff] %v12100_v7  ;;  %v15650_v5 = vld [vmem:[#allocation25_spill] sm:$0xff]  ;;  %v15656_v36 = vsel %vm12115_vm7, 4294967295, %v15655_v36  ;;  %v3480_v7 = vmul.u32 18, %v3479_v42  ;;  %v15659_v42 = vmov 0  ;;  %v12319_v46 = vadd.f32 %v12080_v52, %v11784_v37 }
 0x1f8   : > { %v15651_v22 = vsel %vm11241_vm8, %v15649_v19, %v15650_v5  ;;  %v12129_v5 = vadd.f32 %v11625_v23, %v11542_v10  ;;  %v2425_v19 = vadd.f32 %v11709_v38, %v11529_v32  ;;  %vm15657_vm8 = vcmp.ne.s32.totalorder %v12024_v4, 0  ;;  %v9673_v10 = vpop.f32.mrf.mxu0  ;;  %v12152_v32 = vld [vmem:[%s15296_s2] ss:$0 sm:$0xff]  ;;  %v15665_v9 = vld [vmem:[#allocation34_spill] sm:$0xff]  ;;  %15669 = vst [vmem:[#allocation30_spill] sm:$0xff] %v12171_v58 }
 0x1f9   : > { %vm12107_vm5 = vcmp.lt.s32.totalorder %v15651_v22, 16  ;;  %v12125_v22 = vadd.f32 %v11576_v26, %v2417_v21  ;;  %vm12141_vm10 = vmand %vm15658_vm6, %vm15657_vm8  ;;  %v15662_v26 = vld [vmem:[#allocation8_spill] sm:$0xff]  ;;  %v12175_v38 = vadd.f32 %v11760_v50, %v15670_v3  ;;  %vm15672_vm8 = vcmp.lt.s32.totalorder %v12043_v30, 0  ;;  %v15675_v50 = vld [vmem:[#allocation10_spill] sm:$0xff] }
 0x1fa   : > { %v15660_v42 = vsel %vm12141_vm10, 4294967295, %v15659_v42  ;;  %v12147_v23 = vadd.f32 %v11692_v60, %v15662_v26  ;;  %v15664_v21 = vld [vmem:[#allocation36_spill] sm:$0xff]  ;;  %v12168_v26 = vadd.s32 18, %v12043_v30  ;;  %v2917_v3 = vpop.f32.mrf.mxu0  ;;  %v15679_v60 = vld [vmem:[#allocation35_spill] sm:$0xff] }
 0x1fb   : > { %15661 = vst [vmem:[#allocation24_spill] sm:$0xff] %v15660_v42  ;;  %v15666_v61 = vsel %vm11332_vm13, %v15664_v21, %v15665_v9  ;;  %v9656_v21 = vpop.f32.mrf.mxu1  ;;  %v3062_v9 = vadd.f32 %v9673_v10, %v11773_v49  ;;  %vm15671_vm13 = vcmp.ne.s32.totalorder %v12043_v30, 0  ;;  %v15678_v10 = vld [vmem:[#allocation37_spill] sm:$0xff]  ;;  %v15686_v42 = vld [vmem:[#allocation40_spill] sm:$0xff]  ;;  %v15828_v30 = vld [vmem:[#allocation87_spill] sm:$0xff] }
 0x1fc   : > { %vm12159_vm14 = vcmp.lt.s32.totalorder %v15666_v61, 16  ;;  %v12178_v61 = vadd.f32 %v11794_v48, %v2421_v6  ;;  %vm12189_vm6 = vmand %vm15672_vm8, %vm15671_vm13  ;;  %v12195_v48 = vadd.f32 %v11846_v62, %v15675_v50  ;;  %v15676_v6 = vld [vmem:[#allocation11_spill] sm:$0xff]  ;;  %v15680_v12 = vsel %vm11351_vm15, %v15678_v10, %v15679_v60  ;;  %v9674_v59 = vpop.f32.mrf.mxu0  ;;  %v15695_v10 = vld [vmem:[#allocation52_spill] sm:$0xff] }
 0x1fd   : > { %v15674_v25 = vsel %vm12189_vm6, 4294967295, %v15673_v25  ;;  %v12199_v49 = vadd.f32 %v11895_v40, %v15676_v6  ;;  %vm12206_vm7 = vcmp.lt.s32.totalorder %v15680_v12, 16  ;;  %v12215_v50 = vsub.s32 %v11844_v33, %v3480_v7  ;;  %v15687_v62 = vld [vmem:[#allocation3_spill] sm:$0xff] }
 0x1fe   : > { %v12219_v40 = vadd.f32 %v11933_v27, %v11695_v45  ;;  %v12222_v6 = vadd.f32 %v11986_v14, %v2425_v19  ;;  %v12225_v12 = vadd.f32 %v12152_v32, %v3062_v9  ;;  %v3060_v60 = vadd.f32 %v2917_v3, %v11832_v17  ;;  %v2674_v27 = vpop.f32.mrf.mxu1  ;;  %v2920_v3 = vpop.f32.mrf.mxu0  ;;  %v15696_v45 = vld [vmem:[#allocation41_spill] sm:$0xff] }
 0x1ff   : > { %15683 = vst [vmem:[#allocation33_spill] sm:$0xff] %v12215_v50  ;;  %v15688_v4 = vsel %vm11391_vm1, %v15686_v42, %v15687_v62  ;;  %v3457_v17 = vshrl.u32 %v12078_v51, 4  ;;  %v12250_v19 = vadd.s32 18, %v12171_v58  ;;  %v15693_v42 = vld [vmem:[#allocation7_spill] sm:$0xff]  ;;  %v15697_v51 = vsel %vm11467_vm11, %v15695_v10, %v15696_v45  ;;  %v15708_v62 = vld [vmem:[#allocation45_spill] sm:$0xff] }
 0x200   : > { %15684 = vst [vmem:[#allocation32_spill] sm:$0xff] %v12225_v12  ;;  %vm12233_vm15 = vcmp.lt.s32.totalorder %v15688_v4, 16  ;;  %v3790_v14 = vmax.f32 %v12225_v12, 0.0  ;;  %v12246_v7 = vadd.f32 %v12152_v32, %v3060_v60  ;;  %v3063_v4 = vadd.f32 %v9674_v59, %v11860_v34  ;;  %v9659_v12 = vpop.f32.mrf.mxu1 }
 0x201   : > { %15692 = vst [vmem:[#allocation8_spill] sm:$0xff] %v12250_v19  ;;  %v2429_v9 = vadd.f32 %v11806_v63, %v15693_v42  ;;  %vm12259_vm1 = vcmp.lt.s32.totalorder %v15697_v51, 16  ;;  %vm3599_vm8 = vcmp.ne.s32.totalorder %v12215_v50, 0  ;;  %v3512_v34 = vshrl.u32 %v12122_v8, 4  ;;  %v9677_v8 = vpop.f32.mrf.mxu0  ;;  %v15780_v19 = vld [vmem:[#allocation12_spill] sm:$0xff] }
 0x202   : > { %15691 = vst [vmem:[#allocation25_spill] sm:$0xff] %v12246_v7  ;;  %v3898_v60 = vsel %vm12063_vm9, %v3790_v14, 0.0  ;;  %v3788_v63 = vmax.f32 %v12246_v7, 0.0  ;;  %v12270_v59 = vadd.f32 %v12152_v32, %v3063_v4  ;;  %v3061_v45 = vadd.f32 %v2920_v3, %v11863_v13  ;;  %v15707_v14 = vld [vmem:[#allocation54_spill] sm:$0xff] }
 0x203   : > { %vm15701_vm11 = vcmp.ne.s32.totalorder %v12171_v58, 0  ;;  %vm15702_vm6 = vcmp.lt.s32.totalorder %v12171_v58, 0  ;;  %vm15705_vm13 = vcmask 261120   ;;  %v15709_v10 = vsel %vm11487_vm0, %v15707_v14, %v15708_v62 }
 0x204   : > { %15700 = vst [vmem:[#allocation38_spill] sm:$0xff] %v12270_v59  ;;  %vm12277_vm10 = vmand %vm15702_vm6, %vm15701_vm11  ;;  %vm12287_vm9 = vcmp.lt.s32.totalorder %v15709_v10, 16  ;;  %v12292_v13 = vadd.s32 18, %v12215_v50  ;;  %v3458_v3 = vmul.u32 18, %v3457_v17  ;;  %v3791_v39 = vmax.f32 %v12270_v59, 0.0  ;;  %v15782_v59 = vld [vmem:[#allocation72_spill] sm:$0xff] }
 0x205   : > { %3934 = vst.msk [vmem:[#allocation2 + $0x28] sm:$0xff] %vm15705_vm13, %v3898_v60  ;;  %v12295_v51 = vmul.u32.u64.low 3817748708, %v11883_v55  ;;  %v12296_v7 = vmul.u32.u64.high 3817748708, %v11883_v55, %v12295_v51  ;;  %v3896_v60 = vsel %vm12107_vm5, %v3788_v63, 0.0  ;;  %v12302_v14 = vadd.f32 %v12152_v32, %v3061_v45  ;;  %vm15718_vm5 = vmmov %vm15705_vm13  ;;  %v2933_v63 = vpop.f32.mrf.mxu0  ;;  %v15721_v45 = vld [vmem:[#allocation56_spill] sm:$0xff] }
 0x206   : > { %15712 = vst [vmem:[#allocation36_spill] sm:$0xff] %v12292_v13  ;;  %v3066_v62 = vadd.f32 %v9677_v8, %v11893_v35  ;;  %vm15714_vm0 = vcmp.lt.s32.totalorder %v12215_v50, 0  ;;  %v15715_v17 = vmov 0  ;;  %v12315_v10 = vadd.f32 %v12033_v41, %v11763_v56  ;;  %3932 = vst.msk [vmem:[#allocation2 + $0x18] sm:$0xff] %vm15718_vm5, %v3896_v60  ;;  %v15719_v35 = vld [vmem:[#allocation58_spill] sm:$0xff]  ;;  %v15729_v56 = vld [vmem:[#allocation61_spill] sm:$0xff] }
 0x207   : > { %15713 = vst [vmem:[#allocation34_spill] sm:$0xff] %v12302_v14  ;;  %vm12309_vm6 = vmand %vm15714_vm0, %vm3599_vm8  ;;  %vm15720_vm13 = vnez %v15719_v35  ;;  %v15722_v8 = vld [vmem:[#allocation46_spill] sm:$0xff]  ;;  %v3513_v41 = vmul.u32 18, %v3512_v34  ;;  %v3899_v37 = vsel %vm12159_vm14, %v3791_v39, 0.0  ;;  %v3789_v52 = vmax.f32 %v12302_v14, 0.0  ;;  %v15731_v34 = vld [vmem:[#allocation59_spill] sm:$0xff] }
 0x208   : > { %v15716_v17 = vsel %vm12309_vm6, 4294967295, %v15715_v17  ;;  %v15723_v51 = vsel %vm15720_vm13, %v15721_v45, %v15722_v8  ;;  %v12339_v60 = vadd.f32 %v12152_v32, %v3066_v62  ;;  %v3064_v35 = vadd.f32 %v2933_v63, %v11906_v57  ;;  %vm15728_vm11 = vmmov %vm15718_vm5  ;;  %v10168_v14 = vld [vmem:[%s15297_s3 + $0x30] sm:$0xff]  }
 0x209   : > { %15717 = vst [vmem:[#allocation21_spill] sm:$0xff] %v15716_v17  ;;  %vm12327_vm8 = vcmp.lt.s32.totalorder %v15723_v51, 16  ;;  %v12343_v45 = vadd.f32 %v9656_v21, %v11797_v11  ;;  %v12345_v8 = vadd.f32 %v2674_v27, %v2429_v9  ;;  %3935 = vst.msk [vmem:[#allocation2 + $0x30] sm:$0xff] %vm15728_vm11, %v3899_v37  ;;  %v9678_v51 = vpop.f32.mrf.mxu0  ;;  %vm15730_vm0 = vnez %v15729_v56  ;;  %v2687_v21 = vpop.f32.mrf.mxu1  ;;  %v15760_v11 = vld [vmem:[#allocation18_spill] sm:$0xff] }
 0x20a   : > { %15726 = vst [vmem:[#allocation10_spill] sm:$0xff] %v12339_v60  ;;  %v15733_v39 = vsel %vm15730_vm0, %v15731_v34, %v15732_v1  ;;  %v12362_v57 = vsub.s32 %v11856_v44, %v3458_v3  ;;  %v3897_v27 = vsel %vm12206_vm7, %v3789_v52, 0.0  ;;  %v3794_v9 = vmax.f32 %v12339_v60, 0.0  ;;  %v15738_v44 = vld [vmem:[#allocation62_spill] sm:$0xff]  ;;  %v15739_v3 = vld [vmem:[#allocation60_spill] sm:$0xff]  ;;  %v15745_v1 = vld [vmem:[#allocation43_spill] sm:$0xff] }
 0x20b   : > { %15727 = vst [vmem:[#allocation11_spill] sm:$0xff] %v12345_v8  ;;  %vm12353_vm14 = vcmp.lt.s32.totalorder %v15733_v39, 16  ;;  %v12368_v62 = vadd.f32 %v12152_v32, %v3064_v35  ;;  %v3067_v63 = vadd.f32 %v9678_v51, %v11967_v16  ;;  %v12372_v56 = vadd.f32 %v9659_v12, %v11849_v31  ;;  %3933 = vst.msk [vmem:[#allocation2 + $0x20] sm:$0xff] %vm15718_vm5, %v3897_v27  ;;  %v2936_v37 = vpop.f32.mrf.mxu0  ;;  %v15743_v35 = vld [vmem:[#allocation83_spill] sm:$0xff] }
 0x20c   : > { %v15740_v34 = vsel %vm11634_vm2, %v15738_v44, %v15739_v3  ;;  %v12385_v52 = vsub.s32 %v11870_v20, %v3513_v41  ;;  %v12388_v16 = vmul.u32.u64.low 3817748708, %v15743_v35  ;;  %v12389_v51 = vmul.u32.u64.high 3817748708, %v15743_v35, %v12388_v16  ;;  %vm15746_vm2 = vmmov %vm15718_vm5  ;;  %v15748_v20 = vld [vmem:[#allocation9_spill] sm:$0xff]  ;;  %v15754_v44 = vld [vmem:[#allocation19_spill] sm:$0xff] }
 0x20d   : > { %15736 = vst [vmem:[#allocation39_spill] sm:$0xff] %v12368_v62  ;;  %15737 = vst [vmem:[#allocation37_spill] sm:$0xff] %v12372_v56  ;;  %vm12380_vm13 = vcmp.lt.s32.totalorder %v15740_v34, 16  ;;  %v3902_v31 = vsel %vm12233_vm15, %v3794_v9, 0.0  ;;  %v3792_v12 = vmax.f32 %v12368_v62, 0.0  ;;  %v12395_v43 = vadd.f32 %v12152_v32, %v3067_v63  ;;  %v9681_v27 = vpop.f32.mrf.mxu0  ;;  %v15749_v41 = vld [vmem:[#allocation13_spill] sm:$0xff]  ;;  %v12414_v63 = vpop.f32.mrf.mxu1 }
 0x20e   : > { %v3065_v39 = vadd.f32 %v2936_v37, %v15745_v1  ;;  %3938 = vst.msk [vmem:[#allocation2 + $0x48] sm:$0xff] %vm15746_vm2, %v3902_v31  ;;  %v15750_v3 = vsel %vm11647_vm4, %v15748_v20, %v15749_v41  ;;  %vm3597_vm15 = vcmp.ne.s32.totalorder %v12362_v57, 0  ;;  %vm3633_vm11 = vcmp.lt.s32.totalorder %v12362_v57, 0  ;;  %vm15756_vm4 = vmmov %vm15746_vm2  ;;  %v15821_v34 = vld [vmem:[#allocation78_spill] sm:$0xff] }
 0x20f   : > { %15744 = vst [vmem:[#allocation35_spill] sm:$0xff] %v12395_v43  ;;  %vm12404_vm7 = vcmp.lt.s32.totalorder %v15750_v3, 16  ;;  %v12411_v33 = vadd.s32 18, %v12362_v57  ;;  %v3490_v9 = vshrl.u32 %v12296_v7, 4  ;;  %v3900_v37 = vsel %vm12259_vm1, %v3792_v12, 0.0  ;;  %v2949_v41 = vpop.f32.mrf.mxu0  ;;  %v15757_v3 = vld [vmem:[#allocation71_spill] sm:$0xff] }
 0x210   : > { %v3795_v16 = vmax.f32 %v12395_v43, 0.0  ;;  %v12420_v31 = vadd.f32 %v12152_v32, %v3065_v39  ;;  %v3070_v1 = vadd.f32 %v9681_v27, %v11999_v18  ;;  %v12424_v20 = vadd.f32 %v2687_v21, %v15754_v44  ;;  %3936 = vst.msk [vmem:[#allocation2 + $0x38] sm:$0xff] %vm15756_vm4, %v3900_v37  ;;  %v15759_v7 = vld [vmem:[#allocation65_spill] sm:$0xff]  ;;  %vm12452_vm4 = vmand %vm3633_vm11, %vm3597_vm15  ;;  %v15767_v27 = vld [vmem:[#allocation23_spill] sm:$0xff] }
 0x211   : > { %vm15758_vm0 = vnez %v15757_v3  ;;  %vm3602_vm1 = vcmp.ne.s32.totalorder %v12385_v52, 0  ;;  %v12439_v18 = vadd.s32 18, %v12385_v52  ;;  %v15768_v37 = vld [vmem:[#allocation84_spill] sm:$0xff]  ;;  %v9682_v4 = vpop.f32.mrf.mxu0  ;;  %v15773_v3 = vld [vmem:[#allocation63_spill] sm:$0xff]  ;;  %v3491_v60 = vmul.u32 18, %v3490_v9 }
 0x212   : > { %15753 = vst [vmem:[#allocation42_spill] sm:$0xff] %v12420_v31  ;;  %15755 = vst [vmem:[#allocation40_spill] sm:$0xff] %v12424_v20  ;;  %v15761_v62 = vsel %vm15758_vm0, %v15759_v7, %v15760_v11  ;;  %v3903_v21 = vsel %vm12287_vm9, %v3795_v16, 0.0  ;;  %v3793_v12 = vmax.f32 %v12420_v31, 0.0  ;;  %v12445_v39 = vadd.f32 %v12152_v32, %v3070_v1  ;;  %v15770_v16 = vld [vmem:[#allocation73_spill] sm:$0xff]  ;;  %v4496_v31 = vld [vmem:[#allocation2 + $0x16] sm:$0xff] }
 0x213   : > { %vm12432_vm5 = vcmp.lt.s32.totalorder %v15761_v62, 16  ;;  %v3068_v11 = vadd.f32 %v2949_v41, %v12003_v15  ;;  %v2433_v44 = vadd.f32 %v15768_v37, %v15767_v27  ;;  %vm15769_vm0 = vmmov %vm15746_vm2  ;;  %vm15771_vm9 = vnez %v15770_v16  ;;  %v15772_v1 = vld [vmem:[#allocation69_spill] sm:$0xff]  ;;  %v4015_v41 = vld [vmem:[#allocation2 + $0x15] sm:$0xff]  ;;  %v2690_v27 = vpop.f32.mrf.mxu1  ;;  %v2952_v9 = vpop.f32.mrf.mxu0 }
 0x214   : > { %15764 = vst [vmem:[#allocation3_spill] sm:$0xff] %v12445_v39  ;;  %3939 = vst.msk [vmem:[#allocation2 + $0x50] sm:$0xff] %vm15769_vm0, %v3903_v21  ;;  %v15774_v7 = vsel %vm15771_vm9, %v15772_v1, %v15773_v3  ;;  %v4018_v43 = vld [vmem:[#allocation2 + $0x2d] sm:$0xff]  ;;  %v3901_v21 = vsel %vm12327_vm8, %v3793_v12, 0.0  ;;  %v3798_v37 = vmax.f32 %v12445_v39, 0.0  ;;  %v3071_v1 = vadd.f32 %v9682_v4, %v12028_v47  ;;  %v4016_v3 = vld [vmem:[#allocation2 + $0x1d] sm:$0xff] }
 0x215   : > { %vm12464_vm2 = vcmp.lt.s32.totalorder %v15774_v7, 16  ;;  %v15777_v20 = vld [vmem:[#allocation86_spill] sm:$0xff]  ;;  %v12476_v16 = vadd.f32 %v12152_v32, %v3068_v11  ;;  %v4497_v7 = vld [vmem:[#allocation2 + $0x1e] sm:$0xff]  ;;  %vm15779_vm15 = vmmov %vm15769_vm0  ;;  %v4050_v17 = vpack.c.bf16 %v4016_v3, %v4015_v41  ;;  %vm15781_vm11 = vnez %v15780_v19  ;;  %v9685_v41 = vpop.f32.mrf.mxu0 }
 0x216   : > { %v12469_v56 = vmul.u32.u64.low 3817748708, %v15777_v20  ;;  %v12470_v50 = vmul.u32.u64.high 3817748708, %v15777_v20, %v12469_v56  ;;  %v4017_v13 = vld [vmem:[#allocation2 + $0x25] sm:$0xff]  ;;  %3937 = vst.msk [vmem:[#allocation2 + $0x40] sm:$0xff] %vm15779_vm15, %v3901_v21  ;;  %v4531_v8 = vpack.c.bf16 %v4497_v7, %v4496_v31  ;;  %v15783_v12 = vld [vmem:[#allocation64_spill] sm:$0xff]  ;;  %v3523_v47 = vshrl.u32 %v12389_v51, 4 }
 0x217   : > { %15778 = vst [vmem:[#allocation7_spill] sm:$0xff] %v12476_v16  ;;  %v4051_v56 = vpack.c.bf16 %v4018_v43, %v4017_v13  ;;  %v4498_v58 = vld [vmem:[#allocation2 + $0x26] sm:$0xff]  ;;  %v15784_v39 = vsel %vm15781_vm11, %v15782_v59, %v15783_v12  ;;  %v3906_v31 = vsel %vm12353_vm14, %v3798_v37, 0.0  ;;  %v3796_v13 = vmax.f32 %v12476_v16, 0.0  ;;  %vm15791_vm14 = vmmov %vm15779_vm15  ;;  %v15794_v21 = vld [vmem:[#allocation76_spill] sm:$0xff]  ;;  %v2965_v54 = vpop.f32.mrf.mxu0 }
 0x218   : > { %vm12485_vm8 = vcmp.lt.s32.totalorder %v15784_v39, 16  ;;  %v10167_v4 = vld [vmem:[%s15297_s3 + $0x20] sm:$0xff]   ;;  %v12497_v19 = vadd.f32 %v12152_v32, %v3071_v1  ;;  %v3069_v43 = vadd.f32 %v2952_v9, %v12125_v22  ;;  %v4499_v39 = vld [vmem:[#allocation2 + $0x2e] sm:$0xff]  ;;  %vm15788_vm0 = vcmp.lt.s32.totalorder %v12385_v52, 0  ;;  %3942 = vst.msk [vmem:[#allocation2 + $0x68] sm:$0xff] %vm15791_vm14, %v3906_v31  ;;  %vm15792_vm15 = vmmov %vm15791_vm14 }
 0x219   : > { %vm12504_vm9 = vmand %vm15788_vm0, %vm3602_vm1  ;;  %9712 = vmatmul.mubr.msk.bf16.vlgmr.msra.gmra.mxu1 %vm15792_vm15, %v4050_v17  ;;  %v4532_v22 = vpack.c.bf16 %v4499_v39, %v4498_v58  ;;  %vm15795_vm6 = vnez %v15794_v21  ;;  %v15796_v37 = vld [vmem:[#allocation74_spill] sm:$0xff]  ;;  %v12528_v59 = vsub.s32 %v11883_v55, %v3491_v60  ;;  %v12531_v17 = vadd.s32 264, %v11061_v24  ;;  %v9663_v58 = vpop.f32.mrf.mxu1  ;;  %v15803_v21 = vld [vmem:[#allocation67_spill] sm:$0xff] }
 0x21a   : > { %15787 = vst [vmem:[#allocation53_spill] sm:$0xff] %v12497_v19  ;;  %vm15793_vm11 = vmmov %vm15791_vm14  ;;  %v15797_v1 = vld [vmem:[#allocation66_spill] sm:$0xff]  ;;  %v3799_v12 = vmax.f32 %v12497_v19, 0.0  ;;  %v12537_v31 = vadd.f32 %v12152_v32, %v3069_v43  ;;  %v3074_v39 = vadd.f32 %v9685_v41, %v12129_v5  ;;  %9788 = vmatpush3.bf16.msra.mxu1 %v15803_v21  ;;  %v12546_v24 = vadd.f32 %v2690_v27, %v2433_v44  ;;  %v15814_v27 = vld [vmem:[#allocation68_spill] sm:$0xff] }
 0x21b   : > { %9752 = vmatmul.mubr.msk.bf16.vlgmr.msra.gmra.mxu0 %vm15793_vm11, %v4531_v8  ;;  %v15798_v3 = vsel %vm15795_vm6, %v15796_v37, %v15797_v1  ;;  %v3904_v8 = vsel %vm12380_vm13, %v3796_v13, 0.0  ;;  %vm15802_vm6 = vmmov %vm15793_vm11  ;;  %v15804_v55 = vld [vmem:[#allocation22_spill] sm:$0xff]  ;;  %v15807_v13 = vld [vmem:[#allocation17_spill] sm:$0xff]  ;;  %v3524_v44 = vmul.u32 18, %v3523_v47  ;;  %9789 = vmatprep.subr.bf16.mxu1 %v10167_v4  ;;  %v9686_v47 = vpop.f32.mrf.mxu0 }
 0x21c   : > { %vm12519_vm1 = vcmp.lt.s32.totalorder %v15798_v3, 16  ;;  %15801 = vst [vmem:[#allocation52_spill] sm:$0xff] %v12537_v31  ;;  %9715 = vmatprep.mubr.msk.bf16.mxu1 %vm15802_vm6, %v4051_v56  ;;  %v12544_v60 = vadd.f32 %v12414_v63, %v15804_v55  ;;  %vm15805_vm0 = vmmov %vm15802_vm6  ;;  %vm15808_vm14 = vnez %v15807_v13  ;;  %v15809_v43 = vld [vmem:[#allocation14_spill] sm:$0xff]  ;;  %v15810_v37 = vld [vmem:[#allocation77_spill] sm:$0xff]  ;;  %9828 = vmatpush3.bf16.msra.mxu0 %v15814_v27  ;;  %v3907_v41 = vsel %vm12404_vm7, %v3799_v12, 0.0 }
 0x21d   : > { %3940 = vst.msk [vmem:[#allocation2 + $0x58] sm:$0xff] %vm15805_vm0, %v3904_v8  ;;  %vm15806_vm13 = vmmov %vm15805_vm0  ;;  %v15811_v5 = vsel %vm15808_vm14, %v15809_v43, %v15810_v37  ;;  %v12568_v1 = vadd.f32 %v12152_v32, %v3074_v39  ;;  %v3072_v3 = vadd.f32 %v2965_v54, %v12147_v23  ;;  %9829 = vmatprep.subr.bf16.mxu0 %v10168_v14  ;;  %v15816_v8 = vld [vmem:[#allocation88_spill] sm:$0xff]  ;;  %v15820_v13 = vld [vmem:[#allocation15_spill] sm:$0xff] }
 0x21e   : > { %9755 = vmatprep.mubr.msk.bf16.mxu0 %vm15806_vm13, %v4532_v22  ;;  %vm12555_vm15 = vcmp.lt.s32.totalorder %v15811_v5, 16  ;;  %v3797_v22 = vmax.f32 %v12537_v31, 0.0  ;;  %v12572_v21 = vadd.f32 %v9663_v58, %v15816_v8  ;;  %vm15817_vm11 = vmmov %vm15805_vm0  ;;  %v15818_v55 = vld [vmem:[#allocation80_spill] sm:$0xff]  ;;  %v4022_v23 = vld [vmem:[#allocation2 + $0x4d] sm:$0xff]  ;;  %vm3600_vm0 = vcmp.ne.s32.totalorder %v12528_v59, 0  ;;  %9790 = vmatpush3.bf16.msra.mxu1 %v10167_v4  ;;  %v2703_v4 = vpop.f32.mrf.mxu1 }
 0x21f   : > { %15815 = vst [vmem:[#allocation41_spill] sm:$0xff] %v12568_v1  ;;  %3943 = vst.msk [vmem:[#allocation2 + $0x70] sm:$0xff] %vm15817_vm11, %v3907_v41  ;;  %vm15819_vm6 = vnez %v15818_v55  ;;  %v4019_v39 = vld [vmem:[#allocation2 + $0x35] sm:$0xff]  ;;  %v3501_v58 = vshrl.u32 %v12470_v50, 4  ;;  %v3802_v8 = vmax.f32 %v12568_v1, 0.0  ;;  %v12594_v55 = vadd.f32 %v12152_v32, %v3072_v3  ;;  %v4021_v63 = vld [vmem:[#allocation2 + $0x45] sm:$0xff]  ;;  %v2968_v50 = vpop.f32.mrf.mxu0 }
 0x220   : > { %v15822_v12 = vsel %vm15819_vm6, %v15820_v13, %v15821_v34  ;;  %v4500_v37 = vld [vmem:[#allocation2 + $0x36] sm:$0xff]  ;;  %v3905_v41 = vsel %vm12432_vm5, %v3797_v22, 0.0  ;;  %v3075_v13 = vadd.f32 %v9686_v47, %v12175_v38  ;;  %vm15827_vm13 = vmmov %vm15817_vm11  ;;  %v4502_v16 = vld [vmem:[#allocation2 + $0x46] sm:$0xff]  ;;  %vm15829_vm5 = vnez %v15828_v30  ;;  %9830 = vmatpush3.bf16.msra.mxu0 %v10168_v14 }
 0x221   : > { %vm12580_vm7 = vcmp.lt.s32.totalorder %v15822_v12, 16  ;;  %v15825_v54 = vld [vmem:[#allocation92_spill] sm:$0xff]  ;;  %15826 = vst [vmem:[#allocation55_spill] sm:$0xff] %v12594_v55  ;;  %3941 = vst.msk [vmem:[#allocation2 + $0x60] sm:$0xff] %vm15827_vm13, %v3905_v41  ;;  %v15830_v22 = vld [vmem:[#allocation85_spill] sm:$0xff]  ;;  %v12608_v38 = vsub.s32 %v15743_v35, %v3524_v44  ;;  %v3910_v47 = vsel %vm12464_vm2, %v3802_v8, 0.0  ;;  %v15867_v56 = vsel %vm12089_vm3, %v12049_v2, %v11992_v53 }
 0x222   : > { %v12587_v5 = vmul.u32.u64.low 3817748708, %v15825_v54  ;;  %v12588_v27 = vmul.u32.u64.high 3817748708, %v15825_v54, %v12587_v5  ;;  %v4020_v34 = vld [vmem:[#allocation2 + $0x3d] sm:$0xff]  ;;  %3946 = vst.msk [vmem:[#allocation2 + $0x88] sm:$0xff] %vm15817_vm11, %v3910_v47  ;;  %vm15836_vm6 = vmmov %vm15817_vm11  ;;  %v3502_v41 = vmul.u32 18, %v3501_v58  ;;  %v15848_v30 = vld [vmem:[#allocation75_spill] sm:$0xff] }
 0x223   : > { %v4501_v12 = vld [vmem:[#allocation2 + $0x3e] sm:$0xff]  ;;  %v4052_v9 = vpack.c.bf16 %v4020_v34, %v4019_v39  ;;  %v4053_v5 = vpack.c.bf16 %v4022_v23, %v4021_v63  ;;  %v3800_v63 = vmax.f32 %v12594_v55, 0.0  ;;  %v12614_v39 = vadd.f32 %v12152_v32, %v3075_v13  ;;  %vm15837_vm13 = vmmov %vm15836_vm6 }
 0x224   : > { %v4533_v31 = vpack.c.bf16 %v4501_v12, %v4500_v37  ;;  %v15831_v1 = vld [vmem:[#allocation81_spill] sm:$0xff]  ;;  %v3073_v37 = vadd.f32 %v2968_v50, %v12178_v61  ;;  %v15840_v14 = vld [vmem:[#allocation20_spill] sm:$0xff]  ;;  %vm15846_vm11 = vmmov %vm15836_vm6 }
 0x225   : > { %v15832_v19 = vsel %vm15829_vm5, %v15830_v22, %v15831_v1  ;;  %15835 = vst [vmem:[#allocation54_spill] sm:$0xff] %v12614_v39  ;;  %v4503_v1 = vld [vmem:[#allocation2 + $0x4e] sm:$0xff]  ;;  %9716 = vmatmul.mubr.msk.bf16.gmra.mxu1 %vm15836_vm6, %v4052_v9  ;;  %vm15838_vm5 = vnez %v15597_v28  ;;  %v15839_v15 = vld [vmem:[#allocation89_spill] sm:$0xff]  ;;  %v12641_v28 = vld [vmem:[%s15297_s3 + $0x58] sm:$0xff]  }
 0x226   : > { %vm12603_vm14 = vcmp.lt.s32.totalorder %v15832_v19, 16  ;;  %v9689_v19 = vpop.f32.mrf.mxu0  ;;  %9756 = vmatmul.mubr.msk.bf16.gmra.mxu0 %vm15837_vm13, %v4533_v31  ;;  %v4534_v35 = vpack.c.bf16 %v4503_v1, %v4502_v16  ;;  %v15841_v44 = vsel %vm15838_vm5, %v15839_v15, %v15840_v14  ;;  %v15844_v61 = vld [vmem:[#allocation93_spill] sm:$0xff]  ;;  %v12636_v9 = vld [vmem:[%s15297_s3 + $0x48] sm:$0xff]   ;;  %v3908_v16 = vsel %vm12485_vm8, %v3800_v63, 0.0  ;;  %9719 = vmatprep.mubr.msk.bf16.mxu1 %vm15846_vm11, %v4053_v5  ;;  %vm15850_vm13 = vmmov %vm15836_vm6 }
 0x227   : > { %vm12625_vm2 = vcmp.lt.s32.totalorder %v15841_v44, 16  ;;  %v12630_v8 = vmul.u32.u64.low 3817748708, %v15844_v61  ;;  %v12631_v13 = vmul.u32.u64.high 3817748708, %v15844_v61, %v12630_v8  ;;  %v3803_v31 = vmax.f32 %v12614_v39, 0.0  ;;  %v15847_v12 = vld [vmem:[#allocation90_spill] sm:$0xff]  ;;  %3944 = vst.msk [vmem:[#allocation2 + $0x78] sm:$0xff] %vm15836_vm6, %v3908_v16  ;;  %9867 = vmatprep.subr.bf16.mxu1 %v12636_v9  ;;  %9907 = vmatprep.subr.bf16.mxu0 %v12641_v28 }
 0x228   : > { %v12647_v58 = vadd.f32 %v12152_v32, %v3073_v37  ;;  %v3078_v34 = vadd.f32 %v9689_v19, %v12195_v48  ;;  %v12652_v50 = vadd.f32 %v2703_v4, %v15847_v12  ;;  %v15849_v22 = vld [vmem:[#allocation50_spill] sm:$0xff]  ;;  %9759 = vmatprep.mubr.msk.bf16.mxu0 %vm15850_vm13, %v4534_v35  ;;  %v2981_v11 = vpop.f32.mrf.mxu0  ;;  %v15851_v63 = vld [vmem:[#allocation44_spill] sm:$0xff]  ;;  %v15853_v37 = vld [vmem:[#allocation91_spill] sm:$0xff]  ;;  %vm3636_vm11 = vcmp.lt.s32.totalorder %v12528_v59, 0  ;;  %v9664_v4 = vpop.f32.mrf.mxu1 }
 0x229   : > { %v12656_v47 = vadd.f32 %v15849_v22, %v15848_v30  ;;  %vm15852_vm8 = vnez %v15851_v63  ;;  %v15854_v1 = vld [vmem:[#allocation82_spill] sm:$0xff]  ;;  %v12671_v5 = vadd.s32 18, %v12528_v59  ;;  %v3911_v19 = vsel %vm12519_vm1, %v3803_v31, 0.0  ;;  %v15860_v12 = vld [vmem:[#allocation57_spill] sm:$0xff]  ;;  %v15861_v30 = vld [vmem:[#allocation48_spill] sm:$0xff] }
 0x22a   : > { %15845 = vst [vmem:[#allocation45_spill] sm:$0xff] %v12647_v58  ;;  %v15855_v15 = vsel %vm15852_vm8, %v15853_v37, %v15854_v1  ;;  %v3801_v35 = vmax.f32 %v12647_v58, 0.0  ;;  %v12678_v14 = vadd.f32 %v12152_v32, %v3078_v34  ;;  %v3076_v44 = vadd.f32 %v2981_v11, %v12199_v49  ;;  %3947 = vst.msk [vmem:[#allocation2 + $0x90] sm:$0xff] %vm15836_vm6, %v3911_v19  ;;  %v9690_v8 = vpop.f32.mrf.mxu0  ;;  %v4023_v31 = vld [vmem:[#allocation2 + $0x55] sm:$0xff]  ;;  %v4026_v34 = vld [vmem:[#allocation2 + $0x6d] sm:$0xff] }
 0x22b   : > { %vm12665_vm5 = vcmp.lt.s32.totalorder %v15855_v15, 16  ;;  %v15862_v22 = vsel %vm12071_vm12, %v15860_v12, %v15861_v30  ;;  %v4504_v63 = vld [vmem:[#allocation2 + $0x56] sm:$0xff]  ;;  %v12695_v49 = vadd.s32 18, %v12608_v38  ;;  %v12698_v11 = vsub.s32 %v15777_v20, %v3502_v41  ;;  %v4505_v12 = vld [vmem:[#allocation2 + $0x5e] sm:$0xff]  ;;  %vm15866_vm12 = vmmov %vm15836_vm6 }
 0x22c   : > { %15858 = vst [vmem:[#allocation58_spill] sm:$0xff] %v12678_v14  ;;  %vm12688_vm13 = vcmp.lt.s32.totalorder %v15862_v22, 16  ;;  %v3909_v37 = vsel %vm12555_vm15, %v3801_v35, 0.0  ;;  %v3806_v1 = vmax.f32 %v12678_v14, 0.0  ;;  %v12704_v15 = vadd.f32 %v12152_v32, %v3076_v44  ;;  %v4024_v16 = vld [vmem:[#allocation2 + $0x5d] sm:$0xff]  ;;  %v4025_v30 = vld [vmem:[#allocation2 + $0x65] sm:$0xff]  ;;  %v2984_v22 = vpop.f32.mrf.mxu0  ;;  %v2706_v44 = vpop.f32.mrf.mxu1  ;;  %vm12729_vm3 = vmand %vm3636_vm11, %vm3600_vm0 }
 0x22d   : > { %v3079_v19 = vadd.f32 %v9690_v8, %v12219_v40  ;;  %3945 = vst.msk [vmem:[#allocation2 + $0x80] sm:$0xff] %vm15866_vm12, %v3909_v37  ;;  %v4054_v58 = vpack.c.bf16 %v4024_v16, %v4023_v31  ;;  %v4535_v55 = vpack.c.bf16 %v4505_v12, %v4504_v63  ;;  %v4055_v20 = vpack.c.bf16 %v4026_v34, %v4025_v30  ;;  %v4506_v41 = vld [vmem:[#allocation2 + $0x66] sm:$0xff]  ;;  %v4507_v34 = vld [vmem:[#allocation2 + $0x6e] sm:$0xff]  ;;  %vm15874_vm12 = vmmov %vm15836_vm6 }
 0x22e   : > { %15865 = vst [vmem:[#allocation56_spill] sm:$0xff] %v12704_v15  ;;  %vm12713_vm15 = vcmp.lt.s32.totalorder %v15867_v56, 16  ;;  %v3556_v40 = vshrl.u32 %v12588_v27, 4  ;;  %v3914_v8 = vsel %vm12580_vm7, %v3806_v1, 0.0  ;;  %v3804_v31 = vmax.f32 %v12704_v15, 0.0  ;;  %v9693_v2 = vpop.f32.mrf.mxu0  ;;  %vm15873_vm7 = vmmov %vm15836_vm6  ;;  %v15877_v27 = vld [vmem:[#allocation5_spill] sm:$0xff] }
 0x22f   : > { %v12722_v63 = vadd.f32 %v12152_v32, %v3079_v19  ;;  %v3077_v0 = vadd.f32 %v2984_v22, %v12222_v6  ;;  %3950 = vst.msk [vmem:[#allocation2 + $0xa8] sm:$0xff] %vm15836_vm6, %v3914_v8  ;;  %9720 = vmatmul.mubr.msk.bf16.gmra.mxu1 %vm15873_vm7, %v4054_v58  ;;  %9760 = vmatmul.mubr.msk.bf16.gmra.mxu0 %vm15874_vm12, %v4535_v55  ;;  %vm15875_vm8 = vnez %v15656_v36  ;;  %v15876_v6 = vld [vmem:[#allocation31_spill] sm:$0xff]  ;;  %v3534_v19 = vshrl.u32 %v12631_v13, 4  ;;  %vm15883_vm0 = vmmov %vm15836_vm6  ;;  %v15893_v8 = vld [vmem:[#allocation6_spill] sm:$0xff] }
 0x230   : > { %v4536_v43 = vpack.c.bf16 %v4507_v34, %v4506_v41  ;;  %v15878_v37 = vsel %vm15875_vm8, %v15876_v6, %v15877_v27  ;;  %v15881_v16 = vld [vmem:[#allocation51_spill] sm:$0xff]  ;;  %v3912_v58 = vsel %vm12603_vm14, %v3804_v31, 0.0  ;;  %v3082_v22 = vadd.f32 %v9693_v2, %v12315_v10  ;;  %9723 = vmatprep.mubr.msk.bf16.mxu1 %vm15883_vm0, %v4055_v20  ;;  %v15888_v41 = vld [vmem:[#allocation26_spill] sm:$0xff]  ;;  %vm15889_vm14 = vmmov %vm15883_vm0  ;;  %v2997_v10 = vpop.f32.mrf.mxu0 }
 0x231   : > { %15870 = vst [vmem:[#allocation46_spill] sm:$0xff] %v12722_v63  ;;  %vm12741_vm1 = vcmp.lt.s32.totalorder %v15878_v37, 16  ;;  %v12747_v12 = vmul.u32.u64.low 3817748708, %v15881_v16  ;;  %v12748_v30 = vmul.u32.u64.high 3817748708, %v15881_v16, %v12747_v12  ;;  %v3807_v55 = vmax.f32 %v12722_v63, 0.0  ;;  %3948 = vst.msk [vmem:[#allocation2 + $0x98] sm:$0xff] %vm15889_vm14, %v3912_v58 }
 0x232   : > { %v12754_v36 = vadd.f32 %v12152_v32, %v3077_v0  ;;  %vm15884_vm11 = vcmp.ne.s32.totalorder %v12608_v38, 0  ;;  %vm15885_vm8 = vcmp.lt.s32.totalorder %v12608_v38, 0  ;;  %v12767_v3 = vadd.f32 %v9664_v4, %v15888_v41  ;;  %vm15890_vm7 = vmmov %vm15883_vm0  ;;  %v15891_v20 = vld [vmem:[#allocation24_spill] sm:$0xff]  ;;  %v4030_v12 = vld [vmem:[#allocation2 + $0x8d] sm:$0xff] }
 0x233   : > { %vm12762_vm6 = vmand %vm15885_vm8, %vm15884_vm11  ;;  %v12770_v56 = vadd.f32 %v2706_v44, %v12656_v47  ;;  %9763 = vmatprep.mubr.msk.bf16.mxu0 %vm15890_vm7, %v4536_v43  ;;  %vm15892_vm12 = vnez %v15891_v20  ;;  %v3744_v47 = vsel %vm12729_vm3, %v12671_v5, %v12528_v59  ;;  %v3557_v4 = vmul.u32 18, %v3556_v40  ;;  %v9694_v43 = vpop.f32.mrf.mxu0  ;;  %v15900_v6 = vld [vmem:[#allocation16_spill] sm:$0xff] }
 0x234   : > { %15882 = vst [vmem:[#allocation61_spill] sm:$0xff] %v12754_v36  ;;  %v15894_v31 = vsel %vm15892_vm12, %v12097_v29, %v15893_v8  ;;  %v3915_v44 = vsel %vm12625_vm2, %v3807_v55, 0.0  ;;  %v3805_v34 = vmax.f32 %v12754_v36, 0.0  ;;  %v12791_v2 = vadd.f32 %v12152_v32, %v3082_v22  ;;  %vm15898_vm11 = vmmov %vm15890_vm7  ;;  %v4027_v23 = vld [vmem:[#allocation2 + $0x75] sm:$0xff]  ;;  %v4028_v20 = vld [vmem:[#allocation2 + $0x7d] sm:$0xff] }
 0x235   : > { %vm12779_vm0 = vcmp.lt.s32.totalorder %v15894_v31, 16  ;;  %v3080_v29 = vadd.f32 %v2997_v10, %v12319_v46  ;;  %3951 = vst.msk [vmem:[#allocation2 + $0xb0] sm:$0xff] %vm15898_vm11, %v3915_v44  ;;  %vm15899_vm8 = vnez %v15674_v25  ;;  %v4508_v37 = vld [vmem:[#allocation2 + $0x76] sm:$0xff]  ;;  %vm3601_vm2 = vcmp.ne.s32.totalorder %v12698_v11, 0  ;;  %v4509_v8 = vld [vmem:[#allocation2 + $0x7e] sm:$0xff]  ;;  %vm15911_vm12 = vmmov %vm15890_vm7 }
 0x236   : > { %15897 = vst [vmem:[#allocation59_spill] sm:$0xff] %v12791_v2  ;;  %v15901_v27 = vsel %vm15899_vm8, %v12168_v26, %v15900_v6  ;;  %v3535_v58 = vmul.u32 18, %v3534_v19  ;;  %v12810_v25 = vmul.u32.u64.low 3817748708, %v12531_v17  ;;  %v12811_v55 = vmul.u32.u64.high 3817748708, %v12531_v17, %v12810_v25  ;;  %v4029_v31 = vld [vmem:[#allocation2 + $0x85] sm:$0xff]  ;;  %v3000_v19 = vpop.f32.mrf.mxu0  ;;  %v15904_v48 = vld [vmem:[#allocation8_spill] sm:$0xff]  ;;  %vm15913_vm11 = vmmov %vm15890_vm7 }
 0x237   : > { %vm12800_vm14 = vcmp.lt.s32.totalorder %v15901_v27, 16  ;;  %v3913_v26 = vsel %vm12665_vm5, %v3805_v34, 0.0  ;;  %v3810_v22 = vmax.f32 %v12791_v2, 0.0  ;;  %v12817_v41 = vadd.f32 %v12152_v32, %v3080_v29  ;;  %v4510_v25 = vld [vmem:[#allocation2 + $0x86] sm:$0xff]  ;;  %v15916_v7 = vld [vmem:[#allocation36_spill] sm:$0xff] }
 0x238   : > { %v3083_v10 = vadd.f32 %v9694_v43, %v12343_v45  ;;  %3949 = vst.msk [vmem:[#allocation2 + $0xa0] sm:$0xff] %vm15890_vm7, %v3913_v26  ;;  %v4056_v44 = vpack.c.bf16 %v4028_v20, %v4027_v23  ;;  %v4537_v6 = vpack.c.bf16 %v4509_v8, %v4508_v37  ;;  %v4057_v27 = vpack.c.bf16 %v4030_v12, %v4029_v31  ;;  %v15905_v34 = vld [vmem:[#allocation30_spill] sm:$0xff]  ;;  %v15910_v12 = vld [vmem:[#allocation11_spill] sm:$0xff] }
 0x239   : > { %v15906_v46 = vsel %vm12277_vm10, %v15904_v48, %v15905_v34  ;;  %v12831_v45 = vsub.s32 %v15825_v54, %v3557_v4  ;;  %v3918_v43 = vsel %vm12688_vm13, %v3810_v22, 0.0  ;;  %v3808_v23 = vmax.f32 %v12817_v41, 0.0  ;;  %v4511_v26 = vld [vmem:[#allocation2 + $0x8e] sm:$0xff]  ;;  %vm15912_vm10 = vmmov %vm15890_vm7  ;;  %v15914_v4 = vld [vmem:[#allocation21_spill] sm:$0xff] }
 0x23a   : > { %vm12826_vm5 = vcmp.lt.s32.totalorder %v15906_v46, 16  ;;  %v12837_v37 = vadd.f32 %v12152_v32, %v3083_v10  ;;  %v3081_v42 = vadd.f32 %v3000_v19, %v15910_v12  ;;  %3954 = vst.msk [vmem:[#allocation2 + $0xc8] sm:$0xff] %vm15911_vm12, %v3918_v43  ;;  %v9697_v46 = vpop.f32.mrf.mxu0  ;;  %9724 = vmatmul.mubr.msk.bf16.gmra.mxu1 %vm15912_vm10, %v4056_v44  ;;  %9764 = vmatmul.mubr.msk.bf16.gmra.mxu0 %vm15913_vm11, %v4537_v6  ;;  %vm15915_vm8 = vnez %v15914_v4  ;;  %v15917_v22 = vld [vmem:[#allocation33_spill] sm:$0xff]  ;;  %v9667_v19 = vpop.f32.mrf.mxu1  ;;  %vm15922_vm12 = vmmov %vm15912_vm10  ;;  %v15928_v12 = vld [vmem:[#allocation4_spill] sm:$0xff] }
 0x23b   : > { %v4538_v54 = vpack.c.bf16 %v4511_v26, %v4510_v25  ;;  %v15918_v20 = vsel %vm15915_vm8, %v15916_v7, %v15917_v22  ;;  %vm3637_vm7 = vcmp.lt.s32.totalorder %v12698_v11, 0  ;;  %v12854_v10 = vsub.s32 %v15844_v61, %v3535_v58  ;;  %v15921_v48 = vld [vmem:[#allocation37_spill] sm:$0xff]  ;;  %9727 = vmatprep.mubr.msk.bf16.mxu1 %vm15922_vm12, %v4057_v27  ;;  %vm15923_vm11 = vmmov %vm15912_vm10  ;;  %v4512_v4 = vld [vmem:[#allocation2 + $0x96] sm:$0xff] }
 0x23c   : > { %15909 = vst [vmem:[#allocation49_spill] sm:$0xff] %v12837_v37  ;;  %vm12848_vm13 = vcmp.lt.s32.totalorder %v15918_v20, 16  ;;  %v3567_v31 = vshrl.u32 %v12748_v30, 4  ;;  %v3916_v44 = vsel %vm12713_vm15, %v3808_v23, 0.0  ;;  %v3811_v6 = vmax.f32 %v12837_v37, 0.0  ;;  %v3013_v61 = vpop.f32.mrf.mxu0  ;;  %v4034_v7 = vld [vmem:[#allocation2 + $0xad] sm:$0xff]  ;;  %vm12935_vm3 = vmand %vm3637_vm7, %vm3601_vm2 }
 0x23d   : > { %v12861_v25 = vadd.f32 %v12152_v32, %v3081_v42  ;;  %v3086_v34 = vadd.f32 %v9697_v46, %v15921_v48  ;;  %3952 = vst.msk [vmem:[#allocation2 + $0xb8] sm:$0xff] %vm15912_vm10, %v3916_v44  ;;  %9767 = vmatprep.mubr.msk.bf16.mxu0 %vm15923_vm11, %v4538_v54  ;;  %v15924_v35 = vsel %vm12452_vm4, %v12411_v33, %v12362_v57  ;;  %v12877_v58 = vadd.s32 18, %v12698_v11  ;;  %v15927_v33 = vld [vmem:[#allocation40_spill] sm:$0xff]  ;;  %vm15929_vm4 = vmmov %vm15912_vm10 }
 0x23e   : > { %vm12872_vm15 = vcmp.lt.s32.totalorder %v15924_v35, 16  ;;  %vm3606_vm8 = vcmp.ne.s32.totalorder %v12831_v45, 0  ;;  %vm3642_vm12 = vcmp.lt.s32.totalorder %v12831_v45, 0  ;;  %v12882_v27 = vadd.s32 18, %v12831_v45  ;;  %v9698_v26 = vpop.f32.mrf.mxu0  ;;  %v4031_v54 = vld [vmem:[#allocation2 + $0x95] sm:$0xff]  ;;  %vm15942_vm2 = vmmov %vm15929_vm4 }
 0x23f   : > { %v3919_v62 = vsel %vm12741_vm1, %v3811_v6, 0.0  ;;  %v3809_v43 = vmax.f32 %v12861_v25, 0.0  ;;  %v12888_v57 = vadd.f32 %v12152_v32, %v3086_v34  ;;  %v3084_v23 = vadd.f32 %v3013_v61, %v15927_v33  ;;  %v4513_v6 = vld [vmem:[#allocation2 + $0x9e] sm:$0xff]  ;;  %vm12946_vm11 = vmand %vm3642_vm12, %vm3606_vm8 }
 0x240   : > { %v12892_v42 = vadd.f32 %v9667_v19, %v15928_v12  ;;  %3955 = vst.msk [vmem:[#allocation2 + $0xd0] sm:$0xff] %vm15929_vm4, %v3919_v62  ;;  %v15930_v46 = vsel %vm12504_vm9, %v12439_v18, %v12385_v52  ;;  %vm3604_vm1 = vcmp.ne.s32.totalorder %v12854_v10, 0  ;;  %v3568_v22 = vmul.u32 18, %v3567_v31  ;;  %v4032_v18 = vld [vmem:[#allocation2 + $0x9d] sm:$0xff]  ;;  %v4033_v48 = vld [vmem:[#allocation2 + $0xa5] sm:$0xff]  ;;  %vm15933_vm9 = vmmov %vm15929_vm4  ;;  %v3016_v34 = vpop.f32.mrf.mxu0 }
 0x241   : > { %vm12900_vm10 = vcmp.lt.s32.totalorder %v15930_v46, 16  ;;  %v3545_v20 = vshrl.u32 %v12811_v55, 4  ;;  %v3917_v19 = vsel %vm12779_vm0, %v3809_v43, 0.0  ;;  %v3814_v51 = vmax.f32 %v12888_v57, 0.0  ;;  %v4514_v55 = vld [vmem:[#allocation2 + $0xa6] sm:$0xff]  ;;  %vm15950_vm12 = vmmov %vm15942_vm2 }
 0x242   : > { %v12910_v44 = vadd.f32 %v12152_v32, %v3084_v23  ;;  %v3087_v52 = vadd.f32 %v9698_v26, %v12544_v60  ;;  %3953 = vst.msk [vmem:[#allocation2 + $0xc0] sm:$0xff] %vm15933_vm9, %v3917_v19  ;;  %v4058_v61 = vpack.c.bf16 %v4032_v18, %v4031_v54  ;;  %v4539_v31 = vpack.c.bf16 %v4513_v6, %v4512_v4  ;;  %v2719_v60 = vpop.f32.mrf.mxu1  ;;  %v4515_v23 = vld [vmem:[#allocation2 + $0xae] sm:$0xff]  ;;  %v9701_v5 = vpop.f32.mrf.mxu0  ;;  %vm15939_vm9 = vmmov %vm15929_vm4  ;;  %v15948_v19 = vld [vmem:[#allocation29_spill] sm:$0xff] }
 0x243   : > { %v4059_v35 = vpack.c.bf16 %v4034_v7, %v4033_v48  ;;  %vm12919_vm0 = vcmp.lt.s32.totalorder %v3744_v47, 16  ;;  %v3922_v62 = vsel %vm12800_vm14, %v3814_v51, 0.0  ;;  %v3085_v53 = vadd.f32 %v3016_v34, %v12546_v24  ;;  %vm15938_vm14 = vmmov %vm15929_vm4  ;;  %v4976_v18 = vld [vmem:[#allocation2 + $0x7] sm:$0xff] }
 0x244   : > { %v3812_v43 = vmax.f32 %v12910_v44, 0.0  ;;  %v12928_v33 = vadd.f32 %v12152_v32, %v3087_v52  ;;  %3958 = vst.msk [vmem:[#allocation2 + $0xe8] sm:$0xff] %vm15929_vm4, %v3922_v62  ;;  %9728 = vmatmul.mubr.msk.bf16.gmra.mxu1 %vm15938_vm14, %v4058_v61  ;;  %9768 = vmatmul.mubr.msk.bf16.gmra.mxu0 %vm15939_vm9, %v4539_v31  ;;  %v4540_v47 = vpack.c.bf16 %v4515_v23, %v4514_v55  ;;  %v12951_v40 = vadd.s32 18, %v12854_v10  ;;  %v4035_v31 = vld [vmem:[#allocation2 + $0xb5] sm:$0xff]  ;;  %vm15960_vm4 = vmmov %vm15942_vm2 }
 0x245   : > { %v12954_v12 = vsub.s32 %v15881_v16, %v3568_v22  ;;  %v3546_v26 = vmul.u32 18, %v3545_v20  ;;  %v12960_v4 = vadd.f32 %v12152_v32, %v3085_v53  ;;  %v3090_v7 = vadd.f32 %v9701_v5, %v12572_v21  ;;  %9731 = vmatprep.mubr.msk.bf16.mxu1 %vm15942_vm2, %v4059_v35  ;;  %v15946_v22 = vld [vmem:[#allocation27_spill] sm:$0xff]  ;;  %v3029_v21 = vpop.f32.mrf.mxu0  ;;  %v9668_v35 = vpop.f32.mrf.mxu1  ;;  %vm15961_vm14 = vmmov %vm15942_vm2 }
 0x246   : > { %v3920_v46 = vsel %vm12826_vm5, %v3812_v43, 0.0  ;;  %v3815_v54 = vmax.f32 %v12928_v33, 0.0  ;;  %vm15943_vm7 = vcmp.lt.s32.totalorder %v12854_v10, 0  ;;  %v12973_v29 = vadd.f32 %v2719_v60, %v15946_v22  ;;  %v15947_v20 = vld [vmem:[#allocation79_spill] sm:$0xff]  ;;  %vm15949_vm5 = vmmov %vm15942_vm2  ;;  %9771 = vmatprep.mubr.msk.bf16.mxu0 %vm15950_vm12, %v4540_v47 }
 0x247   : > { %vm12968_vm8 = vmand %vm15943_vm7, %vm3604_vm1  ;;  %v12977_v51 = vadd.f32 %v15948_v19, %v15947_v20  ;;  %3956 = vst.msk [vmem:[#allocation2 + $0xd8] sm:$0xff] %vm15949_vm5, %v3920_v46  ;;  %v15951_v52 = vsel %vm12762_vm6, %v12695_v49, %v12608_v38  ;;  %v3745_v6 = vsel %vm12935_vm3, %v12877_v58, %v12698_v11  ;;  %v3813_v34 = vmax.f32 %v12960_v4, 0.0  ;;  %v9702_v38 = vpop.f32.mrf.mxu0  ;;  %v4516_v11 = vld [vmem:[#allocation2 + $0xb6] sm:$0xff]  ;;  %v4038_v58 = vld [vmem:[#allocation2 + $0xcd] sm:$0xff]  ;;  %v2722_v1 = vpop.f32.mrf.mxu1 }
 0x248   : > { %vm12986_vm1 = vcmp.lt.s32.totalorder %v15951_v52, 16  ;;  %v3923_v48 = vsel %vm12848_vm13, %v3815_v54, 0.0  ;;  %v12998_v61 = vadd.f32 %v12152_v32, %v3090_v7  ;;  %v3088_v13 = vadd.f32 %v3029_v21, %v12652_v50  ;;  %vm15955_vm6 = vmmov %vm15942_vm2  ;;  %v15965_v19 = vld [vmem:[#allocation28_spill] sm:$0xff] }
 0x249   : > { %3959 = vst.msk [vmem:[#allocation2 + $0xf0] sm:$0xff] %vm15955_vm6, %v3923_v48  ;;  %v3750_v49 = vsel %vm12946_vm11, %v12882_v27, %v12831_v45  ;;  %v3748_v8 = vsel %vm12968_vm8, %v12951_v40, %v12854_v10  ;;  %vm3607_vm13 = vcmp.ne.s32.totalorder %v12954_v12, 0  ;;  %v13012_v50 = vsub.s32 %v12531_v17, %v3546_v26  ;;  %v4036_v62 = vld [vmem:[#allocation2 + $0xbd] sm:$0xff]  ;;  %v4037_v53 = vld [vmem:[#allocation2 + $0xc5] sm:$0xff]  ;;  %vm15957_vm11 = vmmov %vm15942_vm2  ;;  %v3032_v10 = vpop.f32.mrf.mxu0 }
 0x24a   : > { %15954 = vst [vmem:[#allocation62_spill] sm:$0xff] %v12998_v61  ;;  %v3921_v55 = vsel %vm12872_vm15, %v3813_v34, 0.0  ;;  %v3818_v60 = vmax.f32 %v12998_v61, 0.0  ;;  %v13018_v45 = vadd.f32 %v12152_v32, %v3088_v13  ;;  %v3091_v27 = vadd.f32 %v9702_v38, %v12767_v3  ;;  %v4517_v43 = vld [vmem:[#allocation2 + $0xbe] sm:$0xff]  ;;  %v4518_v5 = vld [vmem:[#allocation2 + $0xc6] sm:$0xff]  ;;  %v4519_v40 = vld [vmem:[#allocation2 + $0xce] sm:$0xff] }
 0x24b   : > { %3957 = vst.msk [vmem:[#allocation2 + $0xe0] sm:$0xff] %vm15957_vm11, %v3921_v55  ;;  %v4060_v23 = vpack.c.bf16 %v4036_v62, %v4035_v31  ;;  %v4541_v17 = vpack.c.bf16 %v4517_v43, %v4516_v11  ;;  %v4061_v59 = vpack.c.bf16 %v4038_v58, %v4037_v53  ;;  %vm3643_vm3 = vcmp.lt.s32.totalorder %v12954_v12, 0  ;;  %vm15959_vm15 = vmmov %vm15942_vm2  ;;  %v9705_v26 = vpop.f32.mrf.mxu0  ;;  %v4977_v11 = vld [vmem:[#allocation2 + $0xf] sm:$0xff] }
 0x24c   : > { %15956 = vst [vmem:[#allocation60_spill] sm:$0xff] %v13018_v45  ;;  %v3926_v30 = vsel %vm12900_vm10, %v3818_v60, 0.0  ;;  %v3816_v47 = vmax.f32 %v13018_v45, 0.0  ;;  %v13027_v24 = vadd.f32 %v12152_v32, %v3091_v27  ;;  %v3089_v3 = vadd.f32 %v3032_v10, %v12770_v56  ;;  %vm13048_vm7 = vmand %vm3643_vm3, %vm3607_vm13 }
 0x24d   : > { %3962 = vst.msk [vmem:[#allocation2 + $0x108] sm:$0xff] %vm15959_vm15, %v3926_v30  ;;  %9732 = vmatmul.mubr.msk.bf16.gmra.mxu1 %vm15960_vm4, %v4060_v23  ;;  %9772 = vmatmul.mubr.msk.bf16.gmra.mxu0 %vm15961_vm14, %v4541_v17  ;;  %v4542_v46 = vpack.c.bf16 %v4519_v40, %v4518_v5  ;;  %v3715_v54 = vadd.s32 18, %v12954_v12  ;;  %vm3605_vm10 = vcmp.ne.s32.totalorder %v13012_v50, 0  ;;  %vm3641_vm9 = vcmp.lt.s32.totalorder %v13012_v50, 0 }
 0x24e   : > { %15958 = vst [vmem:[#allocation83_spill] sm:$0xff] %v13027_v24  ;;  %v3924_v7 = vsel %vm12919_vm0, %v3816_v47, 0.0  ;;  %v3819_v56 = vmax.f32 %v13027_v24, 0.0  ;;  %v13040_v16 = vadd.f32 %v12152_v32, %v3089_v3  ;;  %v3094_v22 = vadd.f32 %v9705_v26, %v12892_v42  ;;  %9735 = vmatprep.mubr.msk.bf16.mxu1 %vm15942_vm2, %v4061_v59  ;;  %vm15966_vm0 = vmmov %vm15942_vm2  ;;  %v3045_v42 = vpop.f32.mrf.mxu0  ;;  %v4520_v55 = vld [vmem:[#allocation2 + $0xd6] sm:$0xff] }
 0x24f   : > { %v2769_v0 = vadd.f32 %v9668_v35, %v15965_v19  ;;  %3960 = vst.msk [vmem:[#allocation2 + $0xf8] sm:$0xff] %vm15966_vm0, %v3924_v7  ;;  %vm13054_vm8 = vcmp.lt.s32.totalorder %v3745_v6, 16  ;;  %vm15969_vm5 = vmmov %vm15966_vm0  ;;  %v3713_v52 = vadd.s32 18, %v13012_v50  ;;  %v3092_v38 = vadd.f32 %v3045_v42, %v12973_v29  ;;  %v4039_v35 = vld [vmem:[#allocation2 + $0xd5] sm:$0xff] }
 0x250   : > { %15962 = vst [vmem:[#allocation43_spill] sm:$0xff] %v13040_v16  ;;  %9775 = vmatprep.mubr.msk.bf16.mxu0 %vm15969_vm5, %v4542_v46  ;;  %v3927_v48 = vsel %vm12986_vm1, %v3819_v56, 0.0  ;;  %v3817_v34 = vmax.f32 %v13040_v16, 0.0  ;;  %v13064_v13 = vadd.f32 %v12152_v32, %v3094_v22  ;;  %vm13071_vm12 = vmand %vm3641_vm9, %vm3605_vm10  ;;  %v2767_v31 = vadd.f32 %v2722_v1, %v12977_v51  ;;  %v9706_v29 = vpop.f32.mrf.mxu0  ;;  %v4042_v60 = vld [vmem:[#allocation2 + $0xed] sm:$0xff] }
 0x251   : > { %vm15973_vm6 = vmmov %vm15966_vm0  ;;  %vm13077_vm1 = vcmp.lt.s32.totalorder %v3750_v49, 16  ;;  %vm13081_vm13 = vcmp.lt.s32.totalorder %v3748_v8, 16  ;;  %v3751_v58 = vsel %vm13048_vm7, %v3715_v54, %v12954_v12  ;;  %v13092_v27 = vadd.f32 %v12152_v32, %v3092_v38  ;;  %v4523_v26 = vld [vmem:[#allocation2 + $0xee] sm:$0xff] }
 0x252   : > { %15970 = vst [vmem:[#allocation70_spill] sm:$0xff] %v13064_v13  ;;  %3963 = vst.msk [vmem:[#allocation2 + $0x110] sm:$0xff] %vm15973_vm6, %v3927_v48  ;;  %v3925_v51 = vsel %vm13054_vm8, %v3817_v34, 0.0  ;;  %v3822_v49 = vmax.f32 %v13064_v13, 0.0  ;;  %v3095_v8 = vadd.f32 %v9706_v29, %v2769_v0  ;;  %v4040_v62 = vld [vmem:[#allocation2 + $0xdd] sm:$0xff]  ;;  %v4041_v53 = vld [vmem:[#allocation2 + $0xe5] sm:$0xff]  ;;  %v3048_v10 = vpop.f32.mrf.mxu0  ;;  %v3749_v12 = vsel %vm13071_vm12, %v3713_v52, %v13012_v50 }
 0x253   : > { %15978 = vst [vmem:[#allocation9_spill] sm:$0xff] %v13092_v27  ;;  %v4521_v43 = vld [vmem:[#allocation2 + $0xde] sm:$0xff]  ;;  %vm15979_vm11 = vmmov %vm15966_vm0  ;;  %v4062_v23 = vpack.c.bf16 %v4040_v62, %v4039_v35  ;;  %v4063_v59 = vpack.c.bf16 %v4042_v60, %v4041_v53  ;;  %v4522_v5 = vld [vmem:[#allocation2 + $0xe6] sm:$0xff]  ;;  %v3820_v47 = vmax.f32 %v13092_v27, 0.0  ;;  %v3093_v40 = vadd.f32 %v3048_v10, %v2767_v31 }
 0x254   : > { %3961 = vst.msk [vmem:[#allocation2 + $0x100] sm:$0xff] %vm15979_vm11, %v3925_v51  ;;  %v4543_v17 = vpack.c.bf16 %v4521_v43, %v4520_v55  ;;  %v3930_v30 = vsel %vm13077_vm1, %v3822_v49, 0.0  ;;  %v13102_v3 = vadd.f32 %v12152_v32, %v3095_v8  ;;  %vm15981_vm3 = vmmov %vm15966_vm0  ;;  %vm3787_vm15 = vcmp.lt.s32.totalorder %v3751_v58, 16  ;;  %v5459_v58 = vld [vmem:[#allocation2 + $0x1f] sm:$0xff]  ;;  %v5458_v62 = vld [vmem:[#allocation2 + $0x17] sm:$0xff] }
 0x255   : > { %3966 = vst.msk [vmem:[#allocation2 + $0x128] sm:$0xff] %vm15981_vm3, %v3930_v30  ;;  %vm15982_vm4 = vmmov %vm15966_vm0  ;;  %v4544_v50 = vpack.c.bf16 %v4523_v26, %v4522_v5  ;;  %v3928_v46 = vsel %vm13081_vm13, %v3820_v47, 0.0  ;;  %v13111_v1 = vadd.f32 %v12152_v32, %v3093_v40  ;;  %vm3785_vm2 = vcmp.lt.s32.totalorder %v3749_v12, 16  ;;  %v5460_v53 = vld [vmem:[#allocation2 + $0x27] sm:$0xff]  ;;  %v5463_v10 = vld [vmem:[#allocation2 + $0x3f] sm:$0xff] }
 0x256   : > { %15980 = vst [vmem:[#allocation13_spill] sm:$0xff] %v13102_v3  ;;  %9736 = vmatmul.mubr.msk.bf16.gmra.mxu1 %vm15982_vm4, %v4062_v23  ;;  %vm15983_vm14 = vmmov %vm15966_vm0  ;;  %v3823_v54 = vmax.f32 %v13102_v3, 0.0  ;;  %v4043_v22 = vld [vmem:[#allocation2 + $0xf5] sm:$0xff]  ;;  %v5012_v51 = vpack.c.bf16 %v4977_v11, %v4976_v18  ;;  %v5494_v43 = vpack.c.bf16 %v5459_v58, %v5458_v62  ;;  %v10171_v5 = vld [vmem:[%s15297_s3 + $0x40] sm:$0xff]  }
 0x257   : > { %9776 = vmatmul.mubr.msk.bf16.gmra.mxu0 %vm15983_vm14, %v4543_v17  ;;  %15984 = vst [vmem:[#allocation19_spill] sm:$0xff] %v13111_v1  ;;  %vm15985_vm10 = vmmov %vm15966_vm0  ;;  %v3821_v56 = vmax.f32 %v13111_v1, 0.0  ;;  %v4524_v20 = vld [vmem:[#allocation2 + $0xf6] sm:$0xff]  ;;  %v5464_v47 = vld [vmem:[#allocation2 + $0x47] sm:$0xff] }
 0x258   : > { %9739 = vmatprep.mubr.msk.bf16.mxu1 %vm15985_vm10, %v4063_v59  ;;  %vm15986_vm9 = vmmov %vm15966_vm0  ;;  %v3931_v7 = vsel %vm3787_vm15, %v3823_v54, 0.0  ;;  %v5461_v12 = vld [vmem:[#allocation2 + $0x2f] sm:$0xff]  ;;  %v5462_v17 = vld [vmem:[#allocation2 + $0x37] sm:$0xff] }
 0x259   : > { %3964 = vst.msk [vmem:[#allocation2 + $0x118] sm:$0xff] %vm15986_vm9, %v3928_v46  ;;  %vm15987_vm7 = vmmov %vm15966_vm0  ;;  %v4046_v19 = vld [vmem:[#allocation2 + $0x10d] sm:$0xff]  ;;  %v3929_v0 = vsel %vm3785_vm2, %v3821_v56, 0.0  ;;  %v5495_v23 = vpack.c.bf16 %v5461_v12, %v5460_v53  ;;  %v5496_v59 = vpack.c.bf16 %v5463_v10, %v5462_v17  ;;  %v5467_v40 = vld [vmem:[#allocation2 + $0x5f] sm:$0xff] }
 0x25a   : > { %9779 = vmatprep.mubr.msk.bf16.mxu0 %vm15987_vm7, %v4544_v50  ;;  %3967 = vst.msk [vmem:[#allocation2 + $0x130] sm:$0xff] %vm15966_vm0, %v3931_v7  ;;  %vm15988_vm8 = vmmov %vm15966_vm0  ;;  %v4527_v6 = vld [vmem:[#allocation2 + $0x10e] sm:$0xff]  ;;  %v5466_v46 = vld [vmem:[#allocation2 + $0x57] sm:$0xff] }
 0x25b   : > { %v4044_v21 = vld [vmem:[#allocation2 + $0xfd] sm:$0xff]  ;;  %v4045_v32 = vld [vmem:[#allocation2 + $0x105] sm:$0xff]  ;;  %3965 = vst.msk [vmem:[#allocation2 + $0x120] sm:$0xff] %vm15988_vm8, %v3929_v0  ;;  %vm15989_vm5 = vmmov %vm15966_vm0  ;;  %v5498_v54 = vpack.c.bf16 %v5467_v40, %v5466_v46 }
 0x25c   : > { %v4525_v42 = vld [vmem:[#allocation2 + $0xfe] sm:$0xff]  ;;  %v4064_v52 = vpack.c.bf16 %v4044_v21, %v4043_v22  ;;  %v4065_v34 = vpack.c.bf16 %v4046_v19, %v4045_v32  ;;  %v4526_v38 = vld [vmem:[#allocation2 + $0x106] sm:$0xff]  ;;  %vm15990_vm12 = vmmov %vm15966_vm0 }
 0x25d   : > { %v4545_v48 = vpack.c.bf16 %v4525_v42, %v4524_v20  ;;  %v4546_v31 = vpack.c.bf16 %v4527_v6, %v4526_v38  ;;  %vm15991_vm6 = vmmov %vm15966_vm0  ;;  %v10172_v30 = vld [vmem:[%s15297_s3 + $0x50] sm:$0xff]   ;;  %v5468_v7 = vld [vmem:[#allocation2 + $0x67] sm:$0xff] }
 0x25e   : > { %9740 = vmatmul.mubr.msk.bf16.gmra.mxu1 %vm15989_vm5, %v4064_v52  ;;  %vm15992_vm1 = vmmov %vm15966_vm0  ;;  %v5465_v26 = vld [vmem:[#allocation2 + $0x4f] sm:$0xff]  ;;  %v5471_v56 = vld [vmem:[#allocation2 + $0x7f] sm:$0xff] }
 0x25f   : > { %9780 = vmatmul.mubr.msk.bf16.gmra.mxu0 %vm15990_vm12, %v4545_v48  ;;  %9743 = vmatprep.mubr.msk.bf16.mxu1 %vm15991_vm6, %v4065_v34  ;;  %vm15993_vm13 = vmmov %vm15966_vm0  ;;  %v5497_v50 = vpack.c.bf16 %v5465_v26, %v5464_v47  ;;  %v5469_v22 = vld [vmem:[#allocation2 + $0x6f] sm:$0xff]  ;;  %v5470_v19 = vld [vmem:[#allocation2 + $0x77] sm:$0xff] }
 0x260   : > { %9783 = vmatprep.mubr.msk.bf16.mxu0 %vm15992_vm1, %v4546_v31  ;;  %v4047_v29 = vld [vmem:[#allocation2 + $0x115] sm:$0xff]  ;;  %vm15994_vm11 = vmmov %vm15966_vm0  ;;  %v5499_v20 = vpack.c.bf16 %v5469_v22, %v5468_v7  ;;  %v5500_v0 = vpack.c.bf16 %v5471_v56, %v5470_v19  ;;  %v5472_v21 = vld [vmem:[#allocation2 + $0x87] sm:$0xff] }
 0x261   : > { %v4528_v55 = vld [vmem:[#allocation2 + $0x116] sm:$0xff]  ;;  %vm15995_vm3 = vmmov %vm15966_vm0  ;;  %v5475_v42 = vld [vmem:[#allocation2 + $0x9f] sm:$0xff] }
 0x262   : > { %v4048_v35 = vld [vmem:[#allocation2 + $0x11d] sm:$0xff]  ;;  %vm15996_vm15 = vmmov %vm15966_vm0  ;;  %v5473_v32 = vld [vmem:[#allocation2 + $0x8f] sm:$0xff] }
 0x263   : > { %v4529_v60 = vld [vmem:[#allocation2 + $0x11e] sm:$0xff]  ;;  %v4066_v49 = vpack.c.bf16 %v4048_v35, %v4047_v29  ;;  %vm15997_vm4 = vmmov %vm15966_vm0  ;;  %v5501_v52 = vpack.c.bf16 %v5473_v32, %v5472_v21  ;;  %v5476_v38 = vld [vmem:[#allocation2 + $0xa7] sm:$0xff] }
 0x264   : > { %v4547_v8 = vpack.c.bf16 %v4529_v60, %v4528_v55  ;;  %vm15998_vm14 = vmmov %vm15966_vm0  ;;  %v5474_v48 = vld [vmem:[#allocation2 + $0x97] sm:$0xff]  ;;  %v5479_v6 = vld [vmem:[#allocation2 + $0xbf] sm:$0xff] }
 0x265   : > { %vm15999_vm10 = vmmov %vm15966_vm0  ;;  %v5502_v34 = vpack.c.bf16 %v5475_v42, %v5474_v48  ;;  %v5477_v31 = vld [vmem:[#allocation2 + $0xaf] sm:$0xff]  ;;  %v5478_v11 = vld [vmem:[#allocation2 + $0xb7] sm:$0xff] }
 0x266   : > { %9744 = vmatmul.mubr.msk.bf16.gmra.mxu1 %vm15993_vm13, %v4066_v49  ;;  %vm16000_vm9 = vmmov %vm15966_vm0  ;;  %v5503_v18 = vpack.c.bf16 %v5477_v31, %v5476_v38  ;;  %v5504_v29 = vpack.c.bf16 %v5479_v6, %v5478_v11  ;;  %v5480_v58 = vld [vmem:[#allocation2 + $0xc7] sm:$0xff]  ;;  %v5483_v35 = vld [vmem:[#allocation2 + $0xdf] sm:$0xff] }
 0x267   : > { %9784 = vmatmul.mubr.msk.bf16.gmra.mxu0 %vm15994_vm11, %v4547_v8  ;;  %9791 = vmatprep.mubr.msk.bf16.mxu1 %vm15996_vm15, %v5012_v51  ;;  %vm16001_vm2 = vmmov %vm15966_vm0  ;;  %v5481_v55 = vld [vmem:[#allocation2 + $0xcf] sm:$0xff]  ;;  %v5482_v51 = vld [vmem:[#allocation2 + $0xd7] sm:$0xff] }
 0x268   : > { %9831 = vmatprep.mubr.msk.bf16.mxu0 %vm15995_vm3, %v5494_v43  ;;  %vm16002_vm7 = vmmov %vm15966_vm0  ;;  %v5505_v60 = vpack.c.bf16 %v5481_v55, %v5480_v58  ;;  %v5506_v49 = vpack.c.bf16 %v5483_v35, %v5482_v51  ;;  %v5484_v8 = vld [vmem:[#allocation2 + $0xe7] sm:$0xff]  ;;  %v5487_v62 = vld [vmem:[#allocation2 + $0xff] sm:$0xff] }
 0x269   : > { %vm16003_vm8 = vmmov %vm15966_vm0  ;;  %v5486_v10 = vld [vmem:[#allocation2 + $0xf7] sm:$0xff]  ;;  %v5491_v17 = vld [vmem:[#allocation2 + $0x11f] sm:$0xff] }
 0x26a   : > { %vm16004_vm5 = vmmov %vm15966_vm0  ;;  %v5508_v12 = vpack.c.bf16 %v5487_v62, %v5486_v10  ;;  %v5492_v40 = vld [vmem:[#allocation2 + $0x127] sm:$0xff]  ;;  %v5940_v56 = vld [vmem:[#allocation2 + $0x18] sm:$0xff] }
 0x26b   : > { %vm16005_vm12 = vmmov %vm15966_vm0  ;;  %v5941_v26 = vld [vmem:[#allocation2 + $0x20] sm:$0xff]  ;;  %v5943_v19 = vld [vmem:[#allocation2 + $0x30] sm:$0xff] }
 0x26c   : > { %vm16006_vm6 = vmmov %vm15966_vm0  ;;  %v6423_v46 = vld [vmem:[#allocation2 + $0x21] sm:$0xff]  ;;  %v5976_v22 = vpack.c.bf16 %v5941_v26, %v5940_v56  ;;  %v6426_v42 = vld [vmem:[#allocation2 + $0x39] sm:$0xff] }
 0x26d   : > { %vm16007_vm1 = vmmov %vm15966_vm0  ;;  %v5945_v21 = vld [vmem:[#allocation2 + $0x40] sm:$0xff]  ;;  %v6424_v48 = vld [vmem:[#allocation2 + $0x29] sm:$0xff] }
 0x26e   : > { %9792 = vmatmul.mubr.msk.bf16.vlgmr.msra.gmra.mxu1 %vm15997_vm4, %v5494_v43  ;;  %vm16008_vm13 = vmmov %vm15966_vm0  ;;  %v5485_v43 = vld [vmem:[#allocation2 + $0xef] sm:$0xff]  ;;  %v6427_v32 = vld [vmem:[#allocation2 + $0x41] sm:$0xff] }
 0x26f   : > { %9832 = vmatmul.mubr.msk.bf16.vlgmr.msra.gmra.mxu0 %vm15998_vm14, %v5495_v23  ;;  %9795 = vmatprep.mubr.msk.bf16.mxu1 %vm15999_vm10, %v5495_v23  ;;  %vm16009_vm11 = vmmov %vm15966_vm0  ;;  %v5507_v53 = vpack.c.bf16 %v5485_v43, %v5484_v8  ;;  %v5488_v23 = vld [vmem:[#allocation2 + $0x107] sm:$0xff]  ;;  %v5944_v6 = vld [vmem:[#allocation2 + $0x38] sm:$0xff] }
 0x270   : > { %9835 = vmatprep.mubr.msk.bf16.mxu0 %vm16000_vm9, %v5496_v59  ;;  %9868 = vmatpush3.bf16.msra.mxu1 %v12636_v9  ;;  %v13144_v9 = vld [vmem:[%s15297_s3 + $0x68] sm:$0xff]   ;;  %vm16010_vm3 = vmmov %vm15966_vm0  ;;  %v5978_v31 = vpack.c.bf16 %v5945_v21, %v5944_v6  ;;  %v10175_v11 = vld [vmem:[%s15297_s3 + $0x60] sm:$0xff]  }
 0x271   : > { %9908 = vmatpush3.bf16.msra.mxu0 %v12641_v28  ;;  %9869 = vmatprep.subr.bf16.mxu1 %v10171_v5  ;;  %v13149_v28 = vld [vmem:[%s15297_s3 + $0x78] sm:$0xff]   ;;  %vm16011_vm15 = vmmov %vm15966_vm0  ;;  %v5947_v58 = vld [vmem:[#allocation2 + $0x50] sm:$0xff] }
 0x272   : > { %9909 = vmatprep.subr.bf16.mxu0 %v10172_v30  ;;  %vm16012_vm4 = vmmov %vm15966_vm0  ;;  %v6429_v35 = vld [vmem:[#allocation2 + $0x51] sm:$0xff]  ;;  %v5949_v55 = vld [vmem:[#allocation2 + $0x60] sm:$0xff] }
 0x273   : > { %vm16013_vm14 = vmmov %vm15966_vm0  ;;  %v6431_v51 = vld [vmem:[#allocation2 + $0x61] sm:$0xff]  ;;  %v6428_v8 = vld [vmem:[#allocation2 + $0x49] sm:$0xff] }
 0x274   : > { %9870 = vmatpush3.bf16.msra.mxu1 %v10171_v5  ;;  %vm16014_vm10 = vmmov %vm15966_vm0  ;;  %v13201_v43 = vpack.c.bf16 %v6429_v35, %v6428_v8  ;;  %v6437_v56 = vld [vmem:[#allocation2 + $0x91] sm:$0xff]  ;;  %v6436_v21 = vld [vmem:[#allocation2 + $0x89] sm:$0xff] }
 0x275   : > { %9910 = vmatpush3.bf16.msra.mxu0 %v10172_v30  ;;  %9947 = vmatprep.subr.bf16.mxu1 %v13144_v9  ;;  %vm16015_vm9 = vmmov %vm15966_vm0  ;;  %v5490_v30 = vld [vmem:[#allocation2 + $0x117] sm:$0xff]  ;;  %v5958_v35 = vld [vmem:[#allocation2 + $0xa8] sm:$0xff] }
 0x276   : > { %9796 = vmatmul.mubr.msk.bf16.gmra.mxu1 %vm16001_vm2, %v5496_v59  ;;  %9987 = vmatprep.subr.bf16.mxu0 %v13149_v28  ;;  %vm16016_vm2 = vmmov %vm15966_vm0  ;;  %v5489_v59 = vld [vmem:[#allocation2 + $0x10f] sm:$0xff]  ;;  %v5510_v47 = vpack.c.bf16 %v5491_v17, %v5490_v30  ;;  %v5953_v17 = vld [vmem:[#allocation2 + $0x80] sm:$0xff] }
 0x277   : > { %9836 = vmatmul.mubr.msk.bf16.gmra.mxu0 %vm16002_vm7, %v5497_v50  ;;  %9799 = vmatprep.mubr.msk.bf16.mxu1 %vm15966_vm0, %v5497_v50  ;;  %vm16017_vm7 = vmmov %vm15966_vm0  ;;  %v5509_v5 = vpack.c.bf16 %v5489_v59, %v5488_v23  ;;  %v6422_v50 = vld [vmem:[#allocation2 + $0x19] sm:$0xff]  ;;  %v6433_v23 = vld [vmem:[#allocation2 + $0x71] sm:$0xff] }
 0x278   : > { %9839 = vmatprep.mubr.msk.bf16.mxu0 %vm16003_vm8, %v5498_v54  ;;  %vm16018_vm8 = vmmov %vm15966_vm0  ;;  %v6434_v59 = vld [vmem:[#allocation2 + $0x79] sm:$0xff]  ;;  %v5950_v30 = vld [vmem:[#allocation2 + $0x68] sm:$0xff] }
 0x279   : > { %v5959_v6 = vld [vmem:[#allocation2 + $0xb0] sm:$0xff]  ;;  %v7421_v1 = vld [vmem:[#allocation2 + $0x142] sm:$0xff] }
 0x27a   : > { %v7903_v13 = vld [vmem:[#allocation2 + $0x143] sm:$0xff] }
 0x27e   : > { %9800 = vmatmul.mubr.msk.bf16.gmra.mxu1 %vm16004_vm5, %v5498_v54  ;;  %vm16019_vm5 = vmmov %vm15966_vm0  ;;  %v5493_v54 = vld [vmem:[#allocation2 + $0x12f] sm:$0xff] }
 0x27f   : > { %9840 = vmatmul.mubr.msk.bf16.gmra.mxu0 %vm16005_vm12, %v5499_v20  ;;  %9803 = vmatprep.mubr.msk.bf16.mxu1 %vm16006_vm6, %v5499_v20  ;;  %vm16020_vm12 = vmmov %vm15966_vm0  ;;  %v5511_v7 = vpack.c.bf16 %v5493_v54, %v5492_v40  ;;  %v6458_v20 = vpack.c.bf16 %v6423_v46, %v6422_v50  ;;  %v5952_v50 = vld [vmem:[#allocation2 + $0x78] sm:$0xff] }
 0x280   : > { %9843 = vmatprep.mubr.msk.bf16.mxu0 %vm16007_vm1, %v5500_v0  ;;  %vm16021_vm6 = vmmov %vm15966_vm0  ;;  %v5982_v46 = vpack.c.bf16 %v5953_v17, %v5952_v50  ;;  %v6447_v17 = vld [vmem:[#allocation2 + $0xe1] sm:$0xff] }
 0x281   : > { %vm16022_vm1 = vmmov %vm15966_vm0 }
 0x286   : > { %9804 = vmatmul.mubr.msk.bf16.gmra.mxu1 %vm16008_vm13, %v5500_v0  ;;  %vm16023_vm13 = vmmov %vm15966_vm0  ;;  %v6425_v0 = vld [vmem:[#allocation2 + $0x31] sm:$0xff] }
 0x287   : > { %9844 = vmatmul.mubr.msk.bf16.gmra.mxu0 %vm16009_vm11, %v5501_v52  ;;  %9807 = vmatprep.mubr.msk.bf16.mxu1 %vm16010_vm3, %v5501_v52  ;;  %vm16024_vm11 = vmmov %vm15966_vm0  ;;  %v5942_v52 = vld [vmem:[#allocation2 + $0x28] sm:$0xff]  ;;  %v13183_v38 = vpack.c.bf16 %v6425_v0, %v6424_v48 }
 0x288   : > { %9847 = vmatprep.mubr.msk.bf16.mxu0 %vm16011_vm15, %v5502_v34  ;;  %vm16025_vm3 = vmmov %vm15966_vm0  ;;  %v5954_v0 = vld [vmem:[#allocation2 + $0x88] sm:$0xff] }
 0x289   : > { %vm16026_vm15 = vmmov %vm15966_vm0 }
 0x28e   : > { %9808 = vmatmul.mubr.msk.bf16.gmra.mxu1 %vm16012_vm4, %v5502_v34  ;;  %vm16027_vm4 = vmmov %vm15966_vm0  ;;  %v5977_v34 = vpack.c.bf16 %v5943_v19, %v5942_v52  ;;  %v6439_v19 = vld [vmem:[#allocation2 + $0xa1] sm:$0xff]  ;;  %v5956_v52 = vld [vmem:[#allocation2 + $0x98] sm:$0xff] }
 0x28f   : > { %9848 = vmatmul.mubr.msk.bf16.gmra.mxu0 %vm16013_vm14, %v5503_v18  ;;  %9811 = vmatprep.mubr.msk.bf16.mxu1 %vm16014_vm10, %v5503_v18  ;;  %vm16028_vm14 = vmmov %vm15966_vm0  ;;  %v13185_v18 = vpack.c.bf16 %v6427_v32, %v6426_v42  ;;  %v13227_v32 = vpack.c.bf16 %v6437_v56, %v6436_v21  ;;  %v6449_v56 = vld [vmem:[#allocation2 + $0xf1] sm:$0xff]  ;;  %v6448_v21 = vld [vmem:[#allocation2 + $0xe9] sm:$0xff] }
 0x290   : > { %9851 = vmatprep.mubr.msk.bf16.mxu0 %vm16015_vm9, %v5504_v29  ;;  %vm16029_vm10 = vmmov %vm15966_vm0 }
 0x291   : > { %vm16030_vm9 = vmmov %vm15966_vm0 }
 0x296   : > { %9812 = vmatmul.mubr.msk.bf16.gmra.mxu1 %vm16016_vm2, %v5504_v29  ;;  %v10176_v29 = vld [vmem:[%s15297_s3 + $0x70] sm:$0xff]   ;;  %vm16031_vm2 = vmmov %vm15966_vm0 }
 0x297   : > { %9852 = vmatmul.mubr.msk.bf16.gmra.mxu0 %vm16017_vm7, %v5505_v60  ;;  %9815 = vmatprep.mubr.msk.bf16.mxu1 %vm15966_vm0, %v5505_v60  ;;  %vm16032_vm7 = vmmov %vm15966_vm0  ;;  %v6430_v60 = vld [vmem:[#allocation2 + $0x59] sm:$0xff] }
 0x298   : > { %9855 = vmatprep.mubr.msk.bf16.mxu0 %vm16018_vm8, %v5506_v49  ;;  %vm16033_vm8 = vmmov %vm15966_vm0 }
 0x29e   : > { %9816 = vmatmul.mubr.msk.bf16.gmra.mxu1 %vm16019_vm5, %v5506_v49  ;;  %v5946_v49 = vld [vmem:[#allocation2 + $0x48] sm:$0xff]  ;;  %vm16034_vm5 = vmmov %vm15966_vm0 }
 0x29f   : > { %9856 = vmatmul.mubr.msk.bf16.gmra.mxu0 %vm16020_vm12, %v5507_v53  ;;  %9819 = vmatprep.mubr.msk.bf16.mxu1 %vm16021_vm6, %v5507_v53  ;;  %v5979_v62 = vpack.c.bf16 %v5947_v58, %v5946_v49  ;;  %v5948_v53 = vld [vmem:[#allocation2 + $0x58] sm:$0xff]  ;;  %vm16035_vm12 = vmmov %vm15966_vm0  ;;  %v6443_v58 = vld [vmem:[#allocation2 + $0xc1] sm:$0xff] }
 0x2a0   : > { %9859 = vmatprep.mubr.msk.bf16.mxu0 %vm16022_vm1, %v5508_v12  ;;  %v5980_v10 = vpack.c.bf16 %v5949_v55, %v5948_v53  ;;  %vm16036_vm6 = vmmov %vm15966_vm0  ;;  %v6440_v55 = vld [vmem:[#allocation2 + $0xa9] sm:$0xff]  ;;  %v5960_v49 = vld [vmem:[#allocation2 + $0xb8] sm:$0xff] }
 0x2a1   : > { %vm16037_vm1 = vmmov %vm15966_vm0  ;;  %v5963_v53 = vld [vmem:[#allocation2 + $0xd0] sm:$0xff] }
 0x2a6   : > { %9820 = vmatmul.mubr.msk.bf16.gmra.mxu1 %vm16023_vm13, %v5508_v12  ;;  %v13203_v12 = vpack.c.bf16 %v6431_v51, %v6430_v60  ;;  %vm16038_vm13 = vmmov %vm15966_vm0  ;;  %v5985_v60 = vpack.c.bf16 %v5959_v6, %v5958_v35 }
 0x2a7   : > { %9860 = vmatmul.mubr.msk.bf16.gmra.mxu0 %vm16024_vm11, %v5509_v5  ;;  %9823 = vmatprep.mubr.msk.bf16.mxu1 %vm16025_vm3, %v5509_v5  ;;  %v6435_v5 = vld [vmem:[#allocation2 + $0x81] sm:$0xff]  ;;  %vm16039_vm11 = vmmov %vm15966_vm0 }
 0x2a8   : > { %9863 = vmatprep.mubr.msk.bf16.mxu0 %vm16026_vm15, %v5510_v47  ;;  %v13219_v54 = vpack.c.bf16 %v6435_v5, %v6434_v59  ;;  %vm16040_vm3 = vmmov %vm15966_vm0  ;;  %v5962_v59 = vld [vmem:[#allocation2 + $0xc8] sm:$0xff] }
 0x2a9   : > { %vm16041_vm15 = vmmov %vm15966_vm0  ;;  %v6444_v5 = vld [vmem:[#allocation2 + $0xc9] sm:$0xff] }
 0x2ae   : > { %9824 = vmatmul.mubr.msk.bf16.gmra.mxu1 %vm16027_vm4, %v5510_v47  ;;  %v6432_v47 = vld [vmem:[#allocation2 + $0x69] sm:$0xff]  ;;  %vm16042_vm4 = vmmov %vm15966_vm0 }
 0x2af   : > { %9864 = vmatmul.mubr.msk.bf16.gmra.mxu0 %vm16028_vm14, %v5511_v7  ;;  %9871 = vmatprep.mubr.msk.bf16.mxu1 %vm16029_vm10, %v5976_v22  ;;  %v13217_v26 = vpack.c.bf16 %v6433_v23, %v6432_v47  ;;  %v5955_v7 = vld [vmem:[#allocation2 + $0x90] sm:$0xff]  ;;  %v5957_v22 = vld [vmem:[#allocation2 + $0xa0] sm:$0xff]  ;;  %vm16043_vm14 = vmmov %vm15966_vm0 }
 0x2b0   : > { %9911 = vmatprep.mubr.msk.bf16.mxu0 %vm16030_vm9, %v6458_v20  ;;  %v6438_v20 = vld [vmem:[#allocation2 + $0x99] sm:$0xff]  ;;  %v5983_v42 = vpack.c.bf16 %v5955_v7, %v5954_v0  ;;  %v5984_v48 = vpack.c.bf16 %v5957_v22, %v5956_v52  ;;  %vm16044_vm10 = vmmov %vm15966_vm0  ;;  %v5967_v7 = vld [vmem:[#allocation2 + $0xf0] sm:$0xff]  ;;  %v13257_v52 = vpack.c.bf16 %v6449_v56, %v6448_v21 }
 0x2b1   : > { %vm16045_vm9 = vmmov %vm15966_vm0  ;;  %v6446_v23 = vld [vmem:[#allocation2 + $0xd9] sm:$0xff]  ;;  %v5966_v0 = vld [vmem:[#allocation2 + $0xe8] sm:$0xff] }
 0x2b2   : > { %v5969_v22 = vld [vmem:[#allocation2 + $0x100] sm:$0xff]  ;;  %v5975_v21 = vld [vmem:[#allocation2 + $0x130] sm:$0xff] }
 0x2b6   : > { %9872 = vmatmul.mubr.msk.bf16.vlgmr.msra.gmra.mxu1 %vm16031_vm2, %v5977_v34  ;;  %v13229_v34 = vpack.c.bf16 %v6439_v19, %v6438_v20  ;;  %vm16046_vm2 = vmmov %vm15966_vm0  ;;  %v6450_v20 = vld [vmem:[#allocation2 + $0xf9] sm:$0xff]  ;;  %v6451_v19 = vld [vmem:[#allocation2 + $0x101] sm:$0xff] }
 0x2b7   : > { %9912 = vmatmul.mubr.msk.bf16.vlgmr.msra.gmra.mxu0 %vm16032_vm7, %v13183_v38  ;;  %9875 = vmatprep.mubr.msk.bf16.mxu1 %vm15966_vm0, %v5978_v31  ;;  %v6441_v31 = vld [vmem:[#allocation2 + $0xb1] sm:$0xff]  ;;  %vm16047_vm7 = vmmov %vm15966_vm0 }
 0x2b8   : > { %9915 = vmatprep.mubr.msk.bf16.mxu0 %vm16033_vm8, %v13185_v18  ;;  %9948 = vmatpush3.bf16.msra.mxu1 %v13144_v9  ;;  %v13211_v9 = vld [vmem:[%s15297_s3 + $0x88] sm:$0xff]   ;;  %v13237_v51 = vpack.c.bf16 %v6441_v31, %v6440_v55  ;;  %vm16048_vm8 = vmmov %vm15966_vm0  ;;  %v13259_v31 = vpack.c.bf16 %v6451_v19, %v6450_v20  ;;  %v5971_v55 = vld [vmem:[#allocation2 + $0x110] sm:$0xff] }
 0x2b9   : > { %9988 = vmatpush3.bf16.msra.mxu0 %v13149_v28  ;;  %9949 = vmatprep.subr.bf16.mxu1 %v10175_v11  ;;  %v5951_v28 = vld [vmem:[#allocation2 + $0x70] sm:$0xff] }
 0x2ba   : > { %9989 = vmatprep.subr.bf16.mxu0 %v10176_v29  ;;  %v5981_v40 = vpack.c.bf16 %v5951_v28, %v5950_v30  ;;  %v5965_v28 = vld [vmem:[#allocation2 + $0xe0] sm:$0xff]  ;;  %v5987_v30 = vpack.c.bf16 %v5963_v53, %v5962_v59 }
 0x2bb   : > { %v5973_v53 = vld [vmem:[#allocation2 + $0x120] sm:$0xff] }
 0x2bc   : > { %9950 = vmatpush3.bf16.msra.mxu1 %v10175_v11  ;;  %v5961_v11 = vld [vmem:[#allocation2 + $0xc0] sm:$0xff] }
 0x2bd   : > { %9990 = vmatpush3.bf16.msra.mxu0 %v10176_v29  ;;  %10027 = vmatprep.subr.bf16.mxu1 %v13211_v9  ;;  %v6442_v29 = vld [vmem:[#allocation2 + $0xb9] sm:$0xff]  ;;  %v5986_v8 = vpack.c.bf16 %v5961_v11, %v5960_v49 }
 0x2be   : > { %9876 = vmatmul.mubr.msk.bf16.gmra.mxu1 %vm16034_vm5, %v5979_v62  ;;  %v13239_v62 = vpack.c.bf16 %v6443_v58, %v6442_v29  ;;  %vm16049_vm5 = vmmov %vm15966_vm0 }
 0x2bf   : > { %9916 = vmatmul.mubr.msk.bf16.gmra.mxu0 %vm16035_vm12, %v13201_v43  ;;  %9879 = vmatprep.mubr.msk.bf16.mxu1 %vm16036_vm6, %v5980_v10  ;;  %v6445_v10 = vld [vmem:[#allocation2 + $0xd1] sm:$0xff]  ;;  %vm16050_vm12 = vmmov %vm15966_vm0 }
 0x2c0   : > { %9919 = vmatprep.mubr.msk.bf16.mxu0 %vm16037_vm1, %v13203_v12  ;;  %v13247_v47 = vpack.c.bf16 %v6445_v10, %v6444_v5  ;;  %vm16051_vm6 = vmmov %vm15966_vm0  ;;  %v6454_v10 = vld [vmem:[#allocation2 + $0x119] sm:$0xff] }
 0x2c1   : > { %vm16052_vm1 = vmmov %vm15966_vm0 }
 0x2c6   : > { %9880 = vmatmul.mubr.msk.bf16.gmra.mxu1 %vm16038_vm13, %v5981_v40  ;;  %v5964_v40 = vld [vmem:[#allocation2 + $0xd8] sm:$0xff]  ;;  %vm16053_vm13 = vmmov %vm15966_vm0 }
 0x2c7   : > { %9920 = vmatmul.mubr.msk.bf16.gmra.mxu0 %vm16039_vm11, %v13217_v26  ;;  %9883 = vmatprep.mubr.msk.bf16.mxu1 %vm16040_vm3, %v5982_v46  ;;  %v5988_v50 = vpack.c.bf16 %v5965_v28, %v5964_v40  ;;  %v13249_v46 = vpack.c.bf16 %v6447_v17, %v6446_v23  ;;  %vm16054_vm11 = vmmov %vm15966_vm0  ;;  %v6455_v28 = vld [vmem:[#allocation2 + $0x121] sm:$0xff]  ;;  %v6452_v17 = vld [vmem:[#allocation2 + $0x109] sm:$0xff] }
 0x2c8   : > { %9923 = vmatprep.mubr.msk.bf16.mxu0 %vm16041_vm15, %v13219_v54  ;;  %vm16055_vm3 = vmmov %vm15966_vm0  ;;  %v5970_v23 = vld [vmem:[#allocation2 + $0x108] sm:$0xff]  ;;  %v13273_v56 = vpack.c.bf16 %v6455_v28, %v6454_v10 }
 0x2c9   : > { %vm16056_vm15 = vmmov %vm15966_vm0  ;;  %v7386_v10 = vld [vmem:[#allocation2 + $0x2a] sm:$0xff] }
 0x2ce   : > { %9884 = vmatmul.mubr.msk.bf16.gmra.mxu1 %vm16042_vm4, %v5983_v42  ;;  %v5989_v42 = vpack.c.bf16 %v5967_v7, %v5966_v0  ;;  %vm16057_vm4 = vmmov %vm15966_vm0 }
 0x2cf   : > { %9924 = vmatmul.mubr.msk.bf16.gmra.mxu0 %vm16043_vm14, %v13227_v32  ;;  %9887 = vmatprep.mubr.msk.bf16.mxu1 %vm16044_vm10, %v5984_v48  ;;  %v5968_v48 = vld [vmem:[#allocation2 + $0xf8] sm:$0xff]  ;;  %vm16058_vm14 = vmmov %vm15966_vm0 }
 0x2d0   : > { %9927 = vmatprep.mubr.msk.bf16.mxu0 %vm16045_vm9, %v13229_v34  ;;  %v5990_v6 = vpack.c.bf16 %v5969_v22, %v5968_v48  ;;  %vm16059_vm10 = vmmov %vm15966_vm0  ;;  %v6457_v48 = vld [vmem:[#allocation2 + $0x131] sm:$0xff] }
 0x2d1   : > { %vm16060_vm9 = vmmov %vm15966_vm0 }
 0x2d6   : > { %9888 = vmatmul.mubr.msk.bf16.gmra.mxu1 %vm16046_vm2, %v5985_v60  ;;  %v6453_v60 = vld [vmem:[#allocation2 + $0x111] sm:$0xff]  ;;  %vm16061_vm2 = vmmov %vm15966_vm0 }
 0x2d7   : > { %9928 = vmatmul.mubr.msk.bf16.gmra.mxu0 %vm16047_vm7, %v13237_v51  ;;  %9891 = vmatprep.mubr.msk.bf16.mxu1 %vm15966_vm0, %v5986_v8  ;;  %v13270_v40 = vpack.c.bf16 %v6453_v60, %v6452_v17  ;;  %vm16062_vm7 = vmmov %vm15966_vm0 }
 0x2d8   : > { %9931 = vmatprep.mubr.msk.bf16.mxu0 %vm16048_vm8, %v13239_v62  ;;  %vm16063_vm8 = vmmov %vm15966_vm0 }
 0x2d9   : > { %v9713_v11 = vpop.f32.mrf.mxu1 }
 0x2da   : > { %4354 = vrot.lane.b32.xlu1 %v9713_v11, %s10187_s21 }
 0x2db   : > { %v9753_v29 = vpop.f32.mrf.mxu0  ;;  %v4171_v58 = vpop.f32.mrf.mxu1 }
 0x2dc   : > { %4350 = vrot.lane.b32.xlu0 %v4171_v58, %s10187_s21  ;;  %v5974_v58 = vld [vmem:[#allocation2 + $0x128] sm:$0xff] }
 0x2dd   : > { %v4653_v35 = vpop.f32.mrf.mxu0  ;;  %v9714_v49 = vpop.f32.mrf.mxu1 }
 0x2de   : > { %9892 = vmatmul.mubr.msk.bf16.gmra.mxu1 %vm16049_vm5, %v5987_v30  ;;  %4836 = vrot.lane.b32.xlu1 %v9753_v29, %s10187_s21  ;;  %v5991_v30 = vpack.c.bf16 %v5971_v55, %v5970_v23  ;;  %v7387_v29 = vld [vmem:[#allocation2 + $0x32] sm:$0xff]  ;;  %vm16064_vm5 = vmmov %vm15966_vm0 }
 0x2df   : > { %9932 = vmatmul.mubr.msk.bf16.gmra.mxu0 %vm16050_vm12, %v13247_v47  ;;  %9895 = vmatprep.mubr.msk.bf16.mxu1 %vm16051_vm6, %v5988_v50  ;;  %v9754_v8 = vpop.f32.mrf.mxu0  ;;  %v4174_v59 = vpop.f32.mrf.mxu1  ;;  %v5972_v50 = vld [vmem:[#allocation2 + $0x118] sm:$0xff]  ;;  %vm16065_vm12 = vmmov %vm15966_vm0 }
 0x2e0   : > { %9935 = vmatprep.mubr.msk.bf16.mxu0 %vm16052_vm1, %v13249_v46  ;;  %4356 = vrot.lane.b32.xlu0 %v9714_v49, %s10187_s21  ;;  %v5992_v7 = vpack.c.bf16 %v5973_v53, %v5972_v50  ;;  %v5993_v49 = vpack.c.bf16 %v5975_v21, %v5974_v58  ;;  %vm16066_vm6 = vmmov %vm15966_vm0 }
 0x2e1   : > { %v4656_v5 = vpop.f32.mrf.mxu0  ;;  %vm16067_vm1 = vmmov %vm15966_vm0 }
 0x2e2   : > { %4832 = vrot.lane.b32.xlu1 %v4653_v35, %s10187_s21  ;;  %v7422_v35 = vpack.c.bf16 %v7387_v29, %v7386_v10  ;;  %v10178_v29 = vld [vmem:[%s15297_s3 + $0x80] sm:$0xff]  }
 0x2e3   : > { %v7393_v10 = vld [vmem:[#allocation2 + $0x62] sm:$0xff] }
 0x2e4   : > { %4838 = vrot.lane.b32.xlu0 %v9754_v8, %s10187_s21 }
 0x2e5   : > { %v9717_v22 = vpop.f32.mrf.mxu1 }
 0x2e6   : > { %9896 = vmatmul.mubr.msk.bf16.gmra.mxu1 %vm16053_vm13, %v5989_v42  ;;  %v9757_v20 = vpop.f32.mrf.mxu0  ;;  %v6456_v42 = vld [vmem:[#allocation2 + $0x129] sm:$0xff]  ;;  %4352 = vrot.lane.b32.xlu1 %v4174_v59, %s10187_s21  ;;  %v7388_v59 = vld [vmem:[#allocation2 + $0x3a] sm:$0xff]  ;;  %vm16068_vm13 = vmmov %vm15966_vm0 }
 0x2e7   : > { %9936 = vmatmul.mubr.msk.bf16.gmra.mxu0 %vm16054_vm11, %v13257_v52  ;;  %9899 = vmatprep.mubr.msk.bf16.mxu1 %vm16055_vm3, %v5990_v6  ;;  %v4187_v19 = vpop.f32.mrf.mxu1  ;;  %v13284_v53 = vpack.c.bf16 %v6457_v48, %v6456_v42  ;;  %v7390_v48 = vld [vmem:[#allocation2 + $0x4a] sm:$0xff]  ;;  %vm16069_vm11 = vmmov %vm15966_vm0 }
 0x2e8   : > { %9939 = vmatprep.mubr.msk.bf16.mxu0 %vm16056_vm15, %v13259_v31  ;;  %v4669_v0 = vpop.f32.mrf.mxu0  ;;  %4834 = vrot.lane.b32.xlu0 %v4656_v5, %s10187_s21  ;;  %v7389_v5 = vld [vmem:[#allocation2 + $0x42] sm:$0xff]  ;;  %vm16070_vm3 = vmmov %vm15966_vm0 }
 0x2e9   : > { %v9718_v6 = vpop.f32.mrf.mxu1  ;;  %vm16071_vm15 = vmmov %vm15966_vm0 }
 0x2ea   : > { %v9758_v11 = vpop.f32.mrf.mxu0  ;;  %4362 = vrot.lane.b32.xlu1 %v9717_v22, %s10187_s21 }
 0x2eb   : > { %v4190_v55 = vpop.f32.mrf.mxu1 }
 0x2ec   : > { %v4672_v60 = vpop.f32.mrf.mxu0  ;;  %4364 = vrot.lane.b32.xlu0 %v9718_v6, %s10187_s21 }
 0x2ee   : > { %9900 = vmatmul.mubr.msk.bf16.gmra.mxu1 %vm16057_vm4, %v5991_v30  ;;  %4844 = vrot.lane.b32.xlu1 %v9757_v20, %s10187_s21  ;;  %vm16072_vm4 = vmmov %vm15966_vm0 }
 0x2ef   : > { %9940 = vmatmul.mubr.msk.bf16.gmra.mxu0 %vm16058_vm14, %v13270_v40  ;;  %9903 = vmatprep.mubr.msk.bf16.mxu1 %vm16059_vm10, %v5992_v7  ;;  %v9721_v28 = vpop.f32.mrf.mxu1  ;;  %v9761_v8 = vpop.f32.mrf.mxu0  ;;  %v7391_v7 = vld [vmem:[#allocation2 + $0x52] sm:$0xff]  ;;  %vm16073_vm14 = vmmov %vm15966_vm0 }
 0x2f0   : > { %9943 = vmatprep.mubr.msk.bf16.mxu0 %vm16060_vm9, %v13273_v56  ;;  %4846 = vrot.lane.b32.xlu0 %v9758_v11, %s10187_s21  ;;  %v7424_v22 = vpack.c.bf16 %v7391_v7, %v7390_v48  ;;  %vm16074_vm10 = vmmov %vm15966_vm0 }
 0x2f1   : > { %v13294_v23 = vpop.f32.mrf.mxu1  ;;  %v13296_v17 = vpop.f32.mrf.mxu0  ;;  %vm16075_vm9 = vmmov %vm15966_vm0 }
 0x2f2   : > { %4358 = vrot.lane.b32.xlu1 %v4187_v19, %s10187_s21 }
 0x2f3   : > { %v9722_v30 = vpop.f32.mrf.mxu1  ;;  %v9762_v50 = vpop.f32.mrf.mxu0 }
 0x2f4   : > { %4360 = vrot.lane.b32.xlu0 %v4190_v55, %s10187_s21 }
 0x2f5   : > { %v4206_v21 = vpop.f32.mrf.mxu1  ;;  %v13300_v42 = vpop.f32.mrf.mxu0 }
 0x2f6   : > { %9904 = vmatmul.mubr.msk.bf16.gmra.mxu1 %vm16061_vm2, %v5993_v49  ;;  %v7392_v49 = vld [vmem:[#allocation2 + $0x5a] sm:$0xff]  ;;  %4840 = vrot.lane.b32.xlu1 %v4669_v0, %s10187_s21  ;;  %vm16076_vm2 = vmmov %vm15966_vm0 }
 0x2f7   : > { %9944 = vmatmul.mubr.msk.bf16.gmra.mxu0 %vm16062_vm7, %v13284_v53  ;;  %9951 = vmatprep.mubr.msk.bf16.mxu1 %vm15966_vm0, %v13183_v38  ;;  %v7423_v38 = vpack.c.bf16 %v7389_v5, %v7388_v59  ;;  %v7395_v59 = vld [vmem:[#allocation2 + $0x72] sm:$0xff]  ;;  %v7425_v19 = vpack.c.bf16 %v7393_v10, %v7392_v49  ;;  %v7394_v5 = vld [vmem:[#allocation2 + $0x6a] sm:$0xff]  ;;  %vm16077_vm7 = vmmov %vm15966_vm0 }
 0x2f8   : > { %9991 = vmatprep.mubr.msk.bf16.mxu0 %vm16063_vm8, %v7422_v35  ;;  %4842 = vrot.lane.b32.xlu0 %v4672_v60, %s10187_s21  ;;  %v7426_v7 = vpack.c.bf16 %v7395_v59, %v7394_v5  ;;  %v7396_v60 = vld [vmem:[#allocation2 + $0x7a] sm:$0xff]  ;;  %v7398_v49 = vld [vmem:[#allocation2 + $0x8a] sm:$0xff]  ;;  %vm16078_vm8 = vmmov %vm15966_vm0 }
 0x2fa   : > { %v13306_v6 = vpop.f32.mrf.mxu1  ;;  %v13308_v58 = vpop.f32.mrf.mxu0  ;;  %4370 = vrot.lane.b32.xlu1 %v9721_v28, %s10187_s21 }
 0x2fc   : > { %v13317_v20 = vpop.f32.mrf.mxu1  ;;  %v13319_v11 = vpop.f32.mrf.mxu0  ;;  %4372 = vrot.lane.b32.xlu0 %v9722_v30, %s10187_s21  ;;  %v7400_v30 = vld [vmem:[#allocation2 + $0x9a] sm:$0xff] }
 0x2fe   : > { %9952 = vmatmul.mubr.msk.bf16.vlgmr.msra.gmra.mxu1 %vm16064_vm5, %v13185_v18  ;;  %v9726_v18 = vpop.f32.mrf.mxu1  ;;  %v13323_v35 = vpop.f32.mrf.mxu0  ;;  %4852 = vrot.lane.b32.xlu1 %v9761_v8, %s10187_s21  ;;  %vm16079_vm5 = vmmov %vm15966_vm0 }
 0x2ff   : > { %9992 = vmatmul.mubr.msk.bf16.vlgmr.msra.gmra.mxu0 %vm16065_vm12, %v7423_v38  ;;  %9955 = vmatprep.mubr.msk.bf16.mxu1 %vm16066_vm6, %v13201_v43  ;;  %v7397_v38 = vld [vmem:[#allocation2 + $0x82] sm:$0xff]  ;;  %vm16080_vm12 = vmmov %vm15966_vm0 }
 0x300   : > { %9995 = vmatprep.mubr.msk.bf16.mxu0 %vm16067_vm1, %v7424_v22  ;;  %10028 = vmatpush3.bf16.msra.mxu1 %v13211_v9  ;;  %v13326_v43 = vpop.f32.mrf.mxu1  ;;  %v13329_v9 = vpop.f32.mrf.mxu0  ;;  %vm16081_vm6 = vmmov %vm15966_vm0 }
 0x301   : > { %10029 = vmatprep.subr.bf16.mxu1 %v10178_v29  ;;  %4854 = vrot.lane.b32.xlu0 %v9762_v50, %s10187_s21  ;;  %v7401_v50 = vld [vmem:[#allocation2 + $0xa2] sm:$0xff]  ;;  %vm16082_vm1 = vmmov %vm15966_vm0 }
 0x302   : > { %4366 = vrot.lane.b32.xlu1 %v13294_v23, %s10187_s21 }
 0x304   : > { %10030 = vmatpush3.bf16.msra.mxu1 %v10178_v29  ;;  %v13331_v55 = vpop.f32.mrf.mxu1  ;;  %v13343_v48 = vpop.f32.mrf.mxu0 }
 0x305   : > { %4368 = vrot.lane.b32.xlu0 %v4206_v21, %s10187_s21 }
 0x306   : > { %9956 = vmatmul.mubr.msk.bf16.gmra.mxu1 %vm16068_vm13, %v13203_v12  ;;  %v13340_v0 = vpop.f32.mrf.mxu1  ;;  %v7399_v12 = vld [vmem:[#allocation2 + $0x92] sm:$0xff]  ;;  %v13351_v10 = vpop.f32.mrf.mxu0  ;;  %4848 = vrot.lane.b32.xlu1 %v13296_v17, %s10187_s21  ;;  %vm16083_vm13 = vmmov %vm15966_vm0 }
 0x307   : > { %9996 = vmatmul.mubr.msk.bf16.gmra.mxu0 %vm16069_vm11, %v7425_v19  ;;  %9959 = vmatprep.mubr.msk.bf16.mxu1 %vm16070_vm3, %v13217_v26  ;;  %v7427_v26 = vpack.c.bf16 %v7397_v38, %v7396_v60  ;;  %v7428_v28 = vpack.c.bf16 %v7399_v12, %v7398_v49  ;;  %v7402_v60 = vld [vmem:[#allocation2 + $0xaa] sm:$0xff]  ;;  %v7405_v12 = vld [vmem:[#allocation2 + $0xc2] sm:$0xff]  ;;  %vm16084_vm11 = vmmov %vm15966_vm0 }
 0x308   : > { %9999 = vmatprep.mubr.msk.bf16.mxu0 %vm16071_vm15, %v7426_v7  ;;  %v13345_v22 = vpop.f32.mrf.mxu1  ;;  %v13366_v19 = vpop.f32.mrf.mxu0  ;;  %v7429_v7 = vpack.c.bf16 %v7401_v50, %v7400_v30  ;;  %v7406_v30 = vld [vmem:[#allocation2 + $0xca] sm:$0xff]  ;;  %vm16085_vm3 = vmmov %vm15966_vm0 }
 0x309   : > { %4850 = vrot.lane.b32.xlu0 %v13300_v42, %s10187_s21  ;;  %v7404_v42 = vld [vmem:[#allocation2 + $0xba] sm:$0xff]  ;;  %vm16086_vm15 = vmmov %vm15966_vm0 }
 0x30a   : > { %v13348_v29 = vpop.f32.mrf.mxu1  ;;  %v13376_v38 = vpop.f32.mrf.mxu0  ;;  %4378 = vrot.lane.b32.xlu1 %v13306_v6, %s10187_s21 }
 0x30d   : > { %v13353_v59 = vpop.f32.mrf.mxu1  ;;  %4380 = vrot.lane.b32.xlu0 %v9726_v18, %s10187_s21 }
 0x30e   : > { %9960 = vmatmul.mubr.msk.bf16.gmra.mxu1 %vm16072_vm4, %v13219_v54  ;;  %v7403_v54 = vld [vmem:[#allocation2 + $0xb2] sm:$0xff]  ;;  %4860 = vrot.lane.b32.xlu1 %v13308_v58, %s10187_s21  ;;  %vm16087_vm4 = vmmov %vm15966_vm0 }
 0x30f   : > { %10000 = vmatmul.mubr.msk.bf16.gmra.mxu0 %vm16073_vm14, %v7427_v26  ;;  %9963 = vmatprep.mubr.msk.bf16.mxu1 %vm16074_vm10, %v13227_v32  ;;  %v13363_v8 = vpop.f32.mrf.mxu1  ;;  %v7430_v23 = vpack.c.bf16 %v7403_v54, %v7402_v60  ;;  %v13391_v26 = vpop.f32.mrf.mxu0  ;;  %v7409_v54 = vld [vmem:[#allocation2 + $0xe2] sm:$0xff]  ;;  %v7411_v60 = vld [vmem:[#allocation2 + $0xf2] sm:$0xff]  ;;  %vm16088_vm14 = vmmov %vm15966_vm0 }
 0x310   : > { %10003 = vmatprep.mubr.msk.bf16.mxu0 %vm16075_vm9, %v7428_v28  ;;  %v7431_v28 = vpack.c.bf16 %v7405_v12, %v7404_v42  ;;  %v7410_v42 = vld [vmem:[#allocation2 + $0xea] sm:$0xff]  ;;  %vm16089_vm10 = vmmov %vm15966_vm0 }
 0x311   : > { %v13368_v5 = vpop.f32.mrf.mxu1  ;;  %4862 = vrot.lane.b32.xlu0 %v13323_v35, %s10187_s21  ;;  %v13401_v50 = vpop.f32.mrf.mxu0  ;;  %v7408_v35 = vld [vmem:[#allocation2 + $0xda] sm:$0xff]  ;;  %vm16090_vm9 = vmmov %vm15966_vm0 }
 0x312   : > { %4374 = vrot.lane.b32.xlu1 %v13317_v20, %s10187_s21  ;;  %v7434_v20 = vpack.c.bf16 %v7411_v60, %v7410_v42  ;;  %v7417_v60 = vld [vmem:[#allocation2 + $0x122] sm:$0xff] }
 0x313   : > { %v13372_v32 = vpop.f32.mrf.mxu1 }
 0x315   : > { %4376 = vrot.lane.b32.xlu0 %v13326_v43, %s10187_s21 }
 0x316   : > { %v13378_v21 = vpop.f32.mrf.mxu1  ;;  %9964 = vmatmul.mubr.msk.bf16.gmra.mxu1 %vm16076_vm2, %v13229_v34  ;;  %v7407_v34 = vld [vmem:[#allocation2 + $0xd2] sm:$0xff]  ;;  %4856 = vrot.lane.b32.xlu1 %v13319_v11, %s10187_s21  ;;  %vm16091_vm2 = vmmov %vm15966_vm0 }
 0x317   : > { %10004 = vmatmul.mubr.msk.bf16.gmra.mxu0 %vm16077_vm7, %v7429_v7  ;;  %9967 = vmatprep.mubr.msk.bf16.mxu1 %vm15966_vm0, %v13237_v51  ;;  %v7432_v6 = vpack.c.bf16 %v7407_v34, %v7406_v30  ;;  %v13417_v7 = vpop.f32.mrf.mxu0  ;;  %v7413_v34 = vld [vmem:[#allocation2 + $0x102] sm:$0xff]  ;;  %v7415_v30 = vld [vmem:[#allocation2 + $0x112] sm:$0xff]  ;;  %vm16092_vm7 = vmmov %vm15966_vm0 }
 0x318   : > { %10007 = vmatprep.mubr.msk.bf16.mxu0 %vm16078_vm8, %v7430_v23  ;;  %v13388_v17 = vpop.f32.mrf.mxu1  ;;  %vm16093_vm8 = vmmov %vm15966_vm0 }
 0x319   : > { %4858 = vrot.lane.b32.xlu0 %v13329_v9, %s10187_s21  ;;  %v13427_v12 = vpop.f32.mrf.mxu0  ;;  %v7412_v9 = vld [vmem:[#allocation2 + $0xfa] sm:$0xff] }
 0x31a   : > { %v13393_v49 = vpop.f32.mrf.mxu1  ;;  %4386 = vrot.lane.b32.xlu1 %v13331_v55, %s10187_s21 }
 0x31c   : > { %v13397_v51 = vpop.f32.mrf.mxu1 }
 0x31d   : > { %4388 = vrot.lane.b32.xlu0 %v13345_v22, %s10187_s21 }
 0x31e   : > { %v13403_v18 = vpop.f32.mrf.mxu1  ;;  %9968 = vmatmul.mubr.msk.bf16.gmra.mxu1 %vm16079_vm5, %v13239_v62  ;;  %4868 = vrot.lane.b32.xlu1 %v13343_v48, %s10187_s21  ;;  %vm16094_vm5 = vmmov %vm15966_vm0 }
 0x31f   : > { %10008 = vmatmul.mubr.msk.bf16.gmra.mxu0 %vm16080_vm12, %v7431_v28  ;;  %9971 = vmatprep.mubr.msk.bf16.mxu1 %vm16082_vm1, %v13247_v47  ;;  %v7433_v47 = vpack.c.bf16 %v7409_v54, %v7408_v35  ;;  %v13443_v28 = vpop.f32.mrf.mxu0  ;;  %v7414_v35 = vld [vmem:[#allocation2 + $0x10a] sm:$0xff]  ;;  %vm16095_vm12 = vmmov %vm15966_vm0 }
 0x320   : > { %10011 = vmatprep.mubr.msk.bf16.mxu0 %vm16081_vm6, %v7432_v6  ;;  %v13413_v58 = vpop.f32.mrf.mxu1  ;;  %v7436_v55 = vpack.c.bf16 %v7415_v30, %v7414_v35  ;;  %v7869_v35 = vld [vmem:[#allocation2 + $0x33] sm:$0xff]  ;;  %vm16096_vm6 = vmmov %vm15966_vm0 }
 0x321   : > { %4870 = vrot.lane.b32.xlu0 %v13366_v19, %s10187_s21  ;;  %v13453_v54 = vpop.f32.mrf.mxu0  ;;  %v7416_v19 = vld [vmem:[#allocation2 + $0x11a] sm:$0xff]  ;;  %vm16097_vm1 = vmmov %vm15966_vm0 }
 0x322   : > { %v13419_v62 = vpop.f32.mrf.mxu1  ;;  %4382 = vrot.lane.b32.xlu1 %v13340_v0, %s10187_s21 }
 0x324   : > { %v13423_v23 = vpop.f32.mrf.mxu1 }
 0x325   : > { %4384 = vrot.lane.b32.xlu0 %v13348_v29, %s10187_s21  ;;  %v6938_v29 = vld [vmem:[#allocation2 + $0x139] sm:$0xff] }
 0x326   : > { %v13429_v43 = vpop.f32.mrf.mxu1  ;;  %9972 = vmatmul.mubr.msk.bf16.gmra.mxu1 %vm16083_vm13, %v13249_v46  ;;  %4864 = vrot.lane.b32.xlu1 %v13351_v10, %s10187_s21  ;;  %v6939_v10 = vld [vmem:[#allocation2 + $0x141] sm:$0xff]  ;;  %vm16098_vm13 = vmmov %vm15966_vm0 }
 0x327   : > { %10012 = vmatmul.mubr.msk.bf16.gmra.mxu0 %vm16084_vm11, %v7433_v47  ;;  %9975 = vmatprep.mubr.msk.bf16.mxu1 %vm16086_vm15, %v13257_v52  ;;  %v7435_v52 = vpack.c.bf16 %v7413_v34, %v7412_v9  ;;  %v9778_v47 = vpop.f32.mrf.mxu0  ;;  %vm16099_vm11 = vmmov %vm15966_vm0 }
 0x328   : > { %10015 = vmatprep.mubr.msk.bf16.mxu0 %vm16085_vm3, %v7434_v20  ;;  %v13439_v11 = vpop.f32.mrf.mxu1  ;;  %v7419_v20 = vld [vmem:[#allocation2 + $0x132] sm:$0xff]  ;;  %vm16100_vm3 = vmmov %vm15966_vm0 }
 0x329   : > { %4866 = vrot.lane.b32.xlu0 %v13376_v38, %s10187_s21  ;;  %v4752_v34 = vpop.f32.mrf.mxu0  ;;  %vm16101_vm15 = vmmov %vm15966_vm0 }
 0x32a   : > { %v13445_v46 = vpop.f32.mrf.mxu1  ;;  %4394 = vrot.lane.b32.xlu1 %v13353_v59, %s10187_s21 }
 0x32c   : > { %v13449_v6 = vpop.f32.mrf.mxu1 }
 0x32d   : > { %4396 = vrot.lane.b32.xlu0 %v13368_v5, %s10187_s21 }
 0x32e   : > { %v13455_v22 = vpop.f32.mrf.mxu1  ;;  %9976 = vmatmul.mubr.msk.bf16.gmra.mxu1 %vm16087_vm4, %v13259_v31  ;;  %v7418_v31 = vld [vmem:[#allocation2 + $0x12a] sm:$0xff]  ;;  %4876 = vrot.lane.b32.xlu1 %v13391_v26, %s10187_s21  ;;  %v7870_v26 = vld [vmem:[#allocation2 + $0x3b] sm:$0xff]  ;;  %vm16105_vm4 = vmmov %vm15966_vm0 }
 0x32f   : > { %10016 = vmatmul.mubr.msk.bf16.gmra.mxu0 %vm16088_vm14, %v7435_v52  ;;  %9979 = vmatprep.mubr.msk.bf16.mxu1 %vm16090_vm9, %v13270_v40  ;;  %v7437_v40 = vpack.c.bf16 %v7417_v60, %v7416_v19  ;;  %v7438_v0 = vpack.c.bf16 %v7419_v20, %v7418_v31  ;;  %v7871_v60 = vld [vmem:[#allocation2 + $0x43] sm:$0xff]  ;;  %vm16107_vm14 = vmmov %vm15966_vm0 }
 0x330   : > { %10019 = vmatprep.mubr.msk.bf16.mxu0 %vm16089_vm10, %v7436_v55  ;;  %v13465_v48 = vpop.f32.mrf.mxu1  ;;  %vm16111_vm10 = vmmov %vm15966_vm0 }
 0x331   : > { %4878 = vrot.lane.b32.xlu0 %v13417_v7, %s10187_s21  ;;  %v7873_v7 = vld [vmem:[#allocation2 + $0x53] sm:$0xff]  ;;  %vm16113_vm9 = vmmov %vm15966_vm0 }
 0x332   : > { %v13469_v42 = vpop.f32.mrf.mxu1  ;;  %4390 = vrot.lane.b32.xlu1 %v13363_v8, %s10187_s21 }
 0x334   : > { %v13473_v9 = vpop.f32.mrf.mxu1 }
 0x335   : > { %4392 = vrot.lane.b32.xlu0 %v13372_v32, %s10187_s21 }
 0x336   : > { %v13477_v30 = vpop.f32.mrf.mxu1  ;;  %9980 = vmatmul.mubr.msk.bf16.gmra.mxu1 %vm16091_vm2, %v13273_v56  ;;  %v6957_v56 = vpack.c.bf16 %v6939_v10, %v6938_v29  ;;  %4872 = vrot.lane.b32.xlu1 %v13401_v50, %s10187_s21  ;;  %v7874_v50 = vld [vmem:[#allocation2 + $0x5b] sm:$0xff]  ;;  %v7875_v10 = vld [vmem:[#allocation2 + $0x63] sm:$0xff]  ;;  %vm16117_vm2 = vmmov %vm15966_vm0 }
 0x337   : > { %10020 = vmatmul.mubr.msk.bf16.gmra.mxu0 %vm16092_vm7, %v7437_v40  ;;  %9983 = vmatprep.mubr.msk.bf16.mxu1 %vm16093_vm8, %v13284_v53  ;;  %v7868_v53 = vld [vmem:[#allocation2 + $0x2b] sm:$0xff]  ;;  %v7905_v40 = vpack.c.bf16 %v7871_v60, %v7870_v26  ;;  %v7881_v60 = vld [vmem:[#allocation2 + $0x93] sm:$0xff]  ;;  %vm16119_vm7 = vmmov %vm15966_vm0 }
 0x338   : > { %10023 = vmatprep.mubr.msk.bf16.mxu0 %vm15966_vm0, %v7438_v0  ;;  %v13487_v38 = vpop.f32.mrf.mxu1  ;;  %v7904_v19 = vpack.c.bf16 %v7869_v35, %v7868_v53  ;;  %v7872_v0 = vld [vmem:[#allocation2 + $0x4b] sm:$0xff]  ;;  %v7907_v35 = vpack.c.bf16 %v7875_v10, %v7874_v50  ;;  %v7883_v50 = vld [vmem:[#allocation2 + $0xa3] sm:$0xff]  ;;  %vm16124_vm8 = vmmov %vm15966_vm0 }
 0x339   : > { %4874 = vrot.lane.b32.xlu0 %v13427_v12, %s10187_s21  ;;  %v7906_v8 = vpack.c.bf16 %v7873_v7, %v7872_v0  ;;  %v7877_v12 = vld [vmem:[#allocation2 + $0x73] sm:$0xff]  ;;  %v7876_v53 = vld [vmem:[#allocation2 + $0x6b] sm:$0xff]  ;;  %v9781_v7 = vpop.f32.mrf.mxu0 }
 0x33a   : > { %v13491_v52 = vpop.f32.mrf.mxu1  ;;  %4402 = vrot.lane.b32.xlu1 %v13378_v21, %s10187_s21  ;;  %v7878_v21 = vld [vmem:[#allocation2 + $0x7b] sm:$0xff] }
 0x33c   : > { %v13495_v55 = vpop.f32.mrf.mxu1 }
 0x33d   : > { %4404 = vrot.lane.b32.xlu0 %v13393_v49, %s10187_s21  ;;  %v7879_v49 = vld [vmem:[#allocation2 + $0x83] sm:$0xff] }
 0x33e   : > { %v13499_v59 = vpop.f32.mrf.mxu1  ;;  %9984 = vmatmul.mubr.msk.bf16.gmra.mxu1 %vm16094_vm5, %v6957_v56  ;;  %4884 = vrot.lane.b32.xlu1 %v13443_v28, %s10187_s21  ;;  %vm16128_vm5 = vmmov %vm15966_vm0 }
 0x33f   : > { %10031 = vmatprep.mubr.msk.bf16.mxu1 %vm16095_vm12, %v7904_v19  ;;  %v7908_v19 = vpack.c.bf16 %v7877_v12, %v7876_v53  ;;  %v7885_v12 = vld [vmem:[#allocation2 + $0xb3] sm:$0xff]  ;;  %vm16130_vm12 = vmmov %vm15966_vm0 }
 0x340   : > { %v13505_v5 = vpop.f32.mrf.mxu1 }
 0x341   : > { %4886 = vrot.lane.b32.xlu0 %v9778_v47, %s10187_s21  ;;  %v7909_v47 = vpack.c.bf16 %v7879_v49, %v7878_v21  ;;  %v7884_v21 = vld [vmem:[#allocation2 + $0xab] sm:$0xff] }
 0x342   : > { %v13509_v31 = vpop.f32.mrf.mxu1  ;;  %4398 = vrot.lane.b32.xlu1 %v13388_v17, %s10187_s21  ;;  %v13548_v17 = vpop.permute.xlu0 %3974 }
 0x344   : > { %v13513_v20 = vpop.f32.mrf.mxu1 }
 0x345   : > { %4400 = vrot.lane.b32.xlu0 %v13397_v51, %s10187_s21  ;;  %v4765_v51 = vpop.f32.mrf.mxu0 }
 0x346   : > { %v13517_v29 = vpop.f32.mrf.mxu1  ;;  %10032 = vmatmul.mubr.msk.bf16.vlgmr.msra.gmra.mxu1 %vm16096_vm6, %v7905_v40  ;;  %4880 = vrot.lane.b32.xlu1 %v13453_v54, %s10187_s21  ;;  %v7880_v40 = vld [vmem:[#allocation2 + $0x8b] sm:$0xff]  ;;  %v7882_v54 = vld [vmem:[#allocation2 + $0x9b] sm:$0xff]  ;;  %vm16162_vm6 = vmmov %vm15966_vm0 }
 0x347   : > { %10035 = vmatprep.mubr.msk.bf16.mxu1 %vm16097_vm1, %v7906_v8  ;;  %v7910_v0 = vpack.c.bf16 %v7881_v60, %v7880_v40  ;;  %v9782_v53 = vpop.f32.mrf.mxu0  ;;  %v7887_v40 = vld [vmem:[#allocation2 + $0xc3] sm:$0xff]  ;;  %vm16201_vm1 = vmmov %vm15966_vm0 }
 0x348   : > { %v13523_v32 = vpop.f32.mrf.mxu1 }
 0x349   : > { %4882 = vrot.lane.b32.xlu0 %v4752_v34, %s10187_s21 }
 0x34a   : > { %v13527_v56 = vpop.f32.mrf.mxu1  ;;  %4410 = vrot.lane.b32.xlu1 %v13403_v18, %s10187_s21  ;;  %v7912_v18 = vpack.c.bf16 %v7885_v12, %v7884_v21  ;;  %v7888_v21 = vld [vmem:[#allocation2 + $0xcb] sm:$0xff] }
 0x34c   : > { %v13532_v26 = vpop.f32.mrf.mxu1  ;;  %v13557_v34 = vpop.permute.xlu1 %4354 }
 0x34d   : > { %4412 = vrot.lane.b32.xlu0 %v13419_v62, %s10187_s21  ;;  %16102 = vst [vmem:[#allocation71_spill] sm:$0xff] %v13557_v34 }
 0x34e   : > { %10036 = vmatmul.mubr.msk.bf16.gmra.mxu1 %vm16098_vm13, %v7907_v35  ;;  %v13540_v28 = vpop.f32.mrf.mxu1  ;;  %v13559_v35 = vpop.permute.xlu0 %4350  ;;  %4892 = vrot.lane.b32.xlu1 %v9781_v7, %s10187_s21  ;;  %v7886_v7 = vld [vmem:[#allocation2 + $0xbb] sm:$0xff]  ;;  %vm16591_vm13 = vmmov %vm15966_vm0 }
 0x34f   : > { %10039 = vmatprep.mubr.msk.bf16.mxu1 %vm16099_vm11, %v7908_v19  ;;  %16103 = vst [vmem:[#allocation65_spill] sm:$0xff] %v13559_v35  ;;  %v7911_v19 = vpack.c.bf16 %v7883_v50, %v7882_v54  ;;  %v7889_v50 = vld [vmem:[#allocation2 + $0xd3] sm:$0xff]  ;;  %vm16592_vm11 = vmmov %vm15966_vm0 }
 0x350   : > { %v13545_v8 = vpop.f32.mrf.mxu1  ;;  %v13565_v62 = vpop.permute.xlu1 %4836 }
 0x351   : > { %4894 = vrot.lane.b32.xlu0 %v9782_v53, %s10187_s21  ;;  %16104 = vst [vmem:[#allocation18_spill] sm:$0xff] %v13565_v62 }
 0x352   : > { %v13555_v10 = vpop.f32.mrf.mxu1  ;;  %v13568_v60 = vpop.permute.xlu0 %4356  ;;  %4406 = vrot.lane.b32.xlu1 %v13413_v58, %s10187_s21  ;;  %v7914_v58 = vpack.c.bf16 %v7889_v50, %v7888_v21  ;;  %v7893_v50 = vld [vmem:[#allocation2 + $0xf3] sm:$0xff] }
 0x353   : > { %16106 = vst [vmem:[#allocation23_spill] sm:$0xff] %v13568_v60 }
 0x354   : > { %v13563_v49 = vpop.f32.mrf.mxu1  ;;  %v13577_v54 = vpop.permute.xlu1 %4832 }
 0x355   : > { %4408 = vrot.lane.b32.xlu0 %v13423_v23, %s10187_s21  ;;  %16108 = vst [vmem:[#allocation84_spill] sm:$0xff] %v13577_v54 }
 0x356   : > { %10040 = vmatmul.mubr.msk.bf16.gmra.mxu1 %vm16100_vm3, %v7909_v47  ;;  %v4768_v47 = vpop.f32.mrf.mxu0  ;;  %v13579_v12 = vpop.permute.xlu0 %4838  ;;  %4888 = vrot.lane.b32.xlu1 %v4765_v51, %s10187_s21  ;;  %v7890_v51 = vld [vmem:[#allocation2 + $0xdb] sm:$0xff]  ;;  %vm16593_vm3 = vmmov %vm15966_vm0 }
 0x357   : > { %10043 = vmatprep.mubr.msk.bf16.mxu1 %vm16101_vm15, %v7910_v0  ;;  %v13575_v0 = vpop.f32.mrf.mxu1  ;;  %16109 = vst [vmem:[#allocation73_spill] sm:$0xff] %v13579_v12  ;;  %vm16594_vm15 = vmmov %vm15966_vm0 }
 0x358   : > { %v9785_v53 = vpop.f32.mrf.mxu0  ;;  %v13585_v23 = vpop.permute.xlu1 %4352 }
 0x359   : > { %4890 = vrot.lane.b32.xlu0 %v4768_v47, %s10187_s21  ;;  %16110 = vst [vmem:[#allocation69_spill] sm:$0xff] %v13585_v23  ;;  %v7891_v47 = vld [vmem:[#allocation2 + $0xe3] sm:$0xff] }
 0x35a   : > { %v13588_v60 = vpop.permute.xlu0 %4834  ;;  %v4781_v54 = vpop.f32.mrf.mxu0  ;;  %4418 = vrot.lane.b32.xlu1 %v13429_v43, %s10187_s21 }
 0x35b   : > { %16112 = vst [vmem:[#allocation63_spill] sm:$0xff] %v13588_v60  ;;  %v7892_v60 = vld [vmem:[#allocation2 + $0xeb] sm:$0xff] }
 0x35c   : > { %v7916_v43 = vpack.c.bf16 %v7893_v50, %v7892_v60  ;;  %v7897_v50 = vld [vmem:[#allocation2 + $0x113] sm:$0xff] }
 0x35d   : > { %4420 = vrot.lane.b32.xlu0 %v13445_v46, %s10187_s21 }
 0x35e   : > { %10044 = vmatmul.mubr.msk.bf16.gmra.mxu1 %vm16105_vm4, %v7911_v19  ;;  %v7913_v19 = vpack.c.bf16 %v7887_v40, %v7886_v7  ;;  %v13597_v40 = vpop.permute.xlu1 %4362  ;;  %v13599_v21 = vpop.permute.xlu0 %4364  ;;  %4900 = vrot.lane.b32.xlu1 %v9785_v53, %s10187_s21  ;;  %v7894_v53 = vld [vmem:[#allocation2 + $0xfb] sm:$0xff]  ;;  %vm16595_vm4 = vmmov %vm15966_vm0 }
 0x35f   : > { %10047 = vmatprep.mubr.msk.bf16.mxu1 %vm16107_vm14, %v7912_v18  ;;  %v13583_v18 = vpop.f32.mrf.mxu1  ;;  %16114 = vst [vmem:[#allocation86_spill] sm:$0xff] %v13597_v40  ;;  %16115 = vst [vmem:[#allocation12_spill] sm:$0xff] %v13599_v21 }
 0x360   : > { %vm16596_vm14 = vmmov %vm15966_vm0 }
 0x361   : > { %v13595_v7 = vpop.f32.mrf.mxu1 }
 0x362   : > { %v13605_v46 = vpop.permute.xlu1 %4844  ;;  %v13608_v62 = vpop.permute.xlu0 %4846  ;;  %4414 = vrot.lane.b32.xlu1 %v13439_v11, %s10187_s21 }
 0x363   : > { %v13603_v12 = vpop.f32.mrf.mxu1  ;;  %16116 = vst [vmem:[#allocation72_spill] sm:$0xff] %v13605_v46  ;;  %16118 = vst [vmem:[#allocation64_spill] sm:$0xff] %v13608_v62  ;;  %v7896_v62 = vld [vmem:[#allocation2 + $0x10b] sm:$0xff] }
 0x364   : > { %v7918_v11 = vpack.c.bf16 %v7897_v50, %v7896_v62  ;;  %v7901_v50 = vld [vmem:[#allocation2 + $0x133] sm:$0xff] }
 0x365   : > { %v13615_v60 = vpop.f32.mrf.mxu1 }
 0x366   : > { %10048 = vmatmul.mubr.msk.bf16.gmra.mxu1 %vm16111_vm10, %v7913_v19  ;;  %v9786_v19 = vpop.f32.mrf.mxu0  ;;  %4896 = vrot.lane.b32.xlu1 %v4781_v54, %s10187_s21  ;;  %v7898_v54 = vld [vmem:[#allocation2 + $0x11b] sm:$0xff]  ;;  %vm16597_vm10 = vmmov %vm15966_vm0 }
 0x367   : > { %10051 = vmatprep.mubr.msk.bf16.mxu1 %vm16113_vm9, %v7914_v58  ;;  %v7915_v58 = vpack.c.bf16 %v7891_v47, %v7890_v51  ;;  %4902 = vrot.lane.b32.xlu0 %v9786_v19, %s10187_s21  ;;  %v7895_v51 = vld [vmem:[#allocation2 + $0x103] sm:$0xff]  ;;  %v13617_v47 = vpop.permute.xlu1 %4358  ;;  %v13619_v19 = vpop.permute.xlu0 %4360  ;;  %vm16598_vm9 = vmmov %vm15966_vm0 }
 0x368   : > { %v4784_v40 = vpop.f32.mrf.mxu0  ;;  %16120 = vst [vmem:[#allocation76_spill] sm:$0xff] %v13617_v47  ;;  %16121 = vst [vmem:[#allocation74_spill] sm:$0xff] %v13619_v19  ;;  %v13623_v46 = vpop.f32.mrf.mxu1 }
 0x36a   : > { %5318 = vrot.lane.b32.xlu1 %v13455_v22, %s10187_s21  ;;  %v13635_v62 = vpop.f32.mrf.mxu1 }
 0x36b   : > { %4416 = vrot.lane.b32.xlu0 %v13449_v6, %s10187_s21  ;;  %v13625_v6 = vpop.permute.xlu1 %4840  ;;  %v13628_v21 = vpop.permute.xlu0 %4842 }
 0x36c   : > { %16122 = vst [vmem:[#allocation66_spill] sm:$0xff] %v13625_v6  ;;  %16123 = vst [vmem:[#allocation67_spill] sm:$0xff] %v13628_v21  ;;  %v13643_v6 = vpop.f32.mrf.mxu1 }
 0x36e   : > { %10052 = vmatmul.mubr.msk.bf16.gmra.mxu1 %vm16117_vm2, %v7915_v58  ;;  %v9833_v58 = vpop.f32.mrf.mxu0  ;;  %vm16599_vm2 = vmmov %vm15966_vm0 }
 0x36f   : > { %10055 = vmatprep.mubr.msk.bf16.mxu1 %vm16119_vm7, %v7916_v43  ;;  %v7917_v43 = vpack.c.bf16 %v7895_v51, %v7894_v53  ;;  %4898 = vrot.lane.b32.xlu0 %v4784_v40, %s10187_s21  ;;  %v7899_v40 = vld [vmem:[#allocation2 + $0x123] sm:$0xff]  ;;  %v13637_v53 = vpop.permute.xlu1 %4370  ;;  %v7900_v51 = vld [vmem:[#allocation2 + $0x12b] sm:$0xff]  ;;  %vm16600_vm7 = vmmov %vm15966_vm0 }
 0x370   : > { %v5617_v47 = vpop.f32.mrf.mxu0  ;;  %16125 = vst [vmem:[#allocation22_spill] sm:$0xff] %v13637_v53  ;;  %5800 = vrot.lane.b32.xlu1 %v9833_v58, %s10187_s21  ;;  %v7920_v22 = vpack.c.bf16 %v7901_v50, %v7900_v51 }
 0x372   : > { %v9834_v21 = vpop.f32.mrf.mxu0 }
 0x373   : > { %5320 = vrot.lane.b32.xlu0 %v13469_v42, %s10187_s21  ;;  %v13645_v42 = vpop.permute.xlu1 %4852 }
 0x374   : > { %16127 = vst [vmem:[#allocation14_spill] sm:$0xff] %v13645_v42  ;;  %v5620_v53 = vpop.f32.mrf.mxu0  ;;  %5314 = vrot.lane.b32.xlu1 %v13465_v48, %s10187_s21 }
 0x376   : > { %10056 = vmatmul.mubr.msk.bf16.gmra.mxu1 %vm15966_vm0, %v7917_v43  ;;  %v13639_v43 = vpop.permute.xlu0 %4372 }
 0x377   : > { %10059 = vmatprep.mubr.msk.bf16.mxu1 %vm16124_vm8, %v7918_v11  ;;  %16126 = vst [vmem:[#allocation17_spill] sm:$0xff] %v13639_v43  ;;  %v7919_v11 = vpack.c.bf16 %v7899_v40, %v7898_v54  ;;  %5802 = vrot.lane.b32.xlu0 %v9834_v21, %s10187_s21  ;;  %v13655_v58 = vpop.permute.xlu1 %4366  ;;  %v9837_v54 = vpop.f32.mrf.mxu0  ;;  %vm16601_vm8 = vmmov %vm15966_vm0 }
 0x378   : > { %16131 = vst [vmem:[#allocation68_spill] sm:$0xff] %v13655_v58  ;;  %5796 = vrot.lane.b32.xlu1 %v5617_v47, %s10187_s21 }
 0x379   : > { %v5633_v50 = vpop.f32.mrf.mxu0 }
 0x37a   : > { %v13648_v19 = vpop.permute.xlu0 %4854 }
 0x37b   : > { %16129 = vst [vmem:[#allocation77_spill] sm:$0xff] %v13648_v19  ;;  %5316 = vrot.lane.b32.xlu0 %v13473_v9, %s10187_s21  ;;  %v13661_v40 = vpop.permute.xlu1 %4848 }
 0x37c   : > { %16133 = vst [vmem:[#allocation80_spill] sm:$0xff] %v13661_v40  ;;  %5326 = vrot.lane.b32.xlu1 %v13477_v30, %s10187_s21 }
 0x37e   : > { %10060 = vmatmul.mubr.msk.bf16.gmra.mxu1 %vm16128_vm5, %v7919_v11  ;;  %v13657_v21 = vpop.permute.xlu0 %4368  ;;  %v9838_v11 = vpop.f32.mrf.mxu0  ;;  %vm16602_vm5 = vmmov %vm15966_vm0 }
 0x37f   : > { %10063 = vmatprep.mubr.msk.bf16.mxu1 %vm16130_vm12, %v7920_v22  ;;  %16132 = vst [vmem:[#allocation88_spill] sm:$0xff] %v13657_v21  ;;  %5798 = vrot.lane.b32.xlu0 %v5620_v53, %s10187_s21  ;;  %v13669_v48 = vpop.permute.xlu1 %4378  ;;  %vm16603_vm12 = vmmov %vm15966_vm0 }
 0x380   : > { %16135 = vst [vmem:[#allocation78_spill] sm:$0xff] %v13669_v48  ;;  %5808 = vrot.lane.b32.xlu1 %v9837_v54, %s10187_s21  ;;  %v5636_v22 = vpop.f32.mrf.mxu0 }
 0x382   : > { %v13663_v51 = vpop.permute.xlu0 %4850 }
 0x383   : > { %16134 = vst [vmem:[#allocation15_spill] sm:$0xff] %v13663_v51  ;;  %5328 = vrot.lane.b32.xlu0 %v13491_v52, %s10187_s21  ;;  %v13675_v47 = vpop.permute.xlu1 %4860  ;;  %v9841_v51 = vpop.f32.mrf.mxu0 }
 0x384   : > { %16137 = vst [vmem:[#allocation87_spill] sm:$0xff] %v13675_v47  ;;  %5322 = vrot.lane.b32.xlu1 %v13487_v38, %s10187_s21 }
 0x386   : > { %v13671_v9 = vpop.permute.xlu0 %4380 }
 0x387   : > { %16136 = vst [vmem:[#allocation92_spill] sm:$0xff] %v13671_v9  ;;  %5810 = vrot.lane.b32.xlu0 %v9838_v11, %s10187_s21  ;;  %v13683_v30 = vpop.permute.xlu1 %4374 }
 0x388   : > { %16139 = vst [vmem:[#allocation81_spill] sm:$0xff] %v13683_v30  ;;  %5804 = vrot.lane.b32.xlu1 %v5633_v50, %s10187_s21 }
 0x38a   : > { %v13677_v53 = vpop.permute.xlu0 %4862 }
 0x38b   : > { %16138 = vst [vmem:[#allocation85_spill] sm:$0xff] %v13677_v53  ;;  %5324 = vrot.lane.b32.xlu0 %v13495_v55, %s10187_s21  ;;  %v13689_v54 = vpop.permute.xlu1 %4856  ;;  %v5649_v53 = vpop.f32.mrf.mxu0 }
 0x38c   : > { %16141 = vst [vmem:[#allocation20_spill] sm:$0xff] %v13689_v54  ;;  %5334 = vrot.lane.b32.xlu1 %v13499_v59, %s10187_s21  ;;  %v13711_v59 = vpop.f32.mrf.mxu1 }
 0x38e   : > { %v13685_v52 = vpop.permute.xlu0 %4376 }
 0x38f   : > { %16140 = vst [vmem:[#allocation89_spill] sm:$0xff] %v13685_v52  ;;  %5806 = vrot.lane.b32.xlu0 %v5636_v22, %s10187_s21  ;;  %v13697_v38 = vpop.permute.xlu1 %4386  ;;  %v9842_v52 = vpop.f32.mrf.mxu0 }
 0x390   : > { %16143 = vst [vmem:[#allocation90_spill] sm:$0xff] %v13697_v38  ;;  %5816 = vrot.lane.b32.xlu1 %v9841_v51, %s10187_s21 }
 0x392   : > { %v13691_v11 = vpop.permute.xlu0 %4858 }
 0x393   : > { %16142 = vst [vmem:[#allocation93_spill] sm:$0xff] %v13691_v11  ;;  %5336 = vrot.lane.b32.xlu0 %v13509_v31, %s10187_s21  ;;  %v13703_v50 = vpop.permute.xlu1 %4868  ;;  %v5652_v11 = vpop.f32.mrf.mxu0 }
 0x394   : > { %16145 = vst [vmem:[#allocation50_spill] sm:$0xff] %v13703_v50  ;;  %5330 = vrot.lane.b32.xlu1 %v13505_v5, %s10187_s21 }
 0x395   : > { %v9845_v51 = vpop.f32.mrf.mxu0 }
 0x396   : > { %v13699_v55 = vpop.permute.xlu0 %4388 }
 0x397   : > { %16144 = vst [vmem:[#allocation75_spill] sm:$0xff] %v13699_v55  ;;  %5818 = vrot.lane.b32.xlu0 %v9842_v52, %s10187_s21  ;;  %v13713_v31 = vpop.permute.xlu1 %4382  ;;  %v13719_v52 = vpop.f32.mrf.mxu1 }
 0x398   : > { %16147 = vst [vmem:[#allocation91_spill] sm:$0xff] %v13713_v31  ;;  %5812 = vrot.lane.b32.xlu1 %v5649_v53, %s10187_s21  ;;  %v5665_v5 = vpop.f32.mrf.mxu0 }
 0x39a   : > { %v13705_v22 = vpop.permute.xlu0 %4870 }
 0x39b   : > { %16146 = vst [vmem:[#allocation44_spill] sm:$0xff] %v13705_v22  ;;  %5332 = vrot.lane.b32.xlu0 %v13513_v20, %s10187_s21  ;;  %v13721_v22 = vpop.permute.xlu1 %4864  ;;  %v13729_v20 = vpop.f32.mrf.mxu1 }
 0x39c   : > { %16149 = vst [vmem:[#allocation47_spill] sm:$0xff] %v13721_v22  ;;  %5342 = vrot.lane.b32.xlu1 %v13517_v29, %s10187_s21 }
 0x39d   : > { %v13737_v22 = vpop.f32.mrf.mxu1 }
 0x39e   : > { %v13715_v55 = vpop.permute.xlu0 %4384 }
 0x39f   : > { %16148 = vst [vmem:[#allocation82_spill] sm:$0xff] %v13715_v55  ;;  %5814 = vrot.lane.b32.xlu0 %v5652_v11, %s10187_s21  ;;  %v13731_v55 = vpop.permute.xlu1 %4394  ;;  %v9846_v11 = vpop.f32.mrf.mxu0 }
 0x3a0   : > { %16151 = vst [vmem:[#allocation48_spill] sm:$0xff] %v13731_v55  ;;  %5824 = vrot.lane.b32.xlu1 %v9845_v51, %s10187_s21 }
 0x3a1   : > { %v5668_v29 = vpop.f32.mrf.mxu0 }
 0x3a2   : > { %v13723_v50 = vpop.permute.xlu0 %4866 }
 0x3a3   : > { %16150 = vst [vmem:[#allocation57_spill] sm:$0xff] %v13723_v50  ;;  %5344 = vrot.lane.b32.xlu0 %v13527_v56, %s10187_s21  ;;  %v13739_v50 = vpop.permute.xlu1 %4876  ;;  %v13747_v56 = vpop.f32.mrf.mxu1 }
 0x3a4   : > { %16153 = vst [vmem:[#allocation5_spill] sm:$0xff] %v13739_v50  ;;  %5338 = vrot.lane.b32.xlu1 %v13523_v32, %s10187_s21 }
 0x3a5   : > { %v13755_v50 = vpop.f32.mrf.mxu1 }
 0x3a6   : > { %v13733_v53 = vpop.permute.xlu0 %4396 }
 0x3a7   : > { %16152 = vst [vmem:[#allocation31_spill] sm:$0xff] %v13733_v53  ;;  %5826 = vrot.lane.b32.xlu0 %v9846_v11, %s10187_s21  ;;  %v13749_v53 = vpop.permute.xlu1 %4390  ;;  %v9849_v11 = vpop.f32.mrf.mxu0 }
 0x3a8   : > { %5820 = vrot.lane.b32.xlu1 %v5665_v5, %s10187_s21 }
 0x3a9   : > { %v5681_v32 = vpop.f32.mrf.mxu0 }
 0x3aa   : > { %v13741_v31 = vpop.permute.xlu0 %4878 }
 0x3ab   : > { %16154 = vst [vmem:[#allocation51_spill] sm:$0xff] %v13741_v31  ;;  %5340 = vrot.lane.b32.xlu0 %v13532_v26, %s10187_s21  ;;  %v13757_v31 = vpop.permute.xlu1 %4872  ;;  %v13765_v26 = vpop.f32.mrf.mxu1 }
 0x3ac   : > { %5350 = vrot.lane.b32.xlu1 %v13540_v28, %s10187_s21 }
 0x3ad   : > { %v13773_v54 = vpop.f32.mrf.mxu1 }
 0x3ae   : > { %v13751_v51 = vpop.permute.xlu0 %4392 }
 0x3af   : > { %5822 = vrot.lane.b32.xlu0 %v5668_v29, %s10187_s21  ;;  %v13767_v38 = vpop.permute.xlu1 %4402  ;;  %v9850_v29 = vpop.f32.mrf.mxu0 }
 0x3b0   : > { %5832 = vrot.lane.b32.xlu1 %v9849_v11, %s10187_s21 }
 0x3b1   : > { %v5684_v28 = vpop.f32.mrf.mxu0 }
 0x3b2   : > { %v13759_v55 = vpop.permute.xlu0 %4874 }
 0x3b3   : > { %5352 = vrot.lane.b32.xlu0 %v13555_v10, %s10187_s21  ;;  %v13775_v47 = vpop.permute.xlu1 %4884  ;;  %v13783_v10 = vpop.f32.mrf.mxu1 }
 0x3b4   : > { %5346 = vrot.lane.b32.xlu1 %v13545_v8, %s10187_s21 }
 0x3b5   : > { %v13791_v9 = vpop.f32.mrf.mxu1 }
 0x3b6   : > { %v13769_v5 = vpop.permute.xlu0 %4404 }
 0x3b7   : > { %5834 = vrot.lane.b32.xlu0 %v9850_v29, %s10187_s21  ;;  %v13785_v40 = vpop.permute.xlu1 %4398  ;;  %v9853_v29 = vpop.f32.mrf.mxu0 }
 0x3b8   : > { %5828 = vrot.lane.b32.xlu1 %v5681_v32, %s10187_s21 }
 0x3b9   : > { %v5697_v8 = vpop.f32.mrf.mxu0 }
 0x3ba   : > { %v13777_v30 = vpop.permute.xlu0 %4886 }
 0x3bb   : > { %5348 = vrot.lane.b32.xlu0 %v13563_v49, %s10187_s21  ;;  %v13793_v48 = vpop.permute.xlu1 %4880  ;;  %v13801_v49 = vpop.f32.mrf.mxu1 }
 0x3bc   : > { %5358 = vrot.lane.b32.xlu1 %v13575_v0, %s10187_s21 }
 0x3bd   : > { %v13809_v19 = vpop.f32.mrf.mxu1 }
 0x3be   : > { %v13787_v11 = vpop.permute.xlu0 %4400 }
 0x3bf   : > { %5830 = vrot.lane.b32.xlu0 %v5684_v28, %s10187_s21  ;;  %v13803_v58 = vpop.permute.xlu1 %4410  ;;  %v9854_v28 = vpop.f32.mrf.mxu0 }
 0x3c0   : > { %16155 = vst [vmem:[#allocation26_spill] sm:$0xff] %v13803_v58  ;;  %5840 = vrot.lane.b32.xlu1 %v9853_v29, %s10187_s21 }
 0x3c1   : > { %v5700_v0 = vpop.f32.mrf.mxu0 }
 0x3c2   : > { %v13795_v21 = vpop.permute.xlu0 %4882 }
 0x3c3   : > { %5360 = vrot.lane.b32.xlu0 %v13595_v7, %s10187_s21  ;;  %v13811_v42 = vpop.permute.xlu1 %4892  ;;  %v13819_v7 = vpop.f32.mrf.mxu1 }
 0x3c4   : > { %16157 = vst [vmem:[#allocation6_spill] sm:$0xff] %v13811_v42  ;;  %5354 = vrot.lane.b32.xlu1 %v13583_v18, %s10187_s21  ;;  %v9857_v23 = vpop.f32.mrf.mxu0 }
 0x3c5   : > { %v13827_v27 = vpop.f32.mrf.mxu1 }
 0x3c6   : > { %v13805_v32 = vpop.permute.xlu0 %4412  ;;  %v5713_v3 = vpop.f32.mrf.mxu0 }
 0x3c7   : > { %16156 = vst [vmem:[#allocation24_spill] sm:$0xff] %v13805_v32  ;;  %5842 = vrot.lane.b32.xlu0 %v9854_v28, %s10187_s21  ;;  %v13821_v35 = vpop.permute.xlu1 %4406  ;;  %v7420_v28 = vld [vmem:[#allocation2 + $0x13a] sm:$0xff]  ;;  %v13838_v37 = vpop.f32.mrf.mxu1 }
 0x3c8   : > { %16159 = vst [vmem:[#allocation8_spill] sm:$0xff] %v13821_v35  ;;  %5836 = vrot.lane.b32.xlu1 %v5697_v8, %s10187_s21  ;;  %v7439_v34 = vpack.c.bf16 %v7421_v1, %v7420_v28 }
 0x3ca   : > { %v13813_v43 = vpop.permute.xlu0 %4894  ;;  %10024 = vmatmul.mubr.msk.bf16.gmra.mxu0 %vm16162_vm6, %v7439_v34  ;;  %v13846_v34 = vpop.f32.mrf.mxu1  ;;  %vm16604_vm6 = vmmov %vm15966_vm0 }
 0x3cb   : > { %16158 = vst [vmem:[#allocation16_spill] sm:$0xff] %v13813_v43  ;;  %5356 = vrot.lane.b32.xlu0 %v13603_v12, %s10187_s21  ;;  %v13829_v18 = vpop.permute.xlu1 %4888 }
 0x3cc   : > { %16161 = vst [vmem:[#allocation11_spill] sm:$0xff] %v13829_v18  ;;  %5366 = vrot.lane.b32.xlu1 %v13615_v60, %s10187_s21 }
 0x3ce   : > { %v13823_v29 = vpop.permute.xlu0 %4408 }
 0x3cf   : > { %16160 = vst [vmem:[#allocation30_spill] sm:$0xff] %v13823_v29  ;;  %5838 = vrot.lane.b32.xlu0 %v5700_v0, %s10187_s21  ;;  %v13840_v1 = vpop.permute.xlu1 %4418  ;;  %v9858_v0 = vpop.f32.mrf.mxu0 }
 0x3d0   : > { %16164 = vst [vmem:[#allocation36_spill] sm:$0xff] %v13840_v1  ;;  %5848 = vrot.lane.b32.xlu1 %v9857_v23, %s10187_s21 }
 0x3d1   : > { %v5716_v60 = vpop.f32.mrf.mxu0 }
 0x3d2   : > { %v13832_v12 = vpop.permute.xlu0 %4890 }
 0x3d3   : > { %16163 = vst [vmem:[#allocation21_spill] sm:$0xff] %v13832_v12  ;;  %5368 = vrot.lane.b32.xlu0 %v13635_v62, %s10187_s21  ;;  %v13848_v28 = vpop.permute.xlu1 %4900  ;;  %v13856_v62 = vpop.f32.mrf.mxu1 }
 0x3d4   : > { %16166 = vst [vmem:[#allocation37_spill] sm:$0xff] %v13848_v28  ;;  %5362 = vrot.lane.b32.xlu1 %v13623_v46, %s10187_s21 }
 0x3d5   : > { %v13864_v28 = vpop.f32.mrf.mxu1 }
 0x3d6   : > { %v13842_v8 = vpop.permute.xlu0 %4420 }
 0x3d7   : > { %16165 = vst [vmem:[#allocation33_spill] sm:$0xff] %v13842_v8  ;;  %5850 = vrot.lane.b32.xlu0 %v9858_v0, %s10187_s21  ;;  %v13858_v8 = vpop.permute.xlu1 %4414  ;;  %v9861_v0 = vpop.f32.mrf.mxu0 }
 0x3d8   : > { %16168 = vst [vmem:[#allocation4_spill] sm:$0xff] %v13858_v8  ;;  %5844 = vrot.lane.b32.xlu1 %v5713_v3, %s10187_s21 }
 0x3d9   : > { %v5729_v46 = vpop.f32.mrf.mxu0 }
 0x3da   : > { %v13850_v2 = vpop.permute.xlu0 %4902 }
 0x3db   : > { %16167 = vst [vmem:[#allocation40_spill] sm:$0xff] %v13850_v2  ;;  %5364 = vrot.lane.b32.xlu0 %v13643_v6, %s10187_s21  ;;  %v13866_v2 = vpop.permute.xlu1 %4896  ;;  %v13874_v6 = vpop.f32.mrf.mxu1 }
 0x3dc   : > { %16170 = vst [vmem:[#allocation79_spill] sm:$0xff] %v13866_v2  ;;  %5374 = vrot.lane.b32.xlu1 %v13711_v59, %s10187_s21 }
 0x3dd   : > { %v13882_v2 = vpop.f32.mrf.mxu1 }
 0x3de   : > { %v13860_v23 = vpop.permute.xlu0 %4416 }
 0x3df   : > { %16169 = vst [vmem:[#allocation27_spill] sm:$0xff] %v13860_v23  ;;  %5846 = vrot.lane.b32.xlu0 %v5716_v60, %s10187_s21  ;;  %v13876_v23 = vpop.permute.xlu1 %5318  ;;  %v9862_v60 = vpop.f32.mrf.mxu0 }
 0x3e0   : > { %16172 = vst [vmem:[#allocation28_spill] sm:$0xff] %v13876_v23  ;;  %5856 = vrot.lane.b32.xlu1 %v9861_v0, %s10187_s21 }
 0x3e1   : > { %v5732_v59 = vpop.f32.mrf.mxu0 }
 0x3e2   : > { %v13868_v1 = vpop.permute.xlu0 %4898 }
 0x3e3   : > { %16171 = vst [vmem:[#allocation29_spill] sm:$0xff] %v13868_v1  ;;  %5376 = vrot.lane.b32.xlu0 %v13729_v20, %s10187_s21  ;;  %v13884_v1 = vpop.permute.xlu1 %5800  ;;  %v13892_v20 = vpop.f32.mrf.mxu1 }
 0x3e4   : > { %16174 = vst [vmem:[#allocation95_spill] sm:$0xff] %v13884_v1  ;;  %5370 = vrot.lane.b32.xlu1 %v13719_v52, %s10187_s21 }
 0x3e5   : > { %v13900_v1 = vpop.f32.mrf.mxu1 }
 0x3e6   : > { %v13878_v3 = vpop.permute.xlu0 %5320 }
 0x3e7   : > { %16173 = vst [vmem:[#allocation94_spill] sm:$0xff] %v13878_v3  ;;  %5858 = vrot.lane.b32.xlu0 %v9862_v60, %s10187_s21  ;;  %v13894_v3 = vpop.permute.xlu1 %5314  ;;  %v9865_v60 = vpop.f32.mrf.mxu0 }
 0x3e8   : > { %16176 = vst [vmem:[#allocation97_spill] sm:$0xff] %v13894_v3  ;;  %5852 = vrot.lane.b32.xlu1 %v5729_v46, %s10187_s21 }
 0x3e9   : > { %v5745_v52 = vpop.f32.mrf.mxu0 }
 0x3ea   : > { %v13886_v8 = vpop.permute.xlu0 %5802 }
 0x3eb   : > { %16175 = vst [vmem:[#allocation96_spill] sm:$0xff] %v13886_v8  ;;  %5372 = vrot.lane.b32.xlu0 %v13737_v22, %s10187_s21  ;;  %v13902_v8 = vpop.permute.xlu1 %5796  ;;  %v13910_v22 = vpop.f32.mrf.mxu1 }
 0x3ec   : > { %16178 = vst [vmem:[#allocation99_spill] sm:$0xff] %v13902_v8  ;;  %5382 = vrot.lane.b32.xlu1 %v13747_v56, %s10187_s21 }
 0x3ed   : > { %v13918_v8 = vpop.f32.mrf.mxu1 }
 0x3ee   : > { %v13896_v0 = vpop.permute.xlu0 %5316 }
 0x3ef   : > { %16177 = vst [vmem:[#allocation98_spill] sm:$0xff] %v13896_v0  ;;  %5854 = vrot.lane.b32.xlu0 %v5732_v59, %s10187_s21  ;;  %v13912_v0 = vpop.permute.xlu1 %5326  ;;  %v9866_v59 = vpop.f32.mrf.mxu0 }
 0x3f0   : > { %16180 = vst [vmem:[#allocation101_spill] sm:$0xff] %v13912_v0  ;;  %5864 = vrot.lane.b32.xlu1 %v9865_v60, %s10187_s21 }
 0x3f1   : > { %v5748_v56 = vpop.f32.mrf.mxu0 }
 0x3f2   : > { %v13904_v23 = vpop.permute.xlu0 %5798 }
 0x3f3   : > { %16179 = vst [vmem:[#allocation100_spill] sm:$0xff] %v13904_v23  ;;  %5384 = vrot.lane.b32.xlu0 %v13765_v26, %s10187_s21  ;;  %v13920_v23 = vpop.permute.xlu1 %5808  ;;  %v13928_v26 = vpop.f32.mrf.mxu1 }
 0x3f4   : > { %16182 = vst [vmem:[#allocation103_spill] sm:$0xff] %v13920_v23  ;;  %5378 = vrot.lane.b32.xlu1 %v13755_v50, %s10187_s21 }
 0x3f5   : > { %v13936_v23 = vpop.f32.mrf.mxu1 }
 0x3f6   : > { %v13914_v46 = vpop.permute.xlu0 %5328 }
 0x3f7   : > { %16181 = vst [vmem:[#allocation102_spill] sm:$0xff] %v13914_v46  ;;  %5866 = vrot.lane.b32.xlu0 %v9866_v59, %s10187_s21  ;;  %v13930_v46 = vpop.permute.xlu1 %5322  ;;  %v9913_v59 = vpop.f32.mrf.mxu0 }
 0x3f8   : > { %16184 = vst [vmem:[#allocation105_spill] sm:$0xff] %v13930_v46  ;;  %5860 = vrot.lane.b32.xlu1 %v5745_v52, %s10187_s21 }
 0x3f9   : > { %v6581_v50 = vpop.f32.mrf.mxu0 }
 0x3fa   : > { %v13922_v3 = vpop.permute.xlu0 %5810 }
 0x3fb   : > { %16183 = vst [vmem:[#allocation104_spill] sm:$0xff] %v13922_v3  ;;  %5380 = vrot.lane.b32.xlu0 %v13773_v54, %s10187_s21  ;;  %v13938_v3 = vpop.permute.xlu1 %5804  ;;  %v13946_v54 = vpop.f32.mrf.mxu1 }
 0x3fc   : > { %16186 = vst [vmem:[#allocation107_spill] sm:$0xff] %v13938_v3  ;;  %6282 = vrot.lane.b32.xlu1 %v13783_v10, %s10187_s21 }
 0x3fd   : > { %v13954_v3 = vpop.f32.mrf.mxu1 }
 0x3fe   : > { %v13932_v60 = vpop.permute.xlu0 %5324 }
 0x3ff   : > { %16185 = vst [vmem:[#allocation106_spill] sm:$0xff] %v13932_v60  ;;  %5862 = vrot.lane.b32.xlu0 %v5748_v56, %s10187_s21  ;;  %v13948_v60 = vpop.permute.xlu1 %5334  ;;  %v9914_v56 = vpop.f32.mrf.mxu0 }
 0x400   : > { %16188 = vst [vmem:[#allocation109_spill] sm:$0xff] %v13948_v60  ;;  %6764 = vrot.lane.b32.xlu1 %v9913_v59, %s10187_s21 }
 0x401   : > { %v6584_v10 = vpop.f32.mrf.mxu0 }
 0x402   : > { %v13940_v0 = vpop.permute.xlu0 %5806 }
 0x403   : > { %16187 = vst [vmem:[#allocation108_spill] sm:$0xff] %v13940_v0  ;;  %6284 = vrot.lane.b32.xlu0 %v13801_v49, %s10187_s21  ;;  %v13956_v0 = vpop.permute.xlu1 %5816  ;;  %v13964_v49 = vpop.f32.mrf.mxu1 }
 0x404   : > { %16190 = vst [vmem:[#allocation111_spill] sm:$0xff] %v13956_v0  ;;  %6278 = vrot.lane.b32.xlu1 %v13791_v9, %s10187_s21 }
 0x405   : > { %v13972_v0 = vpop.f32.mrf.mxu1 }
 0x406   : > { %v13950_v52 = vpop.permute.xlu0 %5336 }
 0x407   : > { %16189 = vst [vmem:[#allocation110_spill] sm:$0xff] %v13950_v52  ;;  %6766 = vrot.lane.b32.xlu0 %v9914_v56, %s10187_s21  ;;  %v13966_v52 = vpop.permute.xlu1 %5330  ;;  %v9917_v56 = vpop.f32.mrf.mxu0 }
 0x408   : > { %16192 = vst [vmem:[#allocation113_spill] sm:$0xff] %v13966_v52  ;;  %6760 = vrot.lane.b32.xlu1 %v6581_v50, %s10187_s21 }
 0x409   : > { %v6597_v9 = vpop.f32.mrf.mxu0 }
 0x40a   : > { %v13958_v46 = vpop.permute.xlu0 %5818 }
 0x40b   : > { %16191 = vst [vmem:[#allocation112_spill] sm:$0xff] %v13958_v46  ;;  %6280 = vrot.lane.b32.xlu0 %v13809_v19, %s10187_s21  ;;  %v13974_v46 = vpop.permute.xlu1 %5812  ;;  %v13982_v19 = vpop.f32.mrf.mxu1 }
 0x40c   : > { %16194 = vst [vmem:[#allocation115_spill] sm:$0xff] %v13974_v46  ;;  %6290 = vrot.lane.b32.xlu1 %v13819_v7, %s10187_s21  ;;  %v7902_v7 = vld [vmem:[#allocation2 + $0x13b] sm:$0xff] }
 0x40d   : > { %v13990_v46 = vpop.f32.mrf.mxu1 }
 0x40e   : > { %v13968_v59 = vpop.permute.xlu0 %5332 }
 0x40f   : > { %16193 = vst [vmem:[#allocation114_spill] sm:$0xff] %v13968_v59  ;;  %6762 = vrot.lane.b32.xlu0 %v6584_v10, %s10187_s21  ;;  %v13984_v59 = vpop.permute.xlu1 %5342  ;;  %v9918_v10 = vpop.f32.mrf.mxu0 }
 0x410   : > { %16196 = vst [vmem:[#allocation117_spill] sm:$0xff] %v13984_v59  ;;  %6772 = vrot.lane.b32.xlu1 %v9917_v56, %s10187_s21  ;;  %v7921_v59 = vpack.c.bf16 %v7903_v13, %v7902_v7 }
 0x412   : > { %v13976_v60 = vpop.permute.xlu0 %5814  ;;  %10064 = vmatmul.mubr.msk.bf16.gmra.mxu1 %vm16201_vm1, %v7921_v59  ;;  %vm16605_vm1 = vmmov %vm15966_vm0 }
 0x413   : > { %16195 = vst [vmem:[#allocation116_spill] sm:$0xff] %v13976_v60  ;;  %6292 = vrot.lane.b32.xlu0 %v13838_v37, %s10187_s21  ;;  %v13992_v60 = vpop.permute.xlu1 %5824  ;;  %v6600_v37 = vpop.f32.mrf.mxu0 }
 0x414   : > { %16198 = vst [vmem:[#allocation119_spill] sm:$0xff] %v13992_v60  ;;  %6286 = vrot.lane.b32.xlu1 %v13827_v27, %s10187_s21 }
 0x415   : > { %v9921_v60 = vpop.f32.mrf.mxu0 }
 0x416   : > { %v13986_v50 = vpop.permute.xlu0 %5344 }
 0x417   : > { %16197 = vst [vmem:[#allocation118_spill] sm:$0xff] %v13986_v50  ;;  %6774 = vrot.lane.b32.xlu0 %v9918_v10, %s10187_s21  ;;  %v14000_v50 = vpop.f32.mrf.mxu1  ;;  %v14002_v56 = vpop.permute.xlu1 %5338 }
 0x418   : > { %16200 = vst [vmem:[#allocation121_spill] sm:$0xff] %v14002_v56  ;;  %6768 = vrot.lane.b32.xlu1 %v6597_v9, %s10187_s21 }
 0x41a   : > { %v13994_v52 = vpop.permute.xlu0 %5826 }
 0x41b   : > { %16199 = vst [vmem:[#allocation120_spill] sm:$0xff] %v13994_v52  ;;  %6288 = vrot.lane.b32.xlu0 %v13846_v34, %s10187_s21  ;;  %v14009_v52 = vpop.f32.mrf.mxu1  ;;  %v14011_v27 = vpop.permute.xlu1 %5820 }
 0x41c   : > { %16203 = vst [vmem:[#allocation123_spill] sm:$0xff] %v14011_v27  ;;  %v6613_v34 = vpop.f32.mrf.mxu0  ;;  %6298 = vrot.lane.b32.xlu1 %v13856_v62, %s10187_s21 }
 0x41d   : > { %v14019_v59 = vpop.f32.mrf.mxu1 }
 0x41e   : > { %v14005_v10 = vpop.permute.xlu0 %5340 }
 0x41f   : > { %16202 = vst [vmem:[#allocation122_spill] sm:$0xff] %v14005_v10  ;;  %6770 = vrot.lane.b32.xlu0 %v6600_v37, %s10187_s21  ;;  %v14021_v7 = vpop.permute.xlu1 %5350  ;;  %v9922_v37 = vpop.f32.mrf.mxu0 }
 0x420   : > { %16205 = vst [vmem:[#allocation125_spill] sm:$0xff] %v14021_v7  ;;  %6780 = vrot.lane.b32.xlu1 %v9921_v60, %s10187_s21  ;;  %v14027_v27 = vpop.f32.mrf.mxu1 }
 0x421   : > { %v6616_v62 = vpop.f32.mrf.mxu0 }
 0x422   : > { %v14013_v13 = vpop.permute.xlu0 %5822 }
 0x423   : > { %16204 = vst [vmem:[#allocation124_spill] sm:$0xff] %v14013_v13  ;;  %6300 = vrot.lane.b32.xlu0 %v13874_v6, %s10187_s21  ;;  %v14029_v13 = vpop.permute.xlu1 %5832  ;;  %v14037_v6 = vpop.f32.mrf.mxu1 }
 0x424   : > { %16207 = vst [vmem:[#allocation127_spill] sm:$0xff] %v14029_v13  ;;  %6294 = vrot.lane.b32.xlu1 %v13864_v28, %s10187_s21 }
 0x425   : > { %v14045_v13 = vpop.f32.mrf.mxu1 }
 0x426   : > { %v14023_v9 = vpop.permute.xlu0 %5352 }
 0x427   : > { %16206 = vst [vmem:[#allocation126_spill] sm:$0xff] %v14023_v9  ;;  %6782 = vrot.lane.b32.xlu0 %v9922_v37, %s10187_s21  ;;  %v14039_v9 = vpop.permute.xlu1 %5346  ;;  %v9925_v37 = vpop.f32.mrf.mxu0 }
 0x428   : > { %16209 = vst [vmem:[#allocation129_spill] sm:$0xff] %v14039_v9  ;;  %6776 = vrot.lane.b32.xlu1 %v6613_v34, %s10187_s21 }
 0x429   : > { %v6629_v28 = vpop.f32.mrf.mxu0 }
 0x42a   : > { %v14031_v10 = vpop.permute.xlu0 %5834 }
 0x42b   : > { %16208 = vst [vmem:[#allocation128_spill] sm:$0xff] %v14031_v10  ;;  %6296 = vrot.lane.b32.xlu0 %v13882_v2, %s10187_s21  ;;  %v14047_v10 = vpop.permute.xlu1 %5828  ;;  %v14055_v2 = vpop.f32.mrf.mxu1 }
 0x42c   : > { %16211 = vst [vmem:[#allocation131_spill] sm:$0xff] %v14047_v10  ;;  %6306 = vrot.lane.b32.xlu1 %v13892_v20, %s10187_s21 }
 0x42d   : > { %v14063_v10 = vpop.f32.mrf.mxu1 }
 0x42e   : > { %v14041_v60 = vpop.permute.xlu0 %5348 }
 0x42f   : > { %16210 = vst [vmem:[#allocation130_spill] sm:$0xff] %v14041_v60  ;;  %6778 = vrot.lane.b32.xlu0 %v6616_v62, %s10187_s21  ;;  %v14057_v60 = vpop.permute.xlu1 %5358  ;;  %v9926_v62 = vpop.f32.mrf.mxu0 }
 0x430   : > { %16213 = vst [vmem:[#allocation133_spill] sm:$0xff] %v14057_v60  ;;  %6788 = vrot.lane.b32.xlu1 %v9925_v37, %s10187_s21 }
 0x431   : > { %v6632_v20 = vpop.f32.mrf.mxu0 }
 0x432   : > { %v14049_v7 = vpop.permute.xlu0 %5830 }
 0x433   : > { %16212 = vst [vmem:[#allocation132_spill] sm:$0xff] %v14049_v7  ;;  %6308 = vrot.lane.b32.xlu0 %v13910_v22, %s10187_s21  ;;  %v14065_v7 = vpop.permute.xlu1 %5840  ;;  %v14073_v22 = vpop.f32.mrf.mxu1 }
 0x434   : > { %16215 = vst [vmem:[#allocation135_spill] sm:$0xff] %v14065_v7  ;;  %6302 = vrot.lane.b32.xlu1 %v13900_v1, %s10187_s21 }
 0x435   : > { %v14081_v7 = vpop.f32.mrf.mxu1 }
 0x436   : > { %v14059_v34 = vpop.permute.xlu0 %5360 }
 0x437   : > { %16214 = vst [vmem:[#allocation134_spill] sm:$0xff] %v14059_v34  ;;  %6790 = vrot.lane.b32.xlu0 %v9926_v62, %s10187_s21  ;;  %v14075_v34 = vpop.permute.xlu1 %5354  ;;  %v9929_v62 = vpop.f32.mrf.mxu0 }
 0x438   : > { %6784 = vrot.lane.b32.xlu1 %v6629_v28, %s10187_s21 }
 0x439   : > { %v6645_v1 = vpop.f32.mrf.mxu0 }
 0x43a   : > { %v14067_v9 = vpop.permute.xlu0 %5842 }
 0x43b   : > { %16216 = vst [vmem:[#allocation136_spill] sm:$0xff] %v14067_v9  ;;  %6304 = vrot.lane.b32.xlu0 %v13918_v8, %s10187_s21  ;;  %v14083_v9 = vpop.permute.xlu1 %5836  ;;  %v14091_v8 = vpop.f32.mrf.mxu1 }
 0x43c   : > { %6314 = vrot.lane.b32.xlu1 %v13928_v26, %s10187_s21 }
 0x43d   : > { %v14099_v36 = vpop.f32.mrf.mxu1 }
 0x43e   : > { %v14077_v37 = vpop.permute.xlu0 %5356 }
 0x43f   : > { %6786 = vrot.lane.b32.xlu0 %v6632_v20, %s10187_s21  ;;  %v14093_v56 = vpop.permute.xlu1 %5366  ;;  %v9930_v20 = vpop.f32.mrf.mxu0 }
 0x440   : > { %6796 = vrot.lane.b32.xlu1 %v9929_v62, %s10187_s21 }
 0x441   : > { %v6648_v26 = vpop.f32.mrf.mxu0 }
 0x442   : > { %v14085_v60 = vpop.permute.xlu0 %5838 }
 0x443   : > { %6316 = vrot.lane.b32.xlu0 %v13946_v54, %s10187_s21  ;;  %v14101_v15 = vpop.permute.xlu1 %5848  ;;  %v14109_v54 = vpop.f32.mrf.mxu1 }
 0x444   : > { %6310 = vrot.lane.b32.xlu1 %v13936_v23, %s10187_s21 }
 0x445   : > { %v14117_v12 = vpop.f32.mrf.mxu1 }
 0x446   : > { %v14095_v28 = vpop.permute.xlu0 %5368 }
 0x447   : > { %6798 = vrot.lane.b32.xlu0 %v9930_v20, %s10187_s21  ;;  %v14111_v14 = vpop.permute.xlu1 %5362  ;;  %v9933_v20 = vpop.f32.mrf.mxu0 }
 0x448   : > { %6792 = vrot.lane.b32.xlu1 %v6645_v1, %s10187_s21 }
 0x449   : > { %v6661_v23 = vpop.f32.mrf.mxu0 }
 0x44a   : > { %v14103_v63 = vpop.permute.xlu0 %5850 }
 0x44b   : > { %6312 = vrot.lane.b32.xlu0 %v13954_v3, %s10187_s21  ;;  %v14119_v39 = vpop.permute.xlu1 %5844  ;;  %v14127_v3 = vpop.f32.mrf.mxu1 }
 0x44c   : > { %16217 = vst [vmem:[#allocation137_spill] sm:$0xff] %v14119_v39  ;;  %6322 = vrot.lane.b32.xlu1 %v13964_v49, %s10187_s21 }
 0x44d   : > { %v14135_v35 = vpop.f32.mrf.mxu1 }
 0x44e   : > { %v14113_v62 = vpop.permute.xlu0 %5364 }
 0x44f   : > { %6794 = vrot.lane.b32.xlu0 %v6648_v26, %s10187_s21  ;;  %v14129_v29 = vpop.permute.xlu1 %5374  ;;  %v9934_v26 = vpop.f32.mrf.mxu0 }
 0x450   : > { %16219 = vst [vmem:[#allocation139_spill] sm:$0xff] %v14129_v29  ;;  %6804 = vrot.lane.b32.xlu1 %v9933_v20, %s10187_s21 }
 0x451   : > { %v6664_v49 = vpop.f32.mrf.mxu0 }
 0x452   : > { %v14121_v18 = vpop.permute.xlu0 %5846 }
 0x453   : > { %16218 = vst [vmem:[#allocation138_spill] sm:$0xff] %v14121_v18  ;;  %6324 = vrot.lane.b32.xlu0 %v13982_v19, %s10187_s21  ;;  %v14137_v16 = vpop.permute.xlu1 %5856  ;;  %v14145_v19 = vpop.f32.mrf.mxu1 }
 0x454   : > { %16221 = vst [vmem:[#allocation141_spill] sm:$0xff] %v14137_v16  ;;  %6318 = vrot.lane.b32.xlu1 %v13972_v0, %s10187_s21 }
 0x455   : > { %v14153_v16 = vpop.f32.mrf.mxu1 }
 0x456   : > { %v14131_v1 = vpop.permute.xlu0 %5376 }
 0x457   : > { %16220 = vst [vmem:[#allocation140_spill] sm:$0xff] %v14131_v1  ;;  %6806 = vrot.lane.b32.xlu0 %v9934_v26, %s10187_s21  ;;  %v14147_v1 = vpop.permute.xlu1 %5370  ;;  %v9937_v26 = vpop.f32.mrf.mxu0 }
 0x458   : > { %16223 = vst [vmem:[#allocation143_spill] sm:$0xff] %v14147_v1  ;;  %6800 = vrot.lane.b32.xlu1 %v6661_v23, %s10187_s21 }
 0x459   : > { %v6677_v0 = vpop.f32.mrf.mxu0 }
 0x45a   : > { %v14139_v45 = vpop.permute.xlu0 %5858 }
 0x45b   : > { %16222 = vst [vmem:[#allocation142_spill] sm:$0xff] %v14139_v45  ;;  %6320 = vrot.lane.b32.xlu0 %v13990_v46, %s10187_s21  ;;  %v14155_v45 = vpop.permute.xlu1 %5852  ;;  %v14163_v46 = vpop.f32.mrf.mxu1 }
 0x45c   : > { %16225 = vst [vmem:[#allocation145_spill] sm:$0xff] %v14155_v45  ;;  %6330 = vrot.lane.b32.xlu1 %v14000_v50, %s10187_s21 }
 0x45d   : > { %v14171_v45 = vpop.f32.mrf.mxu1 }
 0x45e   : > { %v14149_v20 = vpop.permute.xlu0 %5372 }
 0x45f   : > { %16224 = vst [vmem:[#allocation144_spill] sm:$0xff] %v14149_v20  ;;  %6802 = vrot.lane.b32.xlu0 %v6664_v49, %s10187_s21  ;;  %v14165_v20 = vpop.permute.xlu1 %5382  ;;  %v9938_v49 = vpop.f32.mrf.mxu0 }
 0x460   : > { %16227 = vst [vmem:[#allocation147_spill] sm:$0xff] %v14165_v20  ;;  %6812 = vrot.lane.b32.xlu1 %v9937_v26, %s10187_s21 }
 0x461   : > { %v6680_v50 = vpop.f32.mrf.mxu0 }
 0x462   : > { %v14157_v29 = vpop.permute.xlu0 %5854 }
 0x463   : > { %16226 = vst [vmem:[#allocation146_spill] sm:$0xff] %v14157_v29  ;;  %6332 = vrot.lane.b32.xlu0 %v14019_v59, %s10187_s21  ;;  %v14173_v29 = vpop.permute.xlu1 %5864  ;;  %v14181_v59 = vpop.f32.mrf.mxu1 }
 0x464   : > { %16229 = vst [vmem:[#allocation149_spill] sm:$0xff] %v14173_v29  ;;  %6326 = vrot.lane.b32.xlu1 %v14009_v52, %s10187_s21 }
 0x465   : > { %v14189_v29 = vpop.f32.mrf.mxu1 }
 0x466   : > { %v14167_v23 = vpop.permute.xlu0 %5384 }
 0x467   : > { %16228 = vst [vmem:[#allocation148_spill] sm:$0xff] %v14167_v23  ;;  %6814 = vrot.lane.b32.xlu0 %v9938_v49, %s10187_s21  ;;  %v14183_v23 = vpop.permute.xlu1 %5378  ;;  %v9941_v49 = vpop.f32.mrf.mxu0 }
 0x468   : > { %16231 = vst [vmem:[#allocation151_spill] sm:$0xff] %v14183_v23  ;;  %6808 = vrot.lane.b32.xlu1 %v6677_v0, %s10187_s21 }
 0x469   : > { %v6693_v52 = vpop.f32.mrf.mxu0 }
 0x46a   : > { %v14175_v1 = vpop.permute.xlu0 %5866 }
 0x46b   : > { %16230 = vst [vmem:[#allocation150_spill] sm:$0xff] %v14175_v1  ;;  %6328 = vrot.lane.b32.xlu0 %v14027_v27, %s10187_s21  ;;  %v14191_v1 = vpop.permute.xlu1 %5860  ;;  %v14199_v27 = vpop.f32.mrf.mxu1 }
 0x46c   : > { %16233 = vst [vmem:[#allocation153_spill] sm:$0xff] %v14191_v1  ;;  %6338 = vrot.lane.b32.xlu1 %v14037_v6, %s10187_s21 }
 0x46d   : > { %v14207_v1 = vpop.f32.mrf.mxu1 }
 0x46e   : > { %v14185_v26 = vpop.permute.xlu0 %5380 }
 0x46f   : > { %16232 = vst [vmem:[#allocation152_spill] sm:$0xff] %v14185_v26  ;;  %6810 = vrot.lane.b32.xlu0 %v6680_v50, %s10187_s21  ;;  %v14201_v26 = vpop.permute.xlu1 %6282  ;;  %v9942_v50 = vpop.f32.mrf.mxu0 }
 0x470   : > { %16235 = vst [vmem:[#allocation155_spill] sm:$0xff] %v14201_v26  ;;  %6820 = vrot.lane.b32.xlu1 %v9941_v49, %s10187_s21 }
 0x471   : > { %v6696_v6 = vpop.f32.mrf.mxu0 }
 0x472   : > { %v14193_v20 = vpop.permute.xlu0 %5862 }
 0x473   : > { %16234 = vst [vmem:[#allocation154_spill] sm:$0xff] %v14193_v20  ;;  %6340 = vrot.lane.b32.xlu0 %v14055_v2, %s10187_s21  ;;  %v14209_v20 = vpop.permute.xlu1 %6764  ;;  %v14217_v2 = vpop.f32.mrf.mxu1 }
 0x474   : > { %16237 = vst [vmem:[#allocation157_spill] sm:$0xff] %v14209_v20  ;;  %6334 = vrot.lane.b32.xlu1 %v14045_v13, %s10187_s21 }
 0x475   : > { %v14225_v20 = vpop.f32.mrf.mxu1 }
 0x476   : > { %v14203_v0 = vpop.permute.xlu0 %6284 }
 0x477   : > { %16236 = vst [vmem:[#allocation156_spill] sm:$0xff] %v14203_v0  ;;  %6822 = vrot.lane.b32.xlu0 %v9942_v50, %s10187_s21  ;;  %v14219_v0 = vpop.permute.xlu1 %6278  ;;  %v9945_v50 = vpop.f32.mrf.mxu0 }
 0x478   : > { %16239 = vst [vmem:[#allocation159_spill] sm:$0xff] %v14219_v0  ;;  %6816 = vrot.lane.b32.xlu1 %v6693_v52, %s10187_s21 }
 0x479   : > { %v6709_v13 = vpop.f32.mrf.mxu0 }
 0x47a   : > { %v14211_v23 = vpop.permute.xlu0 %6766 }
 0x47b   : > { %16238 = vst [vmem:[#allocation158_spill] sm:$0xff] %v14211_v23  ;;  %6336 = vrot.lane.b32.xlu0 %v14063_v10, %s10187_s21  ;;  %v14227_v23 = vpop.permute.xlu1 %6760  ;;  %v14235_v10 = vpop.f32.mrf.mxu1 }
 0x47c   : > { %16241 = vst [vmem:[#allocation161_spill] sm:$0xff] %v14227_v23  ;;  %6346 = vrot.lane.b32.xlu1 %v14073_v22, %s10187_s21 }
 0x47d   : > { %v14243_v23 = vpop.f32.mrf.mxu1 }
 0x47e   : > { %v14221_v49 = vpop.permute.xlu0 %6280 }
 0x47f   : > { %16240 = vst [vmem:[#allocation160_spill] sm:$0xff] %v14221_v49  ;;  %6818 = vrot.lane.b32.xlu0 %v6696_v6, %s10187_s21  ;;  %v14237_v49 = vpop.permute.xlu1 %6290  ;;  %v9946_v6 = vpop.f32.mrf.mxu0 }
 0x480   : > { %16243 = vst [vmem:[#allocation163_spill] sm:$0xff] %v14237_v49  ;;  %6828 = vrot.lane.b32.xlu1 %v9945_v50, %s10187_s21 }
 0x481   : > { %v6712_v22 = vpop.f32.mrf.mxu0 }
 0x482   : > { %v14229_v26 = vpop.permute.xlu0 %6762 }
 0x483   : > { %16242 = vst [vmem:[#allocation162_spill] sm:$0xff] %v14229_v26  ;;  %6348 = vrot.lane.b32.xlu0 %v14091_v8, %s10187_s21  ;;  %v14245_v26 = vpop.permute.xlu1 %6772  ;;  %v14253_v8 = vpop.f32.mrf.mxu1 }
 0x484   : > { %16245 = vst [vmem:[#allocation165_spill] sm:$0xff] %v14245_v26  ;;  %6342 = vrot.lane.b32.xlu1 %v14081_v7, %s10187_s21 }
 0x485   : > { %v14261_v26 = vpop.f32.mrf.mxu1 }
 0x486   : > { %v14239_v52 = vpop.permute.xlu0 %6292 }
 0x487   : > { %16244 = vst [vmem:[#allocation164_spill] sm:$0xff] %v14239_v52  ;;  %6830 = vrot.lane.b32.xlu0 %v9946_v6, %s10187_s21  ;;  %v14255_v52 = vpop.permute.xlu1 %6286  ;;  %v9993_v6 = vpop.f32.mrf.mxu0 }
 0x488   : > { %16247 = vst [vmem:[#allocation167_spill] sm:$0xff] %v14255_v52  ;;  %6824 = vrot.lane.b32.xlu1 %v6709_v13, %s10187_s21 }
 0x489   : > { %v7545_v7 = vpop.f32.mrf.mxu0 }
 0x48a   : > { %v14247_v0 = vpop.permute.xlu0 %6774 }
 0x48b   : > { %16246 = vst [vmem:[#allocation166_spill] sm:$0xff] %v14247_v0  ;;  %6344 = vrot.lane.b32.xlu0 %v14099_v36, %s10187_s21  ;;  %v14263_v0 = vpop.permute.xlu1 %6768  ;;  %v14271_v36 = vpop.f32.mrf.mxu1 }
 0x48c   : > { %16249 = vst [vmem:[#allocation169_spill] sm:$0xff] %v14263_v0  ;;  %7246 = vrot.lane.b32.xlu1 %v14109_v54, %s10187_s21 }
 0x48d   : > { %v14279_v0 = vpop.f32.mrf.mxu1 }
 0x48e   : > { %v14257_v50 = vpop.permute.xlu0 %6288 }
 0x48f   : > { %16248 = vst [vmem:[#allocation168_spill] sm:$0xff] %v14257_v50  ;;  %6826 = vrot.lane.b32.xlu0 %v6712_v22, %s10187_s21  ;;  %v14273_v50 = vpop.permute.xlu1 %6298  ;;  %v9994_v22 = vpop.f32.mrf.mxu0 }
 0x490   : > { %16251 = vst [vmem:[#allocation171_spill] sm:$0xff] %v14273_v50  ;;  %7728 = vrot.lane.b32.xlu1 %v9993_v6, %s10187_s21 }
 0x491   : > { %v7548_v54 = vpop.f32.mrf.mxu0 }
 0x492   : > { %v14265_v49 = vpop.permute.xlu0 %6770 }
 0x493   : > { %16250 = vst [vmem:[#allocation170_spill] sm:$0xff] %v14265_v49  ;;  %7248 = vrot.lane.b32.xlu0 %v14127_v3, %s10187_s21  ;;  %v14281_v49 = vpop.permute.xlu1 %6780  ;;  %v14289_v3 = vpop.f32.mrf.mxu1 }
 0x494   : > { %16253 = vst [vmem:[#allocation173_spill] sm:$0xff] %v14281_v49  ;;  %7242 = vrot.lane.b32.xlu1 %v14117_v12, %s10187_s21 }
 0x495   : > { %v14297_v49 = vpop.f32.mrf.mxu1 }
 0x496   : > { %v14275_v13 = vpop.permute.xlu0 %6300 }
 0x497   : > { %16252 = vst [vmem:[#allocation172_spill] sm:$0xff] %v14275_v13  ;;  %7730 = vrot.lane.b32.xlu0 %v9994_v22, %s10187_s21  ;;  %v14291_v13 = vpop.permute.xlu1 %6294  ;;  %v9997_v22 = vpop.f32.mrf.mxu0 }
 0x498   : > { %16255 = vst [vmem:[#allocation175_spill] sm:$0xff] %v14291_v13  ;;  %7724 = vrot.lane.b32.xlu1 %v7545_v7, %s10187_s21 }
 0x499   : > { %v7561_v12 = vpop.f32.mrf.mxu0 }
 0x49a   : > { %v14283_v52 = vpop.permute.xlu0 %6782 }
 0x49b   : > { %16254 = vst [vmem:[#allocation174_spill] sm:$0xff] %v14283_v52  ;;  %7244 = vrot.lane.b32.xlu0 %v14135_v35, %s10187_s21  ;;  %v14299_v52 = vpop.permute.xlu1 %6776  ;;  %v14307_v35 = vpop.f32.mrf.mxu1 }
 0x49c   : > { %16257 = vst [vmem:[#allocation177_spill] sm:$0xff] %v14299_v52  ;;  %7254 = vrot.lane.b32.xlu1 %v14145_v19, %s10187_s21 }
 0x49d   : > { %v14315_v52 = vpop.f32.mrf.mxu1 }
 0x49e   : > { %v14293_v6 = vpop.permute.xlu0 %6296 }
 0x49f   : > { %16256 = vst [vmem:[#allocation176_spill] sm:$0xff] %v14293_v6  ;;  %7726 = vrot.lane.b32.xlu0 %v7548_v54, %s10187_s21  ;;  %v14309_v6 = vpop.permute.xlu1 %6306  ;;  %v9998_v54 = vpop.f32.mrf.mxu0 }
 0x4a0   : > { %16259 = vst [vmem:[#allocation179_spill] sm:$0xff] %v14309_v6  ;;  %7736 = vrot.lane.b32.xlu1 %v9997_v22, %s10187_s21 }
 0x4a1   : > { %v7564_v19 = vpop.f32.mrf.mxu0 }
 0x4a2   : > { %v14301_v50 = vpop.permute.xlu0 %6778 }
 0x4a3   : > { %16258 = vst [vmem:[#allocation178_spill] sm:$0xff] %v14301_v50  ;;  %7256 = vrot.lane.b32.xlu0 %v14163_v46, %s10187_s21  ;;  %v14317_v50 = vpop.permute.xlu1 %6788  ;;  %v14325_v46 = vpop.f32.mrf.mxu1 }
 0x4a4   : > { %16261 = vst [vmem:[#allocation181_spill] sm:$0xff] %v14317_v50  ;;  %7250 = vrot.lane.b32.xlu1 %v14153_v16, %s10187_s21 }
 0x4a5   : > { %v14333_v50 = vpop.f32.mrf.mxu1 }
 0x4a6   : > { %v14311_v7 = vpop.permute.xlu0 %6308 }
 0x4a7   : > { %16260 = vst [vmem:[#allocation180_spill] sm:$0xff] %v14311_v7  ;;  %7738 = vrot.lane.b32.xlu0 %v9998_v54, %s10187_s21  ;;  %v14327_v7 = vpop.permute.xlu1 %6302  ;;  %v10001_v54 = vpop.f32.mrf.mxu0 }
 0x4a8   : > { %16263 = vst [vmem:[#allocation183_spill] sm:$0xff] %v14327_v7  ;;  %7732 = vrot.lane.b32.xlu1 %v7561_v12, %s10187_s21 }
 0x4a9   : > { %v7577_v16 = vpop.f32.mrf.mxu0 }
 0x4aa   : > { %v14319_v13 = vpop.permute.xlu0 %6790 }
 0x4ab   : > { %16262 = vst [vmem:[#allocation182_spill] sm:$0xff] %v14319_v13  ;;  %7252 = vrot.lane.b32.xlu0 %v14171_v45, %s10187_s21  ;;  %v14335_v13 = vpop.permute.xlu1 %6784  ;;  %v14343_v45 = vpop.f32.mrf.mxu1 }
 0x4ac   : > { %16265 = vst [vmem:[#allocation185_spill] sm:$0xff] %v14335_v13  ;;  %7262 = vrot.lane.b32.xlu1 %v14181_v59, %s10187_s21 }
 0x4ad   : > { %v14351_v13 = vpop.f32.mrf.mxu1 }
 0x4ae   : > { %v14329_v22 = vpop.permute.xlu0 %6304 }
 0x4af   : > { %16264 = vst [vmem:[#allocation184_spill] sm:$0xff] %v14329_v22  ;;  %7734 = vrot.lane.b32.xlu0 %v7564_v19, %s10187_s21  ;;  %v14345_v22 = vpop.permute.xlu1 %6314  ;;  %v10002_v19 = vpop.f32.mrf.mxu0 }
 0x4b0   : > { %16267 = vst [vmem:[#allocation187_spill] sm:$0xff] %v14345_v22  ;;  %7744 = vrot.lane.b32.xlu1 %v10001_v54, %s10187_s21 }
 0x4b1   : > { %v7580_v59 = vpop.f32.mrf.mxu0 }
 0x4b2   : > { %v14337_v6 = vpop.permute.xlu0 %6786 }
 0x4b3   : > { %16266 = vst [vmem:[#allocation186_spill] sm:$0xff] %v14337_v6  ;;  %7264 = vrot.lane.b32.xlu0 %v14199_v27, %s10187_s21  ;;  %v14353_v6 = vpop.permute.xlu1 %6796  ;;  %v14361_v27 = vpop.f32.mrf.mxu1 }
 0x4b4   : > { %16269 = vst [vmem:[#allocation189_spill] sm:$0xff] %v14353_v6  ;;  %7258 = vrot.lane.b32.xlu1 %v14189_v29, %s10187_s21 }
 0x4b5   : > { %v14369_v6 = vpop.f32.mrf.mxu1 }
 0x4b6   : > { %v14347_v12 = vpop.permute.xlu0 %6316 }
 0x4b7   : > { %16268 = vst [vmem:[#allocation188_spill] sm:$0xff] %v14347_v12  ;;  %7746 = vrot.lane.b32.xlu0 %v10002_v19, %s10187_s21  ;;  %v14363_v12 = vpop.permute.xlu1 %6310  ;;  %v10005_v19 = vpop.f32.mrf.mxu0 }
 0x4b8   : > { %16271 = vst [vmem:[#allocation191_spill] sm:$0xff] %v14363_v12  ;;  %7740 = vrot.lane.b32.xlu1 %v7577_v16, %s10187_s21 }
 0x4b9   : > { %v7593_v29 = vpop.f32.mrf.mxu0 }
 0x4ba   : > { %v14355_v7 = vpop.permute.xlu0 %6798 }
 0x4bb   : > { %16270 = vst [vmem:[#allocation190_spill] sm:$0xff] %v14355_v7  ;;  %7260 = vrot.lane.b32.xlu0 %v14207_v1, %s10187_s21  ;;  %v14371_v7 = vpop.permute.xlu1 %6792  ;;  %v14379_v1 = vpop.f32.mrf.mxu1 }
 0x4bc   : > { %16273 = vst [vmem:[#allocation193_spill] sm:$0xff] %v14371_v7  ;;  %7270 = vrot.lane.b32.xlu1 %v14217_v2, %s10187_s21 }
 0x4bd   : > { %v14387_v7 = vpop.f32.mrf.mxu1 }
 0x4be   : > { %v14365_v54 = vpop.permute.xlu0 %6312 }
 0x4bf   : > { %16272 = vst [vmem:[#allocation192_spill] sm:$0xff] %v14365_v54  ;;  %7742 = vrot.lane.b32.xlu0 %v7580_v59, %s10187_s21  ;;  %v14381_v54 = vpop.permute.xlu1 %6322  ;;  %v10006_v59 = vpop.f32.mrf.mxu0 }
 0x4c0   : > { %16275 = vst [vmem:[#allocation195_spill] sm:$0xff] %v14381_v54  ;;  %7752 = vrot.lane.b32.xlu1 %v10005_v19, %s10187_s21 }
 0x4c1   : > { %v7596_v2 = vpop.f32.mrf.mxu0 }
 0x4c2   : > { %v14373_v22 = vpop.permute.xlu0 %6794 }
 0x4c3   : > { %16274 = vst [vmem:[#allocation194_spill] sm:$0xff] %v14373_v22  ;;  %7272 = vrot.lane.b32.xlu0 %v14235_v10, %s10187_s21  ;;  %v14389_v22 = vpop.permute.xlu1 %6804  ;;  %v14397_v10 = vpop.f32.mrf.mxu1 }
 0x4c4   : > { %16277 = vst [vmem:[#allocation197_spill] sm:$0xff] %v14389_v22  ;;  %7266 = vrot.lane.b32.xlu1 %v14225_v20, %s10187_s21 }
 0x4c5   : > { %v14405_v22 = vpop.f32.mrf.mxu1 }
 0x4c6   : > { %v14383_v16 = vpop.permute.xlu0 %6324 }
 0x4c7   : > { %16276 = vst [vmem:[#allocation196_spill] sm:$0xff] %v14383_v16  ;;  %7754 = vrot.lane.b32.xlu0 %v10006_v59, %s10187_s21  ;;  %v14399_v16 = vpop.permute.xlu1 %6318  ;;  %v10009_v59 = vpop.f32.mrf.mxu0 }
 0x4c8   : > { %7748 = vrot.lane.b32.xlu1 %v7593_v29, %s10187_s21 }
 0x4c9   : > { %v7609_v20 = vpop.f32.mrf.mxu0 }
 0x4ca   : > { %v14391_v12 = vpop.permute.xlu0 %6806 }
 0x4cb   : > { %16278 = vst [vmem:[#allocation198_spill] sm:$0xff] %v14391_v12  ;;  %7268 = vrot.lane.b32.xlu0 %v14243_v23, %s10187_s21  ;;  %v14407_v12 = vpop.permute.xlu1 %6800  ;;  %v14415_v23 = vpop.f32.mrf.mxu1 }
 0x4cc   : > { %7278 = vrot.lane.b32.xlu1 %v14253_v8, %s10187_s21 }
 0x4cd   : > { %v14423_v42 = vpop.f32.mrf.mxu1 }
 0x4ce   : > { %v14401_v19 = vpop.permute.xlu0 %6320 }
 0x4cf   : > { %7750 = vrot.lane.b32.xlu0 %v7596_v2, %s10187_s21  ;;  %v14417_v43 = vpop.permute.xlu1 %6330  ;;  %v10010_v2 = vpop.f32.mrf.mxu0 }
 0x4d0   : > { %7760 = vrot.lane.b32.xlu1 %v10009_v59, %s10187_s21 }
 0x4d1   : > { %v7612_v8 = vpop.f32.mrf.mxu0 }
 0x4d2   : > { %v14409_v54 = vpop.permute.xlu0 %6802 }
 0x4d3   : > { %7280 = vrot.lane.b32.xlu0 %v14271_v36, %s10187_s21  ;;  %v14425_v32 = vpop.permute.xlu1 %6812  ;;  %v14433_v36 = vpop.f32.mrf.mxu1 }
 0x4d4   : > { %7274 = vrot.lane.b32.xlu1 %v14261_v26, %s10187_s21 }
 0x4d5   : > { %v14441_v24 = vpop.f32.mrf.mxu1 }
 0x4d6   : > { %v14419_v29 = vpop.permute.xlu0 %6332 }
 0x4d7   : > { %7762 = vrot.lane.b32.xlu0 %v10010_v2, %s10187_s21  ;;  %v14435_v18 = vpop.permute.xlu1 %6326  ;;  %v10013_v2 = vpop.f32.mrf.mxu0 }
 0x4d8   : > { %16279 = vst [vmem:[#allocation199_spill] sm:$0xff] %v14435_v18  ;;  %7756 = vrot.lane.b32.xlu1 %v7609_v20, %s10187_s21 }
 0x4d9   : > { %v7625_v26 = vpop.f32.mrf.mxu0 }
 0x4da   : > { %v14427_v58 = vpop.permute.xlu0 %6814 }
 0x4db   : > { %7276 = vrot.lane.b32.xlu0 %v14279_v0, %s10187_s21  ;;  %v14443_v39 = vpop.permute.xlu1 %6808  ;;  %v14451_v0 = vpop.f32.mrf.mxu1 }
 0x4dc   : > { %16281 = vst [vmem:[#allocation201_spill] sm:$0xff] %v14443_v39  ;;  %7286 = vrot.lane.b32.xlu1 %v14289_v3, %s10187_s21 }
 0x4dd   : > { %v14459_v39 = vpop.f32.mrf.mxu1 }
 0x4de   : > { %v14437_v59 = vpop.permute.xlu0 %6328 }
 0x4df   : > { %16280 = vst [vmem:[#allocation200_spill] sm:$0xff] %v14437_v59  ;;  %7758 = vrot.lane.b32.xlu0 %v7612_v8, %s10187_s21  ;;  %v14453_v59 = vpop.permute.xlu1 %6338  ;;  %v10014_v8 = vpop.f32.mrf.mxu0 }
 0x4e0   : > { %16283 = vst [vmem:[#allocation203_spill] sm:$0xff] %v14453_v59  ;;  %7768 = vrot.lane.b32.xlu1 %v10013_v2, %s10187_s21 }
 0x4e1   : > { %v7628_v3 = vpop.f32.mrf.mxu0 }
 0x4e2   : > { %v14445_v61 = vpop.permute.xlu0 %6810 }
 0x4e3   : > { %16282 = vst [vmem:[#allocation202_spill] sm:$0xff] %v14445_v61  ;;  %7288 = vrot.lane.b32.xlu0 %v14307_v35, %s10187_s21  ;;  %v14461_v61 = vpop.permute.xlu1 %6820  ;;  %v14469_v35 = vpop.f32.mrf.mxu1 }
 0x4e4   : > { %16285 = vst [vmem:[#allocation205_spill] sm:$0xff] %v14461_v61  ;;  %7282 = vrot.lane.b32.xlu1 %v14297_v49, %s10187_s21 }
 0x4e5   : > { %v14477_v61 = vpop.f32.mrf.mxu1 }
 0x4e6   : > { %v14455_v20 = vpop.permute.xlu0 %6340 }
 0x4e7   : > { %16284 = vst [vmem:[#allocation204_spill] sm:$0xff] %v14455_v20  ;;  %7770 = vrot.lane.b32.xlu0 %v10014_v8, %s10187_s21  ;;  %v14471_v20 = vpop.permute.xlu1 %6334  ;;  %v10017_v8 = vpop.f32.mrf.mxu0 }
 0x4e8   : > { %16287 = vst [vmem:[#allocation207_spill] sm:$0xff] %v14471_v20  ;;  %7764 = vrot.lane.b32.xlu1 %v7625_v26, %s10187_s21 }
 0x4e9   : > { %v7641_v49 = vpop.f32.mrf.mxu0 }
 0x4ea   : > { %v14463_v18 = vpop.permute.xlu0 %6822 }
 0x4eb   : > { %16286 = vst [vmem:[#allocation206_spill] sm:$0xff] %v14463_v18  ;;  %7284 = vrot.lane.b32.xlu0 %v14315_v52, %s10187_s21  ;;  %v14479_v18 = vpop.permute.xlu1 %6816  ;;  %v14487_v52 = vpop.f32.mrf.mxu1 }
 0x4ec   : > { %16289 = vst [vmem:[#allocation209_spill] sm:$0xff] %v14479_v18  ;;  %7294 = vrot.lane.b32.xlu1 %v14325_v46, %s10187_s21 }
 0x4ed   : > { %v14495_v18 = vpop.f32.mrf.mxu1 }
 0x4ee   : > { %v14473_v2 = vpop.permute.xlu0 %6336 }
 0x4ef   : > { %16288 = vst [vmem:[#allocation208_spill] sm:$0xff] %v14473_v2  ;;  %7766 = vrot.lane.b32.xlu0 %v7628_v3, %s10187_s21  ;;  %v14489_v2 = vpop.permute.xlu1 %6346  ;;  %v10018_v3 = vpop.f32.mrf.mxu0 }
 0x4f0   : > { %16291 = vst [vmem:[#allocation211_spill] sm:$0xff] %v14489_v2  ;;  %7776 = vrot.lane.b32.xlu1 %v10017_v8, %s10187_s21 }
 0x4f1   : > { %v7644_v46 = vpop.f32.mrf.mxu0 }
 0x4f2   : > { %v14481_v59 = vpop.permute.xlu0 %6818 }
 0x4f3   : > { %16290 = vst [vmem:[#allocation210_spill] sm:$0xff] %v14481_v59  ;;  %7296 = vrot.lane.b32.xlu0 %v14343_v45, %s10187_s21  ;;  %v14497_v59 = vpop.permute.xlu1 %6828  ;;  %v14505_v45 = vpop.f32.mrf.mxu1 }
 0x4f4   : > { %16293 = vst [vmem:[#allocation213_spill] sm:$0xff] %v14497_v59  ;;  %7290 = vrot.lane.b32.xlu1 %v14333_v50, %s10187_s21 }
 0x4f5   : > { %v14513_v59 = vpop.f32.mrf.mxu1 }
 0x4f6   : > { %v14491_v26 = vpop.permute.xlu0 %6348 }
 0x4f7   : > { %16292 = vst [vmem:[#allocation212_spill] sm:$0xff] %v14491_v26  ;;  %7778 = vrot.lane.b32.xlu0 %v10018_v3, %s10187_s21  ;;  %v14507_v26 = vpop.permute.xlu1 %6342  ;;  %v10021_v3 = vpop.f32.mrf.mxu0 }
 0x4f8   : > { %16295 = vst [vmem:[#allocation215_spill] sm:$0xff] %v14507_v26  ;;  %7772 = vrot.lane.b32.xlu1 %v7641_v49, %s10187_s21 }
 0x4f9   : > { %v7657_v50 = vpop.f32.mrf.mxu0 }
 0x4fa   : > { %v14499_v20 = vpop.permute.xlu0 %6830 }
 0x4fb   : > { %16294 = vst [vmem:[#allocation214_spill] sm:$0xff] %v14499_v20  ;;  %7292 = vrot.lane.b32.xlu0 %v14351_v13, %s10187_s21  ;;  %v14515_v20 = vpop.permute.xlu1 %6824  ;;  %v14523_v13 = vpop.f32.mrf.mxu1 }
 0x4fc   : > { %16297 = vst [vmem:[#allocation217_spill] sm:$0xff] %v14515_v20  ;;  %7302 = vrot.lane.b32.xlu1 %v14361_v27, %s10187_s21 }
 0x4fd   : > { %v14531_v20 = vpop.f32.mrf.mxu1 }
 0x4fe   : > { %v14509_v8 = vpop.permute.xlu0 %6344 }
 0x4ff   : > { %16296 = vst [vmem:[#allocation216_spill] sm:$0xff] %v14509_v8  ;;  %7774 = vrot.lane.b32.xlu0 %v7644_v46, %s10187_s21  ;;  %v14525_v8 = vpop.permute.xlu1 %7246  ;;  %v10022_v46 = vpop.f32.mrf.mxu0 }
 0x500   : > { %16299 = vst [vmem:[#allocation219_spill] sm:$0xff] %v14525_v8  ;;  %7784 = vrot.lane.b32.xlu1 %v10021_v3, %s10187_s21 }
 0x501   : > { %v7660_v27 = vpop.f32.mrf.mxu0 }
 0x502   : > { %v14517_v2 = vpop.permute.xlu0 %6826 }
 0x503   : > { %16298 = vst [vmem:[#allocation218_spill] sm:$0xff] %v14517_v2  ;;  %7304 = vrot.lane.b32.xlu0 %v14379_v1, %s10187_s21  ;;  %v14533_v2 = vpop.permute.xlu1 %7728  ;;  %v10045_v1 = vpop.f32.mrf.mxu1 }
 0x504   : > { %16301 = vst [vmem:[#allocation221_spill] sm:$0xff] %v14533_v2  ;;  %7298 = vrot.lane.b32.xlu1 %v14369_v6, %s10187_s21  ;;  %v10025_v3 = vpop.f32.mrf.mxu0 }
 0x506   : > { %v14527_v49 = vpop.permute.xlu0 %7248  ;;  %v7673_v6 = vpop.f32.mrf.mxu0 }
 0x507   : > { %16300 = vst [vmem:[#allocation220_spill] sm:$0xff] %v14527_v49  ;;  %7786 = vrot.lane.b32.xlu0 %v10022_v46, %s10187_s21  ;;  %v14541_v49 = vpop.permute.xlu1 %7242  ;;  %v8075_v46 = vpop.f32.mrf.mxu1 }
 0x508   : > { %16303 = vst [vmem:[#allocation223_spill] sm:$0xff] %v14541_v49  ;;  %7780 = vrot.lane.b32.xlu1 %v7657_v50, %s10187_s21  ;;  %v10026_v50 = vpop.f32.mrf.mxu0 }
 0x50a   : > { %v14535_v26 = vpop.permute.xlu0 %7730 }
 0x50b   : > { %16302 = vst [vmem:[#allocation222_spill] sm:$0xff] %v14535_v26  ;;  %7300 = vrot.lane.b32.xlu0 %v14387_v7, %s10187_s21  ;;  %v14547_v2 = vpop.permute.xlu1 %7724  ;;  %v10046_v7 = vpop.f32.mrf.mxu1 }
 0x50c   : > { %16305 = vst [vmem:[#allocation225_spill] sm:$0xff] %v14547_v2  ;;  %7310 = vrot.lane.b32.xlu1 %v14397_v10, %s10187_s21 }
 0x50e   : > { %v14543_v8 = vpop.permute.xlu0 %7244 }
 0x50f   : > { %16304 = vst [vmem:[#allocation224_spill] sm:$0xff] %v14543_v8  ;;  %7782 = vrot.lane.b32.xlu0 %v7660_v27, %s10187_s21  ;;  %v14555_v49 = vpop.permute.xlu1 %7254  ;;  %v8078_v27 = vpop.f32.mrf.mxu1 }
 0x510   : > { %16307 = vst [vmem:[#allocation227_spill] sm:$0xff] %v14555_v49  ;;  %7792 = vrot.lane.b32.xlu1 %v10025_v3, %s10187_s21  ;;  %v7676_v49 = vpop.f32.mrf.mxu0 }
 0x511   : > { %v10049_v10 = vpop.f32.mrf.mxu1 }
 0x512   : > { %v14549_v26 = vpop.permute.xlu0 %7726 }
 0x513   : > { %16306 = vst [vmem:[#allocation226_spill] sm:$0xff] %v14549_v26  ;;  %7312 = vrot.lane.b32.xlu0 %v14415_v23, %s10187_s21  ;;  %v14561_v2 = vpop.permute.xlu1 %7736  ;;  %v8091_v3 = vpop.f32.mrf.mxu1 }
 0x514   : > { %7306 = vrot.lane.b32.xlu1 %v14405_v22, %s10187_s21 }
 0x516   : > { %v14557_v8 = vpop.permute.xlu0 %7256 }
 0x517   : > { %16308 = vst [vmem:[#allocation228_spill] sm:$0xff] %v14557_v8  ;;  %7794 = vrot.lane.b32.xlu0 %v10026_v50, %s10187_s21  ;;  %v14569_v23 = vpop.permute.xlu1 %7250 }
 0x518   : > { %7788 = vrot.lane.b32.xlu1 %v7673_v6, %s10187_s21 }
 0x51a   : > { %v14563_v26 = vpop.permute.xlu0 %7738 }
 0x51b   : > { %16309 = vst [vmem:[#allocation229_spill] sm:$0xff] %v14563_v26  ;;  %7308 = vrot.lane.b32.xlu0 %v14423_v42, %s10187_s21  ;;  %v14575_v50 = vpop.permute.xlu1 %7732  ;;  %v10050_v42 = vpop.f32.mrf.mxu1 }
 0x51c   : > { %8210 = vrot.lane.b32.xlu1 %v14433_v36, %s10187_s21 }
 0x51e   : > { %v14571_v8 = vpop.permute.xlu0 %7252 }
 0x51f   : > { %16310 = vst [vmem:[#allocation230_spill] sm:$0xff] %v14571_v8  ;;  %7790 = vrot.lane.b32.xlu0 %v7676_v49, %s10187_s21  ;;  %v14583_v22 = vpop.permute.xlu1 %7262  ;;  %v8094_v49 = vpop.f32.mrf.mxu1 }
 0x520   : > { %8206 = vrot.lane.b32.xlu1 %v14441_v24, %s10187_s21 }
 0x521   : > { %v10053_v36 = vpop.f32.mrf.mxu1 }
 0x522   : > { %v14577_v26 = vpop.permute.xlu0 %7734 }
 0x523   : > { %16311 = vst [vmem:[#allocation231_spill] sm:$0xff] %v14577_v26  ;;  %8212 = vrot.lane.b32.xlu0 %v14451_v0, %s10187_s21  ;;  %v14591_v6 = vpop.permute.xlu1 %7744 }
 0x524   : > { %8218 = vrot.lane.b32.xlu1 %v14469_v35, %s10187_s21 }
 0x526   : > { %v14585_v8 = vpop.permute.xlu0 %7264 }
 0x527   : > { %16312 = vst [vmem:[#allocation232_spill] sm:$0xff] %v14585_v8  ;;  %8208 = vrot.lane.b32.xlu0 %v14459_v39, %s10187_s21  ;;  %v14599_v0 = vpop.permute.xlu1 %7258  ;;  %v8107_v39 = vpop.f32.mrf.mxu1 }
 0x528   : > { %8214 = vrot.lane.b32.xlu1 %v14477_v61, %s10187_s21 }
 0x529   : > { %v10054_v35 = vpop.f32.mrf.mxu1 }
 0x52a   : > { %v14593_v26 = vpop.permute.xlu0 %7746 }
 0x52b   : > { %16313 = vst [vmem:[#allocation233_spill] sm:$0xff] %v14593_v26  ;;  %8220 = vrot.lane.b32.xlu0 %v14487_v52, %s10187_s21  ;;  %v14607_v24 = vpop.permute.xlu1 %7740  ;;  %v8110_v61 = vpop.f32.mrf.mxu1 }
 0x52c   : > { %8226 = vrot.lane.b32.xlu1 %v14505_v45, %s10187_s21 }
 0x52d   : > { %v10057_v45 = vpop.f32.mrf.mxu1 }
 0x52e   : > { %v14601_v8 = vpop.permute.xlu0 %7260 }
 0x52f   : > { %16314 = vst [vmem:[#allocation234_spill] sm:$0xff] %v14601_v8  ;;  %8216 = vrot.lane.b32.xlu0 %v14495_v18, %s10187_s21  ;;  %v14615_v52 = vpop.permute.xlu1 %7270 }
 0x530   : > { %16316 = vst [vmem:[#allocation236_spill] sm:$0xff] %v14615_v52  ;;  %8222 = vrot.lane.b32.xlu1 %v14513_v59, %s10187_s21  ;;  %v8123_v59 = vpop.f32.mrf.mxu1 }
 0x532   : > { %v14609_v26 = vpop.permute.xlu0 %7742 }
 0x533   : > { %16315 = vst [vmem:[#allocation235_spill] sm:$0xff] %v14609_v26  ;;  %8228 = vrot.lane.b32.xlu0 %v14523_v13, %s10187_s21  ;;  %v14623_v18 = vpop.permute.xlu1 %7752 }
 0x534   : > { %8234 = vrot.lane.b32.xlu1 %v10045_v1, %s10187_s21  ;;  %v10058_v1 = vpop.f32.mrf.mxu1 }
 0x536   : > { %v14617_v8 = vpop.permute.xlu0 %7272 }
 0x537   : > { %16317 = vst [vmem:[#allocation237_spill] sm:$0xff] %v14617_v8  ;;  %8224 = vrot.lane.b32.xlu0 %v14531_v20, %s10187_s21  ;;  %v14629_v13 = vpop.permute.xlu1 %7266 }
 0x538   : > { %8230 = vrot.lane.b32.xlu1 %v8075_v46, %s10187_s21  ;;  %v8126_v46 = vpop.f32.mrf.mxu1 }
 0x53a   : > { %v14625_v26 = vpop.permute.xlu0 %7754 }
 0x53b   : > { %16318 = vst [vmem:[#allocation238_spill] sm:$0xff] %v14625_v26  ;;  %8236 = vrot.lane.b32.xlu0 %v10046_v7, %s10187_s21  ;;  %v14635_v20 = vpop.permute.xlu1 %7748 }
 0x53c   : > { %8242 = vrot.lane.b32.xlu1 %v10049_v10, %s10187_s21  ;;  %v10061_v10 = vpop.f32.mrf.mxu1 }
 0x53e   : > { %v14631_v52 = vpop.permute.xlu0 %7268 }
 0x53f   : > { %16319 = vst [vmem:[#allocation239_spill] sm:$0xff] %v14631_v52  ;;  %8232 = vrot.lane.b32.xlu0 %v8078_v27, %s10187_s21  ;;  %v14641_v7 = vpop.permute.xlu1 %7278 }
 0x540   : > { %8238 = vrot.lane.b32.xlu1 %v8091_v3, %s10187_s21  ;;  %v8139_v3 = vpop.f32.mrf.mxu1 }
 0x542   : > { %v14637_v8 = vpop.permute.xlu0 %7750 }
 0x543   : > { %16320 = vst [vmem:[#allocation240_spill] sm:$0xff] %v14637_v8  ;;  %8244 = vrot.lane.b32.xlu0 %v10050_v42, %s10187_s21  ;;  %v14647_v27 = vpop.permute.xlu1 %7760 }
 0x544   : > { %16321 = vst [vmem:[#allocation241_spill] sm:$0xff] %v14647_v27  ;;  %8250 = vrot.lane.b32.xlu1 %v10053_v36, %s10187_s21  ;;  %v3997_v27 = vadd.f32 %v13548_v17, %v12817_v41  ;;  %v3998_v36 = vadd.f32 %v13548_v17, %v12861_v25  ;;  %v4003_v25 = vadd.f32 %v13548_v17, %v12888_v57 }
 0x546   : > { %v14643_v26 = vpop.permute.xlu0 %7280 }
 0x547   : > { %8240 = vrot.lane.b32.xlu0 %v8094_v49, %s10187_s21  ;;  %v14653_v42 = vpop.permute.xlu1 %7274 }
 0x548   : > { %16323 = vst [vmem:[#allocation243_spill] sm:$0xff] %v14653_v42  ;;  %8246 = vrot.lane.b32.xlu1 %v8107_v39, %s10187_s21  ;;  %v4479_v39 = vadd.f32 %v13751_v51, %v3998_v36  ;;  %v4004_v51 = vadd.f32 %v13548_v17, %v12928_v33 }
 0x54a   : > { %v14649_v52 = vpop.permute.xlu0 %7762  ;;  %v4961_v41 = vadd.f32 %v13759_v55, %v4479_v39  ;;  %v4485_v57 = vadd.f32 %v13769_v5, %v4004_v51 }
 0x54b   : > { %16322 = vst [vmem:[#allocation242_spill] sm:$0xff] %v14649_v52  ;;  %8252 = vrot.lane.b32.xlu0 %v10054_v35, %s10187_s21  ;;  %v14659_v49 = vpop.permute.xlu1 %7756  ;;  %v4478_v35 = vadd.f32 %v13749_v53, %v3997_v27  ;;  %v4484_v27 = vadd.f32 %v13767_v38, %v4003_v25 }
 0x54c   : > { %16325 = vst [vmem:[#allocation245_spill] sm:$0xff] %v14659_v49  ;;  %8258 = vrot.lane.b32.xlu1 %v10057_v45, %s10187_s21  ;;  %v5443_v45 = vadd.f32 %v14077_v37, %v4961_v41 }
 0x54d   : > { %v4960_v49 = vadd.f32 %v13757_v31, %v4478_v35  ;;  %v4966_v33 = vadd.f32 %v13775_v47, %v4484_v27  ;;  %v4001_v47 = vadd.f32 %v13548_v17, %v12910_v44 }
 0x54e   : > { %v14655_v8 = vpop.permute.xlu0 %7276 }
 0x54f   : > { %16324 = vst [vmem:[#allocation244_spill] sm:$0xff] %v14655_v8  ;;  %8248 = vrot.lane.b32.xlu0 %v8110_v61, %s10187_s21  ;;  %v10062_v61 = vpop.f32.mrf.mxu1  ;;  %v14671_v8 = vpop.permute.xlu1 %7286  ;;  %v5442_v53 = vadd.f32 %v14075_v34, %v4960_v49  ;;  %v5925_v34 = vadd.f32 %v14085_v60, %v5443_v45  ;;  %v5448_v36 = vadd.f32 %v14093_v56, %v4966_v33 }
 0x550   : > { %8254 = vrot.lane.b32.xlu1 %v8123_v59, %s10187_s21  ;;  %v4002_v56 = vadd.f32 %v13548_v17, %v12960_v4 }
 0x551   : > { %v5924_v55 = vadd.f32 %v14083_v9, %v5442_v53  ;;  %v6407_v38 = vadd.f32 %v14401_v19, %v5925_v34 }
 0x552   : > { %v14663_v52 = vpop.permute.xlu0 %7758  ;;  %v4483_v44 = vadd.f32 %v13787_v11, %v4002_v56 }
 0x553   : > { %8260 = vrot.lane.b32.xlu0 %v10058_v1, %s10187_s21  ;;  %v8142_v1 = vpop.f32.mrf.mxu1  ;;  %v14685_v31 = vpop.permute.xlu1 %7768  ;;  %v6406_v37 = vadd.f32 %v14399_v16, %v5924_v55 }
 0x554   : > { %16326 = vst [vmem:[#allocation246_spill] sm:$0xff] %v14685_v31  ;;  %8266 = vrot.lane.b32.xlu1 %v10061_v10, %s10187_s21  ;;  %v6889_v10 = vadd.f32 %v14409_v54, %v6407_v38  ;;  %v4482_v54 = vadd.f32 %v13785_v40, %v4001_v47  ;;  %v16340_v47 = vld [vmem:[#allocation6_spill] sm:$0xff]  ;;  %v16397_v31 = vld [vmem:[#allocation209_spill] sm:$0xff] }
 0x555   : > { %v10065_v49 = vpop.f32.mrf.mxu1  ;;  %v6888_v5 = vadd.f32 %v14407_v12, %v6406_v37  ;;  %v16334_v37 = vld [vmem:[#allocation26_spill] sm:$0xff] }
 0x556   : > { %v14674_v42 = vpop.permute.xlu0 %7288 }
 0x557   : > { %8256 = vrot.lane.b32.xlu0 %v8126_v46, %s10187_s21  ;;  %v4967_v46 = vadd.f32 %v13777_v30, %v4485_v57  ;;  %v7283_v9 = vpop.permute.xlu1 %7282  ;;  %v8155_v39 = vpop.f32.mrf.mxu1  ;;  %v5930_v30 = vadd.f32 %v14101_v15, %v5448_v36  ;;  %v16331_v57 = vld [vmem:[#allocation137_spill] sm:$0xff] }
 0x558   : > { %8262 = vrot.lane.b32.xlu1 %v8139_v3, %s10187_s21  ;;  %v7370_v16 = vadd.f32 %v7283_v9, %v6888_v5  ;;  %v16337_v5 = vld [vmem:[#allocation24_spill] sm:$0xff] }
 0x559   : > { %v5449_v60 = vadd.f32 %v14095_v28, %v4967_v46  ;;  %v10066_v25 = vpop.f32.mrf.mxu1 }
 0x55a   : > { %v14689_v59 = vpop.permute.xlu0 %7770 }
 0x55b   : > { %16327 = vst [vmem:[#allocation247_spill] sm:$0xff] %v14689_v59  ;;  %8268 = vrot.lane.b32.xlu0 %v10062_v61, %s10187_s21  ;;  %v5931_v12 = vadd.f32 %v14103_v63, %v5449_v60  ;;  %v7765_v28 = vpop.permute.xlu1 %7764  ;;  %v6412_v61 = vadd.f32 %v14417_v43, %v5930_v30  ;;  %v4964_v63 = vadd.f32 %v13793_v48, %v4482_v54  ;;  %v8158_v27 = vpop.f32.mrf.mxu1  ;;  %v16330_v48 = vld [vmem:[#allocation62_spill] sm:$0xff]  ;;  %v16338_v60 = vld [vmem:[#allocation200_spill] sm:$0xff]  ;;  %v16395_v59 = vld [vmem:[#allocation37_spill] sm:$0xff] }
 0x55c   : > { %v14713_v3 = vadd.f32 %v7765_v28, %v7370_v16  ;;  %8274 = vrot.lane.b32.xlu1 %v10065_v49, %s10187_s21  ;;  %v4965_v43 = vadd.f32 %v13795_v21, %v4483_v44  ;;  %v16332_v21 = vld [vmem:[#allocation83_spill] sm:$0xff]  ;;  %v16333_v49 = vld [vmem:[#allocation138_spill] sm:$0xff]  ;;  %v16341_v16 = vld [vmem:[#allocation201_spill] sm:$0xff] }
 0x55d   : > { %v6413_v15 = vadd.f32 %v14419_v29, %v5931_v12  ;;  %v6894_v4 = vadd.f32 %v14425_v32, %v6412_v61  ;;  %v5446_v11 = vadd.f32 %v14111_v14, %v4964_v63  ;;  %v4007_v32 = vadd.f32 %v13548_v17, %v16330_v48  ;;  %v16342_v12 = vld [vmem:[#allocation16_spill] sm:$0xff]  ;;  %v16343_v28 = vld [vmem:[#allocation202_spill] sm:$0xff]  ;;  %v16346_v63 = vld [vmem:[#allocation139_spill] sm:$0xff] }
 0x55e   : > { %v7285_v35 = vpop.permute.xlu0 %7284  ;;  %16328 = vst [vmem:[#allocation248_spill] sm:$0xff] %v14713_v3  ;;  %v16350_v48 = vld [vmem:[#allocation10_spill] sm:$0xff] }
 0x55f   : > { %8264 = vrot.lane.b32.xlu0 %v8142_v1, %s10187_s21  ;;  %v7371_v19 = vadd.f32 %v7285_v35, %v6889_v10  ;;  %v6895_v40 = vadd.f32 %v14427_v58, %v6413_v15  ;;  %v7295_v51 = vpop.permute.xlu1 %7294  ;;  %v5447_v1 = vadd.f32 %v14113_v62, %v4965_v43  ;;  %v5928_v34 = vadd.f32 %v16331_v57, %v5446_v11  ;;  %v16335_v62 = vld [vmem:[#allocation199_spill] sm:$0xff]  ;;  %v16345_v15 = vld [vmem:[#allocation25_spill] sm:$0xff] }
 0x560   : > { %v7376_v45 = vadd.f32 %v7295_v51, %v6894_v4  ;;  %8270 = vrot.lane.b32.xlu1 %v8155_v39, %s10187_s21  ;;  %v4008_v58 = vadd.f32 %v13548_v17, %v16332_v21  ;;  %v4488_v46 = vadd.f32 %v16334_v37, %v4007_v32  ;;  %v16347_v51 = vld [vmem:[#allocation38_spill] sm:$0xff]  ;;  %v14763_v32 = vadd.f32 %v13548_v17, %v16350_v48  ;;  %v16351_v57 = vld [vmem:[#allocation39_spill] sm:$0xff]  ;;  %v16352_v21 = vld [vmem:[#allocation60_spill] sm:$0xff] }
 0x561   : > { %v5929_v14 = vadd.f32 %v16333_v49, %v5447_v1  ;;  %v6410_v38 = vadd.f32 %v16335_v62, %v5928_v34  ;;  %v14756_v11 = vadd.f32 %v13548_v17, %v16347_v51  ;;  %v16349_v1 = vld [vmem:[#allocation140_spill] sm:$0xff]  ;;  %v14767_v34 = vadd.f32 %v13548_v17, %v16351_v57  ;;  %v16353_v49 = vld [vmem:[#allocation141_spill] sm:$0xff]  ;;  %v16366_v51 = vld [vmem:[#allocation7_spill] sm:$0xff] }
 0x562   : > { %v7767_v41 = vpop.permute.xlu0 %7766  ;;  %v4489_v35 = vadd.f32 %v16337_v5, %v4008_v58  ;;  %v4970_v30 = vadd.f32 %v16340_v47, %v4488_v46  ;;  %v4005_v58 = vadd.f32 %v13548_v17, %v16352_v21  ;;  %v16355_v46 = vld [vmem:[#allocation42_spill] sm:$0xff]  ;;  %v16369_v57 = vld [vmem:[#allocation205_spill] sm:$0xff] }
 0x563   : > { %v14717_v53 = vadd.f32 %v7767_v41, %v7371_v19  ;;  %8276 = vrot.lane.b32.xlu0 %v10066_v25, %s10187_s21  ;;  %v7777_v33 = vpop.permute.xlu1 %7776  ;;  %v6411_v10 = vadd.f32 %v16338_v60, %v5929_v14  ;;  %v6892_v56 = vadd.f32 %v16341_v16, %v6410_v38  ;;  %v16344_v41 = vld [vmem:[#allocation32_spill] sm:$0xff]  ;;  %v14751_v25 = vadd.f32 %v13548_v17, %v16345_v15  ;;  %v16356_v38 = vld [vmem:[#allocation43_spill] sm:$0xff]  ;;  %v16357_v5 = vld [vmem:[#allocation142_spill] sm:$0xff] }
 0x564   : > { %v14737_v9 = vadd.f32 %v7777_v33, %v7376_v45  ;;  %v4971_v19 = vadd.f32 %v16342_v12, %v4489_v35  ;;  %v3979_v44 = vadd.f32 %v13548_v17, %v16344_v41  ;;  %v5452_v4 = vadd.f32 %v16346_v63, %v4970_v30  ;;  %v16348_v45 = vld [vmem:[#allocation34_spill] sm:$0xff]  ;;  %v16354_v33 = vld [vmem:[#allocation35_spill] sm:$0xff]  ;;  %v16359_v30 = vld [vmem:[#allocation8_spill] sm:$0xff] }
 0x565   : > { %16329 = vst [vmem:[#allocation249_spill] sm:$0xff] %v14717_v53  ;;  %v6893_v54 = vadd.f32 %v16343_v28, %v6411_v10  ;;  %v14774_v37 = vadd.f32 %v13548_v17, %v16354_v33  ;;  %v14778_v62 = vadd.f32 %v13548_v17, %v16355_v46  ;;  %v16358_v10 = vld [vmem:[#allocation3_spill] sm:$0xff]  ;;  %v4486_v16 = vadd.f32 %v16359_v30, %v4005_v58  ;;  %v16363_v41 = vld [vmem:[#allocation30_spill] sm:$0xff]  ;;  %v16364_v63 = vld [vmem:[#allocation204_spill] sm:$0xff] }
 0x566   : > { %v7297_v29 = vpop.permute.xlu0 %7296  ;;  %16336 = vst [vmem:[#allocation62_spill] sm:$0xff] %v14737_v9  ;;  %v5934_v14 = vadd.f32 %v16353_v49, %v5452_v4  ;;  %v14785_v47 = vadd.f32 %v13548_v17, %v16358_v10  ;;  %v16370_v58 = vld [vmem:[#allocation41_spill] sm:$0xff]  ;;  %v16393_v53 = vld [vmem:[#allocation208_spill] sm:$0xff] }
 0x567   : > { %v7377_v55 = vadd.f32 %v7297_v29, %v6895_v40  ;;  %8272 = vrot.lane.b32.xlu0 %v8158_v27, %s10187_s21  ;;  %v7291_v61 = vpop.permute.xlu1 %7290  ;;  %v3978_v29 = vadd.f32 %v13548_v17, %v16348_v45  ;;  %v5453_v27 = vadd.f32 %v16349_v1, %v4971_v19  ;;  %v14801_v45 = vadd.f32 %v13548_v17, %v16366_v51  ;;  %v16367_v1 = vld [vmem:[#allocation52_spill] sm:$0xff]  ;;  %v16372_v33 = vld [vmem:[#allocation21_spill] sm:$0xff]  ;;  %s10189_s21 = smov 96  }
 0x568   : > { %v7374_v43 = vadd.f32 %v7291_v61, %v6892_v56  ;;  %v16360_v56 = vld [vmem:[#allocation203_spill] sm:$0xff]  ;;  %v14811_v49 = vadd.f32 %v13548_v17, %v16370_v58  ;;  %v16375_v10 = vld [vmem:[#allocation45_spill] sm:$0xff] }
 0x569   : > { %v5935_v35 = vadd.f32 %v16357_v5, %v5453_v27  ;;  %v6416_v12 = vadd.f32 %v16360_v56, %v5934_v14  ;;  %v14805_v27 = vadd.f32 %v13548_v17, %v16367_v1  ;;  %v16371_v14 = vld [vmem:[#allocation54_spill] sm:$0xff]  ;;  %v14825_v30 = vadd.f32 %v13548_v17, %v16375_v10  ;;  %v16381_v58 = vld [vmem:[#allocation61_spill] sm:$0xff] }
 0x56a   : > { %v7779_v36 = vpop.permute.xlu0 %7778  ;;  %v16385_v10 = vld [vmem:[#allocation49_spill] sm:$0xff] }
 0x56b   : > { %v14741_v39 = vadd.f32 %v7779_v36, %v7377_v55  ;;  %v4006_v36 = vadd.f32 %v13548_v17, %v16356_v38  ;;  %v7773_v60 = vpop.permute.xlu1 %7772  ;;  %v6417_v4 = vadd.f32 %v16364_v63, %v5935_v35  ;;  %v6898_v21 = vadd.f32 %v16369_v57, %v6416_v12  ;;  %v16373_v38 = vld [vmem:[#allocation206_spill] sm:$0xff]  ;;  %v16374_v35 = vld [vmem:[#allocation55_spill] sm:$0xff] }
 0x56c   : > { %v14789_v19 = vadd.f32 %v7773_v60, %v7374_v43  ;;  %v16368_v43 = vld [vmem:[#allocation11_spill] sm:$0xff]  ;;  %v14821_v60 = vadd.f32 %v13548_v17, %v16374_v35 }
 0x56d   : > { %16339 = vst [vmem:[#allocation137_spill] sm:$0xff] %v14741_v39  ;;  %v4487_v15 = vadd.f32 %v16363_v41, %v4006_v36  ;;  %v4968_v48 = vadd.f32 %v16368_v43, %v4486_v16  ;;  %v6899_v36 = vadd.f32 %v16373_v38, %v6417_v4  ;;  %v16376_v16 = vld [vmem:[#allocation143_spill] sm:$0xff]  ;;  %v16379_v4 = vld [vmem:[#allocation144_spill] sm:$0xff] }
 0x56e   : > { %v7293_v40 = vpop.permute.xlu0 %7292  ;;  %16361 = vst [vmem:[#allocation83_spill] sm:$0xff] %v14789_v19  ;;  %v16380_v43 = vld [vmem:[#allocation56_spill] sm:$0xff]  ;;  %v16391_v19 = vld [vmem:[#allocation71_spill] sm:$0xff] }
 0x56f   : > { %v7375_v55 = vadd.f32 %v7293_v40, %v6893_v54  ;;  %v16362_v54 = vld [vmem:[#allocation53_spill] sm:$0xff]  ;;  %v4969_v46 = vadd.f32 %v16372_v33, %v4487_v15  ;;  %v7303_v5 = vpop.permute.xlu1 %7302  ;;  %v5450_v56 = vadd.f32 %v16376_v16, %v4968_v48  ;;  %v16378_v15 = vld [vmem:[#allocation46_spill] sm:$0xff]  ;;  %v14839_v57 = vadd.f32 %v13548_v17, %v16380_v43 }
 0x570   : > { %v14793_v61 = vadd.f32 %v13548_v17, %v16362_v54  ;;  %v7380_v12 = vadd.f32 %v7303_v5, %v6898_v21  ;;  %v16377_v54 = vld [vmem:[#allocation58_spill] sm:$0xff]  ;;  %v14834_v63 = vadd.f32 %v13548_v17, %v16378_v15  ;;  %v14843_v48 = vadd.f32 %v13548_v17, %v16381_v58  ;;  %v16383_v33 = vld [vmem:[#allocation145_spill] sm:$0xff]  ;;  %v16384_v5 = vld [vmem:[#allocation59_spill] sm:$0xff] }
 0x571   : > { %v14830_v41 = vadd.f32 %v13548_v17, %v16377_v54  ;;  %v5451_v51 = vadd.f32 %v16379_v4, %v4969_v46  ;;  %v16382_v21 = vld [vmem:[#allocation70_spill] sm:$0xff]  ;;  %v5932_v38 = vadd.f32 %v16383_v33, %v5450_v56  ;;  %v14850_v35 = vadd.f32 %v13548_v17, %v16384_v5  ;;  %v16388_v4 = vld [vmem:[#allocation36_spill] sm:$0xff]  ;;  %v16389_v58 = vld [vmem:[#allocation9_spill] sm:$0xff] }
 0x572   : > { %v7775_v28 = vpop.permute.xlu0 %7774  ;;  %v14854_v46 = vadd.f32 %v13548_v17, %v16385_v10  ;;  %v16390_v56 = vld [vmem:[#allocation207_spill] sm:$0xff]  ;;  %v4460_v39 = vadd.f32 %v16391_v19, %v3979_v44  ;;  %v16392_v10 = vld [vmem:[#allocation33_spill] sm:$0xff]  ;;  %v16400_v19 = vld [vmem:[#allocation40_spill] sm:$0xff] }
 0x573   : > { %v14797_v40 = vadd.f32 %v7775_v28, %v7375_v55  ;;  %v14815_v55 = vadd.f32 %v13548_v17, %v16371_v14  ;;  %v4011_v14 = vadd.f32 %v13548_v17, %v16382_v21  ;;  %v7785_v15 = vpop.permute.xlu1 %7784  ;;  %v4009_v21 = vadd.f32 %v13548_v17, %v16389_v58 }
 0x574   : > { %v6414_v33 = vadd.f32 %v16390_v56, %v5932_v38  ;;  %v16399_v56 = vld [vmem:[#allocation18_spill] sm:$0xff] }
 0x575   : > { %16365 = vst [vmem:[#allocation138_spill] sm:$0xff] %v14797_v40  ;;  %v4492_v43 = vadd.f32 %v16388_v4, %v4011_v14  ;;  %v14863_v40 = vadd.f32 %v7785_v15, %v7380_v12  ;;  %v16396_v4 = vld [vmem:[#allocation19_spill] sm:$0xff]  ;;  %v16398_v12 = vld [vmem:[#allocation65_spill] sm:$0xff]  ;;  %v4942_v44 = vadd.f32 %v16399_v56, %v4460_v39  ;;  %v16406_v39 = vld [vmem:[#allocation12_spill] sm:$0xff] }
 0x576   : > { %v7305_v28 = vpop.permute.xlu0 %7304  ;;  %v4010_v58 = vadd.f32 %v13548_v17, %v16396_v4  ;;  %v6896_v38 = vadd.f32 %v16397_v31, %v6414_v33  ;;  %v4458_v15 = vadd.f32 %v16398_v12, %v14751_v25  ;;  %v16405_v33 = vld [vmem:[#allocation84_spill] sm:$0xff]  ;;  %v4465_v25 = vadd.f32 %v16406_v39, %v14774_v37  ;;  %v16408_v56 = vld [vmem:[#allocation73_spill] sm:$0xff]  ;;  %v16414_v37 = vld [vmem:[#allocation74_spill] sm:$0xff] }
 0x577   : > { %v7381_v1 = vadd.f32 %v7305_v28, %v6899_v36  ;;  %v16386_v36 = vld [vmem:[#allocation13_spill] sm:$0xff]  ;;  %v16387_v28 = vld [vmem:[#allocation146_spill] sm:$0xff]  ;;  %v4974_v14 = vadd.f32 %v16395_v59, %v4492_v43  ;;  %v16417_v39 = vld [vmem:[#allocation4_spill] sm:$0xff] }
 0x578   : > { %v4012_v16 = vadd.f32 %v13548_v17, %v16386_v36  ;;  %v5933_v54 = vadd.f32 %v16387_v28, %v5451_v51  ;;  %v16394_v51 = vld [vmem:[#allocation69_spill] sm:$0xff]  ;;  %v16403_v59 = vld [vmem:[#allocation86_spill] sm:$0xff]  ;;  %v14886_v4 = vadd.f32 %v16405_v33, %v4458_v15  ;;  %v16413_v15 = vld [vmem:[#allocation76_spill] sm:$0xff] }
 0x579   : > { %v4459_v28 = vadd.f32 %v16394_v51, %v3978_v29  ;;  %v4464_v43 = vadd.f32 %v16403_v59, %v14763_v32 }
 0x57a   : > { %v7787_v5 = vpop.permute.xlu0 %7786  ;;  %v4493_v9 = vadd.f32 %v16392_v10, %v4012_v16  ;;  %v6415_v3 = vadd.f32 %v16393_v53, %v5933_v54  ;;  %v16401_v10 = vld [vmem:[#allocation210_spill] sm:$0xff]  ;;  %v16402_v54 = vld [vmem:[#allocation23_spill] sm:$0xff] }
 0x57b   : > { %v14868_v36 = vadd.f32 %v7787_v5, %v7381_v1  ;;  %v7299_v1 = vpop.permute.xlu1 %7298  ;;  %v4461_v29 = vadd.f32 %v16402_v54, %v14756_v11  ;;  %v16404_v5 = vld [vmem:[#allocation147_spill] sm:$0xff]  ;;  %v16410_v54 = vld [vmem:[#allocation72_spill] sm:$0xff] }
 0x57c   : > { %v4975_v16 = vadd.f32 %v16400_v19, %v4493_v9  ;;  %v6897_v53 = vadd.f32 %v16401_v10, %v6415_v3  ;;  %v5456_v17 = vadd.f32 %v16404_v5, %v4974_v14  ;;  %v7378_v51 = vadd.f32 %v7299_v1, %v6896_v38  ;;  %v16407_v9 = vld [vmem:[#allocation148_spill] sm:$0xff]  ;;  %v16409_v10 = vld [vmem:[#allocation63_spill] sm:$0xff]  ;;  %v16411_v14 = vld [vmem:[#allocation149_spill] sm:$0xff] }
 0x57d   : > { %v4943_v19 = vadd.f32 %v16408_v56, %v4461_v29  ;;  %v14893_v11 = vadd.f32 %v16409_v10, %v4459_v28  ;;  %v14896_v32 = vadd.f32 %v16410_v54, %v4464_v43  ;;  %v16412_v1 = vld [vmem:[#allocation64_spill] sm:$0xff]  ;;  %v4462_v5 = vadd.f32 %v16413_v15, %v14767_v34  ;;  %v16416_v28 = vld [vmem:[#allocation22_spill] sm:$0xff]  ;;  %v16419_v10 = vld [vmem:[#allocation17_spill] sm:$0xff] }
 0x57e   : > { %v7301_v31 = vpop.permute.xlu0 %7300  ;;  %v5457_v12 = vadd.f32 %v16407_v9, %v4975_v16  ;;  %v5938_v38 = vadd.f32 %v16411_v14, %v5456_v17  ;;  %v14900_v59 = vadd.f32 %v16412_v1, %v4465_v25  ;;  %v4463_v16 = vadd.f32 %v16414_v37, %v14778_v62  ;;  %v16418_v9 = vld [vmem:[#allocation211_spill] sm:$0xff]  ;;  %v16421_v1 = vld [vmem:[#allocation212_spill] sm:$0xff] }
 0x57f   : > { %v7379_v3 = vadd.f32 %v7301_v31, %v6897_v53  ;;  %v16415_v53 = vld [vmem:[#allocation150_spill] sm:$0xff]  ;;  %v7781_v29 = vpop.permute.xlu1 %7780  ;;  %v4468_v33 = vadd.f32 %v16416_v28, %v14785_v47  ;;  %v4490_v43 = vadd.f32 %v16417_v39, %v4009_v21  ;;  %v4469_v54 = vadd.f32 %v16419_v10, %v14793_v61  ;;  %v16420_v34 = vld [vmem:[#allocation27_spill] sm:$0xff]  ;;  %v16427_v61 = vld [vmem:[#allocation77_spill] sm:$0xff] }
 0x580   : > { %v5939_v31 = vadd.f32 %v16415_v53, %v5457_v12  ;;  %v6420_v56 = vadd.f32 %v16418_v9, %v5938_v38  ;;  %v14911_v17 = vadd.f32 %v7781_v29, %v7378_v51  ;;  %v4491_v14 = vadd.f32 %v16420_v34, %v4010_v58  ;;  %v16422_v12 = vld [vmem:[#allocation66_spill] sm:$0xff]  ;;  %v16423_v47 = vld [vmem:[#allocation67_spill] sm:$0xff]  ;;  %v16425_v51 = vld [vmem:[#allocation213_spill] sm:$0xff] }
 0x581   : > { %v14920_v37 = vadd.f32 %v16422_v12, %v4462_v5  ;;  %v14923_v53 = vadd.f32 %v16423_v47, %v4463_v16  ;;  %v16424_v21 = vld [vmem:[#allocation79_spill] sm:$0xff]  ;;  %v16426_v28 = vld [vmem:[#allocation14_spill] sm:$0xff]  ;;  %v14931_v9 = vadd.f32 %v16427_v61, %v4469_v54  ;;  %v16428_v58 = vld [vmem:[#allocation29_spill] sm:$0xff] }
 0x582   : > { %v7783_v25 = vpop.permute.xlu0 %7782  ;;  %v6421_v62 = vadd.f32 %v16421_v1, %v5939_v31  ;;  %v4972_v38 = vadd.f32 %v16424_v21, %v4490_v43  ;;  %v6902_v29 = vadd.f32 %v16425_v51, %v6420_v56  ;;  %v14928_v39 = vadd.f32 %v16426_v28, %v4468_v33  ;;  %v16430_v5 = vld [vmem:[#allocation68_spill] sm:$0xff]  ;;  %v16432_v43 = vld [vmem:[#allocation151_spill] sm:$0xff]  ;;  %v16433_v33 = vld [vmem:[#allocation78_spill] sm:$0xff] }
 0x583   : > { %v14917_v15 = vadd.f32 %v7783_v25, %v7379_v3  ;;  %v4973_v31 = vadd.f32 %v16428_v58, %v4491_v14  ;;  %v16429_v3 = vld [vmem:[#allocation214_spill] sm:$0xff]  ;;  %v7311_v10 = vpop.permute.xlu1 %7310  ;;  %v4466_v34 = vadd.f32 %v16430_v5, %v14801_v45  ;;  %v16431_v16 = vld [vmem:[#allocation88_spill] sm:$0xff]  ;;  %v4472_v21 = vadd.f32 %v16433_v33, %v14811_v49  ;;  %v16437_v45 = vld [vmem:[#allocation15_spill] sm:$0xff] }
 0x584   : > { %v6903_v25 = vadd.f32 %v16429_v3, %v6421_v62  ;;  %v4467_v1 = vadd.f32 %v16431_v16, %v14805_v27  ;;  %v5454_v12 = vadd.f32 %v16432_v43, %v4972_v38  ;;  %v7384_v56 = vadd.f32 %v7311_v10, %v6902_v29  ;;  %v16434_v54 = vld [vmem:[#allocation92_spill] sm:$0xff]  ;;  %v16438_v27 = vld [vmem:[#allocation81_spill] sm:$0xff]  ;;  %v16440_v5 = vld [vmem:[#allocation87_spill] sm:$0xff] }
 0x585   : > { %v4473_v51 = vadd.f32 %v16434_v54, %v14815_v55  ;;  %v16435_v14 = vld [vmem:[#allocation152_spill] sm:$0xff]  ;;  %v4470_v38 = vadd.f32 %v16438_v27, %v14821_v60  ;;  %v16439_v29 = vld [vmem:[#allocation153_spill] sm:$0xff]  ;;  %v14955_v16 = vadd.f32 %v16440_v5, %v4472_v21  ;;  %v16446_v60 = vld [vmem:[#allocation215_spill] sm:$0xff] }
 0x586   : > { %v7313_v47 = vpop.permute.xlu0 %7312  ;;  %v5455_v28 = vadd.f32 %v16435_v14, %v4973_v31  ;;  %v16436_v61 = vld [vmem:[#allocation80_spill] sm:$0xff]  ;;  %v14949_v3 = vadd.f32 %v16437_v45, %v4467_v1  ;;  %v5936_v10 = vadd.f32 %v16439_v29, %v5454_v12  ;;  %v16441_v49 = vld [vmem:[#allocation85_spill] sm:$0xff]  ;;  %v16448_v45 = vld [vmem:[#allocation90_spill] sm:$0xff] }
 0x587   : > { %v7385_v62 = vadd.f32 %v7313_v47, %v6903_v25  ;;  %v14946_v58 = vadd.f32 %v16436_v61, %v4466_v34  ;;  %v14958_v43 = vadd.f32 %v16441_v49, %v4473_v51  ;;  %v16442_v55 = vld [vmem:[#allocation89_spill] sm:$0xff]  ;;  %v16443_v25 = vld [vmem:[#allocation154_spill] sm:$0xff]  ;;  %v7793_v47 = vpop.permute.xlu1 %7792  ;;  %v16444_v33 = vld [vmem:[#allocation20_spill] sm:$0xff]  ;;  %v4476_v51 = vadd.f32 %v16448_v45, %v14830_v41 }
 0x588   : > { %v4471_v31 = vadd.f32 %v16442_v55, %v14825_v30  ;;  %v5937_v34 = vadd.f32 %v16443_v25, %v5455_v28  ;;  %v14964_v1 = vadd.f32 %v16444_v33, %v4470_v38  ;;  %v16445_v54 = vld [vmem:[#allocation28_spill] sm:$0xff]  ;;  %v6418_v61 = vadd.f32 %v16446_v60, %v5936_v10  ;;  %v16449_v27 = vld [vmem:[#allocation94_spill] sm:$0xff]  ;;  %v16452_v28 = vld [vmem:[#allocation93_spill] sm:$0xff] }
 0x589   : > { %v5424_v14 = vadd.f32 %v16445_v54, %v4942_v44  ;;  %v14968_v12 = vadd.f32 %v7793_v47, %v7384_v56  ;;  %v5425_v29 = vadd.f32 %v16449_v27, %v4943_v19  ;;  %v16450_v5 = vld [vmem:[#allocation216_spill] sm:$0xff]  ;;  %v16453_v38 = vld [vmem:[#allocation75_spill] sm:$0xff]  ;;  %v16455_v56 = vld [vmem:[#allocation217_spill] sm:$0xff] }
 0x58a   : > { %v7795_v21 = vpop.permute.xlu0 %7794  ;;  %v6419_v30 = vadd.f32 %v16450_v5, %v5937_v34  ;;  %v14977_v55 = vadd.f32 %v16452_v28, %v4471_v31  ;;  %v4477_v44 = vadd.f32 %v16453_v38, %v14834_v63  ;;  %v16454_v25 = vld [vmem:[#allocation95_spill] sm:$0xff]  ;;  %v6900_v47 = vadd.f32 %v16455_v56, %v6418_v61  ;;  %v16456_v33 = vld [vmem:[#allocation50_spill] sm:$0xff]  ;;  %v16458_v60 = vld [vmem:[#allocation96_spill] sm:$0xff] }
 0x58b   : > { %16447 = vst [vmem:[#allocation26_spill] sm:$0xff] %v14968_v12  ;;  %v14974_v49 = vadd.f32 %v7795_v21, %v7385_v62  ;;  %v5906_v10 = vadd.f32 %v16454_v25, %v5424_v14  ;;  %v14984_v54 = vadd.f32 %v16456_v33, %v4476_v51  ;;  %v16457_v41 = vld [vmem:[#allocation91_spill] sm:$0xff]  ;;  %v5907_v34 = vadd.f32 %v16458_v60, %v5425_v29  ;;  %v16459_v62 = vld [vmem:[#allocation218_spill] sm:$0xff]  ;;  %v7307_v45 = vpop.permute.xlu1 %7306  ;;  %v16461_v63 = vld [vmem:[#allocation97_spill] sm:$0xff] }
 0x58c   : > { %v4474_v19 = vadd.f32 %v16457_v41, %v14839_v57  ;;  %v6901_v21 = vadd.f32 %v16459_v62, %v6419_v30  ;;  %v16460_v31 = vld [vmem:[#allocation82_spill] sm:$0xff]  ;;  %v5422_v5 = vadd.f32 %v16461_v63, %v14886_v4  ;;  %v16462_v14 = vld [vmem:[#allocation155_spill] sm:$0xff]  ;;  %v7382_v61 = vadd.f32 %v7307_v45, %v6900_v47  ;;  %v16463_v51 = vld [vmem:[#allocation44_spill] sm:$0xff] }
 0x58d   : > { %16451 = vst [vmem:[#allocation199_spill] sm:$0xff] %v14974_v49  ;;  %v4475_v27 = vadd.f32 %v16460_v31, %v14843_v48  ;;  %v6388_v28 = vadd.f32 %v16462_v14, %v5906_v10  ;;  %v14996_v25 = vadd.f32 %v16463_v51, %v4477_v44  ;;  %v16464_v57 = vld [vmem:[#allocation98_spill] sm:$0xff]  ;;  %v16465_v29 = vld [vmem:[#allocation156_spill] sm:$0xff]  ;;  %v16466_v41 = vld [vmem:[#allocation47_spill] sm:$0xff] }
 0x58e   : > { %v7309_v38 = vpop.permute.xlu0 %7308  ;;  %v5423_v56 = vadd.f32 %v16464_v57, %v14893_v11  ;;  %v6389_v33 = vadd.f32 %v16465_v29, %v5907_v34  ;;  %v15002_v60 = vadd.f32 %v16466_v41, %v4474_v19  ;;  %v16467_v48 = vld [vmem:[#allocation57_spill] sm:$0xff]  ;;  %v16468_v4 = vld [vmem:[#allocation99_spill] sm:$0xff]  ;;  %v16470_v45 = vld [vmem:[#allocation48_spill] sm:$0xff] }
 0x58f   : > { %v7383_v30 = vadd.f32 %v7309_v38, %v6901_v21  ;;  %v15005_v62 = vadd.f32 %v16467_v48, %v4475_v27  ;;  %v5904_v31 = vadd.f32 %v16468_v4, %v5422_v5  ;;  %v16469_v10 = vld [vmem:[#allocation157_spill] sm:$0xff]  ;;  %v4480_v44 = vadd.f32 %v16470_v45, %v14850_v35  ;;  %v16471_v63 = vld [vmem:[#allocation31_spill] sm:$0xff]  ;;  %v16472_v11 = vld [vmem:[#allocation100_spill] sm:$0xff]  ;;  %v7789_v38 = vpop.permute.xlu1 %7788 }
 0x590   : > { %v6870_v47 = vadd.f32 %v16469_v10, %v6388_v28  ;;  %v4481_v14 = vadd.f32 %v16471_v63, %v14854_v46  ;;  %v5905_v51 = vadd.f32 %v16472_v11, %v5423_v56  ;;  %v16473_v34 = vld [vmem:[#allocation158_spill] sm:$0xff]  ;;  %v16474_v19 = vld [vmem:[#allocation101_spill] sm:$0xff]  ;;  %v16475_v27 = vld [vmem:[#allocation159_spill] sm:$0xff]  ;;  %v15019_v48 = vadd.f32 %v7789_v38, %v7382_v61 }
 0x591   : > { %v6871_v21 = vadd.f32 %v16473_v34, %v6389_v33  ;;  %v5428_v57 = vadd.f32 %v16474_v19, %v14896_v32  ;;  %v6386_v29 = vadd.f32 %v16475_v27, %v5904_v31  ;;  %v16476_v41 = vld [vmem:[#allocation219_spill] sm:$0xff]  ;;  %v16477_v35 = vld [vmem:[#allocation102_spill] sm:$0xff]  ;;  %v16478_v10 = vld [vmem:[#allocation160_spill] sm:$0xff] }
 0x592   : > { %v7352_v5 = vadd.f32 %v16476_v41, %v6870_v47  ;;  %v7791_v28 = vpop.permute.xlu0 %7790  ;;  %v5429_v4 = vadd.f32 %v16477_v35, %v14900_v59  ;;  %v6387_v46 = vadd.f32 %v16478_v10, %v5905_v51  ;;  %v16479_v45 = vld [vmem:[#allocation220_spill] sm:$0xff]  ;;  %v16481_v33 = vld [vmem:[#allocation5_spill] sm:$0xff]  ;;  %v16482_v32 = vld [vmem:[#allocation103_spill] sm:$0xff] }
 0x593   : > { %v7353_v56 = vadd.f32 %v16479_v45, %v6871_v21  ;;  %v15025_v63 = vadd.f32 %v7791_v28, %v7383_v30  ;;  %v15028_v11 = vadd.f32 %v16481_v33, %v4480_v44  ;;  %v5910_v34 = vadd.f32 %v16482_v32, %v5428_v57  ;;  %v16483_v31 = vld [vmem:[#allocation161_spill] sm:$0xff]  ;;  %v16485_v38 = vld [vmem:[#allocation51_spill] sm:$0xff]  ;;  %v16486_v41 = vld [vmem:[#allocation104_spill] sm:$0xff]  ;;  %v8211_v30 = vpop.permute.xlu1 %8210 }
 0x594   : > { %v6868_v19 = vadd.f32 %v16483_v31, %v6386_v29  ;;  %v16484_v47 = vld [vmem:[#allocation221_spill] sm:$0xff]  ;;  %v15034_v27 = vadd.f32 %v16485_v38, %v4481_v14  ;;  %v5911_v59 = vadd.f32 %v16486_v41, %v5429_v4  ;;  %v16487_v35 = vld [vmem:[#allocation162_spill] sm:$0xff]  ;;  %v16490_v45 = vld [vmem:[#allocation163_spill] sm:$0xff] }
 0x595   : > { %16480 = vst [vmem:[#allocation24_spill] sm:$0xff] %v15025_v63  ;;  %v7834_v61 = vadd.f32 %v16484_v47, %v7352_v5  ;;  %v6869_v51 = vadd.f32 %v16487_v35, %v6387_v46  ;;  %v16488_v10 = vld [vmem:[#allocation222_spill] sm:$0xff]  ;;  %v16489_v28 = vld [vmem:[#allocation105_spill] sm:$0xff]  ;;  %v6392_v33 = vadd.f32 %v16490_v45, %v5910_v34  ;;  %v16491_v57 = vld [vmem:[#allocation223_spill] sm:$0xff] }
 0x596   : > { %v7835_v21 = vadd.f32 %v16488_v10, %v7353_v56  ;;  %v5426_v44 = vadd.f32 %v16489_v28, %v14920_v37  ;;  %v7350_v32 = vadd.f32 %v16491_v57, %v6868_v19  ;;  %v8213_v31 = vpop.permute.xlu0 %8212  ;;  %v16492_v5 = vld [vmem:[#allocation106_spill] sm:$0xff]  ;;  %v16493_v47 = vld [vmem:[#allocation164_spill] sm:$0xff]  ;;  %v16495_v35 = vld [vmem:[#allocation107_spill] sm:$0xff] }
 0x597   : > { %v8316_v29 = vadd.f32 %v8211_v30, %v7834_v61  ;;  %v5427_v14 = vadd.f32 %v16492_v5, %v14923_v53  ;;  %v6393_v38 = vadd.f32 %v16493_v47, %v5911_v59  ;;  %v16494_v4 = vld [vmem:[#allocation224_spill] sm:$0xff]  ;;  %v16496_v10 = vld [vmem:[#allocation165_spill] sm:$0xff]  ;;  %v16499_v19 = vld [vmem:[#allocation166_spill] sm:$0xff]  ;;  %v8207_v53 = vpop.permute.xlu1 %8206 }
 0x598   : > { %v7351_v41 = vadd.f32 %v16494_v4, %v6869_v51  ;;  %v8317_v46 = vadd.f32 %v8213_v31, %v7835_v21  ;;  %v5908_v56 = vadd.f32 %v16495_v35, %v5426_v44  ;;  %v6874_v49 = vadd.f32 %v16496_v10, %v6392_v33  ;;  %v16497_v12 = vld [vmem:[#allocation225_spill] sm:$0xff]  ;;  %v16498_v34 = vld [vmem:[#allocation108_spill] sm:$0xff]  ;;  %v16500_v30 = vld [vmem:[#allocation226_spill] sm:$0xff] }
 0x599   : > { %v7832_v37 = vadd.f32 %v16497_v12, %v7350_v32  ;;  %v8352_v28 = vmax.f32 %v8316_v29, 0.0  ;;  %v5909_v45 = vadd.f32 %v16498_v34, %v5427_v14  ;;  %v6875_v61 = vadd.f32 %v16499_v19, %v6393_v38  ;;  %v16501_v59 = vld [vmem:[#allocation109_spill] sm:$0xff]  ;;  %v16502_v51 = vld [vmem:[#allocation167_spill] sm:$0xff]  ;;  %v16504_v33 = vld [vmem:[#allocation110_spill] sm:$0xff] }
 0x59a   : > { %v7833_v57 = vadd.f32 %v16500_v30, %v7351_v41  ;;  %v8353_v63 = vmax.f32 %v8317_v46, 0.0  ;;  %v5432_v5 = vadd.f32 %v16501_v59, %v14928_v39  ;;  %v6390_v21 = vadd.f32 %v16502_v51, %v5908_v56  ;;  %v16503_v31 = vld [vmem:[#allocation227_spill] sm:$0xff]  ;;  %v8209_v12 = vpop.permute.xlu0 %8208  ;;  %v16505_v29 = vld [vmem:[#allocation168_spill] sm:$0xff]  ;;  %v16508_v35 = vld [vmem:[#allocation169_spill] sm:$0xff] }
 0x59b   : > { %v7356_v44 = vadd.f32 %v16503_v31, %v6874_v49  ;;  %v8314_v47 = vadd.f32 %v8207_v53, %v7832_v37  ;;  %8426 = vrot.lane.b32.xlu1 %v8352_v28, %s10189_s21  ;;  %v5433_v32 = vadd.f32 %v16504_v33, %v14931_v9  ;;  %v6391_v14 = vadd.f32 %v16505_v29, %v5909_v45  ;;  %v16506_v38 = vld [vmem:[#allocation228_spill] sm:$0xff]  ;;  %v16507_v39 = vld [vmem:[#allocation111_spill] sm:$0xff]  ;;  %v16510_v34 = vld [vmem:[#allocation170_spill] sm:$0xff]  ;;  %v8219_v45 = vpop.permute.xlu1 %8218 }
 0x59c   : > { %v7357_v4 = vadd.f32 %v16506_v38, %v6875_v61  ;;  %v8315_v41 = vadd.f32 %v8209_v12, %v7833_v57  ;;  %8428 = vrot.lane.b32.xlu0 %v8353_v63, %s10189_s21  ;;  %v5914_v46 = vadd.f32 %v16507_v39, %v5432_v5  ;;  %v6872_v56 = vadd.f32 %v16508_v35, %v6390_v21  ;;  %v16509_v37 = vld [vmem:[#allocation112_spill] sm:$0xff]  ;;  %v16511_v30 = vld [vmem:[#allocation229_spill] sm:$0xff]  ;;  %v16513_v59 = vld [vmem:[#allocation171_spill] sm:$0xff] }
 0x59d   : > { %v7838_v49 = vadd.f32 %v14561_v2, %v7356_v44  ;;  %v8350_v10 = vmax.f32 %v8314_v47, 0.0  ;;  %v5915_v28 = vadd.f32 %v16509_v37, %v5433_v32  ;;  %v6873_v19 = vadd.f32 %v16510_v34, %v6391_v14  ;;  %v16512_v61 = vld [vmem:[#allocation113_spill] sm:$0xff]  ;;  %v16514_v21 = vld [vmem:[#allocation114_spill] sm:$0xff]  ;;  %v16515_v44 = vld [vmem:[#allocation172_spill] sm:$0xff] }
 0x59e   : > { %v7839_v9 = vadd.f32 %v16511_v30, %v7357_v4  ;;  %v8351_v53 = vmax.f32 %v8315_v41, 0.0  ;;  %v5430_v57 = vadd.f32 %v16512_v61, %v14946_v58  ;;  %v6396_v63 = vadd.f32 %v16513_v59, %v5914_v46  ;;  %v8221_v2 = vpop.permute.xlu0 %8220  ;;  %v16516_v12 = vld [vmem:[#allocation230_spill] sm:$0xff]  ;;  %v16517_v29 = vld [vmem:[#allocation115_spill] sm:$0xff]  ;;  %v16518_v14 = vld [vmem:[#allocation173_spill] sm:$0xff] }
 0x59f   : > { %v7354_v5 = vadd.f32 %v14569_v23, %v6872_v56  ;;  %v8320_v51 = vadd.f32 %v8219_v45, %v7838_v49  ;;  %8422 = vrot.lane.b32.xlu1 %v8350_v10, %s10189_s21  ;;  %v5431_v31 = vadd.f32 %v16514_v21, %v14949_v3  ;;  %v6397_v47 = vadd.f32 %v16515_v44, %v5915_v28  ;;  %v16519_v41 = vld [vmem:[#allocation116_spill] sm:$0xff]  ;;  %v16520_v46 = vld [vmem:[#allocation174_spill] sm:$0xff]  ;;  %v16521_v56 = vld [vmem:[#allocation231_spill] sm:$0xff]  ;;  %v8215_v10 = vpop.permute.xlu1 %8214 }
 0x5a0   : > { %v7355_v33 = vadd.f32 %v16516_v12, %v6873_v19  ;;  %v8321_v32 = vadd.f32 %v8221_v2, %v7839_v9  ;;  %8424 = vrot.lane.b32.xlu0 %v8351_v53, %s10189_s21  ;;  %v5912_v58 = vadd.f32 %v16517_v29, %v5430_v57  ;;  %v6878_v38 = vadd.f32 %v16518_v14, %v6396_v63  ;;  %v16522_v37 = vld [vmem:[#allocation117_spill] sm:$0xff]  ;;  %v16523_v34 = vld [vmem:[#allocation175_spill] sm:$0xff]  ;;  %v16524_v53 = vld [vmem:[#allocation118_spill] sm:$0xff] }
 0x5a1   : > { %v7836_v23 = vadd.f32 %v14575_v50, %v7354_v5  ;;  %v8356_v4 = vmax.f32 %v8320_v51, 0.0  ;;  %v5913_v39 = vadd.f32 %v16519_v41, %v5431_v31  ;;  %v6879_v35 = vadd.f32 %v16520_v46, %v6397_v47  ;;  %v16525_v61 = vld [vmem:[#allocation176_spill] sm:$0xff]  ;;  %v16527_v51 = vld [vmem:[#allocation119_spill] sm:$0xff]  ;;  %v16528_v2 = vld [vmem:[#allocation177_spill] sm:$0xff] }
 0x5a2   : > { %v7837_v3 = vadd.f32 %v16521_v56, %v7355_v33  ;;  %v8357_v49 = vmax.f32 %v8321_v32, 0.0  ;;  %v5436_v28 = vadd.f32 %v16522_v37, %v14955_v16  ;;  %v6394_v19 = vadd.f32 %v16523_v34, %v5912_v58  ;;  %v8217_v50 = vpop.permute.xlu0 %8216  ;;  %v16526_v59 = vld [vmem:[#allocation232_spill] sm:$0xff]  ;;  %v16530_v12 = vld [vmem:[#allocation178_spill] sm:$0xff]  ;;  %v16531_v32 = vld [vmem:[#allocation233_spill] sm:$0xff] }
 0x5a3   : > { %v7360_v30 = vadd.f32 %v14583_v22, %v6878_v38  ;;  %v8318_v9 = vadd.f32 %v8215_v10, %v7836_v23  ;;  %8434 = vrot.lane.b32.xlu1 %v8356_v4, %s10189_s21  ;;  %v5437_v45 = vadd.f32 %v16524_v53, %v14958_v43  ;;  %v6395_v57 = vadd.f32 %v16525_v61, %v5913_v39  ;;  %v16529_v44 = vld [vmem:[#allocation120_spill] sm:$0xff]  ;;  %v8227_v58 = vpop.permute.xlu1 %8226  ;;  %v16532_v14 = vld [vmem:[#allocation121_spill] sm:$0xff]  ;;  %v16533_v23 = vld [vmem:[#allocation179_spill] sm:$0xff] }
 0x5a4   : > { %v7361_v63 = vadd.f32 %v16526_v59, %v6879_v35  ;;  %v8319_v5 = vadd.f32 %v8217_v50, %v7837_v3  ;;  %8436 = vrot.lane.b32.xlu0 %v8357_v49, %s10189_s21  ;;  %v5918_v16 = vadd.f32 %v16527_v51, %v5436_v28  ;;  %v6876_v21 = vadd.f32 %v16528_v2, %v6394_v19  ;;  %v16534_v46 = vld [vmem:[#allocation122_spill] sm:$0xff]  ;;  %v16535_v56 = vld [vmem:[#allocation180_spill] sm:$0xff]  ;;  %v16537_v28 = vld [vmem:[#allocation123_spill] sm:$0xff] }
 0x5a5   : > { %v7842_v22 = vadd.f32 %v14591_v6, %v7360_v30  ;;  %v8354_v31 = vmax.f32 %v8318_v9, 0.0  ;;  %v5919_v47 = vadd.f32 %v16529_v44, %v5437_v45  ;;  %v6877_v33 = vadd.f32 %v16530_v12, %v6395_v57  ;;  %v16536_v49 = vld [vmem:[#allocation234_spill] sm:$0xff]  ;;  %v16538_v34 = vld [vmem:[#allocation181_spill] sm:$0xff]  ;;  %v16539_v9 = vld [vmem:[#allocation124_spill] sm:$0xff] }
 0x5a6   : > { %v7843_v43 = vadd.f32 %v16531_v32, %v7361_v63  ;;  %v8355_v29 = vmax.f32 %v8319_v5, 0.0  ;;  %v5434_v38 = vadd.f32 %v16532_v14, %v14964_v1  ;;  %v6400_v4 = vadd.f32 %v16533_v23, %v5918_v16  ;;  %v8229_v6 = vpop.permute.xlu0 %8228  ;;  %v16540_v53 = vld [vmem:[#allocation182_spill] sm:$0xff]  ;;  %v16541_v61 = vld [vmem:[#allocation235_spill] sm:$0xff]  ;;  %v16542_v63 = vld [vmem:[#allocation125_spill] sm:$0xff] }
 0x5a7   : > { %v7358_v41 = vadd.f32 %v14599_v0, %v6876_v21  ;;  %v8324_v39 = vadd.f32 %v8227_v58, %v7842_v22  ;;  %8430 = vrot.lane.b32.xlu1 %v8354_v31, %s10189_s21  ;;  %v5435_v35 = vadd.f32 %v16534_v46, %v14977_v55  ;;  %v6401_v3 = vadd.f32 %v16535_v56, %v5919_v47  ;;  %v8223_v59 = vpop.permute.xlu1 %8222  ;;  %v16543_v51 = vld [vmem:[#allocation183_spill] sm:$0xff]  ;;  %v16544_v2 = vld [vmem:[#allocation236_spill] sm:$0xff]  ;;  %v16545_v31 = vld [vmem:[#allocation126_spill] sm:$0xff] }
 0x5a8   : > { %v7359_v10 = vadd.f32 %v16536_v49, %v6877_v33  ;;  %v8325_v37 = vadd.f32 %v8229_v6, %v7843_v43  ;;  %8432 = vrot.lane.b32.xlu0 %v8355_v29, %s10189_s21  ;;  %v5916_v1 = vadd.f32 %v16537_v28, %v5434_v38  ;;  %v6882_v19 = vadd.f32 %v16538_v34, %v6400_v4  ;;  %v16546_v47 = vld [vmem:[#allocation184_spill] sm:$0xff]  ;;  %v16547_v33 = vld [vmem:[#allocation237_spill] sm:$0xff]  ;;  %v16548_v29 = vld [vmem:[#allocation127_spill] sm:$0xff] }
 0x5a9   : > { %v7840_v0 = vadd.f32 %v14607_v24, %v7358_v41  ;;  %v8360_v30 = vmax.f32 %v8324_v39, 0.0  ;;  %v5917_v50 = vadd.f32 %v16539_v9, %v5435_v35  ;;  %v6883_v45 = vadd.f32 %v16540_v53, %v6401_v3  ;;  %v16549_v58 = vld [vmem:[#allocation185_spill] sm:$0xff]  ;;  %v16550_v4 = vld [vmem:[#allocation128_spill] sm:$0xff]  ;;  %v16551_v39 = vld [vmem:[#allocation186_spill] sm:$0xff] }
 0x5aa   : > { %v7841_v55 = vadd.f32 %v16541_v61, %v7359_v10  ;;  %v8361_v57 = vmax.f32 %v8325_v37, 0.0  ;;  %v5440_v5 = vadd.f32 %v16542_v63, %v14984_v54  ;;  %v6398_v16 = vadd.f32 %v16543_v51, %v5916_v1  ;;  %v8225_v24 = vpop.permute.xlu0 %8224  ;;  %v16552_v46 = vld [vmem:[#allocation238_spill] sm:$0xff]  ;;  %v16553_v3 = vld [vmem:[#allocation129_spill] sm:$0xff]  ;;  %v16554_v10 = vld [vmem:[#allocation187_spill] sm:$0xff] }
 0x5ab   : > { %v7364_v21 = vadd.f32 %v16544_v2, %v6882_v19  ;;  %v8322_v22 = vadd.f32 %v8223_v59, %v7840_v0  ;;  %8442 = vrot.lane.b32.xlu1 %v8360_v30, %s10189_s21  ;;  %v5441_v44 = vadd.f32 %v16545_v31, %v14996_v25  ;;  %v6399_v12 = vadd.f32 %v16546_v47, %v5917_v50  ;;  %v8235_v56 = vpop.permute.xlu1 %8234  ;;  %v16555_v34 = vld [vmem:[#allocation130_spill] sm:$0xff]  ;;  %v16556_v0 = vld [vmem:[#allocation188_spill] sm:$0xff]  ;;  %v16557_v9 = vld [vmem:[#allocation239_spill] sm:$0xff] }
 0x5ac   : > { %v7365_v32 = vadd.f32 %v16547_v33, %v6883_v45  ;;  %v8323_v43 = vadd.f32 %v8225_v24, %v7841_v55  ;;  %8444 = vrot.lane.b32.xlu0 %v8361_v57, %s10189_s21  ;;  %v5922_v54 = vadd.f32 %v16548_v29, %v5440_v5  ;;  %v6880_v14 = vadd.f32 %v16549_v58, %v6398_v16  ;;  %v16558_v45 = vld [vmem:[#allocation131_spill] sm:$0xff]  ;;  %v16559_v61 = vld [vmem:[#allocation189_spill] sm:$0xff]  ;;  %v16560_v59 = vld [vmem:[#allocation132_spill] sm:$0xff] }
 0x5ad   : > { %v7846_v38 = vadd.f32 %v14623_v18, %v7364_v21  ;;  %v8358_v23 = vmax.f32 %v8322_v22, 0.0  ;;  %v5923_v41 = vadd.f32 %v16550_v4, %v5441_v44  ;;  %v6881_v6 = vadd.f32 %v16551_v39, %v6399_v12  ;;  %v16561_v5 = vld [vmem:[#allocation190_spill] sm:$0xff]  ;;  %v16562_v16 = vld [vmem:[#allocation240_spill] sm:$0xff]  ;;  %v16563_v22 = vld [vmem:[#allocation133_spill] sm:$0xff] }
 0x5ae   : > { %v7847_v25 = vadd.f32 %v16552_v46, %v7365_v32  ;;  %v8359_v35 = vmax.f32 %v8323_v43, 0.0  ;;  %v5438_v49 = vadd.f32 %v16553_v3, %v15002_v60  ;;  %v6404_v37 = vadd.f32 %v16554_v10, %v5922_v54  ;;  %v8237_v18 = vpop.permute.xlu0 %8236  ;;  %v16564_v31 = vld [vmem:[#allocation191_spill] sm:$0xff]  ;;  %v16565_v33 = vld [vmem:[#allocation134_spill] sm:$0xff]  ;;  %v16566_v43 = vld [vmem:[#allocation192_spill] sm:$0xff] }
 0x5af   : > { %v7362_v28 = vadd.f32 %v14629_v13, %v6880_v14  ;;  %v8328_v1 = vadd.f32 %v8235_v56, %v7846_v38  ;;  %8438 = vrot.lane.b32.xlu1 %v8358_v23, %s10189_s21  ;;  %v5439_v19 = vadd.f32 %v16555_v34, %v15005_v62  ;;  %v6405_v30 = vadd.f32 %v16556_v0, %v5923_v41  ;;  %v8231_v21 = vpop.permute.xlu1 %8230  ;;  %v16567_v14 = vld [vmem:[#allocation135_spill] sm:$0xff]  ;;  %v16568_v38 = vld [vmem:[#allocation193_spill] sm:$0xff]  ;;  %v16570_v39 = vld [vmem:[#allocation136_spill] sm:$0xff] }
 0x5b0   : > { %v7363_v50 = vadd.f32 %v16557_v9, %v6881_v6  ;;  %v8329_v53 = vadd.f32 %v8237_v18, %v7847_v25  ;;  %8440 = vrot.lane.b32.xlu0 %v8359_v35, %s10189_s21  ;;  %v5920_v60 = vadd.f32 %v16558_v45, %v5438_v49  ;;  %v6886_v55 = vadd.f32 %v16559_v61, %v6404_v37  ;;  %v16569_v4 = vld [vmem:[#allocation241_spill] sm:$0xff]  ;;  %v16571_v46 = vld [vmem:[#allocation194_spill] sm:$0xff]  ;;  %v16573_v49 = vld [vmem:[#allocation195_spill] sm:$0xff] }
 0x5b1   : > { %v7844_v13 = vadd.f32 %v14635_v20, %v7362_v28  ;;  %v8364_v57 = vmax.f32 %v8328_v1, 0.0  ;;  %v5921_v63 = vadd.f32 %v16560_v59, %v5439_v19  ;;  %v6887_v51 = vadd.f32 %v16561_v5, %v6405_v30  ;;  %v16572_v35 = vld [vmem:[#allocation242_spill] sm:$0xff]  ;;  %v16574_v10 = vld [vmem:[#allocation243_spill] sm:$0xff]  ;;  %v16575_v18 = vld [vmem:[#allocation196_spill] sm:$0xff] }
 0x5b2   : > { %v7845_v62 = vadd.f32 %v16562_v16, %v7363_v50  ;;  %v8365_v2 = vmax.f32 %v8329_v53, 0.0  ;;  %v5444_v24 = vadd.f32 %v16563_v22, %v15028_v11  ;;  %v6402_v44 = vadd.f32 %v16564_v31, %v5920_v60  ;;  %v8233_v20 = vpop.permute.xlu0 %8232  ;;  %v16576_v19 = vld [vmem:[#allocation244_spill] sm:$0xff]  ;;  %v16577_v9 = vld [vmem:[#allocation197_spill] sm:$0xff]  ;;  %v16579_v61 = vld [vmem:[#allocation198_spill] sm:$0xff] }
 0x5b3   : > { %v7368_v47 = vadd.f32 %v14641_v7, %v6886_v55  ;;  %v8326_v12 = vadd.f32 %v8231_v21, %v7844_v13  ;;  %8450 = vrot.lane.b32.xlu1 %v8364_v57, %s10189_s21  ;;  %v5445_v32 = vadd.f32 %v16565_v33, %v15034_v27  ;;  %v6403_v29 = vadd.f32 %v16566_v43, %v5921_v63  ;;  %v8243_v3 = vpop.permute.xlu1 %8242  ;;  %v16578_v53 = vld [vmem:[#allocation245_spill] sm:$0xff] }
 0x5b4   : > { %v7369_v54 = vadd.f32 %v14643_v26, %v6887_v51  ;;  %v8327_v58 = vadd.f32 %v8233_v20, %v7845_v62  ;;  %8452 = vrot.lane.b32.xlu0 %v8365_v2, %s10189_s21  ;;  %v5926_v11 = vadd.f32 %v16567_v14, %v5444_v24  ;;  %v6884_v23 = vadd.f32 %v16568_v38, %v6402_v44  ;;  %v16580_v2 = vld [vmem:[#allocation246_spill] sm:$0xff]  ;;  %v16581_v24 = vld [vmem:[#allocation247_spill] sm:$0xff] }
 0x5b5   : > { %v7850_v7 = vadd.f32 %v16569_v4, %v7368_v47  ;;  %v8362_v41 = vmax.f32 %v8326_v12, 0.0  ;;  %v5927_v6 = vadd.f32 %v16570_v39, %v5445_v32  ;;  %v6885_v25 = vadd.f32 %v16571_v46, %v6403_v29  ;;  %v16582_v32 = vld [vmem:[#allocation248_spill] sm:$0xff] }
 0x5b6   : > { %v7851_v27 = vadd.f32 %v16572_v35, %v7369_v54  ;;  %v8363_v56 = vmax.f32 %v8327_v58, 0.0  ;;  %v6408_v26 = vadd.f32 %v16573_v49, %v5926_v11  ;;  %v7366_v37 = vadd.f32 %v16574_v10, %v6884_v23  ;;  %v8245_v1 = vpop.permute.xlu0 %8244  ;;  %v16583_v54 = vld [vmem:[#allocation249_spill] sm:$0xff]  ;;  %v16584_v23 = vld [vmem:[#allocation62_spill] sm:$0xff]  ;;  %v16586_v35 = vld [vmem:[#allocation83_spill] sm:$0xff] }
 0x5b7   : > { %v8332_v28 = vadd.f32 %v8243_v3, %v7850_v7  ;;  %8446 = vrot.lane.b32.xlu1 %v8362_v41, %s10189_s21  ;;  %v6409_v34 = vadd.f32 %v16575_v18, %v5927_v6  ;;  %v7367_v0 = vadd.f32 %v16576_v19, %v6885_v25  ;;  %v8239_v59 = vpop.permute.xlu1 %8238  ;;  %v16585_v41 = vld [vmem:[#allocation137_spill] sm:$0xff]  ;;  %v16587_v3 = vld [vmem:[#allocation138_spill] sm:$0xff] }
 0x5b8   : > { %v8333_v30 = vadd.f32 %v8245_v1, %v7851_v27  ;;  %8448 = vrot.lane.b32.xlu0 %v8363_v56, %s10189_s21  ;;  %v6890_v50 = vadd.f32 %v16577_v9, %v6408_v26  ;;  %v7848_v45 = vadd.f32 %v16578_v53, %v7366_v37 }
 0x5b9   : > { %v8368_v60 = vmax.f32 %v8332_v28, 0.0  ;;  %v6891_v55 = vadd.f32 %v16579_v61, %v6409_v34  ;;  %v7849_v13 = vadd.f32 %v14663_v52, %v7367_v0 }
 0x5ba   : > { %v8369_v57 = vmax.f32 %v8333_v30, 0.0  ;;  %v7372_v63 = vadd.f32 %v14671_v8, %v6890_v50  ;;  %v8330_v5 = vadd.f32 %v8239_v59, %v7848_v45  ;;  %v8241_v51 = vpop.permute.xlu0 %8240 }
 0x5bb   : > { %8458 = vrot.lane.b32.xlu1 %v8368_v60, %s10189_s21  ;;  %v7373_v16 = vadd.f32 %v14674_v42, %v6891_v55  ;;  %v8331_v62 = vadd.f32 %v8241_v51, %v7849_v13  ;;  %v8251_v52 = vpop.permute.xlu1 %8250  ;;  %v16588_v55 = vld [vmem:[#allocation24_spill] sm:$0xff] }
 0x5bc   : > { %8460 = vrot.lane.b32.xlu0 %v8369_v57, %s10189_s21  ;;  %v7854_v21 = vadd.f32 %v16580_v2, %v7372_v63  ;;  %v8366_v22 = vmax.f32 %v8330_v5, 0.0  ;;  %v16589_v57 = vld [vmem:[#allocation26_spill] sm:$0xff]  ;;  %v16590_v63 = vld [vmem:[#allocation199_spill] sm:$0xff] }
 0x5bd   : > { %v7855_v31 = vadd.f32 %v16581_v24, %v7373_v16  ;;  %v8367_v44 = vmax.f32 %v8331_v62, 0.0 }
 0x5be   : > { %v8336_v47 = vadd.f32 %v8251_v52, %v7854_v21  ;;  %v8253_v8 = vpop.permute.xlu0 %8252 }
 0x5bf   : > { %8454 = vrot.lane.b32.xlu1 %v8366_v22, %s10189_s21  ;;  %v8337_v12 = vadd.f32 %v8253_v8, %v7855_v31  ;;  %v8247_v42 = vpop.permute.xlu1 %8246 }
 0x5c0   : > { %8456 = vrot.lane.b32.xlu0 %v8367_v44, %s10189_s21  ;;  %v8372_v20 = vmax.f32 %v8336_v47, 0.0  ;;  %v8334_v43 = vadd.f32 %v8247_v42, %v16582_v32 }
 0x5c1   : > { %v8373_v33 = vmax.f32 %v8337_v12, 0.0 }
 0x5c2   : > { %v8249_v29 = vpop.permute.xlu0 %8248  ;;  %v8370_v14 = vmax.f32 %v8334_v43, 0.0 }
 0x5c3   : > { %8466 = vrot.lane.b32.xlu1 %v8372_v20, %s10189_s21  ;;  %v8335_v58 = vadd.f32 %v8249_v29, %v16583_v54  ;;  %v8259_v38 = vpop.permute.xlu1 %8258 }
 0x5c4   : > { %8468 = vrot.lane.b32.xlu0 %v8373_v33, %s10189_s21  ;;  %v8340_v4 = vadd.f32 %v8259_v38, %v16584_v23 }
 0x5c5   : > { %v8371_v11 = vmax.f32 %v8335_v58, 0.0 }
 0x5c6   : > { %v8261_v7 = vpop.permute.xlu0 %8260  ;;  %v8376_v6 = vmax.f32 %v8340_v4, 0.0 }
 0x5c7   : > { %8462 = vrot.lane.b32.xlu1 %v8370_v14, %s10189_s21  ;;  %v8341_v39 = vadd.f32 %v8261_v7, %v16585_v41  ;;  %v8255_v25 = vpop.permute.xlu1 %8254 }
 0x5c8   : > { %8464 = vrot.lane.b32.xlu0 %v8371_v11, %s10189_s21  ;;  %v8338_v27 = vadd.f32 %v8255_v25, %v16586_v35 }
 0x5c9   : > { %v8377_v46 = vmax.f32 %v8341_v39, 0.0 }
 0x5ca   : > { %v8257_v56 = vpop.permute.xlu0 %8256  ;;  %v8374_v26 = vmax.f32 %v8338_v27, 0.0 }
 0x5cb   : > { %8474 = vrot.lane.b32.xlu1 %v8376_v6, %s10189_s21  ;;  %v8339_v49 = vadd.f32 %v8257_v56, %v16587_v3  ;;  %v8267_v37 = vpop.permute.xlu1 %8266 }
 0x5cc   : > { %8476 = vrot.lane.b32.xlu0 %v8377_v46, %s10189_s21  ;;  %v8344_v28 = vadd.f32 %v8267_v37, %v14863_v40 }
 0x5cd   : > { %v8375_v10 = vmax.f32 %v8339_v49, 0.0 }
 0x5ce   : > { %v8269_v1 = vpop.permute.xlu0 %8268  ;;  %v8380_v34 = vmax.f32 %v8344_v28, 0.0 }
 0x5cf   : > { %8470 = vrot.lane.b32.xlu1 %v8374_v26, %s10189_s21  ;;  %v8345_v18 = vadd.f32 %v8269_v1, %v14868_v36  ;;  %v8263_v0 = vpop.permute.xlu1 %8262 }
 0x5d0   : > { %8472 = vrot.lane.b32.xlu0 %v8375_v10, %s10189_s21  ;;  %v8342_v30 = vadd.f32 %v8263_v0, %v14911_v17 }
 0x5d1   : > { %v8381_v19 = vmax.f32 %v8345_v18, 0.0 }
 0x5d2   : > { %v8265_v9 = vpop.permute.xlu0 %8264  ;;  %v8378_v40 = vmax.f32 %v8342_v30, 0.0 }
 0x5d3   : > { %8482 = vrot.lane.b32.xlu1 %v8380_v34, %s10189_s21  ;;  %v8343_v50 = vadd.f32 %v8265_v9, %v14917_v15  ;;  %v8275_v45 = vpop.permute.xlu1 %8274 }
 0x5d4   : > { %8484 = vrot.lane.b32.xlu0 %v8381_v19, %s10189_s21  ;;  %v8348_v59 = vadd.f32 %v8275_v45, %v16589_v57 }
 0x5d5   : > { %v8379_v53 = vmax.f32 %v8343_v50, 0.0 }
 0x5d6   : > { %v8277_v36 = vpop.permute.xlu0 %8276  ;;  %v8384_v16 = vmax.f32 %v8348_v59, 0.0 }
 0x5d7   : > { %8478 = vrot.lane.b32.xlu1 %v8378_v40, %s10189_s21  ;;  %v8271_v60 = vpop.permute.xlu1 %8270  ;;  %v8349_v5 = vadd.f32 %v8277_v36, %v16590_v63 }
 0x5d8   : > { %8480 = vrot.lane.b32.xlu0 %v8379_v53, %s10189_s21  ;;  %v8346_v61 = vadd.f32 %v8271_v60, %v15019_v48 }
 0x5d9   : > { %v8385_v62 = vmax.f32 %v8349_v5, 0.0 }
 0x5da   : > { %v8273_v17 = vpop.permute.xlu0 %8272  ;;  %v8382_v15 = vmax.f32 %v8346_v61, 0.0 }
 0x5db   : > { %v8347_v13 = vadd.f32 %v8273_v17, %v16588_v55 }
 0x5dc   : > { %8486 = vrot.lane.b32.xlu1 %v8382_v15, %s10189_s21 }
 0x5dd   : > { %v8383_v51 = vmax.f32 %v8347_v13, 0.0 }
 0x5df   : > { %8488 = vrot.lane.b32.xlu0 %v8383_v51, %s10189_s21 }
 0x5e0   : > { %8490 = vrot.lane.b32.xlu1 %v8384_v16, %s10189_s21 }
 0x5e3   : > { %8492 = vrot.lane.b32.xlu0 %v8385_v62, %s10189_s21 }
 0x60d   : > { %v8427_v48 = vpop.permute.xlu1 %8426 }
 0x60e   : > { %8532 = vst.msk [vmem:[%s15217_s16 + $0x10] sm:$0xff] %vm16591_vm13, %v8427_v48  ;;  %v8429_v2 = vpop.permute.xlu0 %8428  ;;  %vm16606_vm13 = vmmov %vm15966_vm0 }
 0x60f   : > { %8533 = vst.msk [vmem:[%s15217_s16 + $0x18] sm:$0xff] %vm16592_vm11, %v8429_v2  ;;  %vm16607_vm11 = vmmov %vm15966_vm0 }
 0x611   : > { %v8423_v21 = vpop.permute.xlu1 %8422 }
 0x612   : > { %8530 = vst.msk [vmem:[%s15217_s16] sm:$0xff] %vm16593_vm3, %v8423_v21  ;;  %v8425_v22 = vpop.permute.xlu0 %8424  ;;  %vm16608_vm3 = vmmov %vm15966_vm0 }
 0x613   : > { %8531 = vst.msk [vmem:[%s15217_s16 + $0x8] sm:$0xff] %vm16594_vm15, %v8425_v22  ;;  %vm16609_vm15 = vmmov %vm15966_vm0 }
 0x615   : > { %v8435_v24 = vpop.permute.xlu1 %8434 }
 0x616   : > { %8536 = vst.msk [vmem:[%s15217_s16 + $0x30] sm:$0xff] %vm16595_vm4, %v8435_v24  ;;  %v8437_v31 = vpop.permute.xlu0 %8436  ;;  %vm16610_vm4 = vmmov %vm15966_vm0 }
 0x617   : > { %8537 = vst.msk [vmem:[%s15217_s16 + $0x38] sm:$0xff] %vm16596_vm14, %v8437_v31  ;;  %vm16611_vm14 = vmmov %vm15966_vm0 }
 0x619   : > { %v8431_v44 = vpop.permute.xlu1 %8430 }
 0x61a   : > { %8534 = vst.msk [vmem:[%s15217_s16 + $0x20] sm:$0xff] %vm16597_vm10, %v8431_v44  ;;  %v8433_v52 = vpop.permute.xlu0 %8432  ;;  %vm16612_vm10 = vmmov %vm15966_vm0 }
 0x61b   : > { %8535 = vst.msk [vmem:[%s15217_s16 + $0x28] sm:$0xff] %vm16598_vm9, %v8433_v52  ;;  %vm16613_vm9 = vmmov %vm15966_vm0 }
 0x61d   : > { %v8443_v47 = vpop.permute.xlu1 %8442 }
 0x61e   : > { %8540 = vst.msk [vmem:[%s15217_s16 + $0x50] sm:$0xff] %vm16599_vm2, %v8443_v47  ;;  %v8445_v8 = vpop.permute.xlu0 %8444  ;;  %vm16614_vm2 = vmmov %vm15966_vm0 }
 0x61f   : > { %8541 = vst.msk [vmem:[%s15217_s16 + $0x58] sm:$0xff] %vm16600_vm7, %v8445_v8  ;;  %vm16615_vm7 = vmmov %vm15966_vm0 }
 0x621   : > { %v8439_v12 = vpop.permute.xlu1 %8438 }
 0x622   : > { %8538 = vst.msk [vmem:[%s15217_s16 + $0x40] sm:$0xff] %vm15966_vm0, %v8439_v12  ;;  %v8441_v20 = vpop.permute.xlu0 %8440 }
 0x623   : > { %8539 = vst.msk [vmem:[%s15217_s16 + $0x48] sm:$0xff] %vm16601_vm8, %v8441_v20  ;;  %vm16616_vm8 = vmmov %vm15966_vm0 }
 0x625   : > { %v8451_v33 = vpop.permute.xlu1 %8450 }
 0x626   : > { %8544 = vst.msk [vmem:[%s15217_s16 + $0x70] sm:$0xff] %vm16602_vm5, %v8451_v33  ;;  %v8453_v42 = vpop.permute.xlu0 %8452  ;;  %vm16617_vm5 = vmmov %vm15966_vm0 }
 0x627   : > { %8545 = vst.msk [vmem:[%s15217_s16 + $0x78] sm:$0xff] %vm16603_vm12, %v8453_v42  ;;  %vm16618_vm12 = vmmov %vm15966_vm0 }
 0x629   : > { %v8447_v32 = vpop.permute.xlu1 %8446 }
 0x62a   : > { %8542 = vst.msk [vmem:[%s15217_s16 + $0x60] sm:$0xff] %vm16604_vm6, %v8447_v32  ;;  %v8449_v43 = vpop.permute.xlu0 %8448  ;;  %vm16619_vm6 = vmmov %vm15966_vm0 }
 0x62b   : > { %8543 = vst.msk [vmem:[%s15217_s16 + $0x68] sm:$0xff] %vm16605_vm1, %v8449_v43  ;;  %vm16620_vm1 = vmmov %vm15966_vm0 }
 0x62d   : > { %v8459_v29 = vpop.permute.xlu1 %8458 }
 0x62e   : > { %8548 = vst.msk [vmem:[%s15217_s16 + $0x90] sm:$0xff] %vm16606_vm13, %v8459_v29  ;;  %v8461_v54 = vpop.permute.xlu0 %8460  ;;  %vm16621_vm13 = vmmov %vm15966_vm0 }
 0x62f   : > { %8549 = vst.msk [vmem:[%s15217_s16 + $0x98] sm:$0xff] %vm16607_vm11, %v8461_v54  ;;  %vm16622_vm11 = vmmov %vm15966_vm0 }
 0x631   : > { %v8455_v58 = vpop.permute.xlu1 %8454 }
 0x632   : > { %8546 = vst.msk [vmem:[%s15217_s16 + $0x80] sm:$0xff] %vm16608_vm3, %v8455_v58  ;;  %v8457_v14 = vpop.permute.xlu0 %8456  ;;  %vm16623_vm3 = vmmov %vm15966_vm0 }
 0x633   : > { %8547 = vst.msk [vmem:[%s15217_s16 + $0x88] sm:$0xff] %vm16609_vm15, %v8457_v14  ;;  %vm16624_vm15 = vmmov %vm15966_vm0 }
 0x635   : > { %v8467_v11 = vpop.permute.xlu1 %8466 }
 0x636   : > { %8552 = vst.msk [vmem:[%s15217_s16 + $0xb0] sm:$0xff] %vm16610_vm4, %v8467_v11  ;;  %v8469_v38 = vpop.permute.xlu0 %8468 }
 0x637   : > { %8553 = vst.msk [vmem:[%s15217_s16 + $0xb8] sm:$0xff] %vm16611_vm14, %v8469_v38 }
 0x639   : > { %v8463_v23 = vpop.permute.xlu1 %8462 }
 0x63a   : > { %8550 = vst.msk [vmem:[%s15217_s16 + $0xa0] sm:$0xff] %vm16612_vm10, %v8463_v23  ;;  %v8465_v4 = vpop.permute.xlu0 %8464 }
 0x63b   : > { %8551 = vst.msk [vmem:[%s15217_s16 + $0xa8] sm:$0xff] %vm16613_vm9, %v8465_v4 }
 0x63d   : > { %v8475_v7 = vpop.permute.xlu1 %8474 }
 0x63e   : > { %8556 = vst.msk [vmem:[%s15217_s16 + $0xd0] sm:$0xff] %vm16614_vm2, %v8475_v7  ;;  %v8477_v41 = vpop.permute.xlu0 %8476 }
 0x63f   : > { %8557 = vst.msk [vmem:[%s15217_s16 + $0xd8] sm:$0xff] %vm16615_vm7, %v8477_v41 }
 0x641   : > { %v8471_v39 = vpop.permute.xlu1 %8470 }
 0x642   : > { %8554 = vst.msk [vmem:[%s15217_s16 + $0xc0] sm:$0xff] %vm15966_vm0, %v8471_v39  ;;  %v8473_v6 = vpop.permute.xlu0 %8472 }
 0x643   : > { %8555 = vst.msk [vmem:[%s15217_s16 + $0xc8] sm:$0xff] %vm16616_vm8, %v8473_v6 }
 0x645   : > { %v8483_v46 = vpop.permute.xlu1 %8482 }
 0x646   : > { %8560 = vst.msk [vmem:[%s15217_s16 + $0xf0] sm:$0xff] %vm16617_vm5, %v8483_v46  ;;  %v8485_v25 = vpop.permute.xlu0 %8484 }
 0x647   : > { %8561 = vst.msk [vmem:[%s15217_s16 + $0xf8] sm:$0xff] %vm16618_vm12, %v8485_v25 }
 0x649   : > { %v8479_v35 = vpop.permute.xlu1 %8478 }
 0x64a   : > { %8558 = vst.msk [vmem:[%s15217_s16 + $0xe0] sm:$0xff] %vm16619_vm6, %v8479_v35  ;;  %v8481_v27 = vpop.permute.xlu0 %8480 }
 0x64b   : > { %8559 = vst.msk [vmem:[%s15217_s16 + $0xe8] sm:$0xff] %vm16620_vm1, %v8481_v27 }
 0x64e   : > { %v8487_v56 = vpop.permute.xlu1 %8486 }
 0x64f   : > { %8562 = vst.msk [vmem:[%s15217_s16 + $0x100] sm:$0xff] %vm16621_vm13, %v8487_v56 }
 0x651   : > { %v8489_v3 = vpop.permute.xlu0 %8488 }
 0x652   : > { %8563 = vst.msk [vmem:[%s15217_s16 + $0x108] sm:$0xff] %vm16622_vm11, %v8489_v3  ;;  %v8491_v49 = vpop.permute.xlu1 %8490 }
 0x653   : > { %8564 = vst.msk [vmem:[%s15217_s16 + $0x110] sm:$0xff] %vm16623_vm3, %v8491_v49 }
 0x655   : > { %v8493_v26 = vpop.permute.xlu0 %8492 }
 0x656   : > { %8565 = vst.msk [vmem:[%s15217_s16 + $0x118] sm:$0xff] %vm16624_vm15, %v8493_v26 }
 0x657 PF: > { %s15_s18 = sadd.s32 1, %s10185_s18  }
 0x658   : > { %p12_p4 = scmp.ge.s32.totalorder %s15_s18, 4  }
 0x65a   :  { %14 = sbr.rel (!%p12_p4) target bundleno = 1 (0x1), region = 86 }

</bundles_post_ra>
